<compile_context>
chip_gen: v7x
topology: tpu7x:2x2x1
jax: 0.10.0
libtpu: 0.0.40
codegen_flags: <defaults>
</compile_context>

<pallas_src>
import numpy as np
import jax
import jax.numpy as jnp
from jax.experimental import pallas as pl
from jax.experimental.pallas import tpu as pltpu


# ----------------------------------------------------------------------------
# One-time, host-side parameter preprocessing
# ----------------------------------------------------------------------------
# Each conv is re-expressed as:   conv_row(i) = sum_kh  x_pad[i+kh, :] @ A[kh]
# where the columns of A are ordered [even output W columns | odd output W
# columns] so the 2x2 maxpool over W becomes max(row[:half], row[half:]).

def _build_conv1_mats(w_t, b):
    """w_t: (16,1,3,3) torch-layout conv1 weight; b: (16,)."""
    w = np.asarray(w_t, np.float32)[:, 0]            # (co, kh, kw)
    Wo, C = 30, 16
    half = (Wo // 2) * C                              # 240
    A = np.zeros((3, 32, Wo * C), np.float32)         # K = padded width 32
    for kh in range(3):
        for kw in range(3):
            for j in range(Wo):
                col = (j // 2) * C + (0 if j % 2 == 0 else half)
                A[kh, j + kw, col:col + C] = w[:, kh, kw]
    bias = np.tile(np.asarray(b, np.float32), Wo).reshape(1, Wo * C)
    return A, bias


def _build_conv2_mats(w_t, b):
    """w_t: (32,16,3,3) torch-layout conv2 weight; b: (32,)."""
    w = np.asarray(w_t, np.float32)                   # (co, c, kh, kw)
    Wu, Cin, Cout = 14, 16, 32                        # only W cols 0..13 survive the pool
    half = (Wu // 2) * Cout                           # 224
    A = np.zeros((3, 17 * Cin, Wu * Cout), np.float32)   # K = 272
    for kh in range(3):
        for kw in range(3):
            for j in range(Wu):
                col = (j // 2) * Cout + (0 if j % 2 == 0 else half)
                r0 = (j + kw) * Cin
                A[kh, r0:r0 + Cin, col:col + Cout] = w[:, :, kh, kw].T   # (c, co)
    bias = np.tile(np.asarray(b, np.float32), Wu).reshape(1, Wu * Cout)
    return A, bias


def _fc1_row_permutation():
    """Our pooled NHWC flat index (h*224 + w*32 + c) -> torch NCHW flatten index."""
    perm = np.zeros(7 * 7 * 32, np.int64)
    for h in range(7):
        for w in range(7):
            for c in range(32):
                perm[h * 224 + w * 32 + c] = c * 49 + h * 7 + w
    return perm


def prepare_params(params):
    """Fold conv weights into banded matmul matrices and fold the torch
    NCHW-flatten permutation into fc1's weight rows (one-time, host-side)."""
    A1, b1 = _build_conv1_mats(params["conv1_w"], params["conv1_b"])
    A2, b2 = _build_conv2_mats(params["conv2_w"], params["conv2_b"])
    fc1_w = np.asarray(params["fc1_w"], np.float32).T[_fc1_row_permutation()]
    return {
        "A1": jnp.asarray(A1), "bias1": jnp.asarray(b1),
        "A2": jnp.asarray(A2), "bias2": jnp.asarray(b2),
        "fc1_w": jnp.asarray(fc1_w),                                       # (1568, 512)
        "fc1_b": jnp.asarray(params["fc1_b"], jnp.float32).reshape(1, 512),
        "fc2_w": jnp.asarray(np.asarray(params["fc2_w"], np.float32).T),   # (512, 8)
        "fc2_b": jnp.asarray(params["fc2_b"], jnp.float32).reshape(1, 8),
    }


# ----------------------------------------------------------------------------
# Pallas kernels
# ----------------------------------------------------------------------------

def _features_kernel(x_ref, a1_ref, b1_ref, a2_ref, b2_ref, o_ref,
                     y1_scr, xp2_scr, y2_scr):
    """Per-image fused: conv1 + ReLU + pool -> (zero-pad) -> conv2 + ReLU + pool."""
    # ---- conv1: (30,32) @ (32,480) x3, accumulate; + bias; ReLU ----
    y = jnp.dot(x_ref[0, 0:30, :], a1_ref[0], preferred_element_type=jnp.float32)
    y = y + jnp.dot(x_ref[0, 1:31, :], a1_ref[1], preferred_element_type=jnp.float32)
    y = y + jnp.dot(x_ref[0, 2:32, :], a1_ref[2], preferred_element_type=jnp.float32)
    y1_scr[...] = jnp.maximum(y + b1_ref[...], 0.0)                  # (30, 480)

    # ---- 2x2 maxpool, written into the interior of a zeroed (17, 272) buffer
    #      which is exactly conv2's pad=1 input (padding fused away). ----
    xp2_scr[...] = jnp.zeros_like(xp2_scr)
    for p in range(15):
        r = jnp.maximum(y1_scr[2 * p, :], y1_scr[2 * p + 1, :])      # H-pool, (480,)
        xp2_scr[p + 1, 16:256] = jnp.maximum(r[:240], r[240:])       # W-pool, (240,)

    # ---- conv2: (15,272) @ (272,448) x3, accumulate; + bias; ReLU ----
    y = jnp.dot(xp2_scr[0:15, :], a2_ref[0], preferred_element_type=jnp.float32)
    y = y + jnp.dot(xp2_scr[1:16, :], a2_ref[1], preferred_element_type=jnp.float32)
    y = y + jnp.dot(xp2_scr[2:17, :], a2_ref[2], preferred_element_type=jnp.float32)
    y2_scr[...] = jnp.maximum(y + b2_ref[...], 0.0)                  # (15, 448)

    # ---- 2x2 maxpool (floor mode: row/col 14 dropped) -> pooled NHWC rows ----
    for p in range(7):
        r = jnp.maximum(y2_scr[2 * p, :], y2_scr[2 * p + 1, :])      # (448,)
        o_ref[0, p, :] = jnp.maximum(r[:224], r[224:])               # (224,)


def _classifier_kernel(x_ref, w1_ref, b1_ref, w2_ref, b2_ref, o_ref):
    """fc1 -> fc2 fused; the (B,512) hidden never leaves VMEM."""
    z = jnp.dot(x_ref[...], w1_ref[...], preferred_element_type=jnp.float32)
    z = z + b1_ref[...]
    out = jnp.dot(z, w2_ref[...], preferred_element_type=jnp.float32) + b2_ref[...]
    o_ref[...] = out.astype(o_ref.dtype)


# ----------------------------------------------------------------------------
# Forward pass
# ----------------------------------------------------------------------------

def classical_model_forward(x_nchw, prep):
    B = x_nchw.shape[0]
    # Cin == 1: squeeze the channel and apply conv1's pad=2 once (tiny glue op).
    xpad = jnp.pad(x_nchw.reshape(B, 28, 28).astype(jnp.float32),
                   ((0, 0), (2, 2), (2, 2)))                         # (B, 32, 32)

    feats = pl.pallas_call(
        _features_kernel,
        out_shape=jax.ShapeDtypeStruct((B, 7, 224), jnp.float32),
        grid=(B,),
        in_specs=[
            pl.BlockSpec((1, 32, 32), lambda b: (b, 0, 0)),
            pl.BlockSpec((3, 32, 480), lambda b: (0, 0, 0)),
            pl.BlockSpec((1, 480), lambda b: (0, 0)),
            pl.BlockSpec((3, 272, 448), lambda b: (0, 0, 0)),
            pl.BlockSpec((1, 448), lambda b: (0, 0)),
        ],
        out_specs=pl.BlockSpec((1, 7, 224), lambda b: (b, 0, 0)),
        scratch_shapes=[
            pltpu.VMEM((30, 480), jnp.float32),   # conv1 output (pre-pool)
            pltpu.VMEM((17, 272), jnp.float32),   # pooled + zero-padded conv2 input
            pltpu.VMEM((15, 448), jnp.float32),   # conv2 output (pre-pool)
        ],
        compiler_params=pltpu.CompilerParams(
            dimension_semantics=("parallel",)),
    )(xpad, prep["A1"], prep["bias1"], prep["A2"], prep["bias2"])

    flat = feats.reshape(B, 32 * 7 * 7)   # already in the row order fc1_w expects

    # TODO(synk): for large batches, tile the M (batch) axis of the classifier;
    # at the small batches this model is used with, a single block is optimal.
    out = pl.pallas_call(
        _classifier_kernel,
        out_shape=jax.ShapeDtypeStruct((B, 8), jnp.float32),
        grid=(1,),
        in_specs=[
            pl.BlockSpec((B, 1568), lambda i: (0, 0)),
            pl.BlockSpec((1568, 512), lambda i: (0, 0)),
            pl.BlockSpec((1, 512), lambda i: (0, 0)),
            pl.BlockSpec((512, 8), lambda i: (0, 0)),
            pl.BlockSpec((1, 8), lambda i: (0, 0)),
        ],
        out_specs=pl.BlockSpec((B, 8), lambda i: (0, 0)),
    )(flat, prep["fc1_w"], prep["fc1_b"], prep["fc2_w"], prep["fc2_b"])
    return out


# ----------------------------------------------------------------------------
# Init + plain-JAX reference (validation) + driver
# ----------------------------------------------------------------------------

def init_params(key):
    """PyTorch-style uniform(-1/sqrt(fan_in), 1/sqrt(fan_in)) init, torch layouts."""
    ks = jax.random.split(key, 8)

    def u(k, shape, fan_in):
        bound = 1.0 / float(fan_in) ** 0.5
        return jax.random.uniform(k, shape, jnp.float32, -bound, bound)

    return {
        "conv1_w": u(ks[0], (16, 1, 3, 3), 9),
        "conv1_b": u(ks[1], (16,), 9),
        "conv2_w": u(ks[2], (32, 16, 3, 3), 16 * 9),
        "conv2_b": u(ks[3], (32,), 16 * 9),
        "fc1_w":   u(ks[4], (512, 1568), 1568),
        "fc1_b":   u(ks[5], (512,), 1568),
        "fc2_w":   u(ks[6], (8, 512), 512),
        "fc2_b":   u(ks[7], (8,), 512),
    }


def _reference_forward(x_nchw, params):
    """Plain-JAX replica of the PyTorch module, for validation only."""
    hi = jax.lax.Precision.HIGHEST
    x = jnp.transpose(x_nchw, (0, 2, 3, 1)).astype(jnp.float32)      # NHWC

    def conv(t, w_t, b, pad):
        t = jnp.pad(t, ((0, 0), (pad, pad), (pad, pad), (0, 0)))
        Ho, Wo = t.shape[1] - 2, t.shape[2] - 2
        out = jnp.zeros(t.shape[:1] + (Ho, Wo, w_t.shape[0]), jnp.float32) + b
        for kh in range(3):
            for kw in range(3):
                out = out + jnp.einsum("bhwc,oc->bhwo",
                                       t[:, kh:kh + Ho, kw:kw + Wo, :],
                                       w_t[:, :, kh, kw], precision=hi)
        return out

    def pool(t):
        B, H, W, C = t.shape
        Ho, Wo = H // 2, W // 2
        return t[:, :2 * Ho, :2 * Wo, :].reshape(B, Ho, 2, Wo, 2, C).max(axis=(2, 4))

    h = pool(jnp.maximum(conv(x, params["conv1_w"], params["conv1_b"], 2), 0.0))
    h = pool(jnp.maximum(conv(h, params["conv2_w"], params["conv2_b"], 1), 0.0))
    flat = jnp.transpose(h, (0, 3, 1, 2)).reshape(x.shape[0], -1)    # torch flatten(x, 1)
    z = jnp.dot(flat, params["fc1_w"].T, precision=hi) + params["fc1_b"]
    return jnp.dot(z, params["fc2_w"].T, precision=hi) + params["fc2_b"]


if __name__ == "__main__":
    key = jax.random.PRNGKey(0)
    k_param, k_input = jax.random.split(key)

    params = init_params(k_param)
    prep = prepare_params(params)                      # one-time host-side prep
    # Input implied by the module: 1 channel, 28x28 (so 32*7*7 matches fc1).
    x = jax.random.normal(k_input, (2, 1, 28, 28), dtype=jnp.float32)

    fwd = jax.jit(classical_model_forward)
    y = jax.block_until_ready(fwd(x, prep))

    assert y.shape == (2, 8), y.shape
    assert bool(jnp.all(jnp.isfinite(y)))

    # Validate against the plain-JAX replica of the PyTorch forward.
    y_ref = jax.block_until_ready(_reference_forward(x, params))
    np.testing.assert_allclose(np.asarray(y), np.asarray(y_ref), rtol=2e-2, atol=2e-2)

    print("KERNEL_OK")
</pallas_src>

<mosaic_0001>
module attributes {stable_mosaic.version = 11 : i64} {
  func.func @_features_kernel(%arg0: i32, %arg1: memref<1x32x32xf32, #tpu.memory_space<vmem>>, %arg2: memref<3x32x480xf32, #tpu.memory_space<vmem>>, %arg3: memref<1x480xf32, #tpu.memory_space<vmem>>, %arg4: memref<3x272x448xf32, #tpu.memory_space<vmem>>, %arg5: memref<1x448xf32, #tpu.memory_space<vmem>>, %arg6: memref<1x7x224xf32, #tpu.memory_space<vmem>>, %arg7: memref<30x480xf32, #tpu.memory_space<vmem>>, %arg8: memref<17x272xf32, #tpu.memory_space<vmem>>, %arg9: memref<15x448xf32, #tpu.memory_space<vmem>>) attributes {dimension_semantics = [#tpu.dimension_semantics<parallel>], iteration_bounds = array<i64: 2>, scalar_prefetch = 0 : i64, scratch_operands = 3 : i64, tpu.core_type = #tpu.core_type<tc>, window_params = [{transform_indices = @transform_0, window_bounds = array<i64: 1, 32, 32>}, {pipeline_mode = #tpu.pipeline_mode<synchronous>, transform_indices = @transform_1, window_bounds = array<i64: 3, 32, 480>}, {pipeline_mode = #tpu.pipeline_mode<synchronous>, transform_indices = @transform_2, window_bounds = array<i64: 1, 480>}, {pipeline_mode = #tpu.pipeline_mode<synchronous>, transform_indices = @transform_3, window_bounds = array<i64: 3, 272, 448>}, {pipeline_mode = #tpu.pipeline_mode<synchronous>, transform_indices = @transform_4, window_bounds = array<i64: 1, 448>}, {transform_indices = @transform_5, window_bounds = array<i64: 1, 7, 224>}]} {
    %c0 = arith.constant 0 : index
    %c0_0 = arith.constant 0 : index
    %c0_1 = arith.constant 0 : index
    %0 = vector.load %arg1[%c0, %c0_0, %c0_1] : memref<1x32x32xf32, #tpu.memory_space<vmem>>, vector<1x30x32xf32>
    %1 = vector.shape_cast %0 : vector<1x30x32xf32> to vector<30x32xf32>
    %c0_2 = arith.constant 0 : index
    %c0_3 = arith.constant 0 : index
    %c0_4 = arith.constant 0 : index
    %2 = vector.load %arg2[%c0_2, %c0_3, %c0_4] : memref<3x32x480xf32, #tpu.memory_space<vmem>>, vector<1x32x480xf32>
    %3 = vector.shape_cast %2 : vector<1x32x480xf32> to vector<32x480xf32>
    %cst = arith.constant dense<0.000000e+00> : vector<30x480xf32>
    %4 = tpu.matmul %1, %3, %cst {dimension_numbers = #tpu.dot_dimension_numbers<[1], [0], [0], [1], [0, 0, 1, 1], [], []>} : vector<30x32xf32>, vector<32x480xf32>, vector<30x480xf32> -> vector<30x480xf32>
    %c0_5 = arith.constant 0 : index
    %c1 = arith.constant 1 : index
    %c0_6 = arith.constant 0 : index
    %5 = vector.load %arg1[%c0_5, %c1, %c0_6] : memref<1x32x32xf32, #tpu.memory_space<vmem>>, vector<1x30x32xf32>
    %6 = vector.shape_cast %5 : vector<1x30x32xf32> to vector<30x32xf32>
    %c1_7 = arith.constant 1 : index
    %c0_8 = arith.constant 0 : index
    %c0_9 = arith.constant 0 : index
    %7 = vector.load %arg2[%c1_7, %c0_8, %c0_9] : memref<3x32x480xf32, #tpu.memory_space<vmem>>, vector<1x32x480xf32>
    %8 = vector.shape_cast %7 : vector<1x32x480xf32> to vector<32x480xf32>
    %cst_10 = arith.constant dense<0.000000e+00> : vector<30x480xf32>
    %9 = tpu.matmul %6, %8, %cst_10 {dimension_numbers = #tpu.dot_dimension_numbers<[1], [0], [0], [1], [0, 0, 1, 1], [], []>} : vector<30x32xf32>, vector<32x480xf32>, vector<30x480xf32> -> vector<30x480xf32>
    %10 = arith.addf %4, %9 : vector<30x480xf32>
    %c0_11 = arith.constant 0 : index
    %c2 = arith.constant 2 : index
    %c0_12 = arith.constant 0 : index
    %11 = vector.load %arg1[%c0_11, %c2, %c0_12] : memref<1x32x32xf32, #tpu.memory_space<vmem>>, vector<1x30x32xf32>
    %12 = vector.shape_cast %11 : vector<1x30x32xf32> to vector<30x32xf32>
    %c2_13 = arith.constant 2 : index
    %c0_14 = arith.constant 0 : index
    %c0_15 = arith.constant 0 : index
    %13 = vector.load %arg2[%c2_13, %c0_14, %c0_15] : memref<3x32x480xf32, #tpu.memory_space<vmem>>, vector<1x32x480xf32>
    %14 = vector.shape_cast %13 : vector<1x32x480xf32> to vector<32x480xf32>
    %cst_16 = arith.constant dense<0.000000e+00> : vector<30x480xf32>
    %15 = tpu.matmul %12, %14, %cst_16 {dimension_numbers = #tpu.dot_dimension_numbers<[1], [0], [0], [1], [0, 0, 1, 1], [], []>} : vector<30x32xf32>, vector<32x480xf32>, vector<30x480xf32> -> vector<30x480xf32>
    %16 = arith.addf %10, %15 : vector<30x480xf32>
    %c0_17 = arith.constant 0 : index
    %c0_18 = arith.constant 0 : index
    %17 = vector.load %arg3[%c0_17, %c0_18] : memref<1x480xf32, #tpu.memory_space<vmem>>, vector<1x480xf32>
    %18 = vector.broadcast %17 : vector<1x480xf32> to vector<30x480xf32>
    %19 = arith.addf %16, %18 : vector<30x480xf32>
    %cst_19 = arith.constant 0.000000e+00 : f32
    %20 = vector.broadcast %cst_19 : f32 to vector<30x480xf32>
    %21 = arith.maximumf %19, %20 : vector<30x480xf32>
    %c0_20 = arith.constant 0 : index
    %c0_21 = arith.constant 0 : index
    %22 = vector.load %arg7[%c0_20, %c0_21] : memref<30x480xf32, #tpu.memory_space<vmem>>, vector<30x480xf32>
    tpu.vector_store %arg7[%c0_20, %c0_21], %21 {strides = array<i32>} : memref<30x480xf32, #tpu.memory_space<vmem>>, vector<30x480xf32>,
    %cst_22 = arith.constant 0.000000e+00 : f32
    %23 = vector.broadcast %cst_22 : f32 to vector<17x272xf32>
    %c0_23 = arith.constant 0 : index
    %c0_24 = arith.constant 0 : index
    %24 = vector.load %arg8[%c0_23, %c0_24] : memref<17x272xf32, #tpu.memory_space<vmem>>, vector<17x272xf32>
    tpu.vector_store %arg8[%c0_23, %c0_24], %23 {strides = array<i32>} : memref<17x272xf32, #tpu.memory_space<vmem>>, vector<17x272xf32>,
    %c0_25 = arith.constant 0 : index
    %c0_26 = arith.constant 0 : index
    %25 = vector.load %arg7[%c0_25, %c0_26] : memref<30x480xf32, #tpu.memory_space<vmem>>, vector<1x480xf32>
    %26 = vector.shape_cast %25 : vector<1x480xf32> to vector<480xf32>
    %c1_27 = arith.constant 1 : index
    %c0_28 = arith.constant 0 : index
    %27 = vector.load %arg7[%c1_27, %c0_28] : memref<30x480xf32, #tpu.memory_space<vmem>>, vector<1x480xf32>
    %28 = vector.shape_cast %27 : vector<1x480xf32> to vector<480xf32>
    %29 = arith.maximumf %26, %28 : vector<480xf32>
    %30 = vector.extract_strided_slice %29 {offsets = [0], sizes = [240], strides = [1]} : vector<480xf32> to vector<240xf32>
    %31 = vector.extract_strided_slice %29 {offsets = [240], sizes = [240], strides = [1]} : vector<480xf32> to vector<240xf32>
    %32 = arith.maximumf %30, %31 : vector<240xf32>
    %c1_29 = arith.constant 1 : index
    %c16 = arith.constant 16 : index
    %33 = vector.load %arg8[%c1_29, %c16] : memref<17x272xf32, #tpu.memory_space<vmem>>, vector<1x240xf32>
    %34 = vector.shape_cast %33 : vector<1x240xf32> to vector<240xf32>
    %35 = vector.shape_cast %32 : vector<240xf32> to vector<1x240xf32>
    tpu.vector_store %arg8[%c1_29, %c16], %35 {strides = array<i32>} : memref<17x272xf32, #tpu.memory_space<vmem>>, vector<1x240xf32>,
    %c2_30 = arith.constant 2 : index
    %c0_31 = arith.constant 0 : index
    %36 = vector.load %arg7[%c2_30, %c0_31] : memref<30x480xf32, #tpu.memory_space<vmem>>, vector<1x480xf32>
    %37 = vector.shape_cast %36 : vector<1x480xf32> to vector<480xf32>
    %c3 = arith.constant 3 : index
    %c0_32 = arith.constant 0 : index
    %38 = vector.load %arg7[%c3, %c0_32] : memref<30x480xf32, #tpu.memory_space<vmem>>, vector<1x480xf32>
    %39 = vector.shape_cast %38 : vector<1x480xf32> to vector<480xf32>
    %40 = arith.maximumf %37, %39 : vector<480xf32>
    %41 = vector.extract_strided_slice %40 {offsets = [0], sizes = [240], strides = [1]} : vector<480xf32> to vector<240xf32>
    %42 = vector.extract_strided_slice %40 {offsets = [240], sizes = [240], strides = [1]} : vector<480xf32> to vector<240xf32>
    %43 = arith.maximumf %41, %42 : vector<240xf32>
    %c2_33 = arith.constant 2 : index
    %c16_34 = arith.constant 16 : index
    %44 = vector.load %arg8[%c2_33, %c16_34] : memref<17x272xf32, #tpu.memory_space<vmem>>, vector<1x240xf32>
    %45 = vector.shape_cast %44 : vector<1x240xf32> to vector<240xf32>
    %46 = vector.shape_cast %43 : vector<240xf32> to vector<1x240xf32>
    tpu.vector_store %arg8[%c2_33, %c16_34], %46 {strides = array<i32>} : memref<17x272xf32, #tpu.memory_space<vmem>>, vector<1x240xf32>,
    %c4 = arith.constant 4 : index
    %c0_35 = arith.constant 0 : index
    %47 = vector.load %arg7[%c4, %c0_35] : memref<30x480xf32, #tpu.memory_space<vmem>>, vector<1x480xf32>
    %48 = vector.shape_cast %47 : vector<1x480xf32> to vector<480xf32>
    %c5 = arith.constant 5 : index
    %c0_36 = arith.constant 0 : index
    %49 = vector.load %arg7[%c5, %c0_36] : memref<30x480xf32, #tpu.memory_space<vmem>>, vector<1x480xf32>
    %50 = vector.shape_cast %49 : vector<1x480xf32> to vector<480xf32>
    %51 = arith.maximumf %48, %50 : vector<480xf32>
    %52 = vector.extract_strided_slice %51 {offsets = [0], sizes = [240], strides = [1]} : vector<480xf32> to vector<240xf32>
    %53 = vector.extract_strided_slice %51 {offsets = [240], sizes = [240], strides = [1]} : vector<480xf32> to vector<240xf32>
    %54 = arith.maximumf %52, %53 : vector<240xf32>
    %c3_37 = arith.constant 3 : index
    %c16_38 = arith.constant 16 : index
    %55 = vector.load %arg8[%c3_37, %c16_38] : memref<17x272xf32, #tpu.memory_space<vmem>>, vector<1x240xf32>
    %56 = vector.shape_cast %55 : vector<1x240xf32> to vector<240xf32>
    %57 = vector.shape_cast %54 : vector<240xf32> to vector<1x240xf32>
    tpu.vector_store %arg8[%c3_37, %c16_38], %57 {strides = array<i32>} : memref<17x272xf32, #tpu.memory_space<vmem>>, vector<1x240xf32>,
    %c6 = arith.constant 6 : index
    %c0_39 = arith.constant 0 : index
    %58 = vector.load %arg7[%c6, %c0_39] : memref<30x480xf32, #tpu.memory_space<vmem>>, vector<1x480xf32>
    %59 = vector.shape_cast %58 : vector<1x480xf32> to vector<480xf32>
    %c7 = arith.constant 7 : index
    %c0_40 = arith.constant 0 : index
    %60 = vector.load %arg7[%c7, %c0_40] : memref<30x480xf32, #tpu.memory_space<vmem>>, vector<1x480xf32>
    %61 = vector.shape_cast %60 : vector<1x480xf32> to vector<480xf32>
    %62 = arith.maximumf %59, %61 : vector<480xf32>
    %63 = vector.extract_strided_slice %62 {offsets = [0], sizes = [240], strides = [1]} : vector<480xf32> to vector<240xf32>
    %64 = vector.extract_strided_slice %62 {offsets = [240], sizes = [240], strides = [1]} : vector<480xf32> to vector<240xf32>
    %65 = arith.maximumf %63, %64 : vector<240xf32>
    %c4_41 = arith.constant 4 : index
    %c16_42 = arith.constant 16 : index
    %66 = vector.load %arg8[%c4_41, %c16_42] : memref<17x272xf32, #tpu.memory_space<vmem>>, vector<1x240xf32>
    %67 = vector.shape_cast %66 : vector<1x240xf32> to vector<240xf32>
    %68 = vector.shape_cast %65 : vector<240xf32> to vector<1x240xf32>
    tpu.vector_store %arg8[%c4_41, %c16_42], %68 {strides = array<i32>} : memref<17x272xf32, #tpu.memory_space<vmem>>, vector<1x240xf32>,
    %c8 = arith.constant 8 : index
    %c0_43 = arith.constant 0 : index
    %69 = vector.load %arg7[%c8, %c0_43] : memref<30x480xf32, #tpu.memory_space<vmem>>, vector<1x480xf32>
    %70 = vector.shape_cast %69 : vector<1x480xf32> to vector<480xf32>
    %c9 = arith.constant 9 : index
    %c0_44 = arith.constant 0 : index
    %71 = vector.load %arg7[%c9, %c0_44] : memref<30x480xf32, #tpu.memory_space<vmem>>, vector<1x480xf32>
    %72 = vector.shape_cast %71 : vector<1x480xf32> to vector<480xf32>
    %73 = arith.maximumf %70, %72 : vector<480xf32>
    %74 = vector.extract_strided_slice %73 {offsets = [0], sizes = [240], strides = [1]} : vector<480xf32> to vector<240xf32>
    %75 = vector.extract_strided_slice %73 {offsets = [240], sizes = [240], strides = [1]} : vector<480xf32> to vector<240xf32>
    %76 = arith.maximumf %74, %75 : vector<240xf32>
    %c5_45 = arith.constant 5 : index
    %c16_46 = arith.constant 16 : index
    %77 = vector.load %arg8[%c5_45, %c16_46] : memref<17x272xf32, #tpu.memory_space<vmem>>, vector<1x240xf32>
    %78 = vector.shape_cast %77 : vector<1x240xf32> to vector<240xf32>
    %79 = vector.shape_cast %76 : vector<240xf32> to vector<1x240xf32>
    tpu.vector_store %arg8[%c5_45, %c16_46], %79 {strides = array<i32>} : memref<17x272xf32, #tpu.memory_space<vmem>>, vector<1x240xf32>,
    %c10 = arith.constant 10 : index
    %c0_47 = arith.constant 0 : index
    %80 = vector.load %arg7[%c10, %c0_47] : memref<30x480xf32, #tpu.memory_space<vmem>>, vector<1x480xf32>
    %81 = vector.shape_cast %80 : vector<1x480xf32> to vector<480xf32>
    %c11 = arith.constant 11 : index
    %c0_48 = arith.constant 0 : index
    %82 = vector.load %arg7[%c11, %c0_48] : memref<30x480xf32, #tpu.memory_space<vmem>>, vector<1x480xf32>
    %83 = vector.shape_cast %82 : vector<1x480xf32> to vector<480xf32>
    %84 = arith.maximumf %81, %83 : vector<480xf32>
    %85 = vector.extract_strided_slice %84 {offsets = [0], sizes = [240], strides = [1]} : vector<480xf32> to vector<240xf32>
    %86 = vector.extract_strided_slice %84 {offsets = [240], sizes = [240], strides = [1]} : vector<480xf32> to vector<240xf32>
    %87 = arith.maximumf %85, %86 : vector<240xf32>
    %c6_49 = arith.constant 6 : index
    %c16_50 = arith.constant 16 : index
    %88 = vector.load %arg8[%c6_49, %c16_50] : memref<17x272xf32, #tpu.memory_space<vmem>>, vector<1x240xf32>
    %89 = vector.shape_cast %88 : vector<1x240xf32> to vector<240xf32>
    %90 = vector.shape_cast %87 : vector<240xf32> to vector<1x240xf32>
    tpu.vector_store %arg8[%c6_49, %c16_50], %90 {strides = array<i32>} : memref<17x272xf32, #tpu.memory_space<vmem>>, vector<1x240xf32>,
    %c12 = arith.constant 12 : index
    %c0_51 = arith.constant 0 : index
    %91 = vector.load %arg7[%c12, %c0_51] : memref<30x480xf32, #tpu.memory_space<vmem>>, vector<1x480xf32>
    %92 = vector.shape_cast %91 : vector<1x480xf32> to vector<480xf32>
    %c13 = arith.constant 13 : index
    %c0_52 = arith.constant 0 : index
    %93 = vector.load %arg7[%c13, %c0_52] : memref<30x480xf32, #tpu.memory_space<vmem>>, vector<1x480xf32>
    %94 = vector.shape_cast %93 : vector<1x480xf32> to vector<480xf32>
    %95 = arith.maximumf %92, %94 : vector<480xf32>
    %96 = vector.extract_strided_slice %95 {offsets = [0], sizes = [240], strides = [1]} : vector<480xf32> to vector<240xf32>
    %97 = vector.extract_strided_slice %95 {offsets = [240], sizes = [240], strides = [1]} : vector<480xf32> to vector<240xf32>
    %98 = arith.maximumf %96, %97 : vector<240xf32>
    %c7_53 = arith.constant 7 : index
    %c16_54 = arith.constant 16 : index
    %99 = vector.load %arg8[%c7_53, %c16_54] : memref<17x272xf32, #tpu.memory_space<vmem>>, vector<1x240xf32>
    %100 = vector.shape_cast %99 : vector<1x240xf32> to vector<240xf32>
    %101 = vector.shape_cast %98 : vector<240xf32> to vector<1x240xf32>
    tpu.vector_store %arg8[%c7_53, %c16_54], %101 {strides = array<i32>} : memref<17x272xf32, #tpu.memory_space<vmem>>, vector<1x240xf32>,
    %c14 = arith.constant 14 : index
    %c0_55 = arith.constant 0 : index
    %102 = vector.load %arg7[%c14, %c0_55] : memref<30x480xf32, #tpu.memory_space<vmem>>, vector<1x480xf32>
    %103 = vector.shape_cast %102 : vector<1x480xf32> to vector<480xf32>
    %c15 = arith.constant 15 : index
    %c0_56 = arith.constant 0 : index
    %104 = vector.load %arg7[%c15, %c0_56] : memref<30x480xf32, #tpu.memory_space<vmem>>, vector<1x480xf32>
    %105 = vector.shape_cast %104 : vector<1x480xf32> to vector<480xf32>
    %106 = arith.maximumf %103, %105 : vector<480xf32>
    %107 = vector.extract_strided_slice %106 {offsets = [0], sizes = [240], strides = [1]} : vector<480xf32> to vector<240xf32>
    %108 = vector.extract_strided_slice %106 {offsets = [240], sizes = [240], strides = [1]} : vector<480xf32> to vector<240xf32>
    %109 = arith.maximumf %107, %108 : vector<240xf32>
    %c8_57 = arith.constant 8 : index
    %c16_58 = arith.constant 16 : index
    %110 = vector.load %arg8[%c8_57, %c16_58] : memref<17x272xf32, #tpu.memory_space<vmem>>, vector<1x240xf32>
    %111 = vector.shape_cast %110 : vector<1x240xf32> to vector<240xf32>
    %112 = vector.shape_cast %109 : vector<240xf32> to vector<1x240xf32>
    tpu.vector_store %arg8[%c8_57, %c16_58], %112 {strides = array<i32>} : memref<17x272xf32, #tpu.memory_space<vmem>>, vector<1x240xf32>,
    %c16_59 = arith.constant 16 : index
    %c0_60 = arith.constant 0 : index
    %113 = vector.load %arg7[%c16_59, %c0_60] : memref<30x480xf32, #tpu.memory_space<vmem>>, vector<1x480xf32>
    %114 = vector.shape_cast %113 : vector<1x480xf32> to vector<480xf32>
    %c17 = arith.constant 17 : index
    %c0_61 = arith.constant 0 : index
    %115 = vector.load %arg7[%c17, %c0_61] : memref<30x480xf32, #tpu.memory_space<vmem>>, vector<1x480xf32>
    %116 = vector.shape_cast %115 : vector<1x480xf32> to vector<480xf32>
    %117 = arith.maximumf %114, %116 : vector<480xf32>
    %118 = vector.extract_strided_slice %117 {offsets = [0], sizes = [240], strides = [1]} : vector<480xf32> to vector<240xf32>
    %119 = vector.extract_strided_slice %117 {offsets = [240], sizes = [240], strides = [1]} : vector<480xf32> to vector<240xf32>
    %120 = arith.maximumf %118, %119 : vector<240xf32>
    %c9_62 = arith.constant 9 : index
    %c16_63 = arith.constant 16 : index
    %121 = vector.load %arg8[%c9_62, %c16_63] : memref<17x272xf32, #tpu.memory_space<vmem>>, vector<1x240xf32>
    %122 = vector.shape_cast %121 : vector<1x240xf32> to vector<240xf32>
    %123 = vector.shape_cast %120 : vector<240xf32> to vector<1x240xf32>
    tpu.vector_store %arg8[%c9_62, %c16_63], %123 {strides = array<i32>} : memref<17x272xf32, #tpu.memory_space<vmem>>, vector<1x240xf32>,
    %c18 = arith.constant 18 : index
    %c0_64 = arith.constant 0 : index
    %124 = vector.load %arg7[%c18, %c0_64] : memref<30x480xf32, #tpu.memory_space<vmem>>, vector<1x480xf32>
    %125 = vector.shape_cast %124 : vector<1x480xf32> to vector<480xf32>
    %c19 = arith.constant 19 : index
    %c0_65 = arith.constant 0 : index
    %126 = vector.load %arg7[%c19, %c0_65] : memref<30x480xf32, #tpu.memory_space<vmem>>, vector<1x480xf32>
    %127 = vector.shape_cast %126 : vector<1x480xf32> to vector<480xf32>
    %128 = arith.maximumf %125, %127 : vector<480xf32>
    %129 = vector.extract_strided_slice %128 {offsets = [0], sizes = [240], strides = [1]} : vector<480xf32> to vector<240xf32>
    %130 = vector.extract_strided_slice %128 {offsets = [240], sizes = [240], strides = [1]} : vector<480xf32> to vector<240xf32>
    %131 = arith.maximumf %129, %130 : vector<240xf32>
    %c10_66 = arith.constant 10 : index
    %c16_67 = arith.constant 16 : index
    %132 = vector.load %arg8[%c10_66, %c16_67] : memref<17x272xf32, #tpu.memory_space<vmem>>, vector<1x240xf32>
    %133 = vector.shape_cast %132 : vector<1x240xf32> to vector<240xf32>
    %134 = vector.shape_cast %131 : vector<240xf32> to vector<1x240xf32>
    tpu.vector_store %arg8[%c10_66, %c16_67], %134 {strides = array<i32>} : memref<17x272xf32, #tpu.memory_space<vmem>>, vector<1x240xf32>,
    %c20 = arith.constant 20 : index
    %c0_68 = arith.constant 0 : index
    %135 = vector.load %arg7[%c20, %c0_68] : memref<30x480xf32, #tpu.memory_space<vmem>>, vector<1x480xf32>
    %136 = vector.shape_cast %135 : vector<1x480xf32> to vector<480xf32>
    %c21 = arith.constant 21 : index
    %c0_69 = arith.constant 0 : index
    %137 = vector.load %arg7[%c21, %c0_69] : memref<30x480xf32, #tpu.memory_space<vmem>>, vector<1x480xf32>
    %138 = vector.shape_cast %137 : vector<1x480xf32> to vector<480xf32>
    %139 = arith.maximumf %136, %138 : vector<480xf32>
    %140 = vector.extract_strided_slice %139 {offsets = [0], sizes = [240], strides = [1]} : vector<480xf32> to vector<240xf32>
    %141 = vector.extract_strided_slice %139 {offsets = [240], sizes = [240], strides = [1]} : vector<480xf32> to vector<240xf32>
    %142 = arith.maximumf %140, %141 : vector<240xf32>
    %c11_70 = arith.constant 11 : index
    %c16_71 = arith.constant 16 : index
    %143 = vector.load %arg8[%c11_70, %c16_71] : memref<17x272xf32, #tpu.memory_space<vmem>>, vector<1x240xf32>
    %144 = vector.shape_cast %143 : vector<1x240xf32> to vector<240xf32>
    %145 = vector.shape_cast %142 : vector<240xf32> to vector<1x240xf32>
    tpu.vector_store %arg8[%c11_70, %c16_71], %145 {strides = array<i32>} : memref<17x272xf32, #tpu.memory_space<vmem>>, vector<1x240xf32>,
    %c22 = arith.constant 22 : index
    %c0_72 = arith.constant 0 : index
    %146 = vector.load %arg7[%c22, %c0_72] : memref<30x480xf32, #tpu.memory_space<vmem>>, vector<1x480xf32>
    %147 = vector.shape_cast %146 : vector<1x480xf32> to vector<480xf32>
    %c23 = arith.constant 23 : index
    %c0_73 = arith.constant 0 : index
    %148 = vector.load %arg7[%c23, %c0_73] : memref<30x480xf32, #tpu.memory_space<vmem>>, vector<1x480xf32>
    %149 = vector.shape_cast %148 : vector<1x480xf32> to vector<480xf32>
    %150 = arith.maximumf %147, %149 : vector<480xf32>
    %151 = vector.extract_strided_slice %150 {offsets = [0], sizes = [240], strides = [1]} : vector<480xf32> to vector<240xf32>
    %152 = vector.extract_strided_slice %150 {offsets = [240], sizes = [240], strides = [1]} : vector<480xf32> to vector<240xf32>
    %153 = arith.maximumf %151, %152 : vector<240xf32>
    %c12_74 = arith.constant 12 : index
    %c16_75 = arith.constant 16 : index
    %154 = vector.load %arg8[%c12_74, %c16_75] : memref<17x272xf32, #tpu.memory_space<vmem>>, vector<1x240xf32>
    %155 = vector.shape_cast %154 : vector<1x240xf32> to vector<240xf32>
    %156 = vector.shape_cast %153 : vector<240xf32> to vector<1x240xf32>
    tpu.vector_store %arg8[%c12_74, %c16_75], %156 {strides = array<i32>} : memref<17x272xf32, #tpu.memory_space<vmem>>, vector<1x240xf32>,
    %c24 = arith.constant 24 : index
    %c0_76 = arith.constant 0 : index
    %157 = vector.load %arg7[%c24, %c0_76] : memref<30x480xf32, #tpu.memory_space<vmem>>, vector<1x480xf32>
    %158 = vector.shape_cast %157 : vector<1x480xf32> to vector<480xf32>
    %c25 = arith.constant 25 : index
    %c0_77 = arith.constant 0 : index
    %159 = vector.load %arg7[%c25, %c0_77] : memref<30x480xf32, #tpu.memory_space<vmem>>, vector<1x480xf32>
    %160 = vector.shape_cast %159 : vector<1x480xf32> to vector<480xf32>
    %161 = arith.maximumf %158, %160 : vector<480xf32>
    %162 = vector.extract_strided_slice %161 {offsets = [0], sizes = [240], strides = [1]} : vector<480xf32> to vector<240xf32>
    %163 = vector.extract_strided_slice %161 {offsets = [240], sizes = [240], strides = [1]} : vector<480xf32> to vector<240xf32>
    %164 = arith.maximumf %162, %163 : vector<240xf32>
    %c13_78 = arith.constant 13 : index
    %c16_79 = arith.constant 16 : index
    %165 = vector.load %arg8[%c13_78, %c16_79] : memref<17x272xf32, #tpu.memory_space<vmem>>, vector<1x240xf32>
    %166 = vector.shape_cast %165 : vector<1x240xf32> to vector<240xf32>
    %167 = vector.shape_cast %164 : vector<240xf32> to vector<1x240xf32>
    tpu.vector_store %arg8[%c13_78, %c16_79], %167 {strides = array<i32>} : memref<17x272xf32, #tpu.memory_space<vmem>>, vector<1x240xf32>,
    %c26 = arith.constant 26 : index
    %c0_80 = arith.constant 0 : index
    %168 = vector.load %arg7[%c26, %c0_80] : memref<30x480xf32, #tpu.memory_space<vmem>>, vector<1x480xf32>
    %169 = vector.shape_cast %168 : vector<1x480xf32> to vector<480xf32>
    %c27 = arith.constant 27 : index
    %c0_81 = arith.constant 0 : index
    %170 = vector.load %arg7[%c27, %c0_81] : memref<30x480xf32, #tpu.memory_space<vmem>>, vector<1x480xf32>
    %171 = vector.shape_cast %170 : vector<1x480xf32> to vector<480xf32>
    %172 = arith.maximumf %169, %171 : vector<480xf32>
    %173 = vector.extract_strided_slice %172 {offsets = [0], sizes = [240], strides = [1]} : vector<480xf32> to vector<240xf32>
    %174 = vector.extract_strided_slice %172 {offsets = [240], sizes = [240], strides = [1]} : vector<480xf32> to vector<240xf32>
    %175 = arith.maximumf %173, %174 : vector<240xf32>
    %c14_82 = arith.constant 14 : index
    %c16_83 = arith.constant 16 : index
    %176 = vector.load %arg8[%c14_82, %c16_83] : memref<17x272xf32, #tpu.memory_space<vmem>>, vector<1x240xf32>
    %177 = vector.shape_cast %176 : vector<1x240xf32> to vector<240xf32>
    %178 = vector.shape_cast %175 : vector<240xf32> to vector<1x240xf32>
    tpu.vector_store %arg8[%c14_82, %c16_83], %178 {strides = array<i32>} : memref<17x272xf32, #tpu.memory_space<vmem>>, vector<1x240xf32>,
    %c28 = arith.constant 28 : index
    %c0_84 = arith.constant 0 : index
    %179 = vector.load %arg7[%c28, %c0_84] : memref<30x480xf32, #tpu.memory_space<vmem>>, vector<1x480xf32>
    %180 = vector.shape_cast %179 : vector<1x480xf32> to vector<480xf32>
    %c29 = arith.constant 29 : index
    %c0_85 = arith.constant 0 : index
    %181 = vector.load %arg7[%c29, %c0_85] : memref<30x480xf32, #tpu.memory_space<vmem>>, vector<1x480xf32>
    %182 = vector.shape_cast %181 : vector<1x480xf32> to vector<480xf32>
    %183 = arith.maximumf %180, %182 : vector<480xf32>
    %184 = vector.extract_strided_slice %183 {offsets = [0], sizes = [240], strides = [1]} : vector<480xf32> to vector<240xf32>
    %185 = vector.extract_strided_slice %183 {offsets = [240], sizes = [240], strides = [1]} : vector<480xf32> to vector<240xf32>
    %186 = arith.maximumf %184, %185 : vector<240xf32>
    %c15_86 = arith.constant 15 : index
    %c16_87 = arith.constant 16 : index
    %187 = vector.load %arg8[%c15_86, %c16_87] : memref<17x272xf32, #tpu.memory_space<vmem>>, vector<1x240xf32>
    %188 = vector.shape_cast %187 : vector<1x240xf32> to vector<240xf32>
    %189 = vector.shape_cast %186 : vector<240xf32> to vector<1x240xf32>
    tpu.vector_store %arg8[%c15_86, %c16_87], %189 {strides = array<i32>} : memref<17x272xf32, #tpu.memory_space<vmem>>, vector<1x240xf32>,
    %c0_88 = arith.constant 0 : index
    %c0_89 = arith.constant 0 : index
    %190 = vector.load %arg8[%c0_88, %c0_89] : memref<17x272xf32, #tpu.memory_space<vmem>>, vector<15x272xf32>
    %c0_90 = arith.constant 0 : index
    %c0_91 = arith.constant 0 : index
    %c0_92 = arith.constant 0 : index
    %191 = vector.load %arg4[%c0_90, %c0_91, %c0_92] : memref<3x272x448xf32, #tpu.memory_space<vmem>>, vector<1x272x448xf32>
    %192 = vector.shape_cast %191 : vector<1x272x448xf32> to vector<272x448xf32>
    %cst_93 = arith.constant dense<0.000000e+00> : vector<15x448xf32>
    %193 = tpu.matmul %190, %192, %cst_93 {dimension_numbers = #tpu.dot_dimension_numbers<[1], [0], [0], [1], [0, 0, 1, 1], [], []>} : vector<15x272xf32>, vector<272x448xf32>, vector<15x448xf32> -> vector<15x448xf32>
    %c1_94 = arith.constant 1 : index
    %c0_95 = arith.constant 0 : index
    %194 = vector.load %arg8[%c1_94, %c0_95] : memref<17x272xf32, #tpu.memory_space<vmem>>, vector<15x272xf32>
    %c1_96 = arith.constant 1 : index
    %c0_97 = arith.constant 0 : index
    %c0_98 = arith.constant 0 : index
    %195 = vector.load %arg4[%c1_96, %c0_97, %c0_98] : memref<3x272x448xf32, #tpu.memory_space<vmem>>, vector<1x272x448xf32>
    %196 = vector.shape_cast %195 : vector<1x272x448xf32> to vector<272x448xf32>
    %cst_99 = arith.constant dense<0.000000e+00> : vector<15x448xf32>
    %197 = tpu.matmul %194, %196, %cst_99 {dimension_numbers = #tpu.dot_dimension_numbers<[1], [0], [0], [1], [0, 0, 1, 1], [], []>} : vector<15x272xf32>, vector<272x448xf32>, vector<15x448xf32> -> vector<15x448xf32>
    %198 = arith.addf %193, %197 : vector<15x448xf32>
    %c2_100 = arith.constant 2 : index
    %c0_101 = arith.constant 0 : index
    %199 = vector.load %arg8[%c2_100, %c0_101] : memref<17x272xf32, #tpu.memory_space<vmem>>, vector<15x272xf32>
    %c2_102 = arith.constant 2 : index
    %c0_103 = arith.constant 0 : index
    %c0_104 = arith.constant 0 : index
    %200 = vector.load %arg4[%c2_102, %c0_103, %c0_104] : memref<3x272x448xf32, #tpu.memory_space<vmem>>, vector<1x272x448xf32>
    %201 = vector.shape_cast %200 : vector<1x272x448xf32> to vector<272x448xf32>
    %cst_105 = arith.constant dense<0.000000e+00> : vector<15x448xf32>
    %202 = tpu.matmul %199, %201, %cst_105 {dimension_numbers = #tpu.dot_dimension_numbers<[1], [0], [0], [1], [0, 0, 1, 1], [], []>} : vector<15x272xf32>, vector<272x448xf32>, vector<15x448xf32> -> vector<15x448xf32>
    %203 = arith.addf %198, %202 : vector<15x448xf32>
    %c0_106 = arith.constant 0 : index
    %c0_107 = arith.constant 0 : index
    %204 = vector.load %arg5[%c0_106, %c0_107] : memref<1x448xf32, #tpu.memory_space<vmem>>, vector<1x448xf32>
    %205 = vector.broadcast %204 : vector<1x448xf32> to vector<15x448xf32>
    %206 = arith.addf %203, %205 : vector<15x448xf32>
    %cst_108 = arith.constant 0.000000e+00 : f32
    %207 = vector.broadcast %cst_108 : f32 to vector<15x448xf32>
    %208 = arith.maximumf %206, %207 : vector<15x448xf32>
    %c0_109 = arith.constant 0 : index
    %c0_110 = arith.constant 0 : index
    %209 = vector.load %arg9[%c0_109, %c0_110] : memref<15x448xf32, #tpu.memory_space<vmem>>, vector<15x448xf32>
    tpu.vector_store %arg9[%c0_109, %c0_110], %208 {strides = array<i32>} : memref<15x448xf32, #tpu.memory_space<vmem>>, vector<15x448xf32>,
    %c0_111 = arith.constant 0 : index
    %c0_112 = arith.constant 0 : index
    %210 = vector.load %arg9[%c0_111, %c0_112] : memref<15x448xf32, #tpu.memory_space<vmem>>, vector<1x448xf32>
    %211 = vector.shape_cast %210 : vector<1x448xf32> to vector<448xf32>
    %c1_113 = arith.constant 1 : index
    %c0_114 = arith.constant 0 : index
    %212 = vector.load %arg9[%c1_113, %c0_114] : memref<15x448xf32, #tpu.memory_space<vmem>>, vector<1x448xf32>
    %213 = vector.shape_cast %212 : vector<1x448xf32> to vector<448xf32>
    %214 = arith.maximumf %211, %213 : vector<448xf32>
    %215 = vector.extract_strided_slice %214 {offsets = [0], sizes = [224], strides = [1]} : vector<448xf32> to vector<224xf32>
    %216 = vector.extract_strided_slice %214 {offsets = [224], sizes = [224], strides = [1]} : vector<448xf32> to vector<224xf32>
    %217 = arith.maximumf %215, %216 : vector<224xf32>
    %c0_115 = arith.constant 0 : index
    %c0_116 = arith.constant 0 : index
    %c0_117 = arith.constant 0 : index
    %218 = vector.load %arg6[%c0_115, %c0_116, %c0_117] : memref<1x7x224xf32, #tpu.memory_space<vmem>>, vector<1x1x224xf32>
    %219 = vector.shape_cast %218 : vector<1x1x224xf32> to vector<224xf32>
    %220 = vector.shape_cast %217 : vector<224xf32> to vector<1x1x224xf32>
    tpu.vector_store %arg6[%c0_115, %c0_116, %c0_117], %220 {strides = array<i32>} : memref<1x7x224xf32, #tpu.memory_space<vmem>>, vector<1x1x224xf32>,
    %c2_118 = arith.constant 2 : index
    %c0_119 = arith.constant 0 : index
    %221 = vector.load %arg9[%c2_118, %c0_119] : memref<15x448xf32, #tpu.memory_space<vmem>>, vector<1x448xf32>
    %222 = vector.shape_cast %221 : vector<1x448xf32> to vector<448xf32>
    %c3_120 = arith.constant 3 : index
    %c0_121 = arith.constant 0 : index
    %223 = vector.load %arg9[%c3_120, %c0_121] : memref<15x448xf32, #tpu.memory_space<vmem>>, vector<1x448xf32>
    %224 = vector.shape_cast %223 : vector<1x448xf32> to vector<448xf32>
    %225 = arith.maximumf %222, %224 : vector<448xf32>
    %226 = vector.extract_strided_slice %225 {offsets = [0], sizes = [224], strides = [1]} : vector<448xf32> to vector<224xf32>
    %227 = vector.extract_strided_slice %225 {offsets = [224], sizes = [224], strides = [1]} : vector<448xf32> to vector<224xf32>
    %228 = arith.maximumf %226, %227 : vector<224xf32>
    %c0_122 = arith.constant 0 : index
    %c1_123 = arith.constant 1 : index
    %c0_124 = arith.constant 0 : index
    %229 = vector.load %arg6[%c0_122, %c1_123, %c0_124] : memref<1x7x224xf32, #tpu.memory_space<vmem>>, vector<1x1x224xf32>
    %230 = vector.shape_cast %229 : vector<1x1x224xf32> to vector<224xf32>
    %231 = vector.shape_cast %228 : vector<224xf32> to vector<1x1x224xf32>
    tpu.vector_store %arg6[%c0_122, %c1_123, %c0_124], %231 {strides = array<i32>} : memref<1x7x224xf32, #tpu.memory_space<vmem>>, vector<1x1x224xf32>,
    %c4_125 = arith.constant 4 : index
    %c0_126 = arith.constant 0 : index
    %232 = vector.load %arg9[%c4_125, %c0_126] : memref<15x448xf32, #tpu.memory_space<vmem>>, vector<1x448xf32>
    %233 = vector.shape_cast %232 : vector<1x448xf32> to vector<448xf32>
    %c5_127 = arith.constant 5 : index
    %c0_128 = arith.constant 0 : index
    %234 = vector.load %arg9[%c5_127, %c0_128] : memref<15x448xf32, #tpu.memory_space<vmem>>, vector<1x448xf32>
    %235 = vector.shape_cast %234 : vector<1x448xf32> to vector<448xf32>
    %236 = arith.maximumf %233, %235 : vector<448xf32>
    %237 = vector.extract_strided_slice %236 {offsets = [0], sizes = [224], strides = [1]} : vector<448xf32> to vector<224xf32>
    %238 = vector.extract_strided_slice %236 {offsets = [224], sizes = [224], strides = [1]} : vector<448xf32> to vector<224xf32>
    %239 = arith.maximumf %237, %238 : vector<224xf32>
    %c0_129 = arith.constant 0 : index
    %c2_130 = arith.constant 2 : index
    %c0_131 = arith.constant 0 : index
    %240 = vector.load %arg6[%c0_129, %c2_130, %c0_131] : memref<1x7x224xf32, #tpu.memory_space<vmem>>, vector<1x1x224xf32>
    %241 = vector.shape_cast %240 : vector<1x1x224xf32> to vector<224xf32>
    %242 = vector.shape_cast %239 : vector<224xf32> to vector<1x1x224xf32>
    tpu.vector_store %arg6[%c0_129, %c2_130, %c0_131], %242 {strides = array<i32>} : memref<1x7x224xf32, #tpu.memory_space<vmem>>, vector<1x1x224xf32>,
    %c6_132 = arith.constant 6 : index
    %c0_133 = arith.constant 0 : index
    %243 = vector.load %arg9[%c6_132, %c0_133] : memref<15x448xf32, #tpu.memory_space<vmem>>, vector<1x448xf32>
    %244 = vector.shape_cast %243 : vector<1x448xf32> to vector<448xf32>
    %c7_134 = arith.constant 7 : index
    %c0_135 = arith.constant 0 : index
    %245 = vector.load %arg9[%c7_134, %c0_135] : memref<15x448xf32, #tpu.memory_space<vmem>>, vector<1x448xf32>
    %246 = vector.shape_cast %245 : vector<1x448xf32> to vector<448xf32>
    %247 = arith.maximumf %244, %246 : vector<448xf32>
    %248 = vector.extract_strided_slice %247 {offsets = [0], sizes = [224], strides = [1]} : vector<448xf32> to vector<224xf32>
    %249 = vector.extract_strided_slice %247 {offsets = [224], sizes = [224], strides = [1]} : vector<448xf32> to vector<224xf32>
    %250 = arith.maximumf %248, %249 : vector<224xf32>
    %c0_136 = arith.constant 0 : index
    %c3_137 = arith.constant 3 : index
    %c0_138 = arith.constant 0 : index
    %251 = vector.load %arg6[%c0_136, %c3_137, %c0_138] : memref<1x7x224xf32, #tpu.memory_space<vmem>>, vector<1x1x224xf32>
    %252 = vector.shape_cast %251 : vector<1x1x224xf32> to vector<224xf32>
    %253 = vector.shape_cast %250 : vector<224xf32> to vector<1x1x224xf32>
    tpu.vector_store %arg6[%c0_136, %c3_137, %c0_138], %253 {strides = array<i32>} : memref<1x7x224xf32, #tpu.memory_space<vmem>>, vector<1x1x224xf32>,
    %c8_139 = arith.constant 8 : index
    %c0_140 = arith.constant 0 : index
    %254 = vector.load %arg9[%c8_139, %c0_140] : memref<15x448xf32, #tpu.memory_space<vmem>>, vector<1x448xf32>
    %255 = vector.shape_cast %254 : vector<1x448xf32> to vector<448xf32>
    %c9_141 = arith.constant 9 : index
    %c0_142 = arith.constant 0 : index
    %256 = vector.load %arg9[%c9_141, %c0_142] : memref<15x448xf32, #tpu.memory_space<vmem>>, vector<1x448xf32>
    %257 = vector.shape_cast %256 : vector<1x448xf32> to vector<448xf32>
    %258 = arith.maximumf %255, %257 : vector<448xf32>
    %259 = vector.extract_strided_slice %258 {offsets = [0], sizes = [224], strides = [1]} : vector<448xf32> to vector<224xf32>
    %260 = vector.extract_strided_slice %258 {offsets = [224], sizes = [224], strides = [1]} : vector<448xf32> to vector<224xf32>
    %261 = arith.maximumf %259, %260 : vector<224xf32>
    %c0_143 = arith.constant 0 : index
    %c4_144 = arith.constant 4 : index
    %c0_145 = arith.constant 0 : index
    %262 = vector.load %arg6[%c0_143, %c4_144, %c0_145] : memref<1x7x224xf32, #tpu.memory_space<vmem>>, vector<1x1x224xf32>
    %263 = vector.shape_cast %262 : vector<1x1x224xf32> to vector<224xf32>
    %264 = vector.shape_cast %261 : vector<224xf32> to vector<1x1x224xf32>
    tpu.vector_store %arg6[%c0_143, %c4_144, %c0_145], %264 {strides = array<i32>} : memref<1x7x224xf32, #tpu.memory_space<vmem>>, vector<1x1x224xf32>,
    %c10_146 = arith.constant 10 : index
    %c0_147 = arith.constant 0 : index
    %265 = vector.load %arg9[%c10_146, %c0_147] : memref<15x448xf32, #tpu.memory_space<vmem>>, vector<1x448xf32>
    %266 = vector.shape_cast %265 : vector<1x448xf32> to vector<448xf32>
    %c11_148 = arith.constant 11 : index
    %c0_149 = arith.constant 0 : index
    %267 = vector.load %arg9[%c11_148, %c0_149] : memref<15x448xf32, #tpu.memory_space<vmem>>, vector<1x448xf32>
    %268 = vector.shape_cast %267 : vector<1x448xf32> to vector<448xf32>
    %269 = arith.maximumf %266, %268 : vector<448xf32>
    %270 = vector.extract_strided_slice %269 {offsets = [0], sizes = [224], strides = [1]} : vector<448xf32> to vector<224xf32>
    %271 = vector.extract_strided_slice %269 {offsets = [224], sizes = [224], strides = [1]} : vector<448xf32> to vector<224xf32>
    %272 = arith.maximumf %270, %271 : vector<224xf32>
    %c0_150 = arith.constant 0 : index
    %c5_151 = arith.constant 5 : index
    %c0_152 = arith.constant 0 : index
    %273 = vector.load %arg6[%c0_150, %c5_151, %c0_152] : memref<1x7x224xf32, #tpu.memory_space<vmem>>, vector<1x1x224xf32>
    %274 = vector.shape_cast %273 : vector<1x1x224xf32> to vector<224xf32>
    %275 = vector.shape_cast %272 : vector<224xf32> to vector<1x1x224xf32>
    tpu.vector_store %arg6[%c0_150, %c5_151, %c0_152], %275 {strides = array<i32>} : memref<1x7x224xf32, #tpu.memory_space<vmem>>, vector<1x1x224xf32>,
    %c12_153 = arith.constant 12 : index
    %c0_154 = arith.constant 0 : index
    %276 = vector.load %arg9[%c12_153, %c0_154] : memref<15x448xf32, #tpu.memory_space<vmem>>, vector<1x448xf32>
    %277 = vector.shape_cast %276 : vector<1x448xf32> to vector<448xf32>
    %c13_155 = arith.constant 13 : index
    %c0_156 = arith.constant 0 : index
    %278 = vector.load %arg9[%c13_155, %c0_156] : memref<15x448xf32, #tpu.memory_space<vmem>>, vector<1x448xf32>
    %279 = vector.shape_cast %278 : vector<1x448xf32> to vector<448xf32>
    %280 = arith.maximumf %277, %279 : vector<448xf32>
    %281 = vector.extract_strided_slice %280 {offsets = [0], sizes = [224], strides = [1]} : vector<448xf32> to vector<224xf32>
    %282 = vector.extract_strided_slice %280 {offsets = [224], sizes = [224], strides = [1]} : vector<448xf32> to vector<224xf32>
    %283 = arith.maximumf %281, %282 : vector<224xf32>
    %c0_157 = arith.constant 0 : index
    %c6_158 = arith.constant 6 : index
    %c0_159 = arith.constant 0 : index
    %284 = vector.load %arg6[%c0_157, %c6_158, %c0_159] : memref<1x7x224xf32, #tpu.memory_space<vmem>>, vector<1x1x224xf32>
    %285 = vector.shape_cast %284 : vector<1x1x224xf32> to vector<224xf32>
    %286 = vector.shape_cast %283 : vector<224xf32> to vector<1x1x224xf32>
    tpu.vector_store %arg6[%c0_157, %c6_158, %c0_159], %286 {strides = array<i32>} : memref<1x7x224xf32, #tpu.memory_space<vmem>>, vector<1x1x224xf32>,
    return
  }
  func.func @transform_0(%arg0: i32) -> (i32, i32, i32) {
    %c0_i32 = arith.constant 0 : i32
    %c0_i32_0 = arith.constant 0 : i32
    %c0_i32_1 = arith.constant 0 : i32
    return %arg0, %c0_i32, %c0_i32_0 : i32, i32, i32
  }
  func.func @transform_1(%arg0: i32) -> (i32, i32, i32) {
    %c0_i32 = arith.constant 0 : i32
    %c0_i32_0 = arith.constant 0 : i32
    %c0_i32_1 = arith.constant 0 : i32
    %c0_i32_2 = arith.constant 0 : i32
    return %c0_i32, %c0_i32_0, %c0_i32_1 : i32, i32, i32
  }
  func.func @transform_2(%arg0: i32) -> (i32, i32) {
    %c0_i32 = arith.constant 0 : i32
    %c0_i32_0 = arith.constant 0 : i32
    %c0_i32_1 = arith.constant 0 : i32
    return %c0_i32, %c0_i32_0 : i32, i32
  }
  func.func @transform_3(%arg0: i32) -> (i32, i32, i32) {
    %c0_i32 = arith.constant 0 : i32
    %c0_i32_0 = arith.constant 0 : i32
    %c0_i32_1 = arith.constant 0 : i32
    %c0_i32_2 = arith.constant 0 : i32
    return %c0_i32, %c0_i32_0, %c0_i32_1 : i32, i32, i32
  }
  func.func @transform_4(%arg0: i32) -> (i32, i32) {
    %c0_i32 = arith.constant 0 : i32
    %c0_i32_0 = arith.constant 0 : i32
    %c0_i32_1 = arith.constant 0 : i32
    return %c0_i32, %c0_i32_0 : i32, i32
  }
  func.func @transform_5(%arg0: i32) -> (i32, i32, i32) {
    %c0_i32 = arith.constant 0 : i32
    %c0_i32_0 = arith.constant 0 : i32
    %c0_i32_1 = arith.constant 0 : i32
    return %arg0, %c0_i32, %c0_i32_0 : i32, i32, i32
  }
}

module attributes {stable_mosaic.version = 11 : i64} {
  func.func @_classifier_kernel(%arg0: i32, %arg1: memref<2x1568xf32, #tpu.memory_space<vmem>>, %arg2: memref<1568x512xf32, #tpu.memory_space<vmem>>, %arg3: memref<1x512xf32, #tpu.memory_space<vmem>>, %arg4: memref<512x8xf32, #tpu.memory_space<vmem>>, %arg5: memref<1x8xf32, #tpu.memory_space<vmem>>, %arg6: memref<2x8xf32, #tpu.memory_space<vmem>>) attributes {dimension_semantics = [#tpu.dimension_semantics<arbitrary>], iteration_bounds = array<i64: 1>, scalar_prefetch = 0 : i64, scratch_operands = 0 : i64, tpu.core_type = #tpu.core_type<tc>, window_params = [{pipeline_mode = #tpu.pipeline_mode<synchronous>, transform_indices = @transform_0, window_bounds = array<i64: 2, 1568>}, {pipeline_mode = #tpu.pipeline_mode<synchronous>, transform_indices = @transform_1, window_bounds = array<i64: 1568, 512>}, {pipeline_mode = #tpu.pipeline_mode<synchronous>, transform_indices = @transform_2, window_bounds = array<i64: 1, 512>}, {pipeline_mode = #tpu.pipeline_mode<synchronous>, transform_indices = @transform_3, window_bounds = array<i64: 512, 8>}, {pipeline_mode = #tpu.pipeline_mode<synchronous>, transform_indices = @transform_4, window_bounds = array<i64: 1, 8>}, {pipeline_mode = #tpu.pipeline_mode<synchronous>, transform_indices = @transform_5, window_bounds = array<i64: 2, 8>}]} {
    %c0 = arith.constant 0 : index
    %c0_0 = arith.constant 0 : index
    %0 = vector.load %arg1[%c0, %c0_0] : memref<2x1568xf32, #tpu.memory_space<vmem>>, vector<2x1568xf32>
    %c0_1 = arith.constant 0 : index
    %c0_2 = arith.constant 0 : index
    %1 = vector.load %arg2[%c0_1, %c0_2] : memref<1568x512xf32, #tpu.memory_space<vmem>>, vector<1568x512xf32>
    %cst = arith.constant dense<0.000000e+00> : vector<2x512xf32>
    %2 = tpu.matmul %0, %1, %cst {dimension_numbers = #tpu.dot_dimension_numbers<[1], [0], [0], [1], [0, 0, 1, 1], [], []>} : vector<2x1568xf32>, vector<1568x512xf32>, vector<2x512xf32> -> vector<2x512xf32>
    %c0_3 = arith.constant 0 : index
    %c0_4 = arith.constant 0 : index
    %3 = vector.load %arg3[%c0_3, %c0_4] : memref<1x512xf32, #tpu.memory_space<vmem>>, vector<1x512xf32>
    %4 = vector.broadcast %3 : vector<1x512xf32> to vector<2x512xf32>
    %5 = arith.addf %2, %4 : vector<2x512xf32>
    %c0_5 = arith.constant 0 : index
    %c0_6 = arith.constant 0 : index
    %6 = vector.load %arg4[%c0_5, %c0_6] : memref<512x8xf32, #tpu.memory_space<vmem>>, vector<512x8xf32>
    %cst_7 = arith.constant dense<0.000000e+00> : vector<2x8xf32>
    %7 = tpu.matmul %5, %6, %cst_7 {dimension_numbers = #tpu.dot_dimension_numbers<[1], [0], [0], [1], [0, 0, 1, 1], [], []>} : vector<2x512xf32>, vector<512x8xf32>, vector<2x8xf32> -> vector<2x8xf32>
    %c0_8 = arith.constant 0 : index
    %c0_9 = arith.constant 0 : index
    %8 = vector.load %arg5[%c0_8, %c0_9] : memref<1x8xf32, #tpu.memory_space<vmem>>, vector<1x8xf32>
    %9 = vector.broadcast %8 : vector<1x8xf32> to vector<2x8xf32>
    %10 = arith.addf %7, %9 : vector<2x8xf32>
    %c0_10 = arith.constant 0 : index
    %c0_11 = arith.constant 0 : index
    %11 = vector.load %arg6[%c0_10, %c0_11] : memref<2x8xf32, #tpu.memory_space<vmem>>, vector<2x8xf32>
    tpu.vector_store %arg6[%c0_10, %c0_11], %10 {strides = array<i32>} : memref<2x8xf32, #tpu.memory_space<vmem>>, vector<2x8xf32>,
    return
  }
  func.func @transform_0(%arg0: i32) -> (i32, i32) {
    %c0_i32 = arith.constant 0 : i32
    %c0_i32_0 = arith.constant 0 : i32
    %c0_i32_1 = arith.constant 0 : i32
    return %c0_i32, %c0_i32_0 : i32, i32
  }
  func.func @transform_1(%arg0: i32) -> (i32, i32) {
    %c0_i32 = arith.constant 0 : i32
    %c0_i32_0 = arith.constant 0 : i32
    %c0_i32_1 = arith.constant 0 : i32
    return %c0_i32, %c0_i32_0 : i32, i32
  }
  func.func @transform_2(%arg0: i32) -> (i32, i32) {
    %c0_i32 = arith.constant 0 : i32
    %c0_i32_0 = arith.constant 0 : i32
    %c0_i32_1 = arith.constant 0 : i32
    return %c0_i32, %c0_i32_0 : i32, i32
  }
  func.func @transform_3(%arg0: i32) -> (i32, i32) {
    %c0_i32 = arith.constant 0 : i32
    %c0_i32_0 = arith.constant 0 : i32
    %c0_i32_1 = arith.constant 0 : i32
    return %c0_i32, %c0_i32_0 : i32, i32
  }
  func.func @transform_4(%arg0: i32) -> (i32, i32) {
    %c0_i32 = arith.constant 0 : i32
    %c0_i32_0 = arith.constant 0 : i32
    %c0_i32_1 = arith.constant 0 : i32
    return %c0_i32, %c0_i32_0 : i32, i32
  }
  func.func @transform_5(%arg0: i32) -> (i32, i32) {
    %c0_i32 = arith.constant 0 : i32
    %c0_i32_0 = arith.constant 0 : i32
    %c0_i32_1 = arith.constant 0 : i32
    return %c0_i32, %c0_i32_0 : i32, i32
  }
}

</mosaic_0001>

<bundles_post_ra>
// kernel: classical_model_forward.3
= control target key start
LH: loop header
LB: loop body
LE: loop exit
PB: predicated region body
PF: predicated region fallthrough
CT: control target
= control target key end

     0   :  { %10 = vsyncpa [#allocation3], 0  ;;  %s3588_s0 = inlined_call_operand.vmem [shape: f32[2,1568], index: 0, kind: input, shape index: {}]   ;;  %s3589_s1 = inlined_call_operand.hbm [shape: f32[1568,512], index: 1, kind: input, shape index: {}]   ;;  %s3590_s2 = inlined_call_operand.hbm [shape: f32[1,512], index: 2, kind: input, shape index: {}]   ;;  %s3591_s3 = inlined_call_operand.vmem [shape: f32[512,8], index: 3, kind: input, shape index: {}]   ;;  %s3592_s4 = inlined_call_operand.hbm [shape: f32[1,8], index: 4, kind: input, shape index: {}]   ;;  %s3593_s5 = inlined_call_operand.hbm [shape: f32[2,8], index: 5, kind: output, shape index: {}]  }
   0x1   :  { %11 = vsyncpa [#allocation6], 0 }
   0x2   :  { %12 = vsyncpa [#allocation4], 0  ;;  %s3223_s18 = smov [#allocation5]   ;;  %s3224_s20 = smov [#allocation2]  }
   0x3   :  { %s33_s19 = sshll.u32 %s3223_s18, 4  ;;  %s20_s21 = sshll.u32 %s3224_s20, 4  ;;  %s34_s19 = int_to_ptr.vmem [resolvable:$true] %s33_s19  ;;  %s3261_s21 = int_to_ptr.vmem [resolvable:$true] %s20_s21 }
   0x4   :  { %s3129_s24 = scalar_lea.hbm %s3590_s2, 64 }
   0x5   :  { %p3130_p0 = scmp.ne.s32.totalorder %s3590_s2, %s3129_s24  ;;  %p3133_p1 = scmp.lt.u32.totalorder %s3129_s24, %s3590_s2 }
   0x7   :  { %p3135_p2 = pnand %p3133_p1, %p3130_p0 }
   0x9   :  { %3138 = shalt.err (!%p3135_p2)
}
   0xa   :  { %s3139_s29 = scalar_lea.vmem %s34_s19, 64  ;;  %p3144_p4 = scmp.lt.s32.totalorder %s34_s19, %s34_s19 }
   0xb   :  { %p3140_p3 = scmp.ne.s32.totalorder %s34_s19, %s3139_s29  ;;  %p3145_p5 = scmp.lt.s32.totalorder %s3139_s29, %s3139_s29 }
   0xd   :  { %p3146_p6 = por %p3145_p5, %p3144_p4 }
   0xf   :  { %p3147_p7 = pnand %p3146_p6, %p3140_p3 }
  0x11   :  { %3150 = shalt.err (!%p3147_p7)
}
  0x12   :  { %36 = dma.hbm_to_vmem [thread:$0]  %s3590_s2, 64, %s34_s19, [#allocation6]  }
  0x13   :  { %s3151_s9 = scalar_lea.hbm %s3589_s1, 100352 }
  0x14   :  { %p3152_p8 = scmp.ne.s32.totalorder %s3589_s1, %s3151_s9  ;;  %p3155_p9 = scmp.lt.u32.totalorder %s3151_s9, %s3589_s1 }
  0x16   :  { %p3157_p10 = pnand %p3155_p9, %p3152_p8 }
  0x18   :  { %3160 = shalt.err (!%p3157_p10)
}
  0x19   :  { %s3161_s14 = scalar_lea.vmem %s3261_s21, 100352  ;;  %p3166_p12 = scmp.lt.s32.totalorder %s3261_s21, %s3261_s21 }
  0x1a   :  { %p3162_p11 = scmp.ne.s32.totalorder %s3261_s21, %s3161_s14  ;;  %p3167_p13 = scmp.lt.s32.totalorder %s3161_s14, %s3161_s14 }
  0x1c   :  { %p3168_p0 = por %p3167_p13, %p3166_p12 }
  0x1e   :  { %p3169_p1 = pnand %p3168_p0, %p3162_p11 }
  0x20   :  { %3172 = shalt.err (!%p3169_p1)
}
  0x21   :  { %s3225_s2 = smov 512   ;;  %s3226_s15 = smov 32  }
  0x22   :  { %26 = dma.hbm_to_vmem [thread:$0]  %s3589_s1, 100352, %s3261_s21, [#allocation3], %s3225_s2, %s3225_s2, %s3226_s15  }
  0x23   :  { %s3227_s18 = smov [#allocation7]   ;;  %s3173_s23 = scalar_lea.hbm %s3592_s4, 16 }
  0x24   :  { %s45_s19 = sshll.u32 %s3227_s18, 4  ;;  %p3174_p2 = scmp.ne.s32.totalorder %s3592_s4, %s3173_s23  ;;  %s46_s19 = int_to_ptr.vmem [resolvable:$true] %s45_s19 }
  0x25   :  { %p3177_p3 = scmp.lt.u32.totalorder %s3173_s23, %s3592_s4 }
  0x27   :  { %p3179_p4 = pnand %p3177_p3, %p3174_p2 }
  0x29   :  { %3182 = shalt.err (!%p3179_p4)
}
  0x2a   :  { %s3183_s28 = scalar_lea.vmem %s46_s19, 16  ;;  %s3187_s1 = scalar_lea.vmem %s46_s19, 32 }
  0x2b   :  { %p3184_p5 = scmp.ne.s32.totalorder %s46_s19, %s3183_s28  ;;  %p3188_p6 = scmp.lt.s32.totalorder %s46_s19, %s46_s19 }
  0x2c   :  { %p3189_p7 = scmp.lt.s32.totalorder %s3187_s1, %s3183_s28 }
  0x2e   :  { %p3190_p8 = por %p3189_p7, %p3188_p6 }
  0x30   :  { %p3191_p9 = pnand %p3190_p8, %p3184_p5 }
  0x32   :  { %3194 = shalt.err (!%p3191_p9)
}
  0x33   :  { %48 = dma.hbm_to_vmem [thread:$0]  %s3592_s4, 16, %s46_s19, [#allocation6]  }
  0x34   :  { %3217 = dma.done.wait [#allocation3], 100352  }
  0x35   :  { %3218 = vsyncadd [#allocation3], 4294866944 }
  0x36   :  { %3219 = dma.done.wait [#allocation6], 80  }
  0x37   :  { %3220 = vsyncadd [#allocation6], 4294967216  ;;  %v63_v0 = vld [vmem:[#allocation2 + $0x8] sm:$0xff]  ;;  %v65_v2 = vld [vmem:[#allocation2 + $0x18] sm:$0xff]  ;;  %vm942_vm0 = vcmask 261120   ;;  %vm2150_vm1 = vcmask 58368  }
  0x38   :  { %v67_v1 = vld [vmem:[#allocation2 + $0x28] sm:$0xff]  ;;  %v69_v4 = vld [vmem:[#allocation2 + $0x38] sm:$0xff]  ;;  %v62_v5 = vld [vmem:[#allocation2] sm:$0xff] }
  0x39   :  { %v2242_v3 = vpack.c.bf16 %v67_v1, %v63_v0  ;;  %v66_v6 = vld [vmem:[#allocation2 + $0x20] sm:$0xff]  ;;  %v2634_v7 = vpack.c.bf16 %v69_v4, %v65_v2  ;;  %v64_v9 = vld [vmem:[#allocation2 + $0x10] sm:$0xff]  ;;  %v71_v11 = vld [vmem:[#allocation2 + $0x48] sm:$0xff] }
  0x3a   :  { %v2244_v8 = vpack.c.bf16 %v66_v6, %v62_v5  ;;  %v68_v10 = vld [vmem:[#allocation2 + $0x30] sm:$0xff]  ;;  %v75_v13 = vld [vmem:[#allocation2 + $0x68] sm:$0xff]  ;;  %v73_v14 = vld [vmem:[#allocation2 + $0x58] sm:$0xff] }
  0x3b   :  { %2243 = vmatprep.subr.bf16.mxu0 %v2242_v3  ;;  %v2636_v12 = vpack.c.bf16 %v68_v10, %v64_v9  ;;  %v77_v15 = vld [vmem:[#allocation2 + $0x78] sm:$0xff]  ;;  %2635 = vmatprep.subr.bf16.mxu1 %v2634_v7  ;;  %v2246_v16 = vpack.c.bf16 %v75_v13, %v71_v11  ;;  %v70_v18 = vld [vmem:[#allocation2 + $0x40] sm:$0xff]  ;;  %v72_v20 = vld [vmem:[#allocation2 + $0x50] sm:$0xff] }
  0x3c   :  { %2245 = vmatpush1.bf16.msra.mxu0 %v2244_v8  ;;  %v2638_v17 = vpack.c.bf16 %v77_v15, %v73_v14  ;;  %v74_v19 = vld [vmem:[#allocation2 + $0x60] sm:$0xff]  ;;  %v76_v22 = vld [vmem:[#allocation2 + $0x70] sm:$0xff]  ;;  %v79_v23 = vld [vmem:[#allocation2 + $0x88] sm:$0xff] }
  0x3d   :  { %2637 = vmatpush1.bf16.msra.mxu1 %v2636_v12  ;;  %v2248_v21 = vpack.c.bf16 %v74_v19, %v70_v18  ;;  %v83_v24 = vld [vmem:[#allocation2 + $0xa8] sm:$0xff]  ;;  %2247 = vmatprep.subr.bf16.mxu0 %v2246_v16  ;;  %v2640_v25 = vpack.c.bf16 %v76_v22, %v72_v20  ;;  %v81_v27 = vld [vmem:[#allocation2 + $0x98] sm:$0xff]  ;;  %v78_v29 = vld [vmem:[#allocation2 + $0x80] sm:$0xff] }
  0x3e   :  { %2639 = vmatprep.subr.bf16.mxu1 %v2638_v17  ;;  %v2250_v26 = vpack.c.bf16 %v83_v24, %v79_v23  ;;  %v85_v28 = vld [vmem:[#allocation2 + $0xb8] sm:$0xff]  ;;  %v82_v31 = vld [vmem:[#allocation2 + $0xa0] sm:$0xff]  ;;  %v80_v32 = vld [vmem:[#allocation2 + $0x90] sm:$0xff] }
  0x3f   :  { %v2642_v30 = vpack.c.bf16 %v85_v28, %v81_v27  ;;  %v84_v33 = vld [vmem:[#allocation2 + $0xb0] sm:$0xff]  ;;  %v2252_v34 = vpack.c.bf16 %v82_v31, %v78_v29  ;;  %v87_v35 = vld [vmem:[#allocation2 + $0xc8] sm:$0xff]  ;;  %v89_v37 = vld [vmem:[#allocation2 + $0xd8] sm:$0xff] }
  0x40   :  { %2249 = vmatpush1.bf16.msra.mxu0 %v2248_v21  ;;  %v91_v36 = vld [vmem:[#allocation2 + $0xe8] sm:$0xff]  ;;  %v2644_v38 = vpack.c.bf16 %v84_v33, %v80_v32  ;;  %v93_v40 = vld [vmem:[#allocation2 + $0xf8] sm:$0xff]  ;;  %v86_v41 = vld [vmem:[#allocation2 + $0xc0] sm:$0xff] }
  0x41   :  { %2641 = vmatpush1.bf16.msra.mxu1 %v2640_v25  ;;  %2251 = vmatprep.subr.bf16.mxu0 %v2250_v26  ;;  %v2254_v39 = vpack.c.bf16 %v91_v36, %v87_v35  ;;  %v90_v42 = vld [vmem:[#allocation2 + $0xe0] sm:$0xff]  ;;  %v2646_v43 = vpack.c.bf16 %v93_v40, %v89_v37  ;;  %v88_v44 = vld [vmem:[#allocation2 + $0xd0] sm:$0xff]  ;;  %v95_v46 = vld [vmem:[#allocation2 + $0x108] sm:$0xff] }
  0x42   :  { %2643 = vmatprep.subr.bf16.mxu1 %v2642_v30  ;;  %v92_v45 = vld [vmem:[#allocation2 + $0xf0] sm:$0xff]  ;;  %v99_v47 = vld [vmem:[#allocation2 + $0x128] sm:$0xff]  ;;  %v97_v48 = vld [vmem:[#allocation2 + $0x118] sm:$0xff]  ;;  %v2256_v50 = vpack.c.bf16 %v90_v42, %v86_v41 }
  0x43   :  { %v101_v49 = vld [vmem:[#allocation2 + $0x138] sm:$0xff]  ;;  %v2648_v51 = vpack.c.bf16 %v92_v45, %v88_v44  ;;  %v2258_v52 = vpack.c.bf16 %v99_v47, %v95_v46  ;;  %v94_v53 = vld [vmem:[#allocation2 + $0x100] sm:$0xff]  ;;  %v96_v55 = vld [vmem:[#allocation2 + $0x110] sm:$0xff]  ;;  %v848_v46 = vlaneseq  ;;  %v3228_v47 = vmov 1983009808  }
  0x44   :  { %2253 = vmatpush1.bf16.msra.mxu0 %v2252_v34  ;;  %v98_v54 = vld [vmem:[#allocation2 + $0x120] sm:$0xff]  ;;  %v2650_v56 = vpack.c.bf16 %v101_v49, %v97_v48  ;;  %v100_v57 = vld [vmem:[#allocation2 + $0x130] sm:$0xff]  ;;  %v103_v58 = vld [vmem:[#allocation2 + $0x148] sm:$0xff]  ;;  %v874_v48 = vunpack.c.l.s4 %v3228_v47 }
  0x45   :  { %2645 = vmatpush1.bf16.msra.mxu1 %v2644_v38  ;;  %2255 = vmatprep.subr.bf16.mxu0 %v2254_v39  ;;  %v107_v59 = vld [vmem:[#allocation2 + $0x168] sm:$0xff]  ;;  %v105_v60 = vld [vmem:[#allocation2 + $0x158] sm:$0xff]  ;;  %v2260_v62 = vpack.c.bf16 %v98_v54, %v94_v53  ;;  %v2652_v63 = vpack.c.bf16 %v100_v57, %v96_v55  ;;  %v102_v1 = vld [vmem:[#allocation2 + $0x140] sm:$0xff] }
  0x46   :  { %2647 = vmatprep.subr.bf16.mxu1 %v2646_v43  ;;  %v109_v61 = vld [vmem:[#allocation2 + $0x178] sm:$0xff]  ;;  %v2262_v0 = vpack.c.bf16 %v107_v59, %v103_v58  ;;  %v106_v2 = vld [vmem:[#allocation2 + $0x160] sm:$0xff]  ;;  %v104_v3 = vld [vmem:[#allocation2 + $0x150] sm:$0xff] }
  0x47   :  { %v2654_v4 = vpack.c.bf16 %v109_v61, %v105_v60  ;;  %v108_v5 = vld [vmem:[#allocation2 + $0x170] sm:$0xff]  ;;  %v111_v6 = vld [vmem:[#allocation2 + $0x188] sm:$0xff]  ;;  %v113_v8 = vld [vmem:[#allocation2 + $0x198] sm:$0xff]  ;;  %v2264_v10 = vpack.c.bf16 %v106_v2, %v102_v1  ;;  %v3304_v61 = vshrl.u32 %v848_v46, 7 }
  0x48   :  { %2257 = vmatpush1.bf16.msra.mxu0 %v2256_v50  ;;  %v115_v7 = vld [vmem:[#allocation2 + $0x1a8] sm:$0xff]  ;;  %v117_v9 = vld [vmem:[#allocation2 + $0x1b8] sm:$0xff]  ;;  %v2656_v11 = vpack.c.bf16 %v108_v5, %v104_v3  ;;  %v110_v13 = vld [vmem:[#allocation2 + $0x180] sm:$0xff] }
  0x49   :  { %2649 = vmatpush1.bf16.msra.mxu1 %v2648_v51  ;;  %2259 = vmatprep.subr.bf16.mxu0 %v2258_v52  ;;  %v2266_v12 = vpack.c.bf16 %v115_v7, %v111_v6  ;;  %v114_v14 = vld [vmem:[#allocation2 + $0x1a0] sm:$0xff]  ;;  %v112_v15 = vld [vmem:[#allocation2 + $0x190] sm:$0xff]  ;;  %v2658_v16 = vpack.c.bf16 %v117_v9, %v113_v8  ;;  %v119_v18 = vld [vmem:[#allocation2 + $0x1c8] sm:$0xff] }
  0x4a   :  { %2651 = vmatprep.subr.bf16.mxu1 %v2650_v56  ;;  %v116_v17 = vld [vmem:[#allocation2 + $0x1b0] sm:$0xff]  ;;  %v123_v19 = vld [vmem:[#allocation2 + $0x1e8] sm:$0xff]  ;;  %v121_v20 = vld [vmem:[#allocation2 + $0x1d8] sm:$0xff]  ;;  %v2268_v22 = vpack.c.bf16 %v114_v14, %v110_v13 }
  0x4b   :  { %v125_v21 = vld [vmem:[#allocation2 + $0x1f8] sm:$0xff]  ;;  %v2660_v23 = vpack.c.bf16 %v116_v17, %v112_v15  ;;  %v2270_v24 = vpack.c.bf16 %v123_v19, %v119_v18  ;;  %v118_v25 = vld [vmem:[#allocation2 + $0x1c0] sm:$0xff]  ;;  %v120_v27 = vld [vmem:[#allocation2 + $0x1d0] sm:$0xff] }
  0x4c   :  { %2261 = vmatpush1.bf16.msra.mxu0 %v2260_v62  ;;  %v122_v26 = vld [vmem:[#allocation2 + $0x1e0] sm:$0xff]  ;;  %v2662_v28 = vpack.c.bf16 %v125_v21, %v121_v20  ;;  %v124_v29 = vld [vmem:[#allocation2 + $0x1f0] sm:$0xff]  ;;  %v127_v30 = vld [vmem:[#allocation2 + $0x208] sm:$0xff]  ;;  %v875_v62 = vunpack.c.0.s8 %v874_v48 }
  0x4d   :  { %2653 = vmatpush1.bf16.msra.mxu1 %v2652_v63  ;;  %2263 = vmatprep.subr.bf16.mxu0 %v2262_v0  ;;  %v131_v31 = vld [vmem:[#allocation2 + $0x228] sm:$0xff]  ;;  %v129_v32 = vld [vmem:[#allocation2 + $0x218] sm:$0xff]  ;;  %v2272_v34 = vpack.c.bf16 %v122_v26, %v118_v25  ;;  %v2664_v35 = vpack.c.bf16 %v124_v29, %v120_v27  ;;  %v126_v37 = vld [vmem:[#allocation2 + $0x200] sm:$0xff] }
  0x4e   :  { %2655 = vmatprep.subr.bf16.mxu1 %v2654_v4  ;;  %v133_v33 = vld [vmem:[#allocation2 + $0x238] sm:$0xff]  ;;  %v2274_v36 = vpack.c.bf16 %v131_v31, %v127_v30  ;;  %v130_v38 = vld [vmem:[#allocation2 + $0x220] sm:$0xff]  ;;  %v128_v39 = vld [vmem:[#allocation2 + $0x210] sm:$0xff] }
  0x4f   :  { %v2666_v40 = vpack.c.bf16 %v133_v33, %v129_v32  ;;  %v132_v41 = vld [vmem:[#allocation2 + $0x230] sm:$0xff]  ;;  %v135_v42 = vld [vmem:[#allocation2 + $0x248] sm:$0xff]  ;;  %v137_v44 = vld [vmem:[#allocation2 + $0x258] sm:$0xff]  ;;  %v2276_v49 = vpack.c.bf16 %v130_v38, %v126_v37 }
  0x50   :  { %2265 = vmatpush1.bf16.msra.mxu0 %v2264_v10  ;;  %v139_v43 = vld [vmem:[#allocation2 + $0x268] sm:$0xff]  ;;  %v141_v45 = vld [vmem:[#allocation2 + $0x278] sm:$0xff]  ;;  %v2668_v50 = vpack.c.bf16 %v132_v41, %v128_v39  ;;  %v134_v52 = vld [vmem:[#allocation2 + $0x240] sm:$0xff] }
  0x51   :  { %2657 = vmatpush1.bf16.msra.mxu1 %v2656_v11  ;;  %2267 = vmatprep.subr.bf16.mxu0 %v2266_v12  ;;  %v2278_v51 = vpack.c.bf16 %v139_v43, %v135_v42  ;;  %v138_v53 = vld [vmem:[#allocation2 + $0x260] sm:$0xff]  ;;  %v136_v54 = vld [vmem:[#allocation2 + $0x250] sm:$0xff]  ;;  %v2670_v55 = vpack.c.bf16 %v141_v45, %v137_v44  ;;  %v143_v57 = vld [vmem:[#allocation2 + $0x288] sm:$0xff]  ;;  %v3307_v11 = vsub.s32 %v875_v62, %v3304_v61 }
  0x52   :  { %2659 = vmatprep.subr.bf16.mxu1 %v2658_v16  ;;  %v140_v56 = vld [vmem:[#allocation2 + $0x270] sm:$0xff]  ;;  %v147_v58 = vld [vmem:[#allocation2 + $0x2a8] sm:$0xff]  ;;  %v145_v59 = vld [vmem:[#allocation2 + $0x298] sm:$0xff]  ;;  %v2280_v63 = vpack.c.bf16 %v138_v53, %v134_v52 }
  0x53   :  { %v149_v60 = vld [vmem:[#allocation2 + $0x2b8] sm:$0xff]  ;;  %v2672_v0 = vpack.c.bf16 %v140_v56, %v136_v54  ;;  %v2282_v1 = vpack.c.bf16 %v147_v58, %v143_v57  ;;  %v142_v2 = vld [vmem:[#allocation2 + $0x280] sm:$0xff]  ;;  %v144_v4 = vld [vmem:[#allocation2 + $0x290] sm:$0xff] }
  0x54   :  { %2269 = vmatpush1.bf16.msra.mxu0 %v2268_v22  ;;  %v146_v3 = vld [vmem:[#allocation2 + $0x2a0] sm:$0xff]  ;;  %v2674_v5 = vpack.c.bf16 %v149_v60, %v145_v59  ;;  %v148_v6 = vld [vmem:[#allocation2 + $0x2b0] sm:$0xff]  ;;  %v151_v7 = vld [vmem:[#allocation2 + $0x2c8] sm:$0xff] }
  0x55   :  { %2661 = vmatpush1.bf16.msra.mxu1 %v2660_v23  ;;  %2271 = vmatprep.subr.bf16.mxu0 %v2270_v24  ;;  %v155_v8 = vld [vmem:[#allocation2 + $0x2e8] sm:$0xff]  ;;  %v153_v9 = vld [vmem:[#allocation2 + $0x2d8] sm:$0xff]  ;;  %v2284_v12 = vpack.c.bf16 %v146_v3, %v142_v2  ;;  %v150_v13 = vld [vmem:[#allocation2 + $0x2c0] sm:$0xff]  ;;  %v2676_v14 = vpack.c.bf16 %v148_v6, %v144_v4 }
  0x56   :  { %2663 = vmatprep.subr.bf16.mxu1 %v2662_v28  ;;  %v157_v10 = vld [vmem:[#allocation2 + $0x2f8] sm:$0xff]  ;;  %v2286_v15 = vpack.c.bf16 %v155_v8, %v151_v7  ;;  %v154_v16 = vld [vmem:[#allocation2 + $0x2e0] sm:$0xff]  ;;  %v152_v17 = vld [vmem:[#allocation2 + $0x2d0] sm:$0xff] }
  0x57   :  { %v156_v18 = vld [vmem:[#allocation2 + $0x2f0] sm:$0xff]  ;;  %v2678_v19 = vpack.c.bf16 %v157_v10, %v153_v9  ;;  %v159_v20 = vld [vmem:[#allocation2 + $0x308] sm:$0xff]  ;;  %v3312_v22 = vld [vmem:[%s3588_s0] sm:$0xff]  ;;  %v2288_v26 = vpack.c.bf16 %v154_v16, %v150_v13 }
  0x58   :  { %2273 = vmatpush1.bf16.msra.mxu0 %v2272_v34  ;;  %v163_v21 = vld [vmem:[#allocation2 + $0x328] sm:$0xff]  ;;  %v161_v23 = vld [vmem:[#allocation2 + $0x318] sm:$0xff]  ;;  %v3316_v25 = vrot.slane %v3312_v22, %v3307_v11  ;;  %v2680_v27 = vpack.c.bf16 %v156_v18, %v152_v17  ;;  %v158_v29 = vld [vmem:[#allocation2 + $0x300] sm:$0xff]  ;;  %v872_v8 = vcombine.high %v3312_v22, %v3312_v22 }
  0x59   :  { %2665 = vmatpush1.bf16.msra.mxu1 %v2664_v35  ;;  %2275 = vmatprep.subr.bf16.mxu0 %v2274_v36  ;;  %v165_v24 = vld [vmem:[#allocation2 + $0x338] sm:$0xff]  ;;  %v2290_v28 = vpack.c.bf16 %v163_v21, %v159_v20  ;;  %v162_v30 = vld [vmem:[#allocation2 + $0x320] sm:$0xff]  ;;  %v160_v31 = vld [vmem:[#allocation2 + $0x310] sm:$0xff] }
  0x5a   :  { %2667 = vmatprep.subr.bf16.mxu1 %v2666_v40  ;;  %v887_v32 = vcombine.high %v3316_v25, %v3316_v25  ;;  %v2682_v33 = vpack.c.bf16 %v165_v24, %v161_v23  ;;  %v164_v34 = vld [vmem:[#allocation2 + $0x330] sm:$0xff]  ;;  %v167_v35 = vld [vmem:[#allocation2 + $0x348] sm:$0xff]  ;;  %v169_v37 = vld [vmem:[#allocation2 + $0x358] sm:$0xff]  ;;  %v2292_v39 = vpack.c.bf16 %v162_v30, %v158_v29  ;;  %v3323_v22 = vrot.slane %v872_v8, %v3307_v11 }
  0x5b   :  { %v171_v36 = vld [vmem:[#allocation2 + $0x368] sm:$0xff]  ;;  %v173_v38 = vld [vmem:[#allocation2 + $0x378] sm:$0xff]  ;;  %v2684_v40 = vpack.c.bf16 %v164_v34, %v160_v31  ;;  %v166_v42 = vld [vmem:[#allocation2 + $0x340] sm:$0xff] }
  0x5c   :  { %2277 = vmatpush1.bf16.msra.mxu0 %v2276_v49  ;;  %1009 = vmatprep.mubr.f32.mxu0 %v887_v32  ;;  %v2294_v41 = vpack.c.bf16 %v171_v36, %v167_v35  ;;  %v170_v43 = vld [vmem:[#allocation2 + $0x360] sm:$0xff]  ;;  %v168_v44 = vld [vmem:[#allocation2 + $0x350] sm:$0xff]  ;;  %v2686_v45 = vpack.c.bf16 %v173_v38, %v169_v37  ;;  %v175_v47 = vld [vmem:[#allocation2 + $0x388] sm:$0xff]  ;;  %v888_v38 = vcombine.high %v3323_v22, %v3323_v22 }
  0x5d   :  { %2669 = vmatpush1.bf16.msra.mxu1 %v2668_v50  ;;  %2279 = vmatprep.subr.bf16.mxu0 %v2278_v51  ;;  %v172_v46 = vld [vmem:[#allocation2 + $0x370] sm:$0xff]  ;;  %v179_v48 = vld [vmem:[#allocation2 + $0x3a8] sm:$0xff]  ;;  %v177_v49 = vld [vmem:[#allocation2 + $0x398] sm:$0xff]  ;;  %v2296_v51 = vpack.c.bf16 %v170_v43, %v166_v42 }
  0x5e   :  { %2671 = vmatprep.subr.bf16.mxu1 %v2670_v55  ;;  %1506 = vmatprep.mubr.f32.mxu1 %v887_v32  ;;  %v181_v50 = vld [vmem:[#allocation2 + $0x3b8] sm:$0xff]  ;;  %v2688_v52 = vpack.c.bf16 %v172_v46, %v168_v44  ;;  %v2298_v53 = vpack.c.bf16 %v179_v48, %v175_v47  ;;  %v174_v54 = vld [vmem:[#allocation2 + $0x380] sm:$0xff]  ;;  %v176_v56 = vld [vmem:[#allocation2 + $0x390] sm:$0xff] }
  0x5f   :  { %v178_v55 = vld [vmem:[#allocation2 + $0x3a0] sm:$0xff]  ;;  %v2690_v57 = vpack.c.bf16 %v181_v50, %v177_v49  ;;  %v180_v58 = vld [vmem:[#allocation2 + $0x3b0] sm:$0xff]  ;;  %v183_v59 = vld [vmem:[#allocation2 + $0x3c8] sm:$0xff] }
  0x60   :  { %2281 = vmatpush1.bf16.msra.mxu0 %v2280_v63  ;;  %v187_v60 = vld [vmem:[#allocation2 + $0x3e8] sm:$0xff]  ;;  %v185_v62 = vld [vmem:[#allocation2 + $0x3d8] sm:$0xff]  ;;  %v182_v3 = vld [vmem:[#allocation2 + $0x3c0] sm:$0xff] }
  0x61   :  { %2673 = vmatpush1.bf16.msra.mxu1 %v2672_v0  ;;  %2283 = vmatprep.subr.bf16.mxu0 %v2282_v1  ;;  %v189_v63 = vld [vmem:[#allocation2 + $0x3f8] sm:$0xff]  ;;  %v2300_v0 = vpack.c.bf16 %v178_v55, %v174_v54  ;;  %v2692_v1 = vpack.c.bf16 %v180_v58, %v176_v56  ;;  %v2302_v2 = vpack.c.bf16 %v187_v60, %v183_v59  ;;  %v186_v4 = vld [vmem:[#allocation2 + $0x3e0] sm:$0xff]  ;;  %v188_v7 = vld [vmem:[#allocation2 + $0x3f0] sm:$0xff] }
  0x62   :  { %2675 = vmatprep.subr.bf16.mxu1 %v2674_v5  ;;  %v184_v5 = vld [vmem:[#allocation2 + $0x3d0] sm:$0xff]  ;;  %v2694_v6 = vpack.c.bf16 %v189_v63, %v185_v62  ;;  %v191_v9 = vld [vmem:[#allocation2 + $0x408] sm:$0xff]  ;;  %v197_v13 = vld [vmem:[#allocation2 + $0x438] sm:$0xff] }
  0x63   :  { %v195_v10 = vld [vmem:[#allocation2 + $0x428] sm:$0xff]  ;;  %v190_v17 = vld [vmem:[#allocation2 + $0x400] sm:$0xff]  ;;  %v196_v21 = vld [vmem:[#allocation2 + $0x430] sm:$0xff] }
  0x64   :  { %2285 = vmatpush1.bf16.msra.mxu0 %v2284_v12  ;;  %v193_v12 = vld [vmem:[#allocation2 + $0x418] sm:$0xff]  ;;  %v2306_v16 = vpack.c.bf16 %v195_v10, %v191_v9  ;;  %v194_v18 = vld [vmem:[#allocation2 + $0x420] sm:$0xff]  ;;  %v199_v23 = vld [vmem:[#allocation2 + $0x448] sm:$0xff] }
  0x65   :  { %2677 = vmatpush1.bf16.msra.mxu1 %v2676_v14  ;;  %2287 = vmatprep.subr.bf16.mxu0 %v2286_v15  ;;  %v2304_v14 = vpack.c.bf16 %v186_v4, %v182_v3  ;;  %v2696_v15 = vpack.c.bf16 %v188_v7, %v184_v5  ;;  %v2698_v20 = vpack.c.bf16 %v197_v13, %v193_v12  ;;  %v203_v24 = vld [vmem:[#allocation2 + $0x468] sm:$0xff]  ;;  %v198_v31 = vld [vmem:[#allocation2 + $0x440] sm:$0xff]  ;;  %v204_v35 = vld [vmem:[#allocation2 + $0x470] sm:$0xff] }
  0x66   :  { %2679 = vmatprep.subr.bf16.mxu1 %v2678_v19  ;;  %v192_v19 = vld [vmem:[#allocation2 + $0x410] sm:$0xff]  ;;  %v2310_v30 = vpack.c.bf16 %v203_v24, %v199_v23  ;;  %v202_v32 = vld [vmem:[#allocation2 + $0x460] sm:$0xff]  ;;  %v207_v36 = vld [vmem:[#allocation2 + $0x488] sm:$0xff] }
  0x67   :  { %v2700_v29 = vpack.c.bf16 %v196_v21, %v192_v19  ;;  %v211_v37 = vld [vmem:[#allocation2 + $0x4a8] sm:$0xff]  ;;  %v206_v44 = vld [vmem:[#allocation2 + $0x480] sm:$0xff]  ;;  %v208_v46 = vld [vmem:[#allocation2 + $0x490] sm:$0xff] }
  0x68   :  { %2289 = vmatpush1.bf16.msra.mxu0 %v2288_v26  ;;  %v201_v26 = vld [vmem:[#allocation2 + $0x458] sm:$0xff]  ;;  %v2314_v43 = vpack.c.bf16 %v211_v37, %v207_v36  ;;  %v212_v48 = vld [vmem:[#allocation2 + $0x4b0] sm:$0xff]  ;;  %v215_v49 = vld [vmem:[#allocation2 + $0x4c8] sm:$0xff] }
  0x69   :  { %2681 = vmatpush1.bf16.msra.mxu1 %v2680_v27  ;;  %2291 = vmatprep.subr.bf16.mxu0 %v2290_v28  ;;  %v205_v27 = vld [vmem:[#allocation2 + $0x478] sm:$0xff]  ;;  %v2308_v28 = vpack.c.bf16 %v194_v18, %v190_v17  ;;  %v219_v50 = vld [vmem:[#allocation2 + $0x4e8] sm:$0xff]  ;;  %v214_v55 = vld [vmem:[#allocation2 + $0x4c0] sm:$0xff] }
  0x6a   :  { %2683 = vmatprep.subr.bf16.mxu1 %v2682_v33  ;;  %v200_v33 = vld [vmem:[#allocation2 + $0x450] sm:$0xff]  ;;  %v2702_v34 = vpack.c.bf16 %v205_v27, %v201_v26  ;;  %v2318_v54 = vpack.c.bf16 %v219_v50, %v215_v49  ;;  %v218_v56 = vld [vmem:[#allocation2 + $0x4e0] sm:$0xff]  ;;  %v223_v60 = vld [vmem:[#allocation2 + $0x508] sm:$0xff] }
  0x6b   :  { %v2704_v42 = vpack.c.bf16 %v204_v35, %v200_v33  ;;  %v220_v59 = vld [vmem:[#allocation2 + $0x4f0] sm:$0xff]  ;;  %v227_v62 = vld [vmem:[#allocation2 + $0x528] sm:$0xff]  ;;  %v225_v63 = vld [vmem:[#allocation2 + $0x518] sm:$0xff] }
  0x6c   :  { %2293 = vmatpush1.bf16.msra.mxu0 %v2292_v39  ;;  %v209_v39 = vld [vmem:[#allocation2 + $0x498] sm:$0xff]  ;;  %v2322_v3 = vpack.c.bf16 %v227_v62, %v223_v60  ;;  %v222_v4 = vld [vmem:[#allocation2 + $0x500] sm:$0xff]  ;;  %v228_v8 = vld [vmem:[#allocation2 + $0x530] sm:$0xff] }
  0x6d   :  { %2685 = vmatpush1.bf16.msra.mxu1 %v2684_v40  ;;  %2295 = vmatprep.subr.bf16.mxu0 %v2294_v41  ;;  %v213_v40 = vld [vmem:[#allocation2 + $0x4b8] sm:$0xff]  ;;  %v2312_v41 = vpack.c.bf16 %v202_v32, %v198_v31  ;;  %v226_v5 = vld [vmem:[#allocation2 + $0x520] sm:$0xff]  ;;  %v231_v9 = vld [vmem:[#allocation2 + $0x548] sm:$0xff] }
  0x6e   :  { %2687 = vmatprep.subr.bf16.mxu1 %v2686_v45  ;;  %v210_v45 = vld [vmem:[#allocation2 + $0x4a0] sm:$0xff]  ;;  %v2706_v47 = vpack.c.bf16 %v213_v40, %v209_v39  ;;  %v235_v10 = vld [vmem:[#allocation2 + $0x568] sm:$0xff]  ;;  %v233_v12 = vld [vmem:[#allocation2 + $0x558] sm:$0xff] }
  0x6f   :  { %v237_v13 = vld [vmem:[#allocation2 + $0x578] sm:$0xff]  ;;  %v230_v17 = vld [vmem:[#allocation2 + $0x540] sm:$0xff]  ;;  %v232_v19 = vld [vmem:[#allocation2 + $0x550] sm:$0xff] }
  0x70   :  { %2297 = vmatpush1.bf16.msra.mxu0 %v2296_v51  ;;  %v217_v51 = vld [vmem:[#allocation2 + $0x4d8] sm:$0xff]  ;;  %v234_v18 = vld [vmem:[#allocation2 + $0x560] sm:$0xff]  ;;  %v236_v21 = vld [vmem:[#allocation2 + $0x570] sm:$0xff] }
  0x71   :  { %2689 = vmatpush1.bf16.msra.mxu1 %v2688_v52  ;;  %2299 = vmatprep.subr.bf16.mxu0 %v2298_v53  ;;  %v221_v52 = vld [vmem:[#allocation2 + $0x4f8] sm:$0xff]  ;;  %v2316_v53 = vpack.c.bf16 %v210_v45, %v206_v44  ;;  %v239_v23 = vld [vmem:[#allocation2 + $0x588] sm:$0xff]  ;;  %v238_v31 = vld [vmem:[#allocation2 + $0x580] sm:$0xff] }
  0x72   :  { %2691 = vmatprep.subr.bf16.mxu1 %v2690_v57  ;;  %v216_v57 = vld [vmem:[#allocation2 + $0x4d0] sm:$0xff]  ;;  %v2710_v58 = vpack.c.bf16 %v221_v52, %v217_v51  ;;  %v243_v24 = vld [vmem:[#allocation2 + $0x5a8] sm:$0xff]  ;;  %v241_v26 = vld [vmem:[#allocation2 + $0x598] sm:$0xff] }
  0x73   :  { %v245_v27 = vld [vmem:[#allocation2 + $0x5b8] sm:$0xff]  ;;  %v242_v32 = vld [vmem:[#allocation2 + $0x5a0] sm:$0xff]  ;;  %v240_v33 = vld [vmem:[#allocation2 + $0x590] sm:$0xff] }
  0x74   :  { %2301 = vmatpush1.bf16.msra.mxu0 %v2300_v0  ;;  %v229_v0 = vld [vmem:[#allocation2 + $0x538] sm:$0xff]  ;;  %v244_v35 = vld [vmem:[#allocation2 + $0x5b0] sm:$0xff]  ;;  %v247_v36 = vld [vmem:[#allocation2 + $0x5c8] sm:$0xff]  ;;  %v2332_v40 = vpack.c.bf16 %v242_v32, %v238_v31 }
  0x75   :  { %2693 = vmatpush1.bf16.msra.mxu1 %v2692_v1  ;;  %2303 = vmatprep.subr.bf16.mxu0 %v2302_v2  ;;  %v2320_v1 = vpack.c.bf16 %v218_v56, %v214_v55  ;;  %v2712_v2 = vpack.c.bf16 %v220_v59, %v216_v57  ;;  %v2714_v7 = vpack.c.bf16 %v229_v0, %v225_v63  ;;  %v251_v37 = vld [vmem:[#allocation2 + $0x5e8] sm:$0xff]  ;;  %v253_v39 = vld [vmem:[#allocation2 + $0x5f8] sm:$0xff]  ;;  %v250_v44 = vld [vmem:[#allocation2 + $0x5e0] sm:$0xff] }
  0x76   :  { %2695 = vmatprep.subr.bf16.mxu1 %v2694_v6  ;;  %v224_v6 = vld [vmem:[#allocation2 + $0x510] sm:$0xff]  ;;  %v259_v49 = vld [vmem:[#allocation2 + $0x628] sm:$0xff]  ;;  %v257_v50 = vld [vmem:[#allocation2 + $0x618] sm:$0xff] }
  0x77   :  { %v248_v45 = vld [vmem:[#allocation2 + $0x5d0] sm:$0xff]  ;;  %v261_v51 = vld [vmem:[#allocation2 + $0x638] sm:$0xff]  ;;  %v258_v55 = vld [vmem:[#allocation2 + $0x620] sm:$0xff] }
  0x78   :  { %2305 = vmatpush1.bf16.msra.mxu0 %v2304_v14  ;;  %v2324_v14 = vpack.c.bf16 %v226_v5, %v222_v4  ;;  %v256_v56 = vld [vmem:[#allocation2 + $0x610] sm:$0xff]  ;;  %v2730_v57 = vpack.c.bf16 %v261_v51, %v257_v50  ;;  %v263_v59 = vld [vmem:[#allocation2 + $0x648] sm:$0xff]  ;;  %v265_v62 = vld [vmem:[#allocation2 + $0x658] sm:$0xff] }
  0x79   :  { %2697 = vmatpush1.bf16.msra.mxu1 %v2696_v15  ;;  %2307 = vmatprep.subr.bf16.mxu0 %v2306_v16  ;;  %v2716_v15 = vpack.c.bf16 %v228_v8, %v224_v6  ;;  %v2326_v16 = vpack.c.bf16 %v235_v10, %v231_v9  ;;  %v267_v60 = vld [vmem:[#allocation2 + $0x668] sm:$0xff]  ;;  %v269_v63 = vld [vmem:[#allocation2 + $0x678] sm:$0xff]  ;;  %v266_v4 = vld [vmem:[#allocation2 + $0x660] sm:$0xff] }
  0x7a   :  { %2699 = vmatprep.subr.bf16.mxu1 %v2698_v20  ;;  %v2718_v20 = vpack.c.bf16 %v237_v13, %v233_v12  ;;  %v264_v5 = vld [vmem:[#allocation2 + $0x650] sm:$0xff]  ;;  %v2734_v6 = vpack.c.bf16 %v269_v63, %v265_v62  ;;  %v271_v8 = vld [vmem:[#allocation2 + $0x688] sm:$0xff]  ;;  %v273_v10 = vld [vmem:[#allocation2 + $0x698] sm:$0xff] }
  0x7b   :  { %1010 = vmatmul.mubr.f32.vlgmr.msra.gmra.mrb[0].mxu0 %v3316_v25  ;;  %v275_v9 = vld [vmem:[#allocation2 + $0x6a8] sm:$0xff]  ;;  %v277_v12 = vld [vmem:[#allocation2 + $0x6b8] sm:$0xff]  ;;  %v282_v31 = vld [vmem:[#allocation2 + $0x6e0] sm:$0xff] }
  0x7c   :  { %2309 = vmatpush1.bf16.msra.mxu0 %v2308_v28  ;;  %1507 = vmatmul.mubr.f32.vlgmr.msra.gmra.mrb[0].mxu1 %v3316_v25  ;;  %v2708_v25 = vpack.c.bf16 %v212_v48, %v208_v46  ;;  %v2328_v28 = vpack.c.bf16 %v234_v18, %v230_v17  ;;  %v255_v48 = vld [vmem:[#allocation2 + $0x608] sm:$0xff]  ;;  %v274_v17 = vld [vmem:[#allocation2 + $0x6a0] sm:$0xff]  ;;  %v272_v18 = vld [vmem:[#allocation2 + $0x690] sm:$0xff] }
  0x7d   :  { %2701 = vmatpush1.bf16.msra.mxu1 %v2700_v29  ;;  %2311 = vmatprep.subr.bf16.mxu0 %v2310_v30  ;;  %v2720_v29 = vpack.c.bf16 %v236_v21, %v232_v19  ;;  %v2330_v30 = vpack.c.bf16 %v243_v24, %v239_v23  ;;  %v2738_v19 = vpack.c.bf16 %v277_v12, %v273_v10  ;;  %v279_v21 = vld [vmem:[#allocation2 + $0x6c8] sm:$0xff]  ;;  %v281_v24 = vld [vmem:[#allocation2 + $0x6d8] sm:$0xff]  ;;  %v280_v32 = vld [vmem:[#allocation2 + $0x6d0] sm:$0xff] }
  0x7e   :  { %2703 = vmatprep.subr.bf16.mxu1 %v2702_v34  ;;  %1080 = vmatprep.mubr.f32.mxu0 %v888_v38  ;;  %v2722_v34 = vpack.c.bf16 %v245_v27, %v241_v26  ;;  %v283_v23 = vld [vmem:[#allocation2 + $0x6e8] sm:$0xff]  ;;  %v285_v26 = vld [vmem:[#allocation2 + $0x6f8] sm:$0xff] }
  0x7f   :  { %1577 = vmatprep.mubr.f32.mxu1 %v888_v38  ;;  %v249_v38 = vld [vmem:[#allocation2 + $0x5d8] sm:$0xff] }
  0x80   :  { %2313 = vmatpush1.bf16.msra.mxu0 %v2312_v41  ;;  %v2724_v41 = vpack.c.bf16 %v244_v35, %v240_v33  ;;  %v2726_v46 = vpack.c.bf16 %v253_v39, %v249_v38  ;;  %v2742_v33 = vpack.c.bf16 %v285_v26, %v281_v24  ;;  %v287_v35 = vld [vmem:[#allocation2 + $0x708] sm:$0xff]  ;;  %v293_v38 = vld [vmem:[#allocation2 + $0x738] sm:$0xff] }
  0x81   :  { %2705 = vmatpush1.bf16.msra.mxu1 %v2704_v42  ;;  %2315 = vmatprep.subr.bf16.mxu0 %v2314_v43  ;;  %v2334_v42 = vpack.c.bf16 %v251_v37, %v247_v36  ;;  %v246_v43 = vld [vmem:[#allocation2 + $0x5c0] sm:$0xff]  ;;  %v291_v36 = vld [vmem:[#allocation2 + $0x728] sm:$0xff]  ;;  %v289_v37 = vld [vmem:[#allocation2 + $0x718] sm:$0xff] }
  0x82   :  { %2707 = vmatprep.subr.bf16.mxu1 %v2706_v47  ;;  %v252_v47 = vld [vmem:[#allocation2 + $0x5f0] sm:$0xff]  ;;  %v2336_v52 = vpack.c.bf16 %v250_v44, %v246_v43  ;;  %v290_v43 = vld [vmem:[#allocation2 + $0x720] sm:$0xff]  ;;  %v301_v50 = vld [vmem:[#allocation2 + $0x778] sm:$0xff] }
  0x83   :  { %v288_v44 = vld [vmem:[#allocation2 + $0x710] sm:$0xff]  ;;  %v309_v62 = vld [vmem:[#allocation2 + $0x7b8] sm:$0xff] }
  0x84   :  { %2317 = vmatpush1.bf16.msra.mxu0 %v2316_v53  ;;  %v2728_v53 = vpack.c.bf16 %v252_v47, %v248_v45  ;;  %v2746_v45 = vpack.c.bf16 %v293_v38, %v289_v37  ;;  %v295_v47 = vld [vmem:[#allocation2 + $0x748] sm:$0xff]  ;;  %v317_v10 = vld [vmem:[#allocation2 + $0x7f8] sm:$0xff] }
  0x85   :  { %2709 = vmatpush1.bf16.msra.mxu1 %v2708_v25  ;;  %2319 = vmatprep.subr.bf16.mxu0 %v2318_v54  ;;  %v2338_v25 = vpack.c.bf16 %v259_v49, %v255_v48  ;;  %v254_v54 = vld [vmem:[#allocation2 + $0x600] sm:$0xff]  ;;  %v299_v48 = vld [vmem:[#allocation2 + $0x768] sm:$0xff]  ;;  %v297_v49 = vld [vmem:[#allocation2 + $0x758] sm:$0xff] }
  0x86   :  { %2711 = vmatprep.subr.bf16.mxu1 %v2710_v58  ;;  %v260_v58 = vld [vmem:[#allocation2 + $0x630] sm:$0xff]  ;;  %v2340_v0 = vpack.c.bf16 %v258_v55, %v254_v54  ;;  %v298_v54 = vld [vmem:[#allocation2 + $0x760] sm:$0xff]  ;;  %v325_v24 = vld [vmem:[#allocation2 + $0x838] sm:$0xff] }
  0x87   :  { %v296_v55 = vld [vmem:[#allocation2 + $0x750] sm:$0xff]  ;;  %v333_v37 = vld [vmem:[#allocation2 + $0x878] sm:$0xff] }
  0x88   :  { %2321 = vmatpush1.bf16.msra.mxu0 %v2320_v1  ;;  %v2732_v1 = vpack.c.bf16 %v260_v58, %v256_v56  ;;  %v2750_v56 = vpack.c.bf16 %v301_v50, %v297_v49  ;;  %v303_v58 = vld [vmem:[#allocation2 + $0x788] sm:$0xff]  ;;  %v337_v50 = vld [vmem:[#allocation2 + $0x898] sm:$0xff] }
  0x89   :  { %2713 = vmatpush1.bf16.msra.mxu1 %v2712_v2  ;;  %2323 = vmatprep.subr.bf16.mxu0 %v2322_v3  ;;  %v2342_v2 = vpack.c.bf16 %v267_v60, %v263_v59  ;;  %v262_v3 = vld [vmem:[#allocation2 + $0x640] sm:$0xff]  ;;  %v307_v59 = vld [vmem:[#allocation2 + $0x7a8] sm:$0xff]  ;;  %v305_v60 = vld [vmem:[#allocation2 + $0x798] sm:$0xff] }
  0x8a   :  { %2715 = vmatprep.subr.bf16.mxu1 %v2714_v7  ;;  %v268_v7 = vld [vmem:[#allocation2 + $0x670] sm:$0xff]  ;;  %v2344_v13 = vpack.c.bf16 %v266_v4, %v262_v3  ;;  %v306_v3 = vld [vmem:[#allocation2 + $0x7a0] sm:$0xff]  ;;  %v339_v49 = vld [vmem:[#allocation2 + $0x8a8] sm:$0xff] }
  0x8b   :  { %v304_v4 = vld [vmem:[#allocation2 + $0x790] sm:$0xff] }
  0x8c   :  { %2325 = vmatpush1.bf16.msra.mxu0 %v2324_v14  ;;  %v2736_v14 = vpack.c.bf16 %v268_v7, %v264_v5  ;;  %v2754_v5 = vpack.c.bf16 %v309_v62, %v305_v60  ;;  %v311_v7 = vld [vmem:[#allocation2 + $0x7c8] sm:$0xff] }
  0x8d   :  { %2717 = vmatpush1.bf16.msra.mxu1 %v2716_v15  ;;  %2327 = vmatprep.subr.bf16.mxu0 %v2326_v16  ;;  %v2346_v15 = vpack.c.bf16 %v275_v9, %v271_v8  ;;  %v270_v16 = vld [vmem:[#allocation2 + $0x680] sm:$0xff]  ;;  %v315_v8 = vld [vmem:[#allocation2 + $0x7e8] sm:$0xff]  ;;  %v313_v9 = vld [vmem:[#allocation2 + $0x7d8] sm:$0xff] }
  0x8e   :  { %2719 = vmatprep.subr.bf16.mxu1 %v2718_v20  ;;  %v276_v20 = vld [vmem:[#allocation2 + $0x6b0] sm:$0xff]  ;;  %v2348_v27 = vpack.c.bf16 %v274_v17, %v270_v16  ;;  %v314_v16 = vld [vmem:[#allocation2 + $0x7e0] sm:$0xff]  ;;  %v343_v60 = vld [vmem:[#allocation2 + $0x8c8] sm:$0xff] }
  0x8f   :  { %v312_v17 = vld [vmem:[#allocation2 + $0x7d0] sm:$0xff]  ;;  %v347_v62 = vld [vmem:[#allocation2 + $0x8e8] sm:$0xff] }
  0x90   :  { %2329 = vmatpush1.bf16.msra.mxu0 %v2328_v28  ;;  %v2740_v28 = vpack.c.bf16 %v276_v20, %v272_v18  ;;  %v2758_v18 = vpack.c.bf16 %v317_v10, %v313_v9  ;;  %v319_v20 = vld [vmem:[#allocation2 + $0x808] sm:$0xff]  ;;  %v353_v10 = vld [vmem:[#allocation2 + $0x918] sm:$0xff] }
  0x91   :  { %2721 = vmatpush1.bf16.msra.mxu1 %v2720_v29  ;;  %2331 = vmatprep.subr.bf16.mxu0 %v2330_v30  ;;  %v2350_v29 = vpack.c.bf16 %v283_v23, %v279_v21  ;;  %v278_v30 = vld [vmem:[#allocation2 + $0x6c0] sm:$0xff]  ;;  %v323_v21 = vld [vmem:[#allocation2 + $0x828] sm:$0xff]  ;;  %v321_v23 = vld [vmem:[#allocation2 + $0x818] sm:$0xff] }
  0x92   :  { %2723 = vmatprep.subr.bf16.mxu1 %v2722_v34  ;;  %v284_v34 = vld [vmem:[#allocation2 + $0x6f0] sm:$0xff]  ;;  %v2352_v39 = vpack.c.bf16 %v282_v31, %v278_v30  ;;  %v322_v30 = vld [vmem:[#allocation2 + $0x820] sm:$0xff]  ;;  %v355_v9 = vld [vmem:[#allocation2 + $0x928] sm:$0xff] }
  0x93   :  { %v320_v31 = vld [vmem:[#allocation2 + $0x810] sm:$0xff] }
  0x94   :  { %2333 = vmatpush1.bf16.msra.mxu0 %v2332_v40  ;;  %v2744_v40 = vpack.c.bf16 %v284_v34, %v280_v32  ;;  %v2762_v32 = vpack.c.bf16 %v325_v24, %v321_v23  ;;  %v327_v34 = vld [vmem:[#allocation2 + $0x848] sm:$0xff]  ;;  %v361_v24 = vld [vmem:[#allocation2 + $0x958] sm:$0xff] }
  0x95   :  { %2725 = vmatpush1.bf16.msra.mxu1 %v2724_v41  ;;  %2335 = vmatprep.subr.bf16.mxu0 %v2334_v42  ;;  %v2354_v41 = vpack.c.bf16 %v291_v36, %v287_v35  ;;  %v286_v42 = vld [vmem:[#allocation2 + $0x700] sm:$0xff]  ;;  %v331_v35 = vld [vmem:[#allocation2 + $0x868] sm:$0xff]  ;;  %v329_v36 = vld [vmem:[#allocation2 + $0x858] sm:$0xff] }
  0x96   :  { %2727 = vmatprep.subr.bf16.mxu1 %v2726_v46  ;;  %v292_v46 = vld [vmem:[#allocation2 + $0x730] sm:$0xff]  ;;  %v2356_v51 = vpack.c.bf16 %v290_v43, %v286_v42  ;;  %v326_v42 = vld [vmem:[#allocation2 + $0x840] sm:$0xff]  ;;  %v363_v23 = vld [vmem:[#allocation2 + $0x968] sm:$0xff] }
  0x97   :  { %v330_v43 = vld [vmem:[#allocation2 + $0x860] sm:$0xff] }
  0x98   :  { %2337 = vmatpush1.bf16.msra.mxu0 %v2336_v52  ;;  %v2748_v52 = vpack.c.bf16 %v292_v46, %v288_v44  ;;  %v328_v44 = vld [vmem:[#allocation2 + $0x850] sm:$0xff]  ;;  %v2766_v46 = vpack.c.bf16 %v333_v37, %v329_v36  ;;  %v371_v36 = vld [vmem:[#allocation2 + $0x9a8] sm:$0xff]  ;;  %v369_v37 = vld [vmem:[#allocation2 + $0x998] sm:$0xff] }
  0x99   :  { %2729 = vmatpush1.bf16.msra.mxu1 %v2728_v53  ;;  %2339 = vmatprep.subr.bf16.mxu0 %v2338_v25  ;;  %v2358_v53 = vpack.c.bf16 %v299_v48, %v295_v47  ;;  %v294_v25 = vld [vmem:[#allocation2 + $0x740] sm:$0xff]  ;;  %v332_v47 = vld [vmem:[#allocation2 + $0x870] sm:$0xff]  ;;  %v335_v48 = vld [vmem:[#allocation2 + $0x888] sm:$0xff] }
  0x9a   :  { %2731 = vmatprep.subr.bf16.mxu1 %v2730_v57  ;;  %v300_v57 = vld [vmem:[#allocation2 + $0x770] sm:$0xff]  ;;  %v2360_v63 = vpack.c.bf16 %v298_v54, %v294_v25  ;;  %v2768_v25 = vpack.c.bf16 %v332_v47, %v328_v44  ;;  %v2378_v54 = vpack.c.bf16 %v339_v49, %v335_v48  ;;  %v370_v44 = vld [vmem:[#allocation2 + $0x9a0] sm:$0xff]  ;;  %v375_v49 = vld [vmem:[#allocation2 + $0x9c8] sm:$0xff] }
  0x9b   :  { %v372_v48 = vld [vmem:[#allocation2 + $0x9b0] sm:$0xff] }
  0x9c   :  { %2341 = vmatpush1.bf16.msra.mxu0 %v2340_v0  ;;  %v2752_v0 = vpack.c.bf16 %v300_v57, %v296_v55  ;;  %v334_v55 = vld [vmem:[#allocation2 + $0x880] sm:$0xff]  ;;  %v336_v57 = vld [vmem:[#allocation2 + $0x890] sm:$0xff] }
  0x9d   :  { %2733 = vmatpush1.bf16.msra.mxu1 %v2732_v1  ;;  %2343 = vmatprep.subr.bf16.mxu0 %v2342_v2  ;;  %v2362_v1 = vpack.c.bf16 %v307_v59, %v303_v58  ;;  %v302_v2 = vld [vmem:[#allocation2 + $0x780] sm:$0xff]  ;;  %v340_v59 = vld [vmem:[#allocation2 + $0x8b0] sm:$0xff] }
  0x9e   :  { %2735 = vmatprep.subr.bf16.mxu1 %v2734_v6  ;;  %v308_v6 = vld [vmem:[#allocation2 + $0x7b0] sm:$0xff]  ;;  %v2364_v12 = vpack.c.bf16 %v306_v3, %v302_v2  ;;  %v2382_v2 = vpack.c.bf16 %v347_v62, %v343_v60  ;;  %v342_v3 = vld [vmem:[#allocation2 + $0x8c0] sm:$0xff]  ;;  %v383_v60 = vld [vmem:[#allocation2 + $0xa08] sm:$0xff] }
  0x9f   :  { %v387_v62 = vld [vmem:[#allocation2 + $0xa28] sm:$0xff] }
  0xa0   :  { %2345 = vmatpush1.bf16.msra.mxu0 %v2344_v13  ;;  %v2756_v13 = vpack.c.bf16 %v308_v6, %v304_v4  ;;  %v346_v4 = vld [vmem:[#allocation2 + $0x8e0] sm:$0xff] }
  0xa1   :  { %2737 = vmatpush1.bf16.msra.mxu1 %v2736_v14  ;;  %2347 = vmatprep.subr.bf16.mxu0 %v2346_v15  ;;  %v2366_v14 = vpack.c.bf16 %v315_v8, %v311_v7  ;;  %v310_v15 = vld [vmem:[#allocation2 + $0x7c0] sm:$0xff]  ;;  %v348_v7 = vld [vmem:[#allocation2 + $0x8f0] sm:$0xff]  ;;  %v351_v8 = vld [vmem:[#allocation2 + $0x908] sm:$0xff] }
  0xa2   :  { %2739 = vmatprep.subr.bf16.mxu1 %v2738_v19  ;;  %v316_v19 = vld [vmem:[#allocation2 + $0x7f0] sm:$0xff]  ;;  %v2368_v26 = vpack.c.bf16 %v314_v16, %v310_v15  ;;  %v2386_v15 = vpack.c.bf16 %v355_v9, %v351_v8  ;;  %v350_v16 = vld [vmem:[#allocation2 + $0x900] sm:$0xff]  ;;  %v391_v8 = vld [vmem:[#allocation2 + $0xa48] sm:$0xff] }
  0xa3   :  { %v395_v9 = vld [vmem:[#allocation2 + $0xa68] sm:$0xff] }
  0xa4   :  { %2349 = vmatpush1.bf16.msra.mxu0 %v2348_v27  ;;  %v2760_v27 = vpack.c.bf16 %v316_v19, %v312_v17  ;;  %v354_v17 = vld [vmem:[#allocation2 + $0x920] sm:$0xff] }
  0xa5   :  { %2741 = vmatpush1.bf16.msra.mxu1 %v2740_v28  ;;  %2351 = vmatprep.subr.bf16.mxu0 %v2350_v29  ;;  %v2370_v28 = vpack.c.bf16 %v323_v21, %v319_v20  ;;  %v318_v29 = vld [vmem:[#allocation2 + $0x800] sm:$0xff]  ;;  %v356_v20 = vld [vmem:[#allocation2 + $0x930] sm:$0xff]  ;;  %v359_v21 = vld [vmem:[#allocation2 + $0x948] sm:$0xff] }
  0xa6   :  { %2743 = vmatprep.subr.bf16.mxu1 %v2742_v33  ;;  %v324_v33 = vld [vmem:[#allocation2 + $0x830] sm:$0xff]  ;;  %v2372_v38 = vpack.c.bf16 %v322_v30, %v318_v29  ;;  %v2390_v29 = vpack.c.bf16 %v363_v23, %v359_v21  ;;  %v358_v30 = vld [vmem:[#allocation2 + $0x940] sm:$0xff]  ;;  %v399_v21 = vld [vmem:[#allocation2 + $0xa88] sm:$0xff] }
  0xa7   :  { %v403_v23 = vld [vmem:[#allocation2 + $0xaa8] sm:$0xff] }
  0xa8   :  { %2353 = vmatpush1.bf16.msra.mxu0 %v2352_v39  ;;  %v3332_v39 = vld [vmem:[%s3588_s0 + $0x8] sm:$0xff] }
  0xa9   :  { %2745 = vmatpush1.bf16.msra.mxu1 %v2744_v40  ;;  %2355 = vmatprep.subr.bf16.mxu0 %v2354_v41  ;;  %v2764_v40 = vpack.c.bf16 %v324_v33, %v320_v31  ;;  %v2374_v41 = vpack.c.bf16 %v331_v35, %v327_v34  ;;  %v362_v31 = vld [vmem:[#allocation2 + $0x960] sm:$0xff]  ;;  %v364_v34 = vld [vmem:[#allocation2 + $0x970] sm:$0xff]  ;;  %v367_v35 = vld [vmem:[#allocation2 + $0x988] sm:$0xff] }
  0xaa   :  { %2747 = vmatprep.subr.bf16.mxu1 %v2746_v45  ;;  %v3336_v45 = vrot.slane %v3332_v39, %v3307_v11 }
  0xac   :  { %2357 = vmatpush1.bf16.msra.mxu0 %v2356_v51  ;;  %v341_v51 = vld [vmem:[#allocation2 + $0x8b8] sm:$0xff] }
  0xad   :  { %2749 = vmatpush1.bf16.msra.mxu1 %v2748_v52  ;;  %2359 = vmatprep.subr.bf16.mxu0 %v2358_v53  ;;  %v904_v52 = vcombine.high %v3336_v45, %v3336_v45  ;;  %v2376_v53 = vpack.c.bf16 %v330_v43, %v326_v42  ;;  %v2770_v58 = vpack.c.bf16 %v341_v51, %v337_v50  ;;  %v366_v43 = vld [vmem:[#allocation2 + $0x980] sm:$0xff]  ;;  %v379_v50 = vld [vmem:[#allocation2 + $0x9e8] sm:$0xff]  ;;  %v377_v51 = vld [vmem:[#allocation2 + $0x9d8] sm:$0xff] }
  0xae   :  { %2751 = vmatprep.subr.bf16.mxu1 %v2750_v56  ;;  %v338_v56 = vld [vmem:[#allocation2 + $0x8a0] sm:$0xff]  ;;  %v2394_v42 = vpack.c.bf16 %v371_v36, %v367_v35  ;;  %v407_v35 = vld [vmem:[#allocation2 + $0xac8] sm:$0xff] }
  0xaf   :  { %v411_v36 = vld [vmem:[#allocation2 + $0xae8] sm:$0xff] }
  0xb0   :  { %2361 = vmatpush1.bf16.msra.mxu0 %v2360_v63  ;;  %v345_v63 = vld [vmem:[#allocation2 + $0x8d8] sm:$0xff] }
  0xb1   :  { %2753 = vmatpush1.bf16.msra.mxu1 %v2752_v0  ;;  %2363 = vmatprep.subr.bf16.mxu0 %v2362_v1  ;;  %v349_v0 = vld [vmem:[#allocation2 + $0x8f8] sm:$0xff]  ;;  %v2380_v1 = vpack.c.bf16 %v338_v56, %v334_v55  ;;  %v374_v55 = vld [vmem:[#allocation2 + $0x9c0] sm:$0xff] }
  0xb2   :  { %2755 = vmatprep.subr.bf16.mxu1 %v2754_v5  ;;  %v344_v5 = vld [vmem:[#allocation2 + $0x8d0] sm:$0xff]  ;;  %v2774_v6 = vpack.c.bf16 %v349_v0, %v345_v63  ;;  %v378_v56 = vld [vmem:[#allocation2 + $0x9e0] sm:$0xff]  ;;  %v385_v63 = vld [vmem:[#allocation2 + $0xa18] sm:$0xff] }
  0xb3   :  { %v389_v0 = vld [vmem:[#allocation2 + $0xa38] sm:$0xff] }
  0xb4   :  { %2365 = vmatpush1.bf16.msra.mxu0 %v2364_v12  ;;  %v357_v12 = vld [vmem:[#allocation2 + $0x938] sm:$0xff] }
  0xb5   :  { %2757 = vmatpush1.bf16.msra.mxu1 %v2756_v13  ;;  %2367 = vmatprep.subr.bf16.mxu0 %v2366_v14  ;;  %v2384_v13 = vpack.c.bf16 %v346_v4, %v342_v3  ;;  %v2776_v14 = vpack.c.bf16 %v348_v7, %v344_v5  ;;  %v2778_v19 = vpack.c.bf16 %v357_v12, %v353_v10  ;;  %v382_v3 = vld [vmem:[#allocation2 + $0xa00] sm:$0xff]  ;;  %v384_v5 = vld [vmem:[#allocation2 + $0xa10] sm:$0xff]  ;;  %v393_v10 = vld [vmem:[#allocation2 + $0xa58] sm:$0xff] }
  0xb6   :  { %2759 = vmatprep.subr.bf16.mxu1 %v2758_v18  ;;  %v352_v18 = vld [vmem:[#allocation2 + $0x910] sm:$0xff]  ;;  %v386_v4 = vld [vmem:[#allocation2 + $0xa20] sm:$0xff]  ;;  %v397_v12 = vld [vmem:[#allocation2 + $0xa78] sm:$0xff] }
  0xb7   :  { %v388_v7 = vld [vmem:[#allocation2 + $0xa30] sm:$0xff] }
  0xb8   :  { %2369 = vmatpush1.bf16.msra.mxu0 %v2368_v26  ;;  %v365_v26 = vld [vmem:[#allocation2 + $0x978] sm:$0xff] }
  0xb9   :  { %2761 = vmatpush1.bf16.msra.mxu1 %v2760_v27  ;;  %2371 = vmatprep.subr.bf16.mxu0 %v2370_v28  ;;  %v2388_v27 = vpack.c.bf16 %v354_v17, %v350_v16  ;;  %v2780_v28 = vpack.c.bf16 %v356_v20, %v352_v18  ;;  %v2782_v33 = vpack.c.bf16 %v365_v26, %v361_v24  ;;  %v390_v16 = vld [vmem:[#allocation2 + $0xa40] sm:$0xff]  ;;  %v392_v18 = vld [vmem:[#allocation2 + $0xa50] sm:$0xff]  ;;  %v401_v24 = vld [vmem:[#allocation2 + $0xa98] sm:$0xff] }
  0xba   :  { %2763 = vmatprep.subr.bf16.mxu1 %v2762_v32  ;;  %v360_v32 = vld [vmem:[#allocation2 + $0x950] sm:$0xff]  ;;  %v394_v17 = vld [vmem:[#allocation2 + $0xa60] sm:$0xff]  ;;  %v405_v26 = vld [vmem:[#allocation2 + $0xab8] sm:$0xff] }
  0xbb   :  { %1081 = vmatmul.mubr.f32.vlgmr.msra.gmra.mrb[0].mxu0 %v3323_v22  ;;  %v396_v20 = vld [vmem:[#allocation2 + $0xa70] sm:$0xff] }
  0xbc   :  { %2373 = vmatpush1.bf16.msra.mxu0 %v2372_v38  ;;  %1578 = vmatmul.mubr.f32.vlgmr.msra.gmra.mrb[0].mxu1 %v3323_v22  ;;  %v2772_v22 = vpack.c.bf16 %v340_v59, %v336_v57  ;;  %v373_v38 = vld [vmem:[#allocation2 + $0x9b8] sm:$0xff]  ;;  %v376_v57 = vld [vmem:[#allocation2 + $0x9d0] sm:$0xff] }
  0xbd   :  { %2765 = vmatpush1.bf16.msra.mxu1 %v2764_v40  ;;  %2375 = vmatprep.subr.bf16.mxu0 %v2374_v41  ;;  %v2392_v40 = vpack.c.bf16 %v362_v31, %v358_v30  ;;  %v2784_v41 = vpack.c.bf16 %v364_v34, %v360_v32  ;;  %v2786_v47 = vpack.c.bf16 %v373_v38, %v369_v37  ;;  %v380_v59 = vld [vmem:[#allocation2 + $0x9f0] sm:$0xff]  ;;  %v398_v30 = vld [vmem:[#allocation2 + $0xa80] sm:$0xff]  ;;  %v409_v37 = vld [vmem:[#allocation2 + $0xad8] sm:$0xff] }
  0xbe   :  { %2767 = vmatprep.subr.bf16.mxu1 %v2766_v46  ;;  %1151 = vmatprep.mubr.f32.mxu0 %v904_v52  ;;  %v368_v46 = vld [vmem:[#allocation2 + $0x990] sm:$0xff]  ;;  %v402_v31 = vld [vmem:[#allocation2 + $0xaa0] sm:$0xff]  ;;  %v413_v38 = vld [vmem:[#allocation2 + $0xaf8] sm:$0xff] }
  0xbf   :  { %1648 = vmatprep.mubr.f32.mxu1 %v904_v52  ;;  %v381_v52 = vld [vmem:[#allocation2 + $0x9f8] sm:$0xff]  ;;  %v400_v32 = vld [vmem:[#allocation2 + $0xa90] sm:$0xff] }
  0xc0   :  { %2377 = vmatpush1.bf16.msra.mxu0 %v2376_v53  ;;  %v2396_v53 = vpack.c.bf16 %v370_v44, %v366_v43  ;;  %v404_v34 = vld [vmem:[#allocation2 + $0xab0] sm:$0xff]  ;;  %v406_v43 = vld [vmem:[#allocation2 + $0xac0] sm:$0xff] }
  0xc1   :  { %2769 = vmatpush1.bf16.msra.mxu1 %v2768_v25  ;;  %2379 = vmatprep.subr.bf16.mxu0 %v2378_v54  ;;  %v2788_v25 = vpack.c.bf16 %v372_v48, %v368_v46  ;;  %v2398_v54 = vpack.c.bf16 %v379_v50, %v375_v49  ;;  %v410_v44 = vld [vmem:[#allocation2 + $0xae0] sm:$0xff]  ;;  %v408_v46 = vld [vmem:[#allocation2 + $0xad0] sm:$0xff]  ;;  %v415_v49 = vld [vmem:[#allocation2 + $0xb08] sm:$0xff] }
  0xc2   :  { %2771 = vmatprep.subr.bf16.mxu1 %v2770_v58  ;;  %v2790_v58 = vpack.c.bf16 %v381_v52, %v377_v51  ;;  %v412_v48 = vld [vmem:[#allocation2 + $0xaf0] sm:$0xff]  ;;  %v419_v50 = vld [vmem:[#allocation2 + $0xb28] sm:$0xff]  ;;  %v417_v51 = vld [vmem:[#allocation2 + $0xb18] sm:$0xff] }
  0xc3   :  { %v421_v52 = vld [vmem:[#allocation2 + $0xb38] sm:$0xff] }
  0xc4   :  { %2381 = vmatpush1.bf16.msra.mxu0 %v2380_v1  ;;  %v2400_v1 = vpack.c.bf16 %v378_v56, %v374_v55  ;;  %v414_v55 = vld [vmem:[#allocation2 + $0xb00] sm:$0xff] }
  0xc5   :  { %2773 = vmatpush1.bf16.msra.mxu1 %v2772_v22  ;;  %2383 = vmatprep.subr.bf16.mxu0 %v2382_v2  ;;  %v2792_v22 = vpack.c.bf16 %v380_v59, %v376_v57  ;;  %v2402_v2 = vpack.c.bf16 %v387_v62, %v383_v60  ;;  %v418_v56 = vld [vmem:[#allocation2 + $0xb20] sm:$0xff]  ;;  %v416_v57 = vld [vmem:[#allocation2 + $0xb10] sm:$0xff]  ;;  %v423_v60 = vld [vmem:[#allocation2 + $0xb48] sm:$0xff] }
  0xc6   :  { %2775 = vmatprep.subr.bf16.mxu1 %v2774_v6  ;;  %v2794_v6 = vpack.c.bf16 %v389_v0, %v385_v63  ;;  %v420_v59 = vld [vmem:[#allocation2 + $0xb30] sm:$0xff]  ;;  %v427_v62 = vld [vmem:[#allocation2 + $0xb68] sm:$0xff]  ;;  %v425_v63 = vld [vmem:[#allocation2 + $0xb58] sm:$0xff] }
  0xc7   :  { %v429_v0 = vld [vmem:[#allocation2 + $0xb78] sm:$0xff] }
  0xc8   :  { %2385 = vmatpush1.bf16.msra.mxu0 %v2384_v13  ;;  %v2404_v13 = vpack.c.bf16 %v386_v4, %v382_v3  ;;  %v422_v3 = vld [vmem:[#allocation2 + $0xb40] sm:$0xff] }
  0xc9   :  { %2777 = vmatpush1.bf16.msra.mxu1 %v2776_v14  ;;  %2387 = vmatprep.subr.bf16.mxu0 %v2386_v15  ;;  %v2796_v14 = vpack.c.bf16 %v388_v7, %v384_v5  ;;  %v2406_v15 = vpack.c.bf16 %v395_v9, %v391_v8  ;;  %v426_v4 = vld [vmem:[#allocation2 + $0xb60] sm:$0xff]  ;;  %v424_v5 = vld [vmem:[#allocation2 + $0xb50] sm:$0xff]  ;;  %v431_v8 = vld [vmem:[#allocation2 + $0xb88] sm:$0xff] }
  0xca   :  { %2779 = vmatprep.subr.bf16.mxu1 %v2778_v19  ;;  %v2798_v19 = vpack.c.bf16 %v397_v12, %v393_v10  ;;  %v428_v7 = vld [vmem:[#allocation2 + $0xb70] sm:$0xff]  ;;  %v435_v9 = vld [vmem:[#allocation2 + $0xba8] sm:$0xff]  ;;  %v433_v10 = vld [vmem:[#allocation2 + $0xb98] sm:$0xff] }
  0xcb   :  { %v437_v12 = vld [vmem:[#allocation2 + $0xbb8] sm:$0xff] }
  0xcc   :  { %2389 = vmatpush1.bf16.msra.mxu0 %v2388_v27  ;;  %v2408_v27 = vpack.c.bf16 %v394_v17, %v390_v16  ;;  %v430_v16 = vld [vmem:[#allocation2 + $0xb80] sm:$0xff] }
  0xcd   :  { %2781 = vmatpush1.bf16.msra.mxu1 %v2780_v28  ;;  %2391 = vmatprep.subr.bf16.mxu0 %v2390_v29  ;;  %v2800_v28 = vpack.c.bf16 %v396_v20, %v392_v18  ;;  %v2410_v29 = vpack.c.bf16 %v403_v23, %v399_v21  ;;  %v434_v17 = vld [vmem:[#allocation2 + $0xba0] sm:$0xff]  ;;  %v432_v18 = vld [vmem:[#allocation2 + $0xb90] sm:$0xff]  ;;  %v439_v21 = vld [vmem:[#allocation2 + $0xbc8] sm:$0xff] }
  0xce   :  { %2783 = vmatprep.subr.bf16.mxu1 %v2782_v33  ;;  %v2802_v33 = vpack.c.bf16 %v405_v26, %v401_v24  ;;  %v436_v20 = vld [vmem:[#allocation2 + $0xbb0] sm:$0xff]  ;;  %v443_v23 = vld [vmem:[#allocation2 + $0xbe8] sm:$0xff]  ;;  %v441_v24 = vld [vmem:[#allocation2 + $0xbd8] sm:$0xff] }
  0xcf   :  { %v445_v26 = vld [vmem:[#allocation2 + $0xbf8] sm:$0xff] }
  0xd0   :  { %2393 = vmatpush1.bf16.msra.mxu0 %v2392_v40  ;;  %v2412_v40 = vpack.c.bf16 %v402_v31, %v398_v30  ;;  %v438_v30 = vld [vmem:[#allocation2 + $0xbc0] sm:$0xff] }
  0xd1   :  { %2785 = vmatpush1.bf16.msra.mxu1 %v2784_v41  ;;  %2395 = vmatprep.subr.bf16.mxu0 %v2394_v42  ;;  %v2804_v41 = vpack.c.bf16 %v404_v34, %v400_v32  ;;  %v2414_v42 = vpack.c.bf16 %v411_v36, %v407_v35  ;;  %v442_v31 = vld [vmem:[#allocation2 + $0xbe0] sm:$0xff]  ;;  %v440_v32 = vld [vmem:[#allocation2 + $0xbd0] sm:$0xff]  ;;  %v447_v35 = vld [vmem:[#allocation2 + $0xc08] sm:$0xff] }
  0xd2   :  { %2787 = vmatprep.subr.bf16.mxu1 %v2786_v47  ;;  %v2806_v47 = vpack.c.bf16 %v413_v38, %v409_v37  ;;  %v444_v34 = vld [vmem:[#allocation2 + $0xbf0] sm:$0xff]  ;;  %v451_v36 = vld [vmem:[#allocation2 + $0xc28] sm:$0xff]  ;;  %v889_v37 = vcombine.high %v3332_v39, %v3332_v39  ;;  %v449_v38 = vld [vmem:[#allocation2 + $0xc18] sm:$0xff] }
  0xd3   :  { %v457_v39 = vld [vmem:[#allocation2 + $0xc58] sm:$0xff] }
  0xd4   :  { %2397 = vmatpush1.bf16.msra.mxu0 %v2396_v53  ;;  %v2416_v53 = vpack.c.bf16 %v410_v44, %v406_v43  ;;  %v2434_v43 = vpack.c.bf16 %v451_v36, %v447_v35  ;;  %v446_v44 = vld [vmem:[#allocation2 + $0xc00] sm:$0xff]  ;;  %v484_v35 = vld [vmem:[#allocation2 + $0xd30] sm:$0xff]  ;;  %v487_v36 = vld [vmem:[#allocation2 + $0xd48] sm:$0xff] }
  0xd5   :  { %2789 = vmatpush1.bf16.msra.mxu1 %v2788_v25  ;;  %2399 = vmatprep.subr.bf16.mxu0 %v2398_v54  ;;  %v2808_v25 = vpack.c.bf16 %v412_v48, %v408_v46  ;;  %v2418_v54 = vpack.c.bf16 %v419_v50, %v415_v49  ;;  %v450_v46 = vld [vmem:[#allocation2 + $0xc20] sm:$0xff]  ;;  %v452_v49 = vld [vmem:[#allocation2 + $0xc30] sm:$0xff]  ;;  %v455_v50 = vld [vmem:[#allocation2 + $0xc48] sm:$0xff] }
  0xd6   :  { %2791 = vmatprep.subr.bf16.mxu1 %v2790_v58  ;;  %v2810_v58 = vpack.c.bf16 %v421_v52, %v417_v51  ;;  %v459_v51 = vld [vmem:[#allocation2 + $0xc68] sm:$0xff]  ;;  %v3345_v52 = vrot.slane %v889_v37, %v3307_v11 }
  0xd7   :  { %v491_v37 = vld [vmem:[#allocation2 + $0xd68] sm:$0xff] }
  0xd8   :  { %2401 = vmatpush1.bf16.msra.mxu0 %v2400_v1  ;;  %v2420_v1 = vpack.c.bf16 %v418_v56, %v414_v55  ;;  %v2438_v55 = vpack.c.bf16 %v459_v51, %v455_v50  ;;  %v454_v56 = vld [vmem:[#allocation2 + $0xc40] sm:$0xff]  ;;  %v495_v50 = vld [vmem:[#allocation2 + $0xd88] sm:$0xff] }
  0xd9   :  { %2793 = vmatpush1.bf16.msra.mxu1 %v2792_v22  ;;  %2403 = vmatprep.subr.bf16.mxu0 %v2402_v2  ;;  %v2812_v22 = vpack.c.bf16 %v420_v59, %v416_v57  ;;  %v2422_v2 = vpack.c.bf16 %v427_v62, %v423_v60  ;;  %v458_v57 = vld [vmem:[#allocation2 + $0xc60] sm:$0xff]  ;;  %v460_v60 = vld [vmem:[#allocation2 + $0xc70] sm:$0xff]  ;;  %v463_v62 = vld [vmem:[#allocation2 + $0xc88] sm:$0xff] }
  0xda   :  { %2795 = vmatprep.subr.bf16.mxu1 %v2794_v6  ;;  %v2814_v6 = vpack.c.bf16 %v429_v0, %v425_v63  ;;  %v467_v63 = vld [vmem:[#allocation2 + $0xca8] sm:$0xff]  ;;  %v905_v0 = vcombine.high %v3345_v52, %v3345_v52 }
  0xdb   :  { %v499_v51 = vld [vmem:[#allocation2 + $0xda8] sm:$0xff] }
  0xdc   :  { %2405 = vmatpush1.bf16.msra.mxu0 %v2404_v13  ;;  %v2424_v13 = vpack.c.bf16 %v426_v4, %v422_v3  ;;  %v2442_v4 = vpack.c.bf16 %v467_v63, %v463_v62  ;;  %v503_v62 = vld [vmem:[#allocation2 + $0xdc8] sm:$0xff] }
  0xdd   :  { %2797 = vmatpush1.bf16.msra.mxu1 %v2796_v14  ;;  %2407 = vmatprep.subr.bf16.mxu0 %v2406_v15  ;;  %v2816_v14 = vpack.c.bf16 %v428_v7, %v424_v5  ;;  %v2426_v15 = vpack.c.bf16 %v435_v9, %v431_v8  ;;  %v462_v5 = vld [vmem:[#allocation2 + $0xc80] sm:$0xff]  ;;  %v464_v7 = vld [vmem:[#allocation2 + $0xc90] sm:$0xff]  ;;  %v507_v63 = vld [vmem:[#allocation2 + $0xde8] sm:$0xff] }
  0xde   :  { %2799 = vmatprep.subr.bf16.mxu1 %v2798_v19  ;;  %v2818_v19 = vpack.c.bf16 %v437_v12, %v433_v10  ;;  %v468_v9 = vld [vmem:[#allocation2 + $0xcb0] sm:$0xff]  ;;  %v471_v10 = vld [vmem:[#allocation2 + $0xcc8] sm:$0xff] }
  0xdf   :  { %v475_v12 = vld [vmem:[#allocation2 + $0xce8] sm:$0xff] }
  0xe0   :  { %2409 = vmatpush1.bf16.msra.mxu0 %v2408_v27  ;;  %v2428_v27 = vpack.c.bf16 %v434_v17, %v430_v16  ;;  %v2446_v16 = vpack.c.bf16 %v475_v12, %v471_v10  ;;  %v470_v17 = vld [vmem:[#allocation2 + $0xcc0] sm:$0xff]  ;;  %v515_v10 = vld [vmem:[#allocation2 + $0xe28] sm:$0xff]  ;;  %v513_v12 = vld [vmem:[#allocation2 + $0xe18] sm:$0xff] }
  0xe1   :  { %2801 = vmatpush1.bf16.msra.mxu1 %v2800_v28  ;;  %2411 = vmatprep.subr.bf16.mxu0 %v2410_v29  ;;  %v2820_v28 = vpack.c.bf16 %v436_v20, %v432_v18  ;;  %v2430_v29 = vpack.c.bf16 %v443_v23, %v439_v21  ;;  %v474_v18 = vld [vmem:[#allocation2 + $0xce0] sm:$0xff]  ;;  %v476_v21 = vld [vmem:[#allocation2 + $0xcf0] sm:$0xff]  ;;  %v479_v23 = vld [vmem:[#allocation2 + $0xd08] sm:$0xff] }
  0xe2   :  { %2803 = vmatprep.subr.bf16.mxu1 %v2802_v33  ;;  %v2822_v33 = vpack.c.bf16 %v445_v26, %v441_v24  ;;  %v483_v24 = vld [vmem:[#allocation2 + $0xd28] sm:$0xff]  ;;  %v481_v26 = vld [vmem:[#allocation2 + $0xd18] sm:$0xff] }
  0xe4   :  { %2413 = vmatpush1.bf16.msra.mxu0 %v2412_v40  ;;  %v453_v40 = vld [vmem:[#allocation2 + $0xc38] sm:$0xff] }
  0xe5   :  { %2805 = vmatpush1.bf16.msra.mxu1 %v2804_v41  ;;  %2415 = vmatprep.subr.bf16.mxu0 %v2414_v42  ;;  %v2432_v41 = vpack.c.bf16 %v442_v31, %v438_v30  ;;  %v2824_v42 = vpack.c.bf16 %v444_v34, %v440_v32  ;;  %v2826_v48 = vpack.c.bf16 %v453_v40, %v449_v38  ;;  %v478_v31 = vld [vmem:[#allocation2 + $0xd00] sm:$0xff]  ;;  %v489_v38 = vld [vmem:[#allocation2 + $0xd58] sm:$0xff] }
  0xe6   :  { %2807 = vmatprep.subr.bf16.mxu1 %v2806_v47  ;;  %v448_v47 = vld [vmem:[#allocation2 + $0xc10] sm:$0xff]  ;;  %v2450_v30 = vpack.c.bf16 %v483_v24, %v479_v23  ;;  %v482_v32 = vld [vmem:[#allocation2 + $0xd20] sm:$0xff]  ;;  %v493_v40 = vld [vmem:[#allocation2 + $0xd78] sm:$0xff] }
  0xe7   :  { %v523_v23 = vld [vmem:[#allocation2 + $0xe68] sm:$0xff]  ;;  %v521_v24 = vld [vmem:[#allocation2 + $0xe58] sm:$0xff] }
  0xe8   :  { %2417 = vmatpush1.bf16.msra.mxu0 %v2416_v53  ;;  %v461_v53 = vld [vmem:[#allocation2 + $0xc78] sm:$0xff] }
  0xe9   :  { %2809 = vmatpush1.bf16.msra.mxu1 %v2808_v25  ;;  %2419 = vmatprep.subr.bf16.mxu0 %v2418_v54  ;;  %v2436_v25 = vpack.c.bf16 %v450_v46, %v446_v44  ;;  %v2828_v54 = vpack.c.bf16 %v452_v49, %v448_v47  ;;  %v2830_v59 = vpack.c.bf16 %v461_v53, %v457_v39  ;;  %v486_v44 = vld [vmem:[#allocation2 + $0xd40] sm:$0xff]  ;;  %v488_v47 = vld [vmem:[#allocation2 + $0xd50] sm:$0xff]  ;;  %v497_v39 = vld [vmem:[#allocation2 + $0xd98] sm:$0xff] }
  0xea   :  { %2811 = vmatprep.subr.bf16.mxu1 %v2810_v58  ;;  %v456_v58 = vld [vmem:[#allocation2 + $0xc50] sm:$0xff]  ;;  %v490_v46 = vld [vmem:[#allocation2 + $0xd60] sm:$0xff]  ;;  %v501_v53 = vld [vmem:[#allocation2 + $0xdb8] sm:$0xff] }
  0xeb   :  { %v2832_v3 = vpack.c.bf16 %v460_v60, %v456_v58  ;;  %v492_v49 = vld [vmem:[#allocation2 + $0xd70] sm:$0xff] }
  0xec   :  { %2421 = vmatpush1.bf16.msra.mxu0 %v2420_v1  ;;  %v465_v1 = vld [vmem:[#allocation2 + $0xc98] sm:$0xff]  ;;  %v496_v58 = vld [vmem:[#allocation2 + $0xd90] sm:$0xff] }
  0xed   :  { %2813 = vmatpush1.bf16.msra.mxu1 %v2812_v22  ;;  %2423 = vmatprep.subr.bf16.mxu0 %v2422_v2  ;;  %v469_v22 = vld [vmem:[#allocation2 + $0xcb8] sm:$0xff]  ;;  %v2440_v2 = vpack.c.bf16 %v458_v57, %v454_v56  ;;  %v494_v56 = vld [vmem:[#allocation2 + $0xd80] sm:$0xff]  ;;  %v500_v60 = vld [vmem:[#allocation2 + $0xdb0] sm:$0xff] }
  0xee   :  { %2815 = vmatprep.subr.bf16.mxu1 %v2814_v6  ;;  %v466_v6 = vld [vmem:[#allocation2 + $0xca0] sm:$0xff]  ;;  %v2834_v8 = vpack.c.bf16 %v469_v22, %v465_v1  ;;  %v509_v1 = vld [vmem:[#allocation2 + $0xdf8] sm:$0xff] }
  0xef   :  { %v498_v57 = vld [vmem:[#allocation2 + $0xda0] sm:$0xff] }
  0xf0   :  { %2425 = vmatpush1.bf16.msra.mxu0 %v2424_v13  ;;  %v473_v13 = vld [vmem:[#allocation2 + $0xcd8] sm:$0xff]  ;;  %v2460_v22 = vpack.c.bf16 %v498_v57, %v494_v56  ;;  %v538_v56 = vld [vmem:[#allocation2 + $0xee0] sm:$0xff]  ;;  %v536_v57 = vld [vmem:[#allocation2 + $0xed0] sm:$0xff] }
  0xf1   :  { %2817 = vmatpush1.bf16.msra.mxu1 %v2816_v14  ;;  %2427 = vmatprep.subr.bf16.mxu0 %v2426_v15  ;;  %v477_v14 = vld [vmem:[#allocation2 + $0xcf8] sm:$0xff]  ;;  %v2444_v15 = vpack.c.bf16 %v466_v6, %v462_v5  ;;  %v506_v5 = vld [vmem:[#allocation2 + $0xde0] sm:$0xff]  ;;  %v504_v6 = vld [vmem:[#allocation2 + $0xdd0] sm:$0xff] }
  0xf2   :  { %2819 = vmatprep.subr.bf16.mxu1 %v2818_v19  ;;  %v472_v19 = vld [vmem:[#allocation2 + $0xcd0] sm:$0xff]  ;;  %v2838_v20 = vpack.c.bf16 %v477_v14, %v473_v13  ;;  %v517_v13 = vld [vmem:[#allocation2 + $0xe38] sm:$0xff] }
  0xf4   :  { %2429 = vmatpush1.bf16.msra.mxu0 %v2428_v27  ;;  %v485_v27 = vld [vmem:[#allocation2 + $0xd38] sm:$0xff] }
  0xf5   :  { %2821 = vmatpush1.bf16.msra.mxu1 %v2820_v28  ;;  %2431 = vmatprep.subr.bf16.mxu0 %v2430_v29  ;;  %v2448_v28 = vpack.c.bf16 %v474_v18, %v470_v17  ;;  %v2840_v29 = vpack.c.bf16 %v476_v21, %v472_v19  ;;  %v2842_v34 = vpack.c.bf16 %v485_v27, %v481_v26  ;;  %v514_v17 = vld [vmem:[#allocation2 + $0xe20] sm:$0xff]  ;;  %v512_v18 = vld [vmem:[#allocation2 + $0xe10] sm:$0xff]  ;;  %v519_v21 = vld [vmem:[#allocation2 + $0xe48] sm:$0xff] }
  0xf6   :  { %2823 = vmatprep.subr.bf16.mxu1 %v2822_v33  ;;  %v480_v33 = vld [vmem:[#allocation2 + $0xd10] sm:$0xff]  ;;  %v2858_v19 = vpack.c.bf16 %v517_v13, %v513_v12  ;;  %v525_v26 = vld [vmem:[#allocation2 + $0xe78] sm:$0xff] }
  0xf7   :  { %v557_v12 = vld [vmem:[#allocation2 + $0xf78] sm:$0xff] }
  0xf8   :  { %2433 = vmatpush1.bf16.msra.mxu0 %v2432_v41  ;;  %v2452_v41 = vpack.c.bf16 %v482_v32, %v478_v31  ;;  %v522_v31 = vld [vmem:[#allocation2 + $0xe60] sm:$0xff]  ;;  %v520_v32 = vld [vmem:[#allocation2 + $0xe50] sm:$0xff] }
  0xf9   :  { %2825 = vmatpush1.bf16.msra.mxu1 %v2824_v42  ;;  %2435 = vmatprep.subr.bf16.mxu0 %v2434_v43  ;;  %v2844_v42 = vpack.c.bf16 %v484_v35, %v480_v33  ;;  %v2454_v43 = vpack.c.bf16 %v491_v37, %v487_v36  ;;  %v2862_v33 = vpack.c.bf16 %v525_v26, %v521_v24  ;;  %v527_v35 = vld [vmem:[#allocation2 + $0xe88] sm:$0xff]  ;;  %v529_v37 = vld [vmem:[#allocation2 + $0xe98] sm:$0xff] }
  0xfa   :  { %2827 = vmatprep.subr.bf16.mxu1 %v2826_v48  ;;  %v2846_v48 = vpack.c.bf16 %v493_v40, %v489_v38  ;;  %v531_v36 = vld [vmem:[#allocation2 + $0xea8] sm:$0xff]  ;;  %v533_v38 = vld [vmem:[#allocation2 + $0xeb8] sm:$0xff] }
  0xfb   :  { %1152 = vmatmul.mubr.f32.vlgmr.msra.gmra.mrb[0].mxu0 %v3336_v45  ;;  %v565_v24 = vld [vmem:[#allocation2 + $0xfb8] sm:$0xff] }
  0xfc   :  { %2437 = vmatpush1.bf16.msra.mxu0 %v2436_v25  ;;  %1649 = vmatmul.mubr.f32.vlgmr.msra.gmra.mrb[0].mxu1 %v3336_v45  ;;  %v2836_v45 = vpack.c.bf16 %v468_v9, %v464_v7  ;;  %v2456_v25 = vpack.c.bf16 %v490_v46, %v486_v44  ;;  %v511_v9 = vld [vmem:[#allocation2 + $0xe08] sm:$0xff]  ;;  %v530_v44 = vld [vmem:[#allocation2 + $0xea0] sm:$0xff]  ;;  %v528_v46 = vld [vmem:[#allocation2 + $0xe90] sm:$0xff] }
  0xfd   :  { %2829 = vmatpush1.bf16.msra.mxu1 %v2828_v54  ;;  %2439 = vmatprep.subr.bf16.mxu0 %v2438_v55  ;;  %v2848_v54 = vpack.c.bf16 %v492_v49, %v488_v47  ;;  %v2458_v55 = vpack.c.bf16 %v499_v51, %v495_v50  ;;  %v2866_v47 = vpack.c.bf16 %v533_v38, %v529_v37  ;;  %v535_v49 = vld [vmem:[#allocation2 + $0xec8] sm:$0xff]  ;;  %v537_v51 = vld [vmem:[#allocation2 + $0xed8] sm:$0xff] }
  0xfe   :  { %2831 = vmatprep.subr.bf16.mxu1 %v2830_v59  ;;  %1222 = vmatprep.mubr.f32.mxu0 %v905_v0  ;;  %v2850_v59 = vpack.c.bf16 %v501_v53, %v497_v39  ;;  %v539_v50 = vld [vmem:[#allocation2 + $0xee8] sm:$0xff]  ;;  %v541_v39 = vld [vmem:[#allocation2 + $0xef8] sm:$0xff] }
  0xff   :  { %1719 = vmatprep.mubr.f32.mxu1 %v905_v0  ;;  %v505_v0 = vld [vmem:[#allocation2 + $0xdd8] sm:$0xff] }
 0x100   :  { %2441 = vmatpush1.bf16.msra.mxu0 %v2440_v2  ;;  %v2852_v2 = vpack.c.bf16 %v500_v60, %v496_v58  ;;  %v2854_v7 = vpack.c.bf16 %v509_v1, %v505_v0  ;;  %v2870_v58 = vpack.c.bf16 %v541_v39, %v537_v51  ;;  %v543_v60 = vld [vmem:[#allocation2 + $0xf08] sm:$0xff]  ;;  %v549_v0 = vld [vmem:[#allocation2 + $0xf38] sm:$0xff]  ;;  %v3354_v39 = vld [vmem:[%s3588_s0 + $0x10] sm:$0xff] }
 0x101   :  { %2833 = vmatpush1.bf16.msra.mxu1 %v2832_v3  ;;  %2443 = vmatprep.subr.bf16.mxu0 %v2442_v4  ;;  %v2462_v3 = vpack.c.bf16 %v507_v63, %v503_v62  ;;  %v502_v4 = vld [vmem:[#allocation2 + $0xdc0] sm:$0xff]  ;;  %v547_v62 = vld [vmem:[#allocation2 + $0xf28] sm:$0xff]  ;;  %v545_v63 = vld [vmem:[#allocation2 + $0xf18] sm:$0xff] }
 0x102   :  { %2835 = vmatprep.subr.bf16.mxu1 %v2834_v8  ;;  %v508_v8 = vld [vmem:[#allocation2 + $0xdf0] sm:$0xff]  ;;  %v2464_v14 = vpack.c.bf16 %v506_v5, %v502_v4  ;;  %v546_v4 = vld [vmem:[#allocation2 + $0xf20] sm:$0xff]  ;;  %v573_v37 = vld [vmem:[#allocation2 + $0xff8] sm:$0xff] }
 0x103   :  { %v544_v5 = vld [vmem:[#allocation2 + $0xf10] sm:$0xff]  ;;  %v581_v51 = vld [vmem:[#allocation2 + $0x1038] sm:$0xff] }
 0x104   :  { %2445 = vmatpush1.bf16.msra.mxu0 %v2444_v15  ;;  %v2856_v15 = vpack.c.bf16 %v508_v8, %v504_v6  ;;  %v2874_v6 = vpack.c.bf16 %v549_v0, %v545_v63  ;;  %v551_v8 = vld [vmem:[#allocation2 + $0xf48] sm:$0xff]  ;;  %v3358_v63 = vrot.slane %v3354_v39, %v3307_v11  ;;  %v585_v0 = vld [vmem:[#allocation2 + $0x1058] sm:$0xff] }
 0x105   :  { %2837 = vmatpush1.bf16.msra.mxu1 %v2836_v45  ;;  %2447 = vmatprep.subr.bf16.mxu0 %v2446_v16  ;;  %v2466_v45 = vpack.c.bf16 %v515_v10, %v511_v9  ;;  %v510_v16 = vld [vmem:[#allocation2 + $0xe00] sm:$0xff]  ;;  %v555_v9 = vld [vmem:[#allocation2 + $0xf68] sm:$0xff]  ;;  %v553_v10 = vld [vmem:[#allocation2 + $0xf58] sm:$0xff] }
 0x106   :  { %2839 = vmatprep.subr.bf16.mxu1 %v2838_v20  ;;  %v516_v20 = vld [vmem:[#allocation2 + $0xe30] sm:$0xff]  ;;  %v2468_v27 = vpack.c.bf16 %v514_v17, %v510_v16  ;;  %v554_v16 = vld [vmem:[#allocation2 + $0xf60] sm:$0xff] }
 0x107   :  { %v552_v17 = vld [vmem:[#allocation2 + $0xf50] sm:$0xff] }
 0x108   :  { %2449 = vmatpush1.bf16.msra.mxu0 %v2448_v28  ;;  %v2860_v28 = vpack.c.bf16 %v516_v20, %v512_v18  ;;  %v2878_v18 = vpack.c.bf16 %v557_v12, %v553_v10  ;;  %v559_v20 = vld [vmem:[#allocation2 + $0xf88] sm:$0xff]  ;;  %v921_v12 = vcombine.high %v3358_v63, %v3358_v63 }
 0x109   :  { %2841 = vmatpush1.bf16.msra.mxu1 %v2840_v29  ;;  %2451 = vmatprep.subr.bf16.mxu0 %v2450_v30  ;;  %v2470_v29 = vpack.c.bf16 %v523_v23, %v519_v21  ;;  %v518_v30 = vld [vmem:[#allocation2 + $0xe40] sm:$0xff]  ;;  %v563_v21 = vld [vmem:[#allocation2 + $0xfa8] sm:$0xff]  ;;  %v561_v23 = vld [vmem:[#allocation2 + $0xf98] sm:$0xff] }
 0x10a   :  { %2843 = vmatprep.subr.bf16.mxu1 %v2842_v34  ;;  %v524_v34 = vld [vmem:[#allocation2 + $0xe70] sm:$0xff]  ;;  %v2472_v40 = vpack.c.bf16 %v522_v31, %v518_v30  ;;  %v562_v30 = vld [vmem:[#allocation2 + $0xfa0] sm:$0xff]  ;;  %v595_v10 = vld [vmem:[#allocation2 + $0x10a8] sm:$0xff] }
 0x10b   :  { %v560_v31 = vld [vmem:[#allocation2 + $0xf90] sm:$0xff] }
 0x10c   :  { %2453 = vmatpush1.bf16.msra.mxu0 %v2452_v41  ;;  %v2864_v41 = vpack.c.bf16 %v524_v34, %v520_v32  ;;  %v2882_v32 = vpack.c.bf16 %v565_v24, %v561_v23  ;;  %v567_v34 = vld [vmem:[#allocation2 + $0xfc8] sm:$0xff] }
 0x10d   :  { %2845 = vmatpush1.bf16.msra.mxu1 %v2844_v42  ;;  %2455 = vmatprep.subr.bf16.mxu0 %v2454_v43  ;;  %v2474_v42 = vpack.c.bf16 %v531_v36, %v527_v35  ;;  %v526_v43 = vld [vmem:[#allocation2 + $0xe80] sm:$0xff]  ;;  %v571_v35 = vld [vmem:[#allocation2 + $0xfe8] sm:$0xff]  ;;  %v569_v36 = vld [vmem:[#allocation2 + $0xfd8] sm:$0xff] }
 0x10e   :  { %2847 = vmatprep.subr.bf16.mxu1 %v2846_v48  ;;  %v532_v48 = vld [vmem:[#allocation2 + $0xeb0] sm:$0xff]  ;;  %v2476_v53 = vpack.c.bf16 %v530_v44, %v526_v43  ;;  %v570_v43 = vld [vmem:[#allocation2 + $0xfe0] sm:$0xff]  ;;  %v599_v23 = vld [vmem:[#allocation2 + $0x10c8] sm:$0xff] }
 0x10f   :  { %v568_v44 = vld [vmem:[#allocation2 + $0xfd0] sm:$0xff]  ;;  %v603_v24 = vld [vmem:[#allocation2 + $0x10e8] sm:$0xff] }
 0x110   :  { %2457 = vmatpush1.bf16.msra.mxu0 %v2456_v25  ;;  %v2868_v25 = vpack.c.bf16 %v532_v48, %v528_v46  ;;  %v2886_v46 = vpack.c.bf16 %v573_v37, %v569_v36  ;;  %v575_v48 = vld [vmem:[#allocation2 + $0x1008] sm:$0xff]  ;;  %v609_v37 = vld [vmem:[#allocation2 + $0x1118] sm:$0xff] }
 0x111   :  { %2849 = vmatpush1.bf16.msra.mxu1 %v2848_v54  ;;  %2459 = vmatprep.subr.bf16.mxu0 %v2458_v55  ;;  %v2478_v54 = vpack.c.bf16 %v539_v50, %v535_v49  ;;  %v534_v55 = vld [vmem:[#allocation2 + $0xec0] sm:$0xff]  ;;  %v579_v49 = vld [vmem:[#allocation2 + $0x1028] sm:$0xff]  ;;  %v577_v50 = vld [vmem:[#allocation2 + $0x1018] sm:$0xff] }
 0x112   :  { %2851 = vmatprep.subr.bf16.mxu1 %v2850_v59  ;;  %v540_v59 = vld [vmem:[#allocation2 + $0xef0] sm:$0xff]  ;;  %v2480_v1 = vpack.c.bf16 %v538_v56, %v534_v55  ;;  %v574_v55 = vld [vmem:[#allocation2 + $0x1000] sm:$0xff]  ;;  %v611_v36 = vld [vmem:[#allocation2 + $0x1128] sm:$0xff] }
 0x113   :  { %v578_v56 = vld [vmem:[#allocation2 + $0x1020] sm:$0xff] }
 0x114   :  { %2461 = vmatpush1.bf16.msra.mxu0 %v2460_v22  ;;  %v2872_v22 = vpack.c.bf16 %v540_v59, %v536_v57  ;;  %v576_v57 = vld [vmem:[#allocation2 + $0x1010] sm:$0xff] }
 0x115   :  { %2853 = vmatpush1.bf16.msra.mxu1 %v2852_v2  ;;  %2463 = vmatprep.subr.bf16.mxu0 %v2462_v3  ;;  %v2482_v2 = vpack.c.bf16 %v547_v62, %v543_v60  ;;  %v542_v3 = vld [vmem:[#allocation2 + $0xf00] sm:$0xff]  ;;  %v580_v59 = vld [vmem:[#allocation2 + $0x1030] sm:$0xff]  ;;  %v583_v60 = vld [vmem:[#allocation2 + $0x1048] sm:$0xff] }
 0x116   :  { %2855 = vmatprep.subr.bf16.mxu1 %v2854_v7  ;;  %v548_v7 = vld [vmem:[#allocation2 + $0xf30] sm:$0xff]  ;;  %v2484_v13 = vpack.c.bf16 %v546_v4, %v542_v3  ;;  %v587_v62 = vld [vmem:[#allocation2 + $0x1068] sm:$0xff]  ;;  %v582_v4 = vld [vmem:[#allocation2 + $0x1040] sm:$0xff] }
 0x117   :  { %v2502_v3 = vpack.c.bf16 %v587_v62, %v583_v60  ;;  %v620_v60 = vld [vmem:[#allocation2 + $0x1170] sm:$0xff]  ;;  %v623_v62 = vld [vmem:[#allocation2 + $0x1188] sm:$0xff] }
 0x118   :  { %2465 = vmatpush1.bf16.msra.mxu0 %v2464_v14  ;;  %v2876_v14 = vpack.c.bf16 %v548_v7, %v544_v5  ;;  %v586_v5 = vld [vmem:[#allocation2 + $0x1060] sm:$0xff] }
 0x119   :  { %2857 = vmatpush1.bf16.msra.mxu1 %v2856_v15  ;;  %2467 = vmatprep.subr.bf16.mxu0 %v2466_v45  ;;  %v2486_v15 = vpack.c.bf16 %v555_v9, %v551_v8  ;;  %v550_v45 = vld [vmem:[#allocation2 + $0xf40] sm:$0xff]  ;;  %v588_v8 = vld [vmem:[#allocation2 + $0x1070] sm:$0xff]  ;;  %v591_v9 = vld [vmem:[#allocation2 + $0x1088] sm:$0xff] }
 0x11a   :  { %2859 = vmatprep.subr.bf16.mxu1 %v2858_v19  ;;  %v556_v19 = vld [vmem:[#allocation2 + $0xf70] sm:$0xff]  ;;  %v2488_v26 = vpack.c.bf16 %v554_v16, %v550_v45  ;;  %v2506_v16 = vpack.c.bf16 %v595_v10, %v591_v9  ;;  %v631_v10 = vld [vmem:[#allocation2 + $0x11c8] sm:$0xff] }
 0x11b   :  { %v628_v9 = vld [vmem:[#allocation2 + $0x11b0] sm:$0xff] }
 0x11c   :  { %2469 = vmatpush1.bf16.msra.mxu0 %v2468_v27  ;;  %v2880_v27 = vpack.c.bf16 %v556_v19, %v552_v17  ;;  %v590_v17 = vld [vmem:[#allocation2 + $0x1080] sm:$0xff]  ;;  %v592_v19 = vld [vmem:[#allocation2 + $0x1090] sm:$0xff] }
 0x11d   :  { %2861 = vmatpush1.bf16.msra.mxu1 %v2860_v28  ;;  %2471 = vmatprep.subr.bf16.mxu0 %v2470_v29  ;;  %v2490_v28 = vpack.c.bf16 %v563_v21, %v559_v20  ;;  %v558_v29 = vld [vmem:[#allocation2 + $0xf80] sm:$0xff]  ;;  %v596_v21 = vld [vmem:[#allocation2 + $0x10b0] sm:$0xff] }
 0x11e   :  { %2863 = vmatprep.subr.bf16.mxu1 %v2862_v33  ;;  %v564_v33 = vld [vmem:[#allocation2 + $0xfb0] sm:$0xff]  ;;  %v2492_v38 = vpack.c.bf16 %v562_v30, %v558_v29  ;;  %v2510_v29 = vpack.c.bf16 %v603_v24, %v599_v23  ;;  %v598_v30 = vld [vmem:[#allocation2 + $0x10c0] sm:$0xff]  ;;  %v639_v23 = vld [vmem:[#allocation2 + $0x1208] sm:$0xff] }
 0x11f   :  { %v643_v24 = vld [vmem:[#allocation2 + $0x1228] sm:$0xff] }
 0x120   :  { %2473 = vmatpush1.bf16.msra.mxu0 %v2472_v40  ;;  %v2884_v40 = vpack.c.bf16 %v564_v33, %v560_v31  ;;  %v602_v31 = vld [vmem:[#allocation2 + $0x10e0] sm:$0xff] }
 0x121   :  { %2865 = vmatpush1.bf16.msra.mxu1 %v2864_v41  ;;  %2475 = vmatprep.subr.bf16.mxu0 %v2474_v42  ;;  %v2494_v41 = vpack.c.bf16 %v571_v35, %v567_v34  ;;  %v566_v42 = vld [vmem:[#allocation2 + $0xfc0] sm:$0xff]  ;;  %v604_v34 = vld [vmem:[#allocation2 + $0x10f0] sm:$0xff]  ;;  %v607_v35 = vld [vmem:[#allocation2 + $0x1108] sm:$0xff] }
 0x122   :  { %2867 = vmatprep.subr.bf16.mxu1 %v2866_v47  ;;  %v572_v47 = vld [vmem:[#allocation2 + $0xff0] sm:$0xff] }
 0x124   :  { %2477 = vmatpush1.bf16.msra.mxu0 %v2476_v53  ;;  %v2496_v53 = vpack.c.bf16 %v570_v43, %v566_v42  ;;  %v2514_v42 = vpack.c.bf16 %v611_v36, %v607_v35  ;;  %v606_v43 = vld [vmem:[#allocation2 + $0x1100] sm:$0xff]  ;;  %v647_v35 = vld [vmem:[#allocation2 + $0x1248] sm:$0xff] }
 0x125   :  { %2869 = vmatpush1.bf16.msra.mxu1 %v2868_v25  ;;  %2479 = vmatprep.subr.bf16.mxu0 %v2478_v54  ;;  %v2888_v25 = vpack.c.bf16 %v572_v47, %v568_v44  ;;  %v2498_v54 = vpack.c.bf16 %v579_v49, %v575_v48  ;;  %v610_v44 = vld [vmem:[#allocation2 + $0x1120] sm:$0xff]  ;;  %v612_v48 = vld [vmem:[#allocation2 + $0x1130] sm:$0xff]  ;;  %v615_v49 = vld [vmem:[#allocation2 + $0x1148] sm:$0xff] }
 0x126   :  { %2871 = vmatprep.subr.bf16.mxu1 %v2870_v58  ;;  %v2890_v58 = vpack.c.bf16 %v581_v51, %v577_v50  ;;  %v619_v50 = vld [vmem:[#allocation2 + $0x1168] sm:$0xff]  ;;  %v617_v51 = vld [vmem:[#allocation2 + $0x1158] sm:$0xff] }
 0x127   :  { %v651_v36 = vld [vmem:[#allocation2 + $0x1268] sm:$0xff] }
 0x128   :  { %2481 = vmatpush1.bf16.msra.mxu0 %v2480_v1  ;;  %v589_v1 = vld [vmem:[#allocation2 + $0x1078] sm:$0xff] }
 0x129   :  { %2873 = vmatpush1.bf16.msra.mxu1 %v2872_v22  ;;  %2483 = vmatprep.subr.bf16.mxu0 %v2482_v2  ;;  %v2500_v22 = vpack.c.bf16 %v578_v56, %v574_v55  ;;  %v2892_v2 = vpack.c.bf16 %v580_v59, %v576_v57  ;;  %v2894_v7 = vpack.c.bf16 %v589_v1, %v585_v0  ;;  %v614_v56 = vld [vmem:[#allocation2 + $0x1140] sm:$0xff]  ;;  %v627_v0 = vld [vmem:[#allocation2 + $0x11a8] sm:$0xff]  ;;  %v625_v1 = vld [vmem:[#allocation2 + $0x1198] sm:$0xff] }
 0x12a   :  { %2875 = vmatprep.subr.bf16.mxu1 %v2874_v6  ;;  %v584_v6 = vld [vmem:[#allocation2 + $0x1050] sm:$0xff]  ;;  %v2518_v55 = vpack.c.bf16 %v619_v50, %v615_v49  ;;  %v618_v57 = vld [vmem:[#allocation2 + $0x1160] sm:$0xff]  ;;  %v655_v49 = vld [vmem:[#allocation2 + $0x1288] sm:$0xff] }
 0x12b   :  { %v2896_v45 = vpack.c.bf16 %v588_v8, %v584_v6  ;;  %v626_v6 = vld [vmem:[#allocation2 + $0x11a0] sm:$0xff]  ;;  %v659_v50 = vld [vmem:[#allocation2 + $0x12a8] sm:$0xff] }
 0x12c   :  { %2485 = vmatpush1.bf16.msra.mxu0 %v2484_v13  ;;  %v593_v13 = vld [vmem:[#allocation2 + $0x1098] sm:$0xff] }
 0x12d   :  { %2877 = vmatpush1.bf16.msra.mxu1 %v2876_v14  ;;  %2487 = vmatprep.subr.bf16.mxu0 %v2486_v15  ;;  %v597_v14 = vld [vmem:[#allocation2 + $0x10b8] sm:$0xff]  ;;  %v2504_v15 = vpack.c.bf16 %v586_v5, %v582_v4  ;;  %v2522_v4 = vpack.c.bf16 %v627_v0, %v623_v62  ;;  %v622_v5 = vld [vmem:[#allocation2 + $0x1180] sm:$0xff]  ;;  %v663_v62 = vld [vmem:[#allocation2 + $0x12c8] sm:$0xff] }
 0x12e   :  { %2879 = vmatprep.subr.bf16.mxu1 %v2878_v18  ;;  %v594_v18 = vld [vmem:[#allocation2 + $0x10a0] sm:$0xff]  ;;  %v2898_v20 = vpack.c.bf16 %v597_v14, %v593_v13  ;;  %v633_v13 = vld [vmem:[#allocation2 + $0x11d8] sm:$0xff]  ;;  %v667_v0 = vld [vmem:[#allocation2 + $0x12e8] sm:$0xff] }
 0x12f   :  { %v637_v14 = vld [vmem:[#allocation2 + $0x11f8] sm:$0xff] }
 0x130   :  { %2489 = vmatpush1.bf16.msra.mxu0 %v2488_v26  ;;  %v601_v26 = vld [vmem:[#allocation2 + $0x10d8] sm:$0xff] }
 0x131   :  { %2881 = vmatpush1.bf16.msra.mxu1 %v2880_v27  ;;  %2491 = vmatprep.subr.bf16.mxu0 %v2490_v28  ;;  %v605_v27 = vld [vmem:[#allocation2 + $0x10f8] sm:$0xff]  ;;  %v2508_v28 = vpack.c.bf16 %v594_v18, %v590_v17  ;;  %v630_v17 = vld [vmem:[#allocation2 + $0x11c0] sm:$0xff] }
 0x132   :  { %2883 = vmatprep.subr.bf16.mxu1 %v2882_v32  ;;  %v600_v32 = vld [vmem:[#allocation2 + $0x10d0] sm:$0xff]  ;;  %v2902_v33 = vpack.c.bf16 %v605_v27, %v601_v26  ;;  %v634_v18 = vld [vmem:[#allocation2 + $0x11e0] sm:$0xff]  ;;  %v641_v26 = vld [vmem:[#allocation2 + $0x1218] sm:$0xff] }
 0x133   :  { %v645_v27 = vld [vmem:[#allocation2 + $0x1238] sm:$0xff] }
 0x134   :  { %2493 = vmatpush1.bf16.msra.mxu0 %v2492_v38  ;;  %v613_v38 = vld [vmem:[#allocation2 + $0x1138] sm:$0xff] }
 0x135   :  { %2885 = vmatpush1.bf16.msra.mxu1 %v2884_v40  ;;  %2495 = vmatprep.subr.bf16.mxu0 %v2494_v41  ;;  %v2512_v40 = vpack.c.bf16 %v602_v31, %v598_v30  ;;  %v2904_v41 = vpack.c.bf16 %v604_v34, %v600_v32  ;;  %v2906_v47 = vpack.c.bf16 %v613_v38, %v609_v37  ;;  %v638_v30 = vld [vmem:[#allocation2 + $0x1200] sm:$0xff]  ;;  %v640_v32 = vld [vmem:[#allocation2 + $0x1210] sm:$0xff]  ;;  %v649_v37 = vld [vmem:[#allocation2 + $0x1258] sm:$0xff] }
 0x136   :  { %2887 = vmatprep.subr.bf16.mxu1 %v2886_v46  ;;  %v608_v46 = vld [vmem:[#allocation2 + $0x1110] sm:$0xff]  ;;  %v642_v31 = vld [vmem:[#allocation2 + $0x1220] sm:$0xff]  ;;  %v653_v38 = vld [vmem:[#allocation2 + $0x1278] sm:$0xff] }
 0x137   :  { %v644_v34 = vld [vmem:[#allocation2 + $0x1230] sm:$0xff] }
 0x138   :  { %2497 = vmatpush1.bf16.msra.mxu0 %v2496_v53  ;;  %v621_v53 = vld [vmem:[#allocation2 + $0x1178] sm:$0xff] }
 0x139   :  { %2889 = vmatpush1.bf16.msra.mxu1 %v2888_v25  ;;  %2499 = vmatprep.subr.bf16.mxu0 %v2498_v54  ;;  %v2516_v25 = vpack.c.bf16 %v610_v44, %v606_v43  ;;  %v2908_v54 = vpack.c.bf16 %v612_v48, %v608_v46  ;;  %v2910_v59 = vpack.c.bf16 %v621_v53, %v617_v51  ;;  %v646_v43 = vld [vmem:[#allocation2 + $0x1240] sm:$0xff]  ;;  %v648_v46 = vld [vmem:[#allocation2 + $0x1250] sm:$0xff]  ;;  %v657_v51 = vld [vmem:[#allocation2 + $0x1298] sm:$0xff] }
 0x13a   :  { %2891 = vmatprep.subr.bf16.mxu1 %v2890_v58  ;;  %v616_v58 = vld [vmem:[#allocation2 + $0x1150] sm:$0xff]  ;;  %v650_v44 = vld [vmem:[#allocation2 + $0x1260] sm:$0xff]  ;;  %v661_v53 = vld [vmem:[#allocation2 + $0x12b8] sm:$0xff] }
 0x13b   :  { %1223 = vmatmul.mubr.f32.vlgmr.msra.gmra.mrb[0].mxu0 %v3345_v52  ;;  %v652_v48 = vld [vmem:[#allocation2 + $0x1270] sm:$0xff] }
 0x13c   :  { %2501 = vmatpush1.bf16.msra.mxu0 %v2500_v22  ;;  %1720 = vmatmul.mubr.f32.vlgmr.msra.gmra.mrb[0].mxu1 %v3345_v52  ;;  %v2900_v52 = vpack.c.bf16 %v596_v21, %v592_v19  ;;  %v629_v22 = vld [vmem:[#allocation2 + $0x11b8] sm:$0xff]  ;;  %v632_v19 = vld [vmem:[#allocation2 + $0x11d0] sm:$0xff] }
 0x13d   :  { %2893 = vmatpush1.bf16.msra.mxu1 %v2892_v2  ;;  %2503 = vmatprep.subr.bf16.mxu0 %v2502_v3  ;;  %v2520_v2 = vpack.c.bf16 %v618_v57, %v614_v56  ;;  %v2912_v3 = vpack.c.bf16 %v620_v60, %v616_v58  ;;  %v2914_v8 = vpack.c.bf16 %v629_v22, %v625_v1  ;;  %v636_v21 = vld [vmem:[#allocation2 + $0x11f0] sm:$0xff]  ;;  %v654_v56 = vld [vmem:[#allocation2 + $0x1280] sm:$0xff]  ;;  %v665_v1 = vld [vmem:[#allocation2 + $0x12d8] sm:$0xff] }
 0x13e   :  { %2895 = vmatprep.subr.bf16.mxu1 %v2894_v7  ;;  %1293 = vmatprep.mubr.f32.mxu0 %v921_v12  ;;  %v624_v7 = vld [vmem:[#allocation2 + $0x1190] sm:$0xff]  ;;  %v658_v57 = vld [vmem:[#allocation2 + $0x12a0] sm:$0xff]  ;;  %v669_v22 = vld [vmem:[#allocation2 + $0x12f8] sm:$0xff] }
 0x13f   :  { %1790 = vmatprep.mubr.f32.mxu1 %v921_v12  ;;  %v635_v12 = vld [vmem:[#allocation2 + $0x11e8] sm:$0xff]  ;;  %v656_v58 = vld [vmem:[#allocation2 + $0x1290] sm:$0xff] }
 0x140   :  { %2505 = vmatpush1.bf16.msra.mxu0 %v2504_v15  ;;  %v2524_v15 = vpack.c.bf16 %v626_v6, %v622_v5  ;;  %v660_v60 = vld [vmem:[#allocation2 + $0x12b0] sm:$0xff]  ;;  %v662_v5 = vld [vmem:[#allocation2 + $0x12c0] sm:$0xff] }
 0x141   :  { %2897 = vmatpush1.bf16.msra.mxu1 %v2896_v45  ;;  %2507 = vmatprep.subr.bf16.mxu0 %v2506_v16  ;;  %v2916_v45 = vpack.c.bf16 %v628_v9, %v624_v7  ;;  %v2526_v16 = vpack.c.bf16 %v635_v12, %v631_v10  ;;  %v666_v6 = vld [vmem:[#allocation2 + $0x12e0] sm:$0xff]  ;;  %v664_v7 = vld [vmem:[#allocation2 + $0x12d0] sm:$0xff]  ;;  %v671_v10 = vld [vmem:[#allocation2 + $0x1308] sm:$0xff] }
 0x142   :  { %2899 = vmatprep.subr.bf16.mxu1 %v2898_v20  ;;  %v2918_v20 = vpack.c.bf16 %v637_v14, %v633_v13  ;;  %v668_v9 = vld [vmem:[#allocation2 + $0x12f0] sm:$0xff]  ;;  %v675_v12 = vld [vmem:[#allocation2 + $0x1328] sm:$0xff]  ;;  %v673_v13 = vld [vmem:[#allocation2 + $0x1318] sm:$0xff] }
 0x143   :  { %v677_v14 = vld [vmem:[#allocation2 + $0x1338] sm:$0xff] }
 0x144   :  { %2509 = vmatpush1.bf16.msra.mxu0 %v2508_v28  ;;  %v2528_v28 = vpack.c.bf16 %v634_v18, %v630_v17  ;;  %v670_v17 = vld [vmem:[#allocation2 + $0x1300] sm:$0xff] }
 0x145   :  { %2901 = vmatpush1.bf16.msra.mxu1 %v2900_v52  ;;  %2511 = vmatprep.subr.bf16.mxu0 %v2510_v29  ;;  %v2920_v52 = vpack.c.bf16 %v636_v21, %v632_v19  ;;  %v2530_v29 = vpack.c.bf16 %v643_v24, %v639_v23  ;;  %v674_v18 = vld [vmem:[#allocation2 + $0x1320] sm:$0xff]  ;;  %v672_v19 = vld [vmem:[#allocation2 + $0x1310] sm:$0xff]  ;;  %v679_v23 = vld [vmem:[#allocation2 + $0x1348] sm:$0xff] }
 0x146   :  { %2903 = vmatprep.subr.bf16.mxu1 %v2902_v33  ;;  %v2922_v33 = vpack.c.bf16 %v645_v27, %v641_v26  ;;  %v676_v21 = vld [vmem:[#allocation2 + $0x1330] sm:$0xff]  ;;  %v683_v24 = vld [vmem:[#allocation2 + $0x1368] sm:$0xff]  ;;  %v681_v26 = vld [vmem:[#allocation2 + $0x1358] sm:$0xff] }
 0x147   :  { %v685_v27 = vld [vmem:[#allocation2 + $0x1378] sm:$0xff] }
 0x148   :  { %2513 = vmatpush1.bf16.msra.mxu0 %v2512_v40  ;;  %v2532_v40 = vpack.c.bf16 %v642_v31, %v638_v30  ;;  %v678_v30 = vld [vmem:[#allocation2 + $0x1340] sm:$0xff] }
 0x149   :  { %2905 = vmatpush1.bf16.msra.mxu1 %v2904_v41  ;;  %2515 = vmatprep.subr.bf16.mxu0 %v2514_v42  ;;  %v2924_v41 = vpack.c.bf16 %v644_v34, %v640_v32  ;;  %v2534_v42 = vpack.c.bf16 %v651_v36, %v647_v35  ;;  %v682_v31 = vld [vmem:[#allocation2 + $0x1360] sm:$0xff]  ;;  %v680_v32 = vld [vmem:[#allocation2 + $0x1350] sm:$0xff]  ;;  %v687_v35 = vld [vmem:[#allocation2 + $0x1388] sm:$0xff] }
 0x14a   :  { %2907 = vmatprep.subr.bf16.mxu1 %v2906_v47  ;;  %v2926_v47 = vpack.c.bf16 %v653_v38, %v649_v37  ;;  %v684_v34 = vld [vmem:[#allocation2 + $0x1370] sm:$0xff]  ;;  %v691_v36 = vld [vmem:[#allocation2 + $0x13a8] sm:$0xff]  ;;  %v689_v37 = vld [vmem:[#allocation2 + $0x1398] sm:$0xff] }
 0x14b   :  { %v693_v38 = vld [vmem:[#allocation2 + $0x13b8] sm:$0xff] }
 0x14c   :  { %2517 = vmatpush1.bf16.msra.mxu0 %v2516_v25  ;;  %v2536_v25 = vpack.c.bf16 %v650_v44, %v646_v43  ;;  %v686_v43 = vld [vmem:[#allocation2 + $0x1380] sm:$0xff] }
 0x14d   :  { %2909 = vmatpush1.bf16.msra.mxu1 %v2908_v54  ;;  %2519 = vmatprep.subr.bf16.mxu0 %v2518_v55  ;;  %v2928_v54 = vpack.c.bf16 %v652_v48, %v648_v46  ;;  %v2538_v55 = vpack.c.bf16 %v659_v50, %v655_v49  ;;  %v690_v44 = vld [vmem:[#allocation2 + $0x13a0] sm:$0xff]  ;;  %v688_v46 = vld [vmem:[#allocation2 + $0x1390] sm:$0xff]  ;;  %v695_v49 = vld [vmem:[#allocation2 + $0x13c8] sm:$0xff] }
 0x14e   :  { %2911 = vmatprep.subr.bf16.mxu1 %v2910_v59  ;;  %v2930_v59 = vpack.c.bf16 %v661_v53, %v657_v51  ;;  %v692_v48 = vld [vmem:[#allocation2 + $0x13b0] sm:$0xff]  ;;  %v699_v50 = vld [vmem:[#allocation2 + $0x13e8] sm:$0xff]  ;;  %v697_v51 = vld [vmem:[#allocation2 + $0x13d8] sm:$0xff] }
 0x14f   :  { %v701_v53 = vld [vmem:[#allocation2 + $0x13f8] sm:$0xff] }
 0x150   :  { %2521 = vmatpush1.bf16.msra.mxu0 %v2520_v2  ;;  %v2540_v2 = vpack.c.bf16 %v658_v57, %v654_v56  ;;  %v694_v56 = vld [vmem:[#allocation2 + $0x13c0] sm:$0xff] }
 0x151   :  { %2913 = vmatpush1.bf16.msra.mxu1 %v2912_v3  ;;  %2523 = vmatprep.subr.bf16.mxu0 %v2522_v4  ;;  %v2932_v3 = vpack.c.bf16 %v660_v60, %v656_v58  ;;  %v2542_v4 = vpack.c.bf16 %v667_v0, %v663_v62  ;;  %v698_v57 = vld [vmem:[#allocation2 + $0x13e0] sm:$0xff]  ;;  %v696_v58 = vld [vmem:[#allocation2 + $0x13d0] sm:$0xff]  ;;  %v703_v62 = vld [vmem:[#allocation2 + $0x1408] sm:$0xff] }
 0x152   :  { %2915 = vmatprep.subr.bf16.mxu1 %v2914_v8  ;;  %v2934_v8 = vpack.c.bf16 %v669_v22, %v665_v1  ;;  %v700_v60 = vld [vmem:[#allocation2 + $0x13f0] sm:$0xff]  ;;  %v707_v0 = vld [vmem:[#allocation2 + $0x1428] sm:$0xff]  ;;  %v906_v1 = vcombine.high %v3354_v39, %v3354_v39  ;;  %v705_v22 = vld [vmem:[#allocation2 + $0x1418] sm:$0xff] }
 0x153   :  { %v713_v39 = vld [vmem:[#allocation2 + $0x1458] sm:$0xff] }
 0x154   :  { %2525 = vmatpush1.bf16.msra.mxu0 %v2524_v15  ;;  %v2544_v15 = vpack.c.bf16 %v666_v6, %v662_v5  ;;  %v2562_v5 = vpack.c.bf16 %v707_v0, %v703_v62  ;;  %v702_v6 = vld [vmem:[#allocation2 + $0x1400] sm:$0xff]  ;;  %v743_v62 = vld [vmem:[#allocation2 + $0x1548] sm:$0xff] }
 0x155   :  { %2917 = vmatpush1.bf16.msra.mxu1 %v2916_v45  ;;  %2527 = vmatprep.subr.bf16.mxu0 %v2526_v16  ;;  %v2936_v45 = vpack.c.bf16 %v668_v9, %v664_v7  ;;  %v2546_v16 = vpack.c.bf16 %v675_v12, %v671_v10  ;;  %v706_v7 = vld [vmem:[#allocation2 + $0x1420] sm:$0xff]  ;;  %v708_v10 = vld [vmem:[#allocation2 + $0x1430] sm:$0xff]  ;;  %v711_v12 = vld [vmem:[#allocation2 + $0x1448] sm:$0xff] }
 0x156   :  { %2919 = vmatprep.subr.bf16.mxu1 %v2918_v20  ;;  %v2938_v20 = vpack.c.bf16 %v677_v14, %v673_v13  ;;  %v715_v13 = vld [vmem:[#allocation2 + $0x1468] sm:$0xff]  ;;  %v3367_v14 = vrot.slane %v906_v1, %v3307_v11  ;;  %v745_v1 = vld [vmem:[#allocation2 + $0x1558] sm:$0xff] }
 0x157   :  { %v747_v0 = vld [vmem:[#allocation2 + $0x1568] sm:$0xff] }
 0x158   :  { %2529 = vmatpush1.bf16.msra.mxu0 %v2528_v28  ;;  %v2548_v28 = vpack.c.bf16 %v674_v18, %v670_v17  ;;  %v2566_v17 = vpack.c.bf16 %v715_v13, %v711_v12  ;;  %v710_v18 = vld [vmem:[#allocation2 + $0x1440] sm:$0xff]  ;;  %v922_v11 = vcombine.high %v3367_v14, %v3367_v14  ;;  %v755_v12 = vld [vmem:[#allocation2 + $0x15a8] sm:$0xff]  ;;  %v753_v13 = vld [vmem:[#allocation2 + $0x1598] sm:$0xff] }
 0x159   :  { %2921 = vmatpush1.bf16.msra.mxu1 %v2920_v52  ;;  %2531 = vmatprep.subr.bf16.mxu0 %v2530_v29  ;;  %v2940_v52 = vpack.c.bf16 %v676_v21, %v672_v19  ;;  %v2550_v29 = vpack.c.bf16 %v683_v24, %v679_v23  ;;  %v714_v19 = vld [vmem:[#allocation2 + $0x1460] sm:$0xff]  ;;  %v716_v23 = vld [vmem:[#allocation2 + $0x1470] sm:$0xff]  ;;  %v719_v24 = vld [vmem:[#allocation2 + $0x1488] sm:$0xff] }
 0x15a   :  { %2923 = vmatprep.subr.bf16.mxu1 %v2922_v33  ;;  %v2942_v33 = vpack.c.bf16 %v685_v27, %v681_v26  ;;  %v723_v26 = vld [vmem:[#allocation2 + $0x14a8] sm:$0xff]  ;;  %v721_v27 = vld [vmem:[#allocation2 + $0x1498] sm:$0xff] }
 0x15c   :  { %2533 = vmatpush1.bf16.msra.mxu0 %v2532_v40  ;;  %v2552_v40 = vpack.c.bf16 %v682_v31, %v678_v30  ;;  %v2570_v30 = vpack.c.bf16 %v723_v26, %v719_v24  ;;  %v718_v31 = vld [vmem:[#allocation2 + $0x1480] sm:$0xff]  ;;  %v763_v24 = vld [vmem:[#allocation2 + $0x15e8] sm:$0xff]  ;;  %v761_v26 = vld [vmem:[#allocation2 + $0x15d8] sm:$0xff] }
 0x15d   :  { %2925 = vmatpush1.bf16.msra.mxu1 %v2924_v41  ;;  %2535 = vmatprep.subr.bf16.mxu0 %v2534_v42  ;;  %v2944_v41 = vpack.c.bf16 %v684_v34, %v680_v32  ;;  %v2554_v42 = vpack.c.bf16 %v691_v36, %v687_v35  ;;  %v722_v32 = vld [vmem:[#allocation2 + $0x14a0] sm:$0xff]  ;;  %v724_v35 = vld [vmem:[#allocation2 + $0x14b0] sm:$0xff]  ;;  %v727_v36 = vld [vmem:[#allocation2 + $0x14c8] sm:$0xff] }
 0x15e   :  { %2927 = vmatprep.subr.bf16.mxu1 %v2926_v47  ;;  %v2946_v47 = vpack.c.bf16 %v693_v38, %v689_v37  ;;  %v731_v37 = vld [vmem:[#allocation2 + $0x14e8] sm:$0xff]  ;;  %v729_v38 = vld [vmem:[#allocation2 + $0x14d8] sm:$0xff] }
 0x160   :  { %2537 = vmatpush1.bf16.msra.mxu0 %v2536_v25  ;;  %v2556_v25 = vpack.c.bf16 %v690_v44, %v686_v43  ;;  %v726_v43 = vld [vmem:[#allocation2 + $0x14c0] sm:$0xff] }
 0x161   :  { %2929 = vmatpush1.bf16.msra.mxu1 %v2928_v54  ;;  %2539 = vmatprep.subr.bf16.mxu0 %v2538_v55  ;;  %v2948_v54 = vpack.c.bf16 %v692_v48, %v688_v46  ;;  %v2558_v55 = vpack.c.bf16 %v699_v50, %v695_v49  ;;  %v730_v44 = vld [vmem:[#allocation2 + $0x14e0] sm:$0xff]  ;;  %v728_v46 = vld [vmem:[#allocation2 + $0x14d0] sm:$0xff]  ;;  %v735_v49 = vld [vmem:[#allocation2 + $0x1508] sm:$0xff] }
 0x162   :  { %2931 = vmatprep.subr.bf16.mxu1 %v2930_v59  ;;  %v2950_v59 = vpack.c.bf16 %v701_v53, %v697_v51  ;;  %v732_v48 = vld [vmem:[#allocation2 + $0x14f0] sm:$0xff]  ;;  %v739_v50 = vld [vmem:[#allocation2 + $0x1528] sm:$0xff]  ;;  %v737_v51 = vld [vmem:[#allocation2 + $0x1518] sm:$0xff] }
 0x163   :  { %v741_v53 = vld [vmem:[#allocation2 + $0x1538] sm:$0xff] }
 0x164   :  { %2541 = vmatpush1.bf16.msra.mxu0 %v2540_v2  ;;  %v709_v2 = vld [vmem:[#allocation2 + $0x1438] sm:$0xff] }
 0x165   :  { %2933 = vmatpush1.bf16.msra.mxu1 %v2932_v3  ;;  %2543 = vmatprep.subr.bf16.mxu0 %v2542_v4  ;;  %v2560_v3 = vpack.c.bf16 %v698_v57, %v694_v56  ;;  %v2952_v4 = vpack.c.bf16 %v700_v60, %v696_v58  ;;  %v2954_v9 = vpack.c.bf16 %v709_v2, %v705_v22  ;;  %v734_v56 = vld [vmem:[#allocation2 + $0x1500] sm:$0xff]  ;;  %v736_v58 = vld [vmem:[#allocation2 + $0x1510] sm:$0xff]  ;;  %v749_v22 = vld [vmem:[#allocation2 + $0x1578] sm:$0xff] }
 0x166   :  { %2935 = vmatprep.subr.bf16.mxu1 %v2934_v8  ;;  %v704_v8 = vld [vmem:[#allocation2 + $0x1410] sm:$0xff]  ;;  %v738_v57 = vld [vmem:[#allocation2 + $0x1520] sm:$0xff] }
 0x167   :  { %v740_v60 = vld [vmem:[#allocation2 + $0x1530] sm:$0xff]  ;;  %v2580_v2 = vpack.c.bf16 %v738_v57, %v734_v56 }
 0x168   :  { %2545 = vmatpush1.bf16.msra.mxu0 %v2544_v15  ;;  %v717_v15 = vld [vmem:[#allocation2 + $0x1478] sm:$0xff]  ;;  %v776_v56 = vld [vmem:[#allocation2 + $0x1650] sm:$0xff] }
 0x169   :  { %2937 = vmatpush1.bf16.msra.mxu1 %v2936_v45  ;;  %2547 = vmatprep.subr.bf16.mxu0 %v2546_v16  ;;  %v2564_v45 = vpack.c.bf16 %v706_v7, %v702_v6  ;;  %v2956_v16 = vpack.c.bf16 %v708_v10, %v704_v8  ;;  %v2958_v21 = vpack.c.bf16 %v717_v15, %v713_v39  ;;  %v746_v6 = vld [vmem:[#allocation2 + $0x1560] sm:$0xff]  ;;  %v744_v7 = vld [vmem:[#allocation2 + $0x1550] sm:$0xff]  ;;  %v751_v10 = vld [vmem:[#allocation2 + $0x1588] sm:$0xff] }
 0x16a   :  { %2939 = vmatprep.subr.bf16.mxu1 %v2938_v20  ;;  %v712_v20 = vld [vmem:[#allocation2 + $0x1450] sm:$0xff]  ;;  %v2974_v8 = vpack.c.bf16 %v749_v22, %v745_v1  ;;  %v757_v39 = vld [vmem:[#allocation2 + $0x15b8] sm:$0xff] }
 0x16c   :  { %2549 = vmatpush1.bf16.msra.mxu0 %v2548_v28  ;;  %v725_v28 = vld [vmem:[#allocation2 + $0x14b8] sm:$0xff] }
 0x16d   :  { %2941 = vmatpush1.bf16.msra.mxu1 %v2940_v52  ;;  %2551 = vmatprep.subr.bf16.mxu0 %v2550_v29  ;;  %v2568_v52 = vpack.c.bf16 %v714_v19, %v710_v18  ;;  %v2960_v29 = vpack.c.bf16 %v716_v23, %v712_v20  ;;  %v2962_v34 = vpack.c.bf16 %v725_v28, %v721_v27  ;;  %v754_v18 = vld [vmem:[#allocation2 + $0x15a0] sm:$0xff]  ;;  %v752_v19 = vld [vmem:[#allocation2 + $0x1590] sm:$0xff]  ;;  %v759_v23 = vld [vmem:[#allocation2 + $0x15c8] sm:$0xff] }
 0x16e   :  { %2943 = vmatprep.subr.bf16.mxu1 %v2942_v33  ;;  %v720_v33 = vld [vmem:[#allocation2 + $0x1490] sm:$0xff]  ;;  %v2978_v20 = vpack.c.bf16 %v757_v39, %v753_v13 }
 0x170   :  { %2553 = vmatpush1.bf16.msra.mxu0 %v2552_v40  ;;  %v733_v40 = vld [vmem:[#allocation2 + $0x14f8] sm:$0xff] }
 0x171   :  { %2945 = vmatpush1.bf16.msra.mxu1 %v2944_v41  ;;  %2555 = vmatprep.subr.bf16.mxu0 %v2554_v42  ;;  %v2572_v41 = vpack.c.bf16 %v722_v32, %v718_v31  ;;  %v2574_v42 = vpack.c.bf16 %v731_v37, %v727_v36  ;;  %v760_v31 = vld [vmem:[#allocation2 + $0x15d0] sm:$0xff]  ;;  %v769_v36 = vld [vmem:[#allocation2 + $0x1618] sm:$0xff] }
 0x172   :  { %2947 = vmatprep.subr.bf16.mxu1 %v2946_v47  ;;  %v2966_v47 = vpack.c.bf16 %v733_v40, %v729_v38  ;;  %v773_v37 = vld [vmem:[#allocation2 + $0x1638] sm:$0xff] }
 0x174   :  { %2557 = vmatpush1.bf16.msra.mxu0 %v2556_v25  ;;  %v2576_v25 = vpack.c.bf16 %v730_v44, %v726_v43  ;;  %v768_v43 = vld [vmem:[#allocation2 + $0x1610] sm:$0xff]  ;;  %v2986_v44 = vpack.c.bf16 %v773_v37, %v769_v36 }
 0x175   :  { %2949 = vmatpush1.bf16.msra.mxu1 %v2948_v54  ;;  %2559 = vmatprep.subr.bf16.mxu0 %v2558_v55  ;;  %v2968_v54 = vpack.c.bf16 %v732_v48, %v728_v46  ;;  %v2578_v55 = vpack.c.bf16 %v739_v50, %v735_v49  ;;  %v772_v46 = vld [vmem:[#allocation2 + $0x1630] sm:$0xff]  ;;  %v779_v48 = vld [vmem:[#allocation2 + $0x1668] sm:$0xff]  ;;  %v777_v49 = vld [vmem:[#allocation2 + $0x1658] sm:$0xff] }
 0x176   :  { %2951 = vmatprep.subr.bf16.mxu1 %v2950_v59  ;;  %v2970_v59 = vpack.c.bf16 %v741_v53, %v737_v51  ;;  %v781_v50 = vld [vmem:[#allocation2 + $0x1678] sm:$0xff]  ;;  %v2988_v53 = vpack.c.bf16 %v772_v46, %v768_v43  ;;  %v812_v43 = vld [vmem:[#allocation2 + $0x1770] sm:$0xff]  ;;  %v819_v46 = vld [vmem:[#allocation2 + $0x17a8] sm:$0xff] }
 0x177   :  { %v2990_v57 = vpack.c.bf16 %v781_v50, %v777_v49 }
 0x178   :  { %2561 = vmatpush1.bf16.msra.mxu0 %v2560_v3  ;;  %v2972_v3 = vpack.c.bf16 %v740_v60, %v736_v58  ;;  %v780_v58 = vld [vmem:[#allocation2 + $0x1670] sm:$0xff]  ;;  %v787_v60 = vld [vmem:[#allocation2 + $0x16a8] sm:$0xff] }
 0x179   :  { %2953 = vmatpush1.bf16.msra.mxu1 %v2952_v4  ;;  %2563 = vmatprep.subr.bf16.mxu0 %v2562_v5  ;;  %v2582_v4 = vpack.c.bf16 %v747_v0, %v743_v62  ;;  %v742_v5 = vld [vmem:[#allocation2 + $0x1540] sm:$0xff]  ;;  %v785_v62 = vld [vmem:[#allocation2 + $0x1698] sm:$0xff]  ;;  %v2992_v22 = vpack.c.bf16 %v780_v58, %v776_v56  ;;  %v820_v56 = vld [vmem:[#allocation2 + $0x17b0] sm:$0xff] }
 0x17a   :  { %2955 = vmatprep.subr.bf16.mxu1 %v2954_v9  ;;  %v748_v9 = vld [vmem:[#allocation2 + $0x1570] sm:$0xff]  ;;  %v2584_v15 = vpack.c.bf16 %v746_v6, %v742_v5  ;;  %v789_v0 = vld [vmem:[#allocation2 + $0x16b8] sm:$0xff]  ;;  %v827_v58 = vld [vmem:[#allocation2 + $0x17e8] sm:$0xff] }
 0x17b   :  { %1294 = vmatmul.mubr.f32.vlgmr.msra.gmra.mrb[0].mxu0 %v3358_v63  ;;  %v784_v5 = vld [vmem:[#allocation2 + $0x1690] sm:$0xff]  ;;  %v2994_v6 = vpack.c.bf16 %v789_v0, %v785_v62 }
 0x17c   :  { %2565 = vmatpush1.bf16.msra.mxu0 %v2564_v45  ;;  %1791 = vmatmul.mubr.f32.vlgmr.msra.gmra.mrb[0].mxu1 %v3358_v63  ;;  %v2964_v63 = vpack.c.bf16 %v724_v35, %v720_v33  ;;  %v2976_v45 = vpack.c.bf16 %v748_v9, %v744_v7  ;;  %v764_v33 = vld [vmem:[#allocation2 + $0x15f0] sm:$0xff]  ;;  %v771_v35 = vld [vmem:[#allocation2 + $0x1628] sm:$0xff] }
 0x17d   :  { %2957 = vmatpush1.bf16.msra.mxu1 %v2956_v16  ;;  %2567 = vmatprep.subr.bf16.mxu0 %v2566_v17  ;;  %v2586_v16 = vpack.c.bf16 %v755_v12, %v751_v10  ;;  %v750_v17 = vld [vmem:[#allocation2 + $0x1580] sm:$0xff]  ;;  %v2984_v40 = vpack.c.bf16 %v764_v33, %v760_v31  ;;  %v788_v7 = vld [vmem:[#allocation2 + $0x16b0] sm:$0xff]  ;;  %v795_v9 = vld [vmem:[#allocation2 + $0x16e8] sm:$0xff] }
 0x17e   :  { %2959 = vmatprep.subr.bf16.mxu1 %v2958_v21  ;;  %1364 = vmatprep.mubr.f32.mxu0 %v922_v11  ;;  %v756_v21 = vld [vmem:[#allocation2 + $0x15b0] sm:$0xff]  ;;  %v2588_v27 = vpack.c.bf16 %v754_v18, %v750_v17  ;;  %v793_v10 = vld [vmem:[#allocation2 + $0x16d8] sm:$0xff]  ;;  %v2996_v39 = vpack.c.bf16 %v788_v7, %v784_v5  ;;  %v811_v33 = vld [vmem:[#allocation2 + $0x1768] sm:$0xff] }
 0x17f   :  { %1861 = vmatprep.mubr.f32.mxu1 %v922_v11  ;;  %v765_v11 = vld [vmem:[#allocation2 + $0x15f8] sm:$0xff]  ;;  %v2980_v28 = vpack.c.bf16 %v756_v21, %v752_v19  ;;  %v792_v17 = vld [vmem:[#allocation2 + $0x16d0] sm:$0xff]  ;;  %v803_v21 = vld [vmem:[#allocation2 + $0x1728] sm:$0xff] }
 0x180   :  { %2569 = vmatpush1.bf16.msra.mxu0 %v2568_v52  ;;  %v2590_v52 = vpack.c.bf16 %v763_v24, %v759_v23  ;;  %v2982_v32 = vpack.c.bf16 %v765_v11, %v761_v26  ;;  %v797_v12 = vld [vmem:[#allocation2 + $0x16f8] sm:$0xff]  ;;  %v796_v19 = vld [vmem:[#allocation2 + $0x16f0] sm:$0xff]  ;;  %v835_v7 = vld [vmem:[#allocation2 + $0x1828] sm:$0xff] }
 0x181   :  { %2961 = vmatpush1.bf16.msra.mxu1 %v2960_v29  ;;  %2571 = vmatprep.subr.bf16.mxu0 %v2570_v30  ;;  %v758_v29 = vld [vmem:[#allocation2 + $0x15c0] sm:$0xff]  ;;  %v2998_v18 = vpack.c.bf16 %v797_v12, %v793_v10  ;;  %v801_v23 = vld [vmem:[#allocation2 + $0x1718] sm:$0xff]  ;;  %v3000_v11 = vpack.c.bf16 %v796_v19, %v792_v17  ;;  %v804_v31 = vld [vmem:[#allocation2 + $0x1730] sm:$0xff] }
 0x182   :  { %2963 = vmatprep.subr.bf16.mxu1 %v2962_v34  ;;  %v762_v30 = vld [vmem:[#allocation2 + $0x15e0] sm:$0xff]  ;;  %v767_v34 = vld [vmem:[#allocation2 + $0x1608] sm:$0xff]  ;;  %v805_v24 = vld [vmem:[#allocation2 + $0x1738] sm:$0xff] }
 0x183   :  { %v2592_v38 = vpack.c.bf16 %v762_v30, %v758_v29  ;;  %v800_v29 = vld [vmem:[#allocation2 + $0x1710] sm:$0xff]  ;;  %v3002_v30 = vpack.c.bf16 %v805_v24, %v801_v23  ;;  %v843_v19 = vld [vmem:[#allocation2 + $0x1868] sm:$0xff] }
 0x184   :  { %2573 = vmatpush1.bf16.msra.mxu0 %v2572_v41  ;;  %v2594_v41 = vpack.c.bf16 %v771_v35, %v767_v34  ;;  %v809_v34 = vld [vmem:[#allocation2 + $0x1758] sm:$0xff]  ;;  %v3004_v37 = vpack.c.bf16 %v804_v31, %v800_v29  ;;  %v828_v5 = vld [vmem:[#allocation2 + $0x17f0] sm:$0xff]  ;;  %v1956_v31 = vld [vmem:[%s3591_s3 + $0x88] sm:$0xff] }
 0x185   :  { %2965 = vmatpush1.bf16.msra.mxu1 %v2964_v63  ;;  %2575 = vmatprep.subr.bf16.mxu0 %v2574_v42  ;;  %v766_v63 = vld [vmem:[#allocation2 + $0x1600] sm:$0xff]  ;;  %v813_v35 = vld [vmem:[#allocation2 + $0x1778] sm:$0xff]  ;;  %v836_v17 = vld [vmem:[#allocation2 + $0x1830] sm:$0xff] }
 0x186   :  { %2967 = vmatprep.subr.bf16.mxu1 %v2966_v47  ;;  %v770_v42 = vld [vmem:[#allocation2 + $0x1620] sm:$0xff]  ;;  %v775_v47 = vld [vmem:[#allocation2 + $0x1648] sm:$0xff]  ;;  %v844_v29 = vld [vmem:[#allocation2 + $0x1870] sm:$0xff] }
 0x187   :  { %v2596_v51 = vpack.c.bf16 %v770_v42, %v766_v63  ;;  %v808_v63 = vld [vmem:[#allocation2 + $0x1750] sm:$0xff]  ;;  %v3006_v42 = vpack.c.bf16 %v813_v35, %v809_v34 }
 0x188   :  { %2577 = vmatpush1.bf16.msra.mxu0 %v2576_v25  ;;  %v2598_v25 = vpack.c.bf16 %v779_v48, %v775_v47  ;;  %v817_v47 = vld [vmem:[#allocation2 + $0x1798] sm:$0xff]  ;;  %v3008_v50 = vpack.c.bf16 %v812_v43, %v808_v63  ;;  %v1972_v63 = vld [vmem:[%s3591_s3 + $0x108] sm:$0xff] }
 0x189   :  { %2969 = vmatpush1.bf16.msra.mxu1 %v2968_v54  ;;  %2579 = vmatprep.subr.bf16.mxu0 %v2578_v55  ;;  %v774_v54 = vld [vmem:[#allocation2 + $0x1640] sm:$0xff]  ;;  %v821_v48 = vld [vmem:[#allocation2 + $0x17b8] sm:$0xff] }
 0x18a   :  { %2971 = vmatprep.subr.bf16.mxu1 %v2970_v59  ;;  %v778_v55 = vld [vmem:[#allocation2 + $0x1660] sm:$0xff]  ;;  %v783_v59 = vld [vmem:[#allocation2 + $0x1688] sm:$0xff]  ;;  %v1958_v43 = vld [vmem:[%s3591_s3 + $0x98] sm:$0xff] }
 0x18b   :  { %v2600_v1 = vpack.c.bf16 %v778_v55, %v774_v54  ;;  %v816_v54 = vld [vmem:[#allocation2 + $0x1790] sm:$0xff]  ;;  %v3010_v55 = vpack.c.bf16 %v821_v48, %v817_v47  ;;  %v2168_v47 = vld.sshfl [vmem:[%s3588_s0 + $0x18] sm:$0x3 pattern:$0x76325410] }
 0x18c   :  { %2581 = vmatpush1.bf16.msra.mxu0 %v2580_v2  ;;  %v2602_v2 = vpack.c.bf16 %v787_v60, %v783_v59  ;;  %v825_v59 = vld [vmem:[#allocation2 + $0x17d8] sm:$0xff]  ;;  %v3012_v0 = vpack.c.bf16 %v820_v56, %v816_v54  ;;  %v1959_v56 = vld [vmem:[%s3591_s3 + $0xa0] sm:$0xff] }
 0x18d   :  { %2973 = vmatpush1.bf16.msra.mxu1 %v2972_v3  ;;  %2583 = vmatprep.subr.bf16.mxu0 %v2582_v4  ;;  %v782_v3 = vld [vmem:[#allocation2 + $0x1680] sm:$0xff]  ;;  %v829_v60 = vld [vmem:[#allocation2 + $0x17f8] sm:$0xff] }
 0x18e   :  { %2975 = vmatprep.subr.bf16.mxu1 %v2974_v8  ;;  %v786_v4 = vld [vmem:[#allocation2 + $0x16a0] sm:$0xff]  ;;  %v791_v8 = vld [vmem:[#allocation2 + $0x16c8] sm:$0xff] }
 0x18f   :  { %v2604_v13 = vpack.c.bf16 %v786_v4, %v782_v3  ;;  %v824_v3 = vld [vmem:[#allocation2 + $0x17d0] sm:$0xff]  ;;  %v3014_v4 = vpack.c.bf16 %v829_v60, %v825_v59  ;;  %v1992_v59 = vld [vmem:[%s3591_s3 + $0x1a8] sm:$0xff] }
 0x190   :  { %2585 = vmatpush1.bf16.msra.mxu0 %v2584_v15  ;;  %v2606_v15 = vpack.c.bf16 %v795_v9, %v791_v8  ;;  %v833_v8 = vld [vmem:[#allocation2 + $0x1818] sm:$0xff]  ;;  %v3016_v12 = vpack.c.bf16 %v828_v5, %v824_v3  ;;  %v1961_v5 = vld [vmem:[%s3591_s3 + $0xb0] sm:$0xff] }
 0x191   :  { %2977 = vmatpush1.bf16.msra.mxu1 %v2976_v45  ;;  %2587 = vmatprep.subr.bf16.mxu0 %v2586_v16  ;;  %v790_v45 = vld [vmem:[#allocation2 + $0x16c0] sm:$0xff]  ;;  %v837_v9 = vld [vmem:[#allocation2 + $0x1838] sm:$0xff] }
 0x192   :  { %2979 = vmatprep.subr.bf16.mxu1 %v2978_v20  ;;  %v794_v16 = vld [vmem:[#allocation2 + $0x16e0] sm:$0xff]  ;;  %v799_v20 = vld [vmem:[#allocation2 + $0x1708] sm:$0xff] }
 0x193   :  { %v2608_v26 = vpack.c.bf16 %v794_v16, %v790_v45  ;;  %v832_v45 = vld [vmem:[#allocation2 + $0x1810] sm:$0xff]  ;;  %v3018_v16 = vpack.c.bf16 %v837_v9, %v833_v8  ;;  %v1994_v8 = vld [vmem:[%s3591_s3 + $0x1b8] sm:$0xff] }
 0x194   :  { %2589 = vmatpush1.bf16.msra.mxu0 %v2588_v27  ;;  %v2610_v27 = vpack.c.bf16 %v803_v21, %v799_v20  ;;  %v841_v20 = vld [vmem:[#allocation2 + $0x1858] sm:$0xff]  ;;  %v3020_v24 = vpack.c.bf16 %v836_v17, %v832_v45  ;;  %v1963_v17 = vld [vmem:[%s3591_s3 + $0xc0] sm:$0xff] }
 0x195   :  { %2981 = vmatpush1.bf16.msra.mxu1 %v2980_v28  ;;  %2591 = vmatprep.subr.bf16.mxu0 %v2590_v52  ;;  %v798_v28 = vld [vmem:[#allocation2 + $0x1700] sm:$0xff]  ;;  %v845_v21 = vld [vmem:[#allocation2 + $0x1878] sm:$0xff] }
 0x196   :  { %2983 = vmatprep.subr.bf16.mxu1 %v2982_v32  ;;  %v802_v52 = vld [vmem:[#allocation2 + $0x1720] sm:$0xff]  ;;  %v807_v32 = vld [vmem:[#allocation2 + $0x1748] sm:$0xff] }
 0x197   :  { %v2612_v36 = vpack.c.bf16 %v802_v52, %v798_v28  ;;  %v840_v28 = vld [vmem:[#allocation2 + $0x1850] sm:$0xff]  ;;  %v3022_v52 = vpack.c.bf16 %v845_v21, %v841_v20  ;;  %v1996_v20 = vld [vmem:[%s3591_s3 + $0x1c8] sm:$0xff] }
 0x198   :  { %2593 = vmatpush1.bf16.msra.mxu0 %v2592_v38  ;;  %v2614_v38 = vpack.c.bf16 %v811_v33, %v807_v32  ;;  %v1987_v32 = vld [vmem:[%s3591_s3 + $0x180] sm:$0xff]  ;;  %v1988_v33 = vld [vmem:[%s3591_s3 + $0x188] sm:$0xff]  ;;  %v3024_v35 = vpack.c.bf16 %v844_v29, %v840_v28  ;;  %v1965_v29 = vld [vmem:[%s3591_s3 + $0xd0] sm:$0xff] }
 0x199   :  { %2985 = vmatpush1.bf16.msra.mxu1 %v2984_v40  ;;  %2595 = vmatprep.subr.bf16.mxu0 %v2594_v41  ;;  %v806_v40 = vld [vmem:[#allocation2 + $0x1740] sm:$0xff] }
 0x19a   :  { %2987 = vmatprep.subr.bf16.mxu1 %v2986_v44  ;;  %v810_v41 = vld [vmem:[#allocation2 + $0x1760] sm:$0xff]  ;;  %v815_v44 = vld [vmem:[#allocation2 + $0x1788] sm:$0xff] }
 0x19b   :  { %v2616_v49 = vpack.c.bf16 %v810_v41, %v806_v40  ;;  %v1971_v40 = vld [vmem:[%s3591_s3 + $0x100] sm:$0xff]  ;;  %v3058_v41 = vpack.c.bf16 %v1988_v33, %v1987_v32  ;;  %v1998_v32 = vld [vmem:[%s3591_s3 + $0x1d8] sm:$0xff] }
 0x19c   :  { %2597 = vmatpush1.bf16.msra.mxu0 %v2596_v51  ;;  %v2618_v51 = vpack.c.bf16 %v819_v46, %v815_v44  ;;  %v1989_v44 = vld [vmem:[%s3591_s3 + $0x190] sm:$0xff]  ;;  %v1990_v46 = vld [vmem:[%s3591_s3 + $0x198] sm:$0xff] }
 0x19d   :  { %2989 = vmatpush1.bf16.msra.mxu1 %v2988_v53  ;;  %2599 = vmatprep.subr.bf16.mxu0 %v2598_v25  ;;  %v814_v53 = vld [vmem:[#allocation2 + $0x1780] sm:$0xff]  ;;  %v3062_v54 = vpack.c.bf16 %v1990_v46, %v1989_v44 }
 0x19e   :  { %2991 = vmatprep.subr.bf16.mxu1 %v2990_v57  ;;  %v818_v25 = vld [vmem:[#allocation2 + $0x17a0] sm:$0xff]  ;;  %v823_v57 = vld [vmem:[#allocation2 + $0x17c8] sm:$0xff] }
 0x19f   :  { %v2620_v62 = vpack.c.bf16 %v818_v25, %v814_v53  ;;  %v1942_v53 = vld [vmem:[%s3591_s3 + $0x18] sm:$0xff]  ;;  %v1973_v25 = vld [vmem:[%s3591_s3 + $0x110] sm:$0xff] }
 0x1a0   :  { %2601 = vmatpush1.bf16.msra.mxu0 %v2600_v1  ;;  %v2622_v1 = vpack.c.bf16 %v827_v58, %v823_v57  ;;  %v1960_v57 = vld [vmem:[%s3591_s3 + $0xa8] sm:$0xff]  ;;  %v1991_v58 = vld [vmem:[%s3591_s3 + $0x1a0] sm:$0xff] }
 0x1a1   :  { %2993 = vmatpush1.bf16.msra.mxu1 %v2992_v22  ;;  %2603 = vmatprep.subr.bf16.mxu0 %v2602_v2  ;;  %v822_v22 = vld [vmem:[#allocation2 + $0x17c0] sm:$0xff]  ;;  %v3066_v3 = vpack.c.bf16 %v1992_v59, %v1991_v58  ;;  %v2002_v59 = vld [vmem:[%s3591_s3 + $0x1f8] sm:$0xff] }
 0x1a2   :  { %2995 = vmatprep.subr.bf16.mxu1 %v2994_v6  ;;  %v826_v2 = vld [vmem:[#allocation2 + $0x17e0] sm:$0xff]  ;;  %v831_v6 = vld [vmem:[#allocation2 + $0x1808] sm:$0xff] }
 0x1a3   :  { %v2624_v10 = vpack.c.bf16 %v826_v2, %v822_v22  ;;  %v1944_v22 = vld [vmem:[%s3591_s3 + $0x28] sm:$0xff]  ;;  %v1975_v2 = vld [vmem:[%s3591_s3 + $0x120] sm:$0xff] }
 0x1a4   :  { %2605 = vmatpush1.bf16.msra.mxu0 %v2604_v13  ;;  %v2626_v13 = vpack.c.bf16 %v835_v7, %v831_v6  ;;  %v1962_v6 = vld [vmem:[%s3591_s3 + $0xb8] sm:$0xff]  ;;  %v1993_v7 = vld [vmem:[%s3591_s3 + $0x1b0] sm:$0xff] }
 0x1a5   :  { %2997 = vmatpush1.bf16.msra.mxu1 %v2996_v39  ;;  %2607 = vmatprep.subr.bf16.mxu0 %v2606_v15  ;;  %v830_v39 = vld [vmem:[#allocation2 + $0x1800] sm:$0xff]  ;;  %v3070_v45 = vpack.c.bf16 %v1994_v8, %v1993_v7  ;;  %v862_v7 = vsub.s32 3, %v3304_v61  ;;  %v858_v8 = vsub.s32 2, %v3304_v61 }
 0x1a6   :  { %2999 = vmatprep.subr.bf16.mxu1 %v2998_v18  ;;  %v834_v15 = vld [vmem:[#allocation2 + $0x1820] sm:$0xff]  ;;  %v839_v18 = vld [vmem:[#allocation2 + $0x1848] sm:$0xff] }
 0x1a7   :  { %v2628_v23 = vpack.c.bf16 %v834_v15, %v830_v39  ;;  %v1946_v39 = vld [vmem:[%s3591_s3 + $0x38] sm:$0xff]  ;;  %v1977_v15 = vld [vmem:[%s3591_s3 + $0x130] sm:$0xff] }
 0x1a8   :  { %2609 = vmatpush1.bf16.msra.mxu0 %v2608_v26  ;;  %v2630_v26 = vpack.c.bf16 %v843_v19, %v839_v18  ;;  %v1964_v18 = vld [vmem:[%s3591_s3 + $0xc8] sm:$0xff]  ;;  %v1995_v19 = vld [vmem:[%s3591_s3 + $0x1c0] sm:$0xff] }
 0x1a9   :  { %3001 = vmatpush1.bf16.msra.mxu1 %v3000_v11  ;;  %2611 = vmatprep.subr.bf16.mxu0 %v2610_v27  ;;  %v838_v11 = vld [vmem:[#allocation2 + $0x1840] sm:$0xff]  ;;  %v3074_v28 = vpack.c.bf16 %v1996_v20, %v1995_v19 }
 0x1aa   :  { %3003 = vmatprep.subr.bf16.mxu1 %v3002_v30  ;;  %v842_v27 = vld [vmem:[#allocation2 + $0x1860] sm:$0xff] }
 0x1ab   :  { %v1955_v30 = vld [vmem:[%s3591_s3 + $0x80] sm:$0xff]  ;;  %v2632_v34 = vpack.c.bf16 %v842_v27, %v838_v11  ;;  %v1948_v11 = vld [vmem:[%s3591_s3 + $0x48] sm:$0xff] }
 0x1ac   :  { %2613 = vmatpush1.bf16.msra.mxu0 %v2612_v36  ;;  %v3026_v36 = vpack.c.bf16 %v1956_v31, %v1955_v30  ;;  %v1979_v27 = vld [vmem:[%s3591_s3 + $0x140] sm:$0xff]  ;;  %v1966_v30 = vld [vmem:[%s3591_s3 + $0xd8] sm:$0xff]  ;;  %v1997_v31 = vld [vmem:[%s3591_s3 + $0x1d0] sm:$0xff] }
 0x1ad   :  { %3005 = vmatpush1.bf16.msra.mxu1 %v3004_v37  ;;  %2615 = vmatprep.subr.bf16.mxu0 %v2614_v38  ;;  %v1939_v37 = vld [vmem:[%s3591_s3] sm:$0xff]  ;;  %v1940_v38 = vld [vmem:[%s3591_s3 + $0x8] sm:$0xff] }
 0x1ae   :  { %3007 = vmatprep.subr.bf16.mxu1 %v3006_v42  ;;  %v1957_v42 = vld [vmem:[%s3591_s3 + $0x90] sm:$0xff]  ;;  %v3028_v48 = vpack.c.bf16 %v1940_v38, %v1939_v37  ;;  %v1950_v37 = vld [vmem:[%s3591_s3 + $0x58] sm:$0xff] }
 0x1af   :  { %v1981_v38 = vld [vmem:[%s3591_s3 + $0x150] sm:$0xff] }
 0x1b0   :  { %2617 = vmatpush1.bf16.msra.mxu0 %v2616_v49  ;;  %v3060_v49 = vpack.c.bf16 %v1972_v63, %v1971_v40  ;;  %v3078_v40 = vpack.c.bf16 %v1998_v32, %v1997_v31  ;;  %v1968_v63 = vld [vmem:[%s3591_s3 + $0xe8] sm:$0xff] }
 0x1b1   :  { %3009 = vmatpush1.bf16.msra.mxu1 %v3008_v50  ;;  %2619 = vmatprep.subr.bf16.mxu0 %v2618_v51  ;;  %v3030_v50 = vpack.c.bf16 %v1958_v43, %v1957_v42  ;;  %v1941_v51 = vld [vmem:[%s3591_s3 + $0x10] sm:$0xff]  ;;  %v1999_v42 = vld [vmem:[%s3591_s3 + $0x1e0] sm:$0xff]  ;;  %v2000_v43 = vld [vmem:[%s3591_s3 + $0x1e8] sm:$0xff] }
 0x1b2   :  { %3011 = vmatprep.subr.bf16.mxu1 %v3010_v55  ;;  %v1974_v55 = vld [vmem:[%s3591_s3 + $0x118] sm:$0xff]  ;;  %v3032_v60 = vpack.c.bf16 %v1942_v53, %v1941_v51  ;;  %v1983_v51 = vld [vmem:[%s3591_s3 + $0x160] sm:$0xff]  ;;  %v1984_v53 = vld [vmem:[%s3591_s3 + $0x168] sm:$0xff] }
 0x1b4   :  { %2621 = vmatpush1.bf16.msra.mxu0 %v2620_v62  ;;  %v3064_v62 = vpack.c.bf16 %v1974_v55, %v1973_v25  ;;  %v1969_v55 = vld [vmem:[%s3591_s3 + $0xf0] sm:$0xff] }
 0x1b5   :  { %3013 = vmatpush1.bf16.msra.mxu1 %v3012_v0  ;;  %2623 = vmatprep.subr.bf16.mxu0 %v2622_v1  ;;  %v3034_v0 = vpack.c.bf16 %v1960_v57, %v1959_v56  ;;  %v1943_v1 = vld [vmem:[%s3591_s3 + $0x20] sm:$0xff]  ;;  %v1970_v56 = vld [vmem:[%s3591_s3 + $0xf8] sm:$0xff]  ;;  %v2001_v57 = vld [vmem:[%s3591_s3 + $0x1f0] sm:$0xff] }
 0x1b6   :  { %3015 = vmatprep.subr.bf16.mxu1 %v3014_v4  ;;  %v1976_v4 = vld [vmem:[%s3591_s3 + $0x128] sm:$0xff]  ;;  %v3036_v9 = vpack.c.bf16 %v1944_v22, %v1943_v1  ;;  %v3054_v58 = vpack.c.bf16 %v1970_v56, %v1969_v55  ;;  %v1985_v22 = vld [vmem:[%s3591_s3 + $0x170] sm:$0xff] }
 0x1b8   :  { %2625 = vmatpush1.bf16.msra.mxu0 %v2624_v10  ;;  %v3068_v10 = vpack.c.bf16 %v1976_v4, %v1975_v2  ;;  %v1986_v2 = vld [vmem:[%s3591_s3 + $0x178] sm:$0xff]  ;;  %v854_v4 = vsub.s32 1, %v3304_v61 }
 0x1b9   :  { %3017 = vmatpush1.bf16.msra.mxu1 %v3016_v12  ;;  %2627 = vmatprep.subr.bf16.mxu0 %v2626_v13  ;;  %v3038_v12 = vpack.c.bf16 %v1962_v6, %v1961_v5  ;;  %v1945_v13 = vld [vmem:[%s3591_s3 + $0x30] sm:$0xff]  ;;  %v846_v5 = vld [vmem:[#allocation5] sm:$0xf]  ;;  %v850_v6 = vsub.s32 0, %v3304_v61 }
 0x1ba   :  { %3019 = vmatprep.subr.bf16.mxu1 %v3018_v16  ;;  %v1978_v16 = vld [vmem:[%s3591_s3 + $0x138] sm:$0xff]  ;;  %v3040_v21 = vpack.c.bf16 %v1946_v39, %v1945_v13  ;;  %v859_v39 = vrot.slane %v846_v5, %v858_v8 }
 0x1bb   :  { %1365 = vmatmul.mubr.f32.vlgmr.msra.gmra.mrb[0].mxu0 %v3367_v14 }
 0x1bc   :  { %1862 = vmatmul.mubr.f32.vlgmr.msra.gmra.mrb[0].mxu1 %v3367_v14  ;;  %2629 = vmatpush1.bf16.msra.mxu0 %v2628_v23  ;;  %v3229_v14 = vmov 0.0   ;;  %v3072_v23 = vpack.c.bf16 %v1978_v16, %v1977_v15 }
 0x1bd   :  { %3021 = vmatpush1.bf16.msra.mxu1 %v3020_v24  ;;  %2631 = vmatprep.subr.bf16.mxu0 %v2630_v26  ;;  %v3042_v24 = vpack.c.bf16 %v1964_v18, %v1963_v17  ;;  %v1947_v26 = vld [vmem:[%s3591_s3 + $0x40] sm:$0xff] }
 0x1be   :  { %3023 = vmatprep.subr.bf16.mxu1 %v3022_v52  ;;  %1435 = vmatprep.mubr.f32.mxu0 %v3229_v14  ;;  %v1980_v52 = vld [vmem:[%s3591_s3 + $0x148] sm:$0xff]  ;;  %v3044_v33 = vpack.c.bf16 %v1948_v11, %v1947_v26 }
 0x1bf   :  { %1932 = vmatprep.mubr.f32.mxu1 %v3229_v14  ;;  %v1982_v14 = vld [vmem:[%s3591_s3 + $0x158] sm:$0xff] }
 0x1c0   :  { %2633 = vmatpush1.bf16.msra.mxu0 %v2632_v34  ;;  %v3076_v34 = vpack.c.bf16 %v1980_v52, %v1979_v27  ;;  %v3080_v46 = vpack.c.bf16 %v1982_v14, %v1981_v38 }
 0x1c1   :  { %3025 = vmatpush1.bf16.msra.mxu1 %v3024_v35  ;;  %3027 = vmatprep.subr.bf16.mxu0 %v3026_v36  ;;  %v3046_v35 = vpack.c.bf16 %v1966_v30, %v1965_v29  ;;  %v1949_v36 = vld [vmem:[%s3591_s3 + $0x50] sm:$0xff] }
 0x1c2   :  { %3059 = vmatprep.subr.bf16.mxu1 %v3058_v41  ;;  %v1967_v41 = vld [vmem:[%s3591_s3 + $0xe0] sm:$0xff]  ;;  %v3048_v44 = vpack.c.bf16 %v1950_v37, %v1949_v36 }
 0x1c3   :  { %2169 = vmatmul.mubr.msk.f32.vlgmr.msra.gmra.mrb[0].mxu0 %vm942_vm0, %v2168_v47 }
 0x1c4   :  { %2170 = vmatmul.mubr.msk.f32.vlgmr.msra.gmra.mrb[0].mxu1 %vm942_vm0, %v2168_v47  ;;  %3029 = vmatpush3.bf16.msra.mxu0 %v3028_v48  ;;  %v3050_v47 = vpack.c.bf16 %v1968_v63, %v1967_v41  ;;  %v1951_v48 = vld [vmem:[%s3591_s3 + $0x60] sm:$0xff] }
 0x1c5   :  { %3061 = vmatpush3.bf16.msra.mxu1 %v3060_v49  ;;  %3031 = vmatprep.subr.bf16.mxu0 %v3030_v50  ;;  %v1952_v49 = vld [vmem:[%s3591_s3 + $0x68] sm:$0xff]  ;;  %v3082_v50 = vpack.c.bf16 %v2000_v43, %v1999_v42 }
 0x1c6   :  { %3063 = vmatprep.subr.bf16.mxu1 %v3062_v54  ;;  %v3052_v25 = vpack.c.bf16 %v1952_v49, %v1951_v48  ;;  %v3084_v54 = vpack.c.bf16 %v1984_v53, %v1983_v51 }
 0x1c8   :  { %3033 = vmatpush3.bf16.msra.mxu0 %v3032_v60  ;;  %v1953_v60 = vld [vmem:[%s3591_s3 + $0x70] sm:$0xff] }
 0x1c9   :  { %3065 = vmatpush3.bf16.msra.mxu1 %v3064_v62  ;;  %3035 = vmatprep.subr.bf16.mxu0 %v3034_v0  ;;  %v1954_v62 = vld [vmem:[%s3591_s3 + $0x78] sm:$0xff]  ;;  %v3086_v0 = vpack.c.bf16 %v2002_v59, %v2001_v57  ;;  %s3230_s3 = smov [#allocation8]  }
 0x1ca   :  { %3067 = vmatprep.subr.bf16.mxu1 %v3066_v3  ;;  %v3056_v1 = vpack.c.bf16 %v1954_v62, %v1953_v60  ;;  %v3088_v3 = vpack.c.bf16 %v1986_v2, %v1985_v22  ;;  %s2158_s24 = sshll.u32 %s3230_s3, 4  ;;  %s2159_s24 = int_to_ptr.vmem [resolvable:$true] %s2158_s24 }
 0x1cb   :  { %s3195_s25 = scalar_lea.vmem %s2159_s24, 32  ;;  %p3200_p11 = scmp.lt.s32.totalorder %s2159_s24, %s2159_s24 }
 0x1cc   :  { %3037 = vmatpush3.bf16.msra.mxu0 %v3036_v9  ;;  %v855_v9 = vrot.slane %v846_v5, %v854_v4  ;;  %p3196_p10 = scmp.ne.s32.totalorder %s2159_s24, %s3195_s25  ;;  %p3201_p12 = scmp.lt.s32.totalorder %s3195_s25, %s3195_s25 }
 0x1cd   :  { %3069 = vmatpush3.bf16.msra.mxu1 %v3068_v10  ;;  %3039 = vmatprep.subr.bf16.mxu0 %v3038_v12  ;;  %v851_v10 = vrot.slane %v846_v5, %v850_v6  ;;  %v863_v12 = vrot.slane %v846_v5, %v862_v7 }
 0x1ce   :  { %3071 = vmatprep.subr.bf16.mxu1 %v3070_v45  ;;  %p3202_p13 = por %p3201_p12, %p3200_p11 }
 0x1d0   :  { %3041 = vmatpush3.bf16.msra.mxu0 %v3040_v21  ;;  %p3203_p0 = pnand %p3202_p13, %p3196_p10 }
 0x1d1   :  { %3073 = vmatpush3.bf16.msra.mxu1 %v3072_v23  ;;  %3043 = vmatprep.subr.bf16.mxu0 %v3042_v24  ;;  %v2171_v24 = vld [vmem:[#allocation7] ss:$0 sm:$0xff] }
 0x1d2   :  { %3075 = vmatprep.subr.bf16.mxu1 %v3074_v28 }
 0x1d4   :  { %3045 = vmatpush3.bf16.msra.mxu0 %v3044_v33 }
 0x1d5   :  { %3077 = vmatpush3.bf16.msra.mxu1 %v3076_v34  ;;  %3047 = vmatprep.subr.bf16.mxu0 %v3046_v35 }
 0x1d6   :  { %3079 = vmatprep.subr.bf16.mxu1 %v3078_v40 }
 0x1d8   :  { %3049 = vmatpush3.bf16.msra.mxu0 %v3048_v44 }
 0x1d9   :  { %3081 = vmatpush3.bf16.msra.mxu1 %v3080_v46  ;;  %3051 = vmatprep.subr.bf16.mxu0 %v3050_v47 }
 0x1da   :  { %3083 = vmatprep.subr.bf16.mxu1 %v3082_v50 }
 0x1dc   :  { %3053 = vmatpush3.bf16.msra.mxu0 %v3052_v25 }
 0x1dd   :  { %3085 = vmatpush3.bf16.msra.mxu1 %v3084_v54  ;;  %3055 = vmatprep.subr.bf16.mxu0 %v3054_v58 }
 0x1de   :  { %3087 = vmatprep.subr.bf16.mxu1 %v3086_v0 }
 0x1e0   :  { %3057 = vmatpush3.bf16.msra.mxu0 %v3056_v1 }
 0x1e1   :  { %3089 = vmatpush3.bf16.msra.mxu1 %v3088_v3 }
 0x296   :  { %v1437_v13 = vpop.f32.mrb[0].mxu0 }
 0x297   :  { %v1934_v15 = vpop.f32.mrb[0].mxu1  ;;  %v1439_v45 = vpop.f32.mrb[1].mxu0  ;;  %v3090_v18 = vadd.f32 %v1437_v13, %v851_v10 }
 0x298   :  { %v3091_v16 = vadd.f32 %v1439_v45, %v855_v9  ;;  %v1936_v17 = vpop.f32.mrb[1].mxu1  ;;  %v3092_v20 = vadd.f32 %v1934_v15, %v859_v39 }
 0x299   :  { %v3093_v19 = vadd.f32 %v1936_v17, %v863_v12 }
 0x29a   :  { %2074 = vmatprep.mubr.f32.mxu0 %v3091_v16 }
 0x29b   :  { %2144 = vmatprep.mubr.f32.mxu1 %v3093_v19  ;;  %2075 = vmatmul.mubr.f32.vlgmr.msra.gmra.mrb[2].mxu0 %v3090_v18 }
 0x29c   :  { %2145 = vmatmul.mubr.f32.vlgmr.msra.gmra.mrb[2].mxu1 %v3092_v20 }
 0x36e   :  { %v2204_v21 = vpop.f32.mrb[2].mxu0 }
 0x36f   :  { %v2239_v23 = vpop.f32.mrb[2].mxu1  ;;  %v2205_v61 = vpop.f32.mrb[3].mxu0 }
 0x370   :  { %v2206_v26 = vadd.f32 %v2205_v61, %v2204_v21  ;;  %v2240_v11 = vpop.f32.mrb[3].mxu1 }
 0x371   :  { %v2241_v27 = vadd.f32 %v2240_v11, %v2239_v23 }
 0x372   :  { %v2077_v28 = vadd.f32 %v2206_v26, %v2171_v24 }
 0x374   :  { %v2147_v52 = vadd.f32 %v2241_v27, %v2077_v28 }
 0x376   :  { %2151 = vst.msk [vmem:[#allocation8] sm:$0x3] %vm2150_vm1, %v2147_v52 }
 0x377   :  { %3206 = shalt.err (!%p3203_p0)
}
 0x378   :  { %s3207_s28 = scalar_lea.hbm %s3593_s5, 32 }
 0x379   :  { %p3208_p1 = scmp.ne.s32.totalorder %s3593_s5, %s3207_s28  ;;  %p3211_p2 = scmp.lt.u32.totalorder %s3207_s28, %s3593_s5 }
 0x37b   :  { %p3213_p3 = pnand %p3211_p2, %p3208_p1 }
 0x37d   :  { %3216 = shalt.err (!%p3213_p3)
}
 0x37e   :  { %2161 = dma.vmem_to_hbm [thread:$0]  %s2159_s24, 32, %s3593_s5, [#allocation4]  }
 0x37f   :  { %3221 = dma.done.wait [#allocation4], 32  }
 0x380   :  { %3222 = vsyncadd [#allocation4], 4294967264 }
 0x381   :  { %2165 = vsyncpa [#allocation3], 1 }
 0x382   :  { %2166 = vsyncpa [#allocation6], 1 }
 0x383   :  { %2167 = vsyncpa [#allocation4], 1 }

// kernel: classical_model_forward.2
= control target key start
LH: loop header
LB: loop body
LE: loop exit
PB: predicated region body
PF: predicated region fallthrough
CT: control target
= control target key end

     0   :  { %10 = vsyncpa [#allocation6], 0  ;;  %s4329_s0 = inlined_call_operand.vmem [shape: f32[2,32,32], index: 0, kind: input, shape index: {}]   ;;  %s4330_s1 = inlined_call_operand.hbm [shape: f32[3,32,480], index: 1, kind: input, shape index: {}]   ;;  %s4331_s2 = inlined_call_operand.hbm [shape: f32[1,480], index: 2, kind: input, shape index: {}]   ;;  %s4332_s3 = inlined_call_operand.hbm [shape: f32[3,272,448], index: 3, kind: input, shape index: {}]   ;;  %s4333_s4 = inlined_call_operand.hbm [shape: f32[1,448], index: 4, kind: input, shape index: {}]   ;;  %s4334_s5 = inlined_call_operand.vmem [shape: f32[2,7,224], index: 5, kind: output, shape index: {}]  }
   0x1   :  { %11 = vsyncpa [#allocation8], 0 }
   0x2   :  { %12 = vsyncpa [#allocation11], 0  ;;  %s3844_s18 = smov 0  }
   0x3 LB: > { %s3805_s19 = smov [#allocation7]   ;;  %s3850_s21 = sadd.s32 4294967295, %s3803_s18   ;;  %s3803_s18 = sphi %s3844_s18, %s18_s18  }
   0x4   : > { %s185_s20 = sshll.u32 %s3805_s19, 4  ;;  %p3030_p0 = scmp.ge.s32.totalorder %s3803_s18, 1  ;;  %s3855_s20 = int_to_ptr.vmem [resolvable:$true] %s185_s20 }
   0x5   : > { %p159_p1 = scmp.lt.s32.totalorder %s3803_s18, 3  ;;  %p4335_p2 = scmp.eq.s32.totalorder %s3850_s21, 0 }
   0x6   : > { %s3806_s23 = smov [#allocation5]   ;;  %s3807_s26 = smov [#allocation9]  }
   0x7   : > { %p3857_p3 = pnand %p3030_p0, %p159_p1  ;;  %s171_s24 = sshll.u32 %s3806_s23, 4  ;;  %s3863_s24 = int_to_ptr.vmem [resolvable:$true] %s171_s24 }
   0x8   : > { %s195_s27 = sshll.u32 %s3807_s26, 4  ;;  %s3808_s28 = smov [#allocation10]   ;;  %s3871_s27 = int_to_ptr.vmem [resolvable:$true] %s195_s27 }
   0x9   : > { %s4337_s22 = scalar_select %p3857_p3, 1, 0 }
   0xa   : > { %p3635_p4 = pneg %p3857_p3  ;;  %s3873_s29 = sshll.u32 %s3808_s28, 4  ;;  %s210_s29 = int_to_ptr.vmem [resolvable:$true] %s3873_s29 }
   0xb   : > { %s3673_s7 = scalar_lea.hbm %s4331_s2, 64 }
   0xc   : > { %p3867_p5 = pnand %p4335_p2, %p3635_p4  ;;  %p3674_p6 = scmp.ne.s32.totalorder %s4331_s2, %s3673_s7 }
   0xd   : > { %p3680_p10 = scmp.lt.u32.totalorder %s3673_s7, %s4331_s2 }
   0xe   : > { %p3883_p7 = pneg %p3867_p5 }
  0x10   : > { %p3676_p8 = pnand %p3883_p7, %p3674_p6 }
  0x12   : > { %p3677_p9 = pneg %p3676_p8 }
  0x14   : > { %p3682_p11 = pnand %p3680_p10, %p3677_p9 }
  0x16   : > { %3685 = shalt.err (!%p3682_p11)
}
  0x17   : > { %s3686_s13 = scalar_lea.vmem %s3855_s20, 64  ;;  %p3694_p1 = scmp.lt.s32.totalorder %s3855_s20, %s3855_s20 }
  0x18   : > { %p3687_p12 = scmp.ne.s32.totalorder %s3855_s20, %s3686_s13  ;;  %p3695_p4 = scmp.lt.s32.totalorder %s3686_s13, %s3686_s13 }
  0x1a   : > { %p3689_p13 = pnand %p3687_p12, %p3883_p7  ;;  %p3696_p6 = por %p3695_p4, %p3694_p1 }
  0x1c   : > { %p3690_p0 = pneg %p3689_p13 }
  0x1e   : > { %p3697_p8 = pnand %p3696_p6, %p3690_p0 }
  0x20   : > { %3700 = shalt.err (!%p3697_p8)
}
  0x21   : > { %3641 = dma.hbm_to_vmem [thread:$0]  (!%p3867_p5), %s4331_s2, 64, %s3855_s20, [#allocation8]  }
  0x22   : > { %s3701_s19 = scalar_lea.hbm %s4330_s1, 6144 }
  0x23   : > { %p3702_p9 = scmp.ne.s32.totalorder %s4330_s1, %s3701_s19  ;;  %p3708_p12 = scmp.lt.u32.totalorder %s3701_s19, %s4330_s1 }
  0x25   : > { %p3704_p10 = pnand %p3702_p9, %p3883_p7 }
  0x27   : > { %p3705_p11 = pneg %p3704_p10 }
  0x29   : > { %p3710_p13 = pnand %p3708_p12, %p3705_p11 }
  0x2b   : > { %3713 = shalt.err (!%p3710_p13)
}
  0x2c   : > { %s3714_s20 = scalar_lea.vmem %s3863_s24, 6144  ;;  %p3722_p6 = scmp.lt.s32.totalorder %s3863_s24, %s3863_s24 }
  0x2d   : > { %p3715_p0 = scmp.ne.s32.totalorder %s3863_s24, %s3714_s20  ;;  %p3723_p8 = scmp.lt.s32.totalorder %s3714_s20, %s3714_s20 }
  0x2f   : > { %p3717_p1 = pnand %p3715_p0, %p3883_p7  ;;  %p3724_p9 = por %p3723_p8, %p3722_p6 }
  0x31   : > { %p3718_p4 = pneg %p3717_p1 }
  0x33   : > { %p3725_p10 = pnand %p3724_p9, %p3718_p4 }
  0x35   : > { %3728 = shalt.err (!%p3725_p10)
}
  0x36   : > { %s3809_s6 = smov 512   ;;  %s3810_s7 = smov 32  }
  0x37   : > { %3638 = dma.hbm_to_vmem [thread:$0]  (!%p3867_p5), %s4330_s1, 6144, %s3863_s24, [#allocation6], %s3809_s6, %s3809_s6, %s3810_s7  }
  0x38   : > { %s3729_s13 = scalar_lea.hbm %s4332_s3, 52224 }
  0x39   : > { %p3730_p11 = scmp.ne.s32.totalorder %s4332_s3, %s3729_s13  ;;  %p3736_p0 = scmp.lt.u32.totalorder %s3729_s13, %s4332_s3 }
  0x3b   : > { %p3732_p12 = pnand %p3730_p11, %p3883_p7 }
  0x3d   : > { %p3733_p13 = pneg %p3732_p12 }
  0x3f   : > { %p3738_p1 = pnand %p3736_p0, %p3733_p13 }
  0x41   : > { %3741 = shalt.err (!%p3738_p1)
}
  0x42   : > { %s3742_s24 = scalar_lea.vmem %s3871_s27, 52224  ;;  %p3750_p9 = scmp.lt.s32.totalorder %s3871_s27, %s3871_s27 }
  0x43   : > { %p3743_p4 = scmp.ne.s32.totalorder %s3871_s27, %s3742_s24  ;;  %p3751_p10 = scmp.lt.s32.totalorder %s3742_s24, %s3742_s24 }
  0x45   : > { %p3745_p6 = pnand %p3743_p4, %p3883_p7  ;;  %p3752_p11 = por %p3751_p10, %p3750_p9 }
  0x47   : > { %p3746_p8 = pneg %p3745_p6 }
  0x49   : > { %p3753_p12 = pnand %p3752_p11, %p3746_p8 }
  0x4b   : > { %3756 = shalt.err (!%p3753_p12)
}
  0x4c   : > { %3644 = dma.hbm_to_vmem [thread:$0]  (!%p3867_p5), %s4332_s3, 52224, %s3871_s27, [#allocation8], %s3809_s6, %s3809_s6, %s3810_s7  }
  0x4d   : > { %s3757_s30 = scalar_lea.hbm %s4333_s4, 64 }
  0x4e   : > { %p3758_p13 = scmp.ne.s32.totalorder %s4333_s4, %s3757_s30  ;;  %p3764_p4 = scmp.lt.u32.totalorder %s3757_s30, %s4333_s4 }
  0x50   : > { %p3760_p0 = pnand %p3758_p13, %p3883_p7 }
  0x52   : > { %p3761_p1 = pneg %p3760_p0 }
  0x54   : > { %p3766_p6 = pnand %p3764_p4, %p3761_p1 }
  0x56   : > { %3769 = shalt.err (!%p3766_p6)
}
  0x57   : > { %s3770_s12 = scalar_lea.vmem %s210_s29, 64  ;;  %p3778_p11 = scmp.lt.s32.totalorder %s210_s29, %s210_s29 }
  0x58   : > { %p3771_p8 = scmp.ne.s32.totalorder %s210_s29, %s3770_s12  ;;  %p3779_p12 = scmp.lt.s32.totalorder %s3770_s12, %s3770_s12 }
  0x5a   : > { %p3773_p9 = pnand %p3771_p8, %p3883_p7  ;;  %p3780_p2 = por %p3779_p12, %p3778_p11 }
  0x5c   : > { %p3774_p10 = pneg %p3773_p9 }
  0x5e   : > { %p3781_p3 = pnand %p3780_p2, %p3774_p10 }
  0x60   : > { %3784 = shalt.err (!%p3781_p3)
}
  0x61   : > { %3647 = dma.hbm_to_vmem [thread:$0]  (!%p3867_p5), %s4333_s4, 64, %s210_s29, [#allocation11]  }
  0x62   : > { %p4340_p13 = scmp.ne.s32.totalorder %s4337_s22, 0 }
  0x63   : > { %p4341_p0 = scmp.eq.s32.totalorder (!%p4340_p13), %s3850_s21, 0 }
  0x64   : > { %230 = sbr.rel (%p4340_p13) target bundleno = 1180 (0x49c), region = 40 }
  0x6b   : > { %3790 = dma.done.wait (%p4341_p0), [#allocation6], 6144   ;;  %p4342_p7 = pmov %p4341_p0 }
  0x6c   : > { %p4343_p1 = pmov %p4341_p0 }
  0x6d   : > { %3792 = vsyncadd (%p4342_p7), [#allocation6], 4294961152 }
  0x6e   : > { %3794 = dma.done.wait (%p4343_p1), [#allocation8], 52288   ;;  %p4344_p2 = pmov %p4341_p0 }
  0x6f   : > { %p4345_p3 = pmov %p4341_p0 }
  0x70   : > { %3796 = vsyncadd (%p4344_p2), [#allocation8], 4294915008 }
  0x71   : > { %3798 = dma.done.wait (%p4345_p3), [#allocation11], 64   ;;  %p4346_p5 = pmov %p4341_p0 }
  0x72   : > { %v3811_v0 = vmov 0.0   ;;  %p270_p4 = scmp.lt.s32.totalorder %s3850_s21, 1  ;;  %v306_v1 = vld [vmem:[#allocation5 + $0x88] sm:$0xff]  ;;  %v308_v3 = vld [vmem:[#allocation5 + $0x98] sm:$0xff]  ;;  %v305_v6 = vld [vmem:[#allocation5 + $0x80] sm:$0xff]  ;;  %vm321_vm0 = vcmask 261120  }
  0x73   : > { %3800 = vsyncadd (%p4346_p5), [#allocation11], 4294967232  ;;  %398 = vmatprep.mubr.f32.mxu0 %v3811_v0  ;;  %1001 = vst [vmem:[#allocation3] sm:$0xff] %v3811_v0  ;;  %487 = vmatprep.mubr.f32.mxu1 %v3811_v0  ;;  %v310_v2 = vld [vmem:[#allocation5 + $0xa8] sm:$0xff]  ;;  %v312_v5 = vld [vmem:[#allocation5 + $0xb8] sm:$0xff]  ;;  %vm986_vm1 = vcmask 785408  }
  0x74   : > { %1002 = vst [vmem:[#allocation3 + $0x8] sm:$0xff] %v3811_v0  ;;  %1005 = vst [vmem:[#allocation3 + $0x18] sm:$0xff] %v3811_v0  ;;  %s4352_s21 = smov (!%p270_p4, %s3850_s21), 1  ;;  %v3091_v4 = vpack.c.bf16 %v310_v2, %v306_v1  ;;  %v309_v7 = vld [vmem:[#allocation5 + $0xa0] sm:$0xff]  ;;  %v3099_v8 = vpack.c.bf16 %v312_v5, %v308_v3  ;;  %v307_v10 = vld [vmem:[#allocation5 + $0x90] sm:$0xff]  ;;  %vm1003_vm2 = vcmask 130048  }
  0x75   : > { %1006 = vst [vmem:[#allocation3 + $0x20] sm:$0xff] %v3811_v0  ;;  %1008 = vst [vmem:[#allocation3 + $0x30] sm:$0x1] %v3811_v0  ;;  %v3093_v9 = vpack.c.bf16 %v309_v7, %v305_v6  ;;  %v311_v11 = vld [vmem:[#allocation5 + $0xb0] sm:$0xff]  ;;  %v314_v12 = vld [vmem:[#allocation5 + $0xc8] sm:$0xff]  ;;  %s3089_s22 = sshll.u32 %s4352_s21, 5 }
  0x76   : > { %1009 = vst [vmem:[#allocation3 + $0x38] sm:$0x1] %v3811_v0  ;;  %3092 = vmatprep.subr.bf16.mxu0 %v3091_v4  ;;  %v3101_v13 = vpack.c.bf16 %v311_v11, %v307_v10  ;;  %v318_v14 = vld [vmem:[#allocation5 + $0xe8] sm:$0xff]  ;;  %v316_v15 = vld [vmem:[#allocation5 + $0xd8] sm:$0xff]  ;;  %3100 = vmatprep.subr.bf16.mxu1 %v3099_v8  ;;  %v313_v19 = vld [vmem:[#allocation5 + $0xc0] sm:$0xff]  ;;  %s3999_s10 = scalar_lea.vmem %s4329_s0, %s3089_s22  ;;  %vm999_vm3 = vcmask 783360  }
  0x77   : > { %v320_v16 = vld [vmem:[#allocation5 + $0xf8] sm:$0xff]  ;;  %3094 = vmatpush1.bf16.msra.mxu0 %v3093_v9  ;;  %v3095_v17 = vpack.c.bf16 %v318_v14, %v314_v12  ;;  %v317_v20 = vld [vmem:[#allocation5 + $0xe0] sm:$0xff]  ;;  %v315_v21 = vld [vmem:[#allocation5 + $0xd0] sm:$0xff]  ;;  %1004 = vst.msk [vmem:[#allocation3 + $0x10] sm:$0xff] %vm1003_vm2, %v3811_v0  ;;  %s3812_s7 = smov 16   ;;  %vm1636_vm7 = vcmask 1046528  }
  0x78   : > { %v3103_v18 = vpack.c.bf16 %v320_v16, %v316_v15  ;;  %3102 = vmatpush1.bf16.msra.mxu1 %v3101_v13  ;;  %v3097_v22 = vpack.c.bf16 %v317_v20, %v313_v19  ;;  %v319_v23 = vld [vmem:[#allocation5 + $0xf0] sm:$0xff]  ;;  %v285_v24 = vld [vmem:[#allocation5 + $0x8] sm:$0xff]  ;;  %v287_v27 = vld [vmem:[#allocation5 + $0x18] sm:$0xff]  ;;  %1007 = vst.msk [vmem:[#allocation3 + $0x28] sm:$0xff] %vm1003_vm2, %v3811_v0  ;;  %vm1010_vm8 = vcmask 122880   ;;  %vm2431_vm9 = vcmask 1045504  }
  0x79   : > { %3096 = vmatprep.subr.bf16.mxu0 %v3095_v17  ;;  %v3105_v25 = vpack.c.bf16 %v319_v23, %v315_v21  ;;  %v289_v26 = vld [vmem:[#allocation5 + $0x28] sm:$0xff]  ;;  %v291_v28 = vld [vmem:[#allocation5 + $0x38] sm:$0xff]  ;;  %v284_v31 = vld [vmem:[#allocation5] sm:$0xff]  ;;  %1011 = vst.msk [vmem:[#allocation3 + $0x40] sm:$0x1] %vm1010_vm8, %v3811_v0  ;;  %vm2812_vm10 = vcmask 523264  }
  0x7a   : > { %3104 = vmatprep.subr.bf16.mxu1 %v3103_v18  ;;  %v3107_v29 = vpack.c.bf16 %v289_v26, %v285_v24  ;;  %v3115_v30 = vpack.c.bf16 %v291_v28, %v287_v27  ;;  %v288_v32 = vld [vmem:[#allocation5 + $0x20] sm:$0xff]  ;;  %v286_v33 = vld [vmem:[#allocation5 + $0x10] sm:$0xff]  ;;  %v293_v38 = vld [vmem:[#allocation5 + $0x48] sm:$0xff]  ;;  %vm2817_vm11 = vcmask 522240   ;;  %s3813_s13 = smov 32   ;;  %s3090_s14 = sshll.u32 %s4352_s21, 4 }
  0x7b   : > { %3098 = vmatpush1.bf16.msra.mxu0 %v3097_v22  ;;  %v300_v34 = vld [vmem:[%s3999_s10 + $0x1] sm:$0xff]  ;;  %v3109_v35 = vpack.c.bf16 %v288_v32, %v284_v31  ;;  %v290_v36 = vld [vmem:[#allocation5 + $0x30] sm:$0xff]  ;;  %v297_v39 = vld [vmem:[#allocation5 + $0x68] sm:$0xff]  ;;  %v931_v22 = vlaneseq  ;;  %s4291_s17 = scalar_lea.vmem %s4334_s5, %s3090_s14 }
  0x7c   : > { %3106 = vmatpush1.bf16.msra.mxu1 %v3105_v25  ;;  %3108 = vmatprep.subr.bf16.mxu0 %v3107_v29  ;;  %v3117_v37 = vpack.c.bf16 %v290_v36, %v286_v33  ;;  %v295_v40 = vld [vmem:[#allocation5 + $0x58] sm:$0xff]  ;;  %v3111_v41 = vpack.c.bf16 %v297_v39, %v293_v38  ;;  %v292_v43 = vld [vmem:[#allocation5 + $0x40] sm:$0xff]  ;;  %v294_v46 = vld [vmem:[#allocation5 + $0x50] sm:$0xff] }
  0x7d   : > { %3116 = vmatprep.subr.bf16.mxu1 %v3115_v30  ;;  %v299_v42 = vld [vmem:[#allocation5 + $0x78] sm:$0xff]  ;;  %v296_v44 = vld [vmem:[#allocation5 + $0x60] sm:$0xff]  ;;  %v298_v47 = vld [vmem:[#allocation5 + $0x70] sm:$0xff]  ;;  %v4060_v23 = vshrl.u32 %v931_v22, 7  ;;  %vm1031_vm4 = vcmp.ge.s32.totalorder %v931_v22, 16  ;;  %vm1032_vm5 = vcmp.lt.s32.totalorder %v931_v22, 256 }
  0x7e   : > { %3045 = vmatmul.mubr.msk.f32.vlgmr.msra.gmra.mrb[0].mxu0 %vm321_vm0, %v300_v34  ;;  %v3119_v45 = vpack.c.bf16 %v299_v42, %v295_v40  ;;  %v301_v48 = vld [vmem:[%s3999_s10 + $0x9] sm:$0xff]  ;;  %v3113_v51 = vpack.c.bf16 %v296_v44, %v292_v43  ;;  %v710_v52 = vld [vmem:[#allocation5 + $0x118] sm:$0xff]  ;;  %v3121_v54 = vpack.c.bf16 %v298_v47, %v294_v46  ;;  %v302_v57 = vld [vmem:[%s3999_s10 + $0x11] sm:$0xff]  ;;  %vm4294_vm12 = vcmp.lt.s32.totalorder %v931_v22, 224 }
  0x7f   : > { %3049 = vmatmul.mubr.msk.f32.vlgmr.msra.gmra.mrb[0].mxu1 %vm321_vm0, %v300_v34  ;;  %3110 = vmatpush1.bf16.msra.mxu0 %v3109_v35  ;;  %v708_v49 = vld [vmem:[#allocation5 + $0x108] sm:$0xff]  ;;  %v714_v53 = vld [vmem:[#allocation5 + $0x138] sm:$0xff]  ;;  %v303_v58 = vld [vmem:[%s3999_s10 + $0x19] sm:$0x3f]  ;;  %v933_v24 = vsub.s32 0, %v4060_v23  ;;  %v941_v26 = vsub.s32 2, %v4060_v23 }
  0x80   : > { %v712_v50 = vld [vmem:[#allocation5 + $0x128] sm:$0xff]  ;;  %3118 = vmatpush1.bf16.msra.mxu1 %v3117_v37  ;;  %404 = vmatprep.mubr.f32.mxu0 %v3811_v0  ;;  %v3131_v56 = vpack.c.bf16 %v714_v53, %v710_v52  ;;  %v707_v59 = vld [vmem:[#allocation5 + $0x100] sm:$0xff]  ;;  %v709_v61 = vld [vmem:[#allocation5 + $0x110] sm:$0xff]  ;;  %v937_v27 = vsub.s32 1, %v4060_v23  ;;  %v945_v28 = vsub.s32 3, %v4060_v23 }
  0x81   : > { %493 = vmatprep.mubr.f32.mxu1 %v3811_v0  ;;  %3112 = vmatprep.subr.bf16.mxu0 %v3111_v41  ;;  %v3123_v55 = vpack.c.bf16 %v712_v50, %v708_v49  ;;  %v711_v60 = vld [vmem:[#allocation5 + $0x120] sm:$0xff]  ;;  %v713_v62 = vld [vmem:[#allocation5 + $0x130] sm:$0xff]  ;;  %v716_v63 = vld [vmem:[#allocation5 + $0x148] sm:$0xff] }
  0x82   : > { %3046 = vmatmul.mubr.msk.f32.gmra.mrb[2].mxu0 %vm321_vm0, %v301_v48  ;;  %3120 = vmatprep.subr.bf16.mxu1 %v3119_v45  ;;  %v720_v1 = vld [vmem:[#allocation5 + $0x168] sm:$0xff]  ;;  %v280_v2 = vld [vmem:[%s3999_s10] sm:$0xff]  ;;  %v3125_v3 = vpack.c.bf16 %v711_v60, %v707_v59  ;;  %v3133_v6 = vpack.c.bf16 %v713_v62, %v709_v61  ;;  %v715_v8 = vld [vmem:[#allocation5 + $0x140] sm:$0xff] }
  0x83   : > { %3050 = vmatmul.mubr.msk.f32.gmra.mrb[2].mxu1 %vm321_vm0, %v301_v48  ;;  %410 = vmatprep.mubr.f32.mxu0 %v3811_v0  ;;  %v718_v4 = vld [vmem:[#allocation5 + $0x158] sm:$0xff]  ;;  %v3127_v7 = vpack.c.bf16 %v720_v1, %v716_v63  ;;  %v719_v9 = vld [vmem:[#allocation5 + $0x160] sm:$0xff]  ;;  %v717_v11 = vld [vmem:[#allocation5 + $0x150] sm:$0xff] }
  0x84   : > { %499 = vmatprep.mubr.f32.mxu1 %v3811_v0  ;;  %3114 = vmatpush1.bf16.msra.mxu0 %v3113_v51  ;;  %v722_v5 = vld [vmem:[#allocation5 + $0x178] sm:$0xff]  ;;  %v721_v12 = vld [vmem:[#allocation5 + $0x170] sm:$0xff]  ;;  %v281_v13 = vld [vmem:[%s3999_s10 + $0x8] sm:$0xff]  ;;  %v3129_v14 = vpack.c.bf16 %v719_v9, %v715_v8 }
  0x85   : > { %3122 = vmatpush1.bf16.msra.mxu1 %v3121_v54  ;;  %3124 = vmatprep.subr.bf16.mxu0 %v3123_v55  ;;  %v3135_v10 = vpack.c.bf16 %v722_v5, %v718_v4  ;;  %v3137_v15 = vpack.c.bf16 %v721_v12, %v717_v11  ;;  %v282_v16 = vld [vmem:[%s3999_s10 + $0x10] sm:$0xff]  ;;  %v283_v17 = vld [vmem:[%s3999_s10 + $0x18] sm:$0x3f]  ;;  %v702_v18 = vld [vmem:[%s3999_s10 + $0x2] sm:$0xff] }
  0x86   : > { %3047 = vmatmul.mubr.msk.f32.gmra.mrb[4].mxu0 %vm321_vm0, %v302_v57  ;;  %3132 = vmatprep.subr.bf16.mxu1 %v3131_v56  ;;  %v703_v19 = vld [vmem:[%s3999_s10 + $0xa] sm:$0xff]  ;;  %v704_v20 = vld [vmem:[%s3999_s10 + $0x12] sm:$0xff]  ;;  %v705_v21 = vld [vmem:[%s3999_s10 + $0x1a] sm:$0x3f] }
  0x87   : > { %3051 = vmatmul.mubr.msk.f32.gmra.mrb[4].mxu1 %vm321_vm0, %v302_v57  ;;  %416 = vmatprep.mubr.f32.mxu0 %v3811_v0  ;;  %v929_v25 = vld [vmem:[#allocation7] sm:$0xf]  ;;  %vm4188_vm6 = vmand %vm1031_vm4, %vm1032_vm5 }
  0x88   : > { %505 = vmatprep.mubr.f32.mxu1 %v3811_v0  ;;  %v934_v29 = vrot.slane %v929_v25, %v933_v24  ;;  %v942_v30 = vrot.slane %v929_v25, %v941_v26  ;;  %v938_v31 = vrot.slane %v929_v25, %v937_v27  ;;  %v946_v32 = vrot.slane %v929_v25, %v945_v28 }
  0x8a   : > { %3048 = vmatmul.mubr.msk.f32.gmra.mrb[6].mxu0 %vm321_vm0, %v303_v58 }
  0x8b   : > { %3052 = vmatmul.mubr.msk.f32.gmra.mrb[6].mxu1 %vm321_vm0, %v303_v58  ;;  %588 = vmatprep.mubr.f32.mxu0 %v3811_v0 }
  0x8c   : > { %677 = vmatprep.mubr.f32.mxu1 %v3811_v0 }
  0x8e   : > { %3053 = vmatmul.mubr.msk.f32.vlgmr.msra.gmra.mrb[0].mxu0 %vm321_vm0, %v280_v2 }
  0x8f   : > { %3057 = vmatmul.mubr.msk.f32.vlgmr.msra.gmra.mrb[0].mxu1 %vm321_vm0, %v280_v2  ;;  %3126 = vmatpush1.bf16.msra.mxu0 %v3125_v3 }
  0x90   : > { %3134 = vmatpush1.bf16.msra.mxu1 %v3133_v6  ;;  %594 = vmatprep.mubr.f32.mxu0 %v3811_v0 }
  0x91   : > { %683 = vmatprep.mubr.f32.mxu1 %v3811_v0  ;;  %3128 = vmatprep.subr.bf16.mxu0 %v3127_v7 }
  0x92   : > { %3054 = vmatmul.mubr.msk.f32.gmra.mrb[2].mxu0 %vm321_vm0, %v281_v13  ;;  %3136 = vmatprep.subr.bf16.mxu1 %v3135_v10 }
  0x93   : > { %3058 = vmatmul.mubr.msk.f32.gmra.mrb[2].mxu1 %vm321_vm0, %v281_v13  ;;  %600 = vmatprep.mubr.f32.mxu0 %v3811_v0 }
  0x94   : > { %689 = vmatprep.mubr.f32.mxu1 %v3811_v0  ;;  %3130 = vmatpush1.bf16.msra.mxu0 %v3129_v14 }
  0x95   : > { %3138 = vmatpush1.bf16.msra.mxu1 %v3137_v15 }
  0x96   : > { %3055 = vmatmul.mubr.msk.f32.gmra.mrb[4].mxu0 %vm321_vm0, %v282_v16 }
  0x97   : > { %3059 = vmatmul.mubr.msk.f32.gmra.mrb[4].mxu1 %vm321_vm0, %v282_v16  ;;  %606 = vmatprep.mubr.f32.mxu0 %v3811_v0 }
  0x98   : > { %695 = vmatprep.mubr.f32.mxu1 %v3811_v0 }
  0x9a   : > { %3056 = vmatmul.mubr.msk.f32.gmra.mrb[6].mxu0 %vm321_vm0, %v283_v17 }
  0x9b   : > { %3060 = vmatmul.mubr.msk.f32.gmra.mrb[6].mxu1 %vm321_vm0, %v283_v17  ;;  %799 = vmatprep.mubr.f32.mxu0 %v3811_v0 }
  0x9c   : > { %888 = vmatprep.mubr.f32.mxu1 %v3811_v0 }
  0x9e   : > { %3061 = vmatmul.mubr.msk.f32.vlgmr.msra.gmra.mrb[0].mxu0 %vm321_vm0, %v702_v18 }
  0x9f   : > { %3065 = vmatmul.mubr.msk.f32.vlgmr.msra.gmra.mrb[0].mxu1 %vm321_vm0, %v702_v18  ;;  %805 = vmatprep.mubr.f32.mxu0 %v3811_v0 }
  0xa0   : > { %894 = vmatprep.mubr.f32.mxu1 %v3811_v0 }
  0xa2   : > { %3062 = vmatmul.mubr.msk.f32.gmra.mrb[2].mxu0 %vm321_vm0, %v703_v19 }
  0xa3   : > { %3066 = vmatmul.mubr.msk.f32.gmra.mrb[2].mxu1 %vm321_vm0, %v703_v19  ;;  %811 = vmatprep.mubr.f32.mxu0 %v3811_v0 }
  0xa4   : > { %900 = vmatprep.mubr.f32.mxu1 %v3811_v0 }
  0xa6   : > { %3063 = vmatmul.mubr.msk.f32.gmra.mrb[4].mxu0 %vm321_vm0, %v704_v20 }
  0xa7   : > { %3067 = vmatmul.mubr.msk.f32.gmra.mrb[4].mxu1 %vm321_vm0, %v704_v20  ;;  %817 = vmatprep.mubr.f32.mxu0 %v3811_v0 }
  0xa8   : > { %906 = vmatprep.mubr.f32.mxu1 %v3811_v0 }
  0xaa   : > { %3064 = vmatmul.mubr.msk.f32.gmra.mrb[6].mxu0 %vm321_vm0, %v705_v21 }
  0xab   : > { %3068 = vmatmul.mubr.msk.f32.gmra.mrb[6].mxu1 %vm321_vm0, %v705_v21 }
 0x171   : > { %v801_v33 = vpop.f32.mrb[0].mxu0 }
 0x172   : > { %v951_v34 = vadd.f32 %v934_v29, %v801_v33  ;;  %v890_v35 = vpop.f32.mrb[0].mxu1  ;;  %v803_v36 = vpop.f32.mrb[1].mxu0 }
 0x173   : > { %v953_v37 = vadd.f32 %v942_v30, %v890_v35  ;;  %v952_v38 = vadd.f32 %v938_v31, %v803_v36  ;;  %v892_v39 = vpop.f32.mrb[1].mxu1 }
 0x174   : > { %v967_v40 = vmax.f32 %v951_v34, 0.0  ;;  %v954_v41 = vadd.f32 %v946_v32, %v892_v39 }
 0x175   : > { %v969_v42 = vmax.f32 %v953_v37, 0.0  ;;  %v968_v43 = vmax.f32 %v952_v38, 0.0  ;;  %v807_v44 = vpop.f32.mrb[2].mxu0 }
 0x176   : > { %983 = vst [vmem:[#allocation2] sm:$0xff] %v967_v40  ;;  %v970_v45 = vmax.f32 %v954_v41, 0.0  ;;  %v955_v46 = vadd.f32 %v934_v29, %v807_v44  ;;  %v896_v47 = vpop.f32.mrb[2].mxu1  ;;  %v809_v48 = vpop.f32.mrb[3].mxu0 }
 0x177   : > { %985 = vst [vmem:[#allocation2 + $0x10] sm:$0xff] %v969_v42  ;;  %984 = vst [vmem:[#allocation2 + $0x8] sm:$0xff] %v968_v43  ;;  %v957_v49 = vadd.f32 %v942_v30, %v896_v47  ;;  %v956_v50 = vadd.f32 %v938_v31, %v809_v48  ;;  %v898_v51 = vpop.f32.mrb[3].mxu1 }
 0x178   : > { %987 = vst.msk [vmem:[#allocation2 + $0x18] sm:$0xff] %vm986_vm1, %v970_v45  ;;  %v971_v52 = vmax.f32 %v955_v46, 0.0  ;;  %v958_v53 = vadd.f32 %v946_v32, %v898_v51 }
 0x179   : > { %v973_v54 = vmax.f32 %v957_v49, 0.0  ;;  %v972_v55 = vmax.f32 %v956_v50, 0.0  ;;  %v813_v56 = vpop.f32.mrb[4].mxu0 }
 0x17a   : > { %988 = vst [vmem:[#allocation2 + $0x20] sm:$0xff] %v971_v52  ;;  %v974_v57 = vmax.f32 %v958_v53, 0.0  ;;  %v959_v58 = vadd.f32 %v934_v29, %v813_v56  ;;  %v902_v59 = vpop.f32.mrb[4].mxu1  ;;  %v815_v60 = vpop.f32.mrb[5].mxu0 }
 0x17b   : > { %990 = vst [vmem:[#allocation2 + $0x30] sm:$0xff] %v973_v54  ;;  %989 = vst [vmem:[#allocation2 + $0x28] sm:$0xff] %v972_v55  ;;  %v961_v61 = vadd.f32 %v942_v30, %v902_v59  ;;  %v960_v62 = vadd.f32 %v938_v31, %v815_v60  ;;  %v904_v63 = vpop.f32.mrb[5].mxu1 }
 0x17c   : > { %991 = vst.msk [vmem:[#allocation2 + $0x38] sm:$0xff] %vm986_vm1, %v974_v57  ;;  %v975_v1 = vmax.f32 %v959_v58, 0.0  ;;  %v962_v2 = vadd.f32 %v946_v32, %v904_v63 }
 0x17d   : > { %v977_v3 = vmax.f32 %v961_v61, 0.0  ;;  %v976_v4 = vmax.f32 %v960_v62, 0.0  ;;  %v819_v5 = vpop.f32.mrb[6].mxu0 }
 0x17e   : > { %992 = vst [vmem:[#allocation2 + $0x40] sm:$0xff] %v975_v1  ;;  %v978_v6 = vmax.f32 %v962_v2, 0.0  ;;  %v963_v7 = vadd.f32 %v934_v29, %v819_v5  ;;  %v908_v8 = vpop.f32.mrb[6].mxu1  ;;  %v821_v9 = vpop.f32.mrb[7].mxu0  ;;  %v1495_v2 = vld [vmem:[#allocation9 + $0x448] sm:$0xff] }
 0x17f   : > { %994 = vst [vmem:[#allocation2 + $0x50] sm:$0xff] %v977_v3  ;;  %993 = vst [vmem:[#allocation2 + $0x48] sm:$0xff] %v976_v4  ;;  %v965_v10 = vadd.f32 %v942_v30, %v908_v8  ;;  %v964_v11 = vadd.f32 %v938_v31, %v821_v9  ;;  %v910_v12 = vpop.f32.mrb[7].mxu1  ;;  %v1060_v13 = vld [vmem:[#allocation2 + $0x4] ss:$8 sm:$0xf] }
 0x180   : > { %995 = vst.msk [vmem:[#allocation2 + $0x58] sm:$0xff] %vm986_vm1, %v978_v6  ;;  %v979_v14 = vmax.f32 %v963_v7, 0.0  ;;  %v966_v15 = vadd.f32 %v946_v32, %v910_v12  ;;  %v1062_v16 = vld [vmem:[#allocation2 + $0x5] ss:$8 sm:$0xf] }
 0x181   : > { %v981_v17 = vmax.f32 %v965_v10, 0.0  ;;  %v980_v18 = vmax.f32 %v964_v11, 0.0  ;;  %v4081_v19 = vmax.f32 %v1060_v13, %v1062_v16  ;;  %v1012_v20 = vld [vmem:[#allocation2] ss:$8 sm:$0xf] }
 0x182   : > { %996 = vst [vmem:[#allocation2 + $0x60] sm:$0x3f] %v979_v14  ;;  %v982_v21 = vmax.f32 %v966_v15, 0.0  ;;  %v1014_v25 = vld [vmem:[#allocation2 + $0x1] ss:$8 sm:$0xf] }
 0x183   : > { %998 = vst [vmem:[#allocation2 + $0x70] sm:$0x3f] %v981_v17  ;;  %997 = vst [vmem:[#allocation2 + $0x68] sm:$0x3f] %v980_v18  ;;  %1065 = vrot.lane.b32.xlu1 %v4081_v19, %s3812_s7  ;;  %v4085_v29 = vmax.f32 %v1012_v20, %v1014_v25  ;;  %v1499_v3 = vld [vmem:[#allocation9 + $0x468] sm:$0xff]  ;;  %v1497_v4 = vld [vmem:[#allocation9 + $0x458] sm:$0xff] }
 0x184   : > { %v1082_v30 = vld [vmem:[#allocation2 + $0x6] ss:$8 sm:$0xf]  ;;  %v1084_v31 = vld [vmem:[#allocation2 + $0x7] ss:$8 sm:$0xf]  ;;  %v3139_v7 = vpack.c.bf16 %v1499_v3, %v1495_v2 }
 0x185   : > { %1000 = vst.msk [vmem:[#allocation2 + $0x78] sm:$0x3f] %vm999_vm3, %v982_v21  ;;  %v1038_v32 = vld [vmem:[#allocation2 + $0x2] ss:$8 sm:$0xf]  ;;  %1017 = vrot.lane.b32.xlu0 %v4085_v29, %s3812_s7  ;;  %v4089_v34 = vmax.f32 %v1082_v30, %v1084_v31 }
 0x186   : > { %v1040_v33 = vld [vmem:[#allocation2 + $0x3] ss:$8 sm:$0xf]  ;;  %v1126_v35 = vld [vmem:[#allocation2 + $0x22] ss:$8 sm:$0xf]  ;;  %3140 = vmatprep.subr.bf16.mxu0 %v3139_v7 }
 0x187   : > { %v1128_v36 = vld [vmem:[#allocation2 + $0x23] ss:$8 sm:$0xf]  ;;  %1087 = vrot.lane.b32.xlu1 %v4089_v34, %s3812_s7  ;;  %v4093_v37 = vmax.f32 %v1038_v32, %v1040_v33  ;;  %v1104_v38 = vld [vmem:[#allocation2 + $0x20] ss:$8 sm:$0xf] }
 0x188   : > { %v1106_v39 = vld [vmem:[#allocation2 + $0x21] ss:$8 sm:$0xf]  ;;  %v4097_v40 = vmax.f32 %v1126_v35, %v1128_v36  ;;  %v1170_v41 = vld [vmem:[#allocation2 + $0x26] ss:$8 sm:$0xf] }
 0x189   : > { %1043 = vrot.lane.b32.xlu0 %v4093_v37, %s3812_s7  ;;  %v1172_v42 = vld [vmem:[#allocation2 + $0x27] ss:$8 sm:$0xf]  ;;  %v4101_v43 = vmax.f32 %v1104_v38, %v1106_v39  ;;  %v1148_v44 = vld [vmem:[#allocation2 + $0x24] ss:$8 sm:$0xf] }
 0x18a   : > { %v1150_v45 = vld [vmem:[#allocation2 + $0x25] ss:$8 sm:$0xf]  ;;  %v4105_v46 = vmax.f32 %v1170_v41, %v1172_v42  ;;  %v1214_v47 = vld [vmem:[#allocation2 + $0x42] ss:$8 sm:$0xf] }
 0x18b   : > { %1131 = vrot.lane.b32.xlu1 %v4097_v40, %s3812_s7  ;;  %v1216_v48 = vld [vmem:[#allocation2 + $0x43] ss:$8 sm:$0xf]  ;;  %v4109_v49 = vmax.f32 %v1148_v44, %v1150_v45  ;;  %v1192_v50 = vld [vmem:[#allocation2 + $0x40] ss:$8 sm:$0xf] }
 0x18c   : > { %v1194_v51 = vld [vmem:[#allocation2 + $0x41] ss:$8 sm:$0xf]  ;;  %v4113_v52 = vmax.f32 %v1214_v47, %v1216_v48  ;;  %v1258_v53 = vld [vmem:[#allocation2 + $0x46] ss:$8 sm:$0xf] }
 0x18d   : > { %1109 = vrot.lane.b32.xlu0 %v4101_v43, %s3812_s7  ;;  %v1260_v54 = vld [vmem:[#allocation2 + $0x47] ss:$8 sm:$0xf]  ;;  %v4117_v55 = vmax.f32 %v1192_v50, %v1194_v51  ;;  %v1236_v56 = vld [vmem:[#allocation2 + $0x44] ss:$8 sm:$0xf] }
 0x18e   : > { %v1238_v57 = vld [vmem:[#allocation2 + $0x45] ss:$8 sm:$0xf]  ;;  %v4121_v58 = vmax.f32 %v1258_v53, %v1260_v54  ;;  %v1302_v59 = vld [vmem:[#allocation2 + $0x62] ss:$8 sm:$0xf] }
 0x18f   : > { %1175 = vrot.lane.b32.xlu1 %v4105_v46, %s3812_s7  ;;  %v1304_v60 = vld [vmem:[#allocation2 + $0x63] ss:$8 sm:$0xf]  ;;  %v4125_v61 = vmax.f32 %v1236_v56, %v1238_v57  ;;  %v1280_v62 = vld [vmem:[#allocation2 + $0x60] ss:$8 sm:$0xf] }
 0x190   : > { %v1282_v63 = vld [vmem:[#allocation2 + $0x61] ss:$8 sm:$0xf]  ;;  %v4129_v1 = vmax.f32 %v1302_v59, %v1304_v60  ;;  %v1324_v5 = vld [vmem:[#allocation2 + $0x64] ss:$8 sm:$0xf] }
 0x191   : > { %1153 = vrot.lane.b32.xlu0 %v4109_v49, %s3812_s7  ;;  %v1326_v6 = vld [vmem:[#allocation2 + $0x65] ss:$8 sm:$0xf]  ;;  %v4133_v11 = vmax.f32 %v1280_v62, %v1282_v63 }
 0x192   : > { %v1501_v8 = vld [vmem:[#allocation9 + $0x478] sm:$0xff]  ;;  %v1494_v9 = vld [vmem:[#allocation9 + $0x440] sm:$0xff]  ;;  %v1496_v14 = vld [vmem:[#allocation9 + $0x450] sm:$0xff]  ;;  %v4137_v41 = vmax.f32 %v1324_v5, %v1326_v6 }
 0x193   : > { %1219 = vrot.lane.b32.xlu1 %v4113_v52, %s3812_s7  ;;  %v1498_v10 = vld [vmem:[#allocation9 + $0x460] sm:$0xff]  ;;  %v3207_v12 = vpack.c.bf16 %v1501_v8, %v1497_v4  ;;  %v1500_v15 = vld [vmem:[#allocation9 + $0x470] sm:$0xff]  ;;  %v1503_v16 = vld [vmem:[#allocation9 + $0x488] sm:$0xff] }
 0x194   : > { %v3141_v13 = vpack.c.bf16 %v1498_v10, %v1494_v9  ;;  %v3209_v17 = vpack.c.bf16 %v1500_v15, %v1496_v14  ;;  %v1507_v18 = vld [vmem:[#allocation9 + $0x4a8] sm:$0xff]  ;;  %v1505_v20 = vld [vmem:[#allocation9 + $0x498] sm:$0xff]  ;;  %v1502_v31 = vld [vmem:[#allocation9 + $0x480] sm:$0xff] }
 0x195   : > { %1197 = vrot.lane.b32.xlu0 %v4117_v55, %s3812_s7  ;;  %v1509_v21 = vld [vmem:[#allocation9 + $0x4b8] sm:$0xff]  ;;  %3208 = vmatprep.subr.bf16.mxu1 %v3207_v12  ;;  %v3143_v25 = vpack.c.bf16 %v1507_v18, %v1503_v16  ;;  %v1506_v32 = vld [vmem:[#allocation9 + $0x4a0] sm:$0xff]  ;;  %v1504_v33 = vld [vmem:[#allocation9 + $0x490] sm:$0xff] }
 0x196   : > { %v3211_v30 = vpack.c.bf16 %v1509_v21, %v1505_v20  ;;  %3142 = vmatpush1.bf16.msra.mxu0 %v3141_v13  ;;  %3210 = vmatpush1.bf16.msra.mxu1 %v3209_v17  ;;  %v3145_v35 = vpack.c.bf16 %v1506_v32, %v1502_v31  ;;  %v1508_v36 = vld [vmem:[#allocation9 + $0x4b0] sm:$0xff]  ;;  %v1511_v38 = vld [vmem:[#allocation9 + $0x4c8] sm:$0xff]  ;;  %v1513_v45 = vld [vmem:[#allocation9 + $0x4d8] sm:$0xff] }
 0x197   : > { %1263 = vrot.lane.b32.xlu1 %v4121_v58, %s3812_s7  ;;  %v1515_v39 = vld [vmem:[#allocation9 + $0x4e8] sm:$0xff]  ;;  %3144 = vmatprep.subr.bf16.mxu0 %v3143_v25  ;;  %v3213_v42 = vpack.c.bf16 %v1508_v36, %v1504_v33  ;;  %v1517_v47 = vld [vmem:[#allocation9 + $0x4f8] sm:$0xff]  ;;  %v1510_v48 = vld [vmem:[#allocation9 + $0x4c0] sm:$0xff] }
 0x198   : > { %3212 = vmatprep.subr.bf16.mxu1 %v3211_v30  ;;  %v3147_v44 = vpack.c.bf16 %v1515_v39, %v1511_v38  ;;  %v3215_v50 = vpack.c.bf16 %v1517_v47, %v1513_v45  ;;  %v1514_v51 = vld [vmem:[#allocation9 + $0x4e0] sm:$0xff]  ;;  %v1512_v53 = vld [vmem:[#allocation9 + $0x4d0] sm:$0xff]  ;;  %v1519_v56 = vld [vmem:[#allocation9 + $0x508] sm:$0xff] }
 0x199   : > { %1241 = vrot.lane.b32.xlu0 %v4125_v61, %s3812_s7  ;;  %v1516_v54 = vld [vmem:[#allocation9 + $0x4f0] sm:$0xff]  ;;  %v1523_v57 = vld [vmem:[#allocation9 + $0x528] sm:$0xff]  ;;  %v1521_v59 = vld [vmem:[#allocation9 + $0x518] sm:$0xff]  ;;  %v3149_v60 = vpack.c.bf16 %v1514_v51, %v1510_v48 }
 0x19a   : > { %3146 = vmatpush1.bf16.msra.mxu0 %v3145_v35  ;;  %3214 = vmatpush1.bf16.msra.mxu1 %v3213_v42  ;;  %v3217_v62 = vpack.c.bf16 %v1516_v54, %v1512_v53  ;;  %v1525_v63 = vld [vmem:[#allocation9 + $0x538] sm:$0xff]  ;;  %v1518_v2 = vld [vmem:[#allocation9 + $0x500] sm:$0xff]  ;;  %v3151_v4 = vpack.c.bf16 %v1523_v57, %v1519_v56  ;;  %v1520_v6 = vld [vmem:[#allocation9 + $0x510] sm:$0xff] }
 0x19b   : > { %1307 = vrot.lane.b32.xlu1 %v4129_v1, %s3812_s7  ;;  %v1522_v3 = vld [vmem:[#allocation9 + $0x520] sm:$0xff]  ;;  %3148 = vmatprep.subr.bf16.mxu0 %v3147_v44  ;;  %v3219_v5 = vpack.c.bf16 %v1525_v63, %v1521_v59  ;;  %v1524_v7 = vld [vmem:[#allocation9 + $0x530] sm:$0xff]  ;;  %v1527_v8 = vld [vmem:[#allocation9 + $0x548] sm:$0xff] }
 0x19c   : > { %3216 = vmatprep.subr.bf16.mxu1 %v3215_v50  ;;  %v1531_v9 = vld [vmem:[#allocation9 + $0x568] sm:$0xff]  ;;  %v1529_v10 = vld [vmem:[#allocation9 + $0x558] sm:$0xff]  ;;  %v3153_v13 = vpack.c.bf16 %v1522_v3, %v1518_v2  ;;  %v3221_v14 = vpack.c.bf16 %v1524_v7, %v1520_v6  ;;  %v1526_v15 = vld [vmem:[#allocation9 + $0x540] sm:$0xff] }
 0x19d   : > { %1285 = vrot.lane.b32.xlu0 %v4133_v11, %s3812_s7  ;;  %v1533_v12 = vld [vmem:[#allocation9 + $0x578] sm:$0xff]  ;;  %v1530_v16 = vld [vmem:[#allocation9 + $0x560] sm:$0xff]  ;;  %v3155_v17 = vpack.c.bf16 %v1531_v9, %v1527_v8  ;;  %v1528_v20 = vld [vmem:[#allocation9 + $0x550] sm:$0xff] }
 0x19e   : > { %3150 = vmatpush1.bf16.msra.mxu0 %v3149_v60  ;;  %3218 = vmatpush1.bf16.msra.mxu1 %v3217_v62  ;;  %v3223_v18 = vpack.c.bf16 %v1533_v12, %v1529_v10  ;;  %v1532_v21 = vld [vmem:[#allocation9 + $0x570] sm:$0xff]  ;;  %v1535_v25 = vld [vmem:[#allocation9 + $0x588] sm:$0xff]  ;;  %v1537_v31 = vld [vmem:[#allocation9 + $0x598] sm:$0xff]  ;;  %v3157_v33 = vpack.c.bf16 %v1530_v16, %v1526_v15 }
 0x19f   : > { %3152 = vmatprep.subr.bf16.mxu0 %v3151_v4  ;;  %3220 = vmatprep.subr.bf16.mxu1 %v3219_v5  ;;  %v1539_v30 = vld [vmem:[#allocation9 + $0x5a8] sm:$0xff]  ;;  %v1541_v32 = vld [vmem:[#allocation9 + $0x5b8] sm:$0xff]  ;;  %v3225_v35 = vpack.c.bf16 %v1532_v21, %v1528_v20  ;;  %v1534_v39 = vld [vmem:[#allocation9 + $0x580] sm:$0xff] }
 0x1a0   : > { %v3159_v36 = vpack.c.bf16 %v1539_v30, %v1535_v25  ;;  %v3227_v38 = vpack.c.bf16 %v1541_v32, %v1537_v31  ;;  %v1538_v42 = vld [vmem:[#allocation9 + $0x5a0] sm:$0xff]  ;;  %v1536_v44 = vld [vmem:[#allocation9 + $0x590] sm:$0xff]  ;;  %v1543_v50 = vld [vmem:[#allocation9 + $0x5c8] sm:$0xff] }
 0x1a1   : > { %1329 = vrot.lane.b32.xlu0 %v4137_v41, %s3812_s7  ;;  %v3161_v45 = vpack.c.bf16 %v1538_v42, %v1534_v39  ;;  %v1540_v47 = vld [vmem:[#allocation9 + $0x5b0] sm:$0xff]  ;;  %v1547_v51 = vld [vmem:[#allocation9 + $0x5e8] sm:$0xff]  ;;  %v1545_v53 = vld [vmem:[#allocation9 + $0x5d8] sm:$0xff] }
 0x1a2   : > { %3154 = vmatpush1.bf16.msra.mxu0 %v3153_v13  ;;  %3222 = vmatpush1.bf16.msra.mxu1 %v3221_v14  ;;  %v3229_v48 = vpack.c.bf16 %v1540_v47, %v1536_v44  ;;  %v3163_v54 = vpack.c.bf16 %v1547_v51, %v1543_v50  ;;  %v1549_v56 = vld [vmem:[#allocation9 + $0x5f8] sm:$0xff]  ;;  %v1542_v57 = vld [vmem:[#allocation9 + $0x5c0] sm:$0xff]  ;;  %v1544_v63 = vld [vmem:[#allocation9 + $0x5d0] sm:$0xff] }
 0x1a3   : > { %3156 = vmatprep.subr.bf16.mxu0 %v3155_v17  ;;  %3224 = vmatprep.subr.bf16.mxu1 %v3223_v18  ;;  %v1546_v59 = vld [vmem:[#allocation9 + $0x5e0] sm:$0xff]  ;;  %v3231_v60 = vpack.c.bf16 %v1549_v56, %v1545_v53  ;;  %v1548_v2 = vld [vmem:[#allocation9 + $0x5f0] sm:$0xff]  ;;  %v1551_v5 = vld [vmem:[#allocation9 + $0x608] sm:$0xff] }
 0x1a4   : > { %v3165_v62 = vpack.c.bf16 %v1546_v59, %v1542_v57  ;;  %v3233_v4 = vpack.c.bf16 %v1548_v2, %v1544_v63  ;;  %v1555_v6 = vld [vmem:[#allocation9 + $0x628] sm:$0xff]  ;;  %v1553_v7 = vld [vmem:[#allocation9 + $0x618] sm:$0xff]  ;;  %v1550_v14 = vld [vmem:[#allocation9 + $0x600] sm:$0xff] }
 0x1a5   : > { %v3167_v12 = vpack.c.bf16 %v1555_v6, %v1551_v5  ;;  %v1557_v13 = vld [vmem:[#allocation9 + $0x638] sm:$0xff]  ;;  %v1554_v15 = vld [vmem:[#allocation9 + $0x620] sm:$0xff]  ;;  %v1552_v20 = vld [vmem:[#allocation9 + $0x610] sm:$0xff] }
 0x1a6   : > { %3158 = vmatpush1.bf16.msra.mxu0 %v3157_v33  ;;  %3226 = vmatpush1.bf16.msra.mxu1 %v3225_v35  ;;  %v3235_v18 = vpack.c.bf16 %v1557_v13, %v1553_v7  ;;  %v1556_v21 = vld [vmem:[#allocation9 + $0x630] sm:$0xff]  ;;  %v3169_v30 = vpack.c.bf16 %v1554_v15, %v1550_v14  ;;  %v1561_v39 = vld [vmem:[#allocation9 + $0x658] sm:$0xff]  ;;  %v1558_v50 = vld [vmem:[#allocation9 + $0x640] sm:$0xff] }
 0x1a7   : > { %3160 = vmatprep.subr.bf16.mxu0 %v3159_v36  ;;  %3228 = vmatprep.subr.bf16.mxu1 %v3227_v38  ;;  %v3237_v31 = vpack.c.bf16 %v1556_v21, %v1552_v20  ;;  %v1559_v36 = vld [vmem:[#allocation9 + $0x648] sm:$0xff]  ;;  %v1562_v51 = vld [vmem:[#allocation9 + $0x660] sm:$0xff]  ;;  %v1560_v57 = vld [vmem:[#allocation9 + $0x650] sm:$0xff] }
 0x1a8   : > { %v1563_v38 = vld [vmem:[#allocation9 + $0x668] sm:$0xff]  ;;  %v1564_v59 = vld [vmem:[#allocation9 + $0x670] sm:$0xff]  ;;  %v1569_v6 = vld [vmem:[#allocation9 + $0x698] sm:$0xff] }
 0x1a9   : > { %v3171_v47 = vpack.c.bf16 %v1563_v38, %v1559_v36  ;;  %v3241_v63 = vpack.c.bf16 %v1564_v59, %v1560_v57  ;;  %v1571_v5 = vld [vmem:[#allocation9 + $0x6a8] sm:$0xff]  ;;  %v1573_v13 = vld [vmem:[#allocation9 + $0x6b8] sm:$0xff]  ;;  %v1566_v14 = vld [vmem:[#allocation9 + $0x680] sm:$0xff] }
 0x1aa   : > { %3162 = vmatpush1.bf16.msra.mxu0 %v3161_v45  ;;  %3230 = vmatpush1.bf16.msra.mxu1 %v3229_v48  ;;  %v1565_v48 = vld [vmem:[#allocation9 + $0x678] sm:$0xff]  ;;  %v1570_v15 = vld [vmem:[#allocation9 + $0x6a0] sm:$0xff]  ;;  %v1572_v20 = vld [vmem:[#allocation9 + $0x6b0] sm:$0xff] }
 0x1ab   : > { %3164 = vmatprep.subr.bf16.mxu0 %v3163_v54  ;;  %3232 = vmatprep.subr.bf16.mxu1 %v3231_v60  ;;  %v3239_v56 = vpack.c.bf16 %v1565_v48, %v1561_v39  ;;  %v1579_v36 = vld [vmem:[#allocation9 + $0x6e8] sm:$0xff]  ;;  %v1577_v38 = vld [vmem:[#allocation9 + $0x6d8] sm:$0xff]  ;;  %v1574_v48 = vld [vmem:[#allocation9 + $0x6c0] sm:$0xff] }
 0x1ae   : > { %3166 = vmatpush1.bf16.msra.mxu0 %v3165_v62  ;;  %3234 = vmatpush1.bf16.msra.mxu1 %v3233_v4  ;;  %v3173_v62 = vpack.c.bf16 %v1562_v51, %v1558_v50  ;;  %v1567_v4 = vld [vmem:[#allocation9 + $0x688] sm:$0xff]  ;;  %v1578_v50 = vld [vmem:[#allocation9 + $0x6e0] sm:$0xff] }
 0x1af   : > { %3168 = vmatprep.subr.bf16.mxu0 %v3167_v12  ;;  %3236 = vmatprep.subr.bf16.mxu1 %v3235_v18  ;;  %v3175_v12 = vpack.c.bf16 %v1571_v5, %v1567_v4  ;;  %v1568_v18 = vld [vmem:[#allocation9 + $0x690] sm:$0xff]  ;;  %v3181_v59 = vpack.c.bf16 %v1578_v50, %v1574_v48 }
 0x1b0   : > { %v1596_v48 = vld [vmem:[#allocation9 + $0x770] sm:$0xff] }
 0x1b2   : > { %3170 = vmatpush1.bf16.msra.mxu0 %v3169_v30  ;;  %3238 = vmatpush1.bf16.msra.mxu1 %v3237_v31  ;;  %v3245_v30 = vpack.c.bf16 %v1572_v20, %v1568_v18 }
 0x1b3   : > { %3172 = vmatprep.subr.bf16.mxu0 %v3171_v47  ;;  %3240 = vmatprep.subr.bf16.mxu1 %v3239_v56  ;;  %v1581_v47 = vld [vmem:[#allocation9 + $0x6f8] sm:$0xff]  ;;  %v1580_v56 = vld [vmem:[#allocation9 + $0x6f0] sm:$0xff] }
 0x1b6   : > { %3174 = vmatpush1.bf16.msra.mxu0 %v3173_v62  ;;  %3242 = vmatpush1.bf16.msra.mxu1 %v3241_v63 }
 0x1b7   : > { %3176 = vmatprep.subr.bf16.mxu0 %v3175_v12  ;;  %v1586_v12 = vld [vmem:[#allocation9 + $0x720] sm:$0xff] }
 0x1f5   : > { %v1066_v3 = vpop.permute.xlu1 %1065 }
 0x1f6   : > { %v1067_v8 = vrot.slane %v1066_v3, 1  ;;  %v1068_v9 = vrot.slane %v1066_v3, 2 }
 0x1f7   : > { %v1018_v10 = vpop.permute.xlu0 %1017 }
 0x1f8   : > { %v1019_v16 = vrot.slane %v1018_v10, 1  ;;  %v1020_v17 = vrot.slane %v1018_v10, 2  ;;  %v1069_v45 = vsel %vm1003_vm2, %v1067_v8, %v1068_v9 }
 0x1f9   : > { %v1088_v25 = vpop.permute.xlu1 %1087 }
 0x1fa   : > { %v1089_v32 = vrot.slane %v1088_v25, 1  ;;  %v1090_v33 = vrot.slane %v1088_v25, 2  ;;  %v1021_v35 = vsel %vm1003_vm2, %v1019_v16, %v1020_v17  ;;  %v3243_v17 = vpack.c.bf16 %v1573_v13, %v1569_v6 }
 0x1fb   : > { %v1044_v42 = vpop.permute.xlu0 %1043  ;;  %v1023_v44 = vmax.f32 %v4085_v29, %v1021_v35  ;;  %v1071_v29 = vmax.f32 %v4081_v19, %v1069_v45  ;;  %v3177_v25 = vpack.c.bf16 %v1570_v15, %v1566_v14  ;;  %v1575_v35 = vld [vmem:[#allocation9 + $0x6c8] sm:$0xff]  ;;  %v1584_v15 = vld [vmem:[#allocation9 + $0x710] sm:$0xff] }
 0x1fc   : > { %v1045_v53 = vrot.slane %v1044_v42, 1  ;;  %v1046_v54 = vrot.slane %v1044_v42, 2  ;;  %v1091_v3 = vsel %vm1003_vm2, %v1089_v32, %v1090_v33  ;;  %3244 = vmatprep.subr.bf16.mxu1 %v3243_v17  ;;  %v3179_v45 = vpack.c.bf16 %v1579_v36, %v1575_v35 }
 0x1fd   : > { %1025 = vrot.lane.b32.xlu1 %v1023_v44, %s3812_s7  ;;  %v1132_v60 = vpop.permute.xlu1 %1131  ;;  %v1093_v33 = vmax.f32 %v4089_v34, %v1091_v3  ;;  %3178 = vmatpush1.bf16.msra.mxu0 %v3177_v25  ;;  %v1576_v34 = vld [vmem:[#allocation9 + $0x6d0] sm:$0xff]  ;;  %v1585_v3 = vld [vmem:[#allocation9 + $0x718] sm:$0xff] }
 0x1fe   : > { %v1047_v2 = vsel %vm1003_vm2, %v1045_v53, %v1046_v54  ;;  %v1133_v7 = vrot.slane %v1132_v60, 1  ;;  %v1134_v8 = vrot.slane %v1132_v60, 2  ;;  %3246 = vmatpush1.bf16.msra.mxu1 %v3245_v30  ;;  %v3247_v54 = vpack.c.bf16 %v1581_v47, %v1577_v38  ;;  %3180 = vmatprep.subr.bf16.mxu0 %v3179_v45  ;;  %v1591_v30 = vld [vmem:[#allocation9 + $0x748] sm:$0xff]  ;;  %v1597_v38 = vld [vmem:[#allocation9 + $0x778] sm:$0xff] }
 0x1ff   : > { %v1110_v9 = vpop.permute.xlu0 %1109  ;;  %v1049_v10 = vmax.f32 %v4093_v37, %v1047_v2  ;;  %v1587_v2 = vld [vmem:[#allocation9 + $0x728] sm:$0xff] }
 0x200   : > { %v1111_v19 = vrot.slane %v1110_v9, 1  ;;  %v1112_v16 = vrot.slane %v1110_v9, 2  ;;  %v1135_v44 = vsel %vm1003_vm2, %v1133_v7, %v1134_v8  ;;  %3248 = vmatprep.subr.bf16.mxu1 %v3247_v54  ;;  %v1589_v9 = vld [vmem:[#allocation9 + $0x738] sm:$0xff] }
 0x201   : > { %1073 = vrot.lane.b32.xlu1 %v1071_v29, %s3812_s7  ;;  %1051 = vrot.lane.b32.xlu0 %v1049_v10, %s3812_s7  ;;  %v1176_v21 = vpop.permute.xlu1 %1175  ;;  %v1137_v62 = vmax.f32 %v4097_v40, %v1135_v44  ;;  %v1583_v29 = vld [vmem:[#allocation9 + $0x708] sm:$0xff]  ;;  %v1582_v10 = vld [vmem:[#allocation9 + $0x700] sm:$0xff]  ;;  %v3251_v14 = vpack.c.bf16 %v1589_v9, %v1585_v3 }
 0x202   : > { %v1177_v31 = vrot.slane %v1176_v21, 1  ;;  %v1178_v37 = vrot.slane %v1176_v21, 2  ;;  %v1113_v32 = vsel %vm1003_vm2, %v1111_v19, %v1112_v16  ;;  %3182 = vmatpush1.bf16.msra.mxu0 %v3181_v59  ;;  %v3183_v8 = vpack.c.bf16 %v1587_v2, %v1583_v29  ;;  %v1588_v19 = vld [vmem:[#allocation9 + $0x730] sm:$0xff]  ;;  %v1601_v59 = vld [vmem:[#allocation9 + $0x798] sm:$0xff]  ;;  %v1598_v3 = vld [vmem:[#allocation9 + $0x780] sm:$0xff] }
 0x203   : > { %v1154_v39 = vpop.permute.xlu0 %1153  ;;  %v1115_v42 = vmax.f32 %v4101_v43, %v1113_v32  ;;  %v3249_v43 = vpack.c.bf16 %v1580_v56, %v1576_v34  ;;  %v3185_v17 = vpack.c.bf16 %v1586_v12, %v1582_v10  ;;  %v3253_v18 = vpack.c.bf16 %v1588_v19, %v1584_v15  ;;  %v1599_v56 = vld [vmem:[#allocation9 + $0x788] sm:$0xff]  ;;  %v1605_v2 = vld [vmem:[#allocation9 + $0x7b8] sm:$0xff] }
 0x204   : > { %v1155_v51 = vrot.slane %v1154_v39, 1  ;;  %v1156_v53 = vrot.slane %v1154_v39, 2  ;;  %v1179_v63 = vsel %vm1003_vm2, %v1177_v31, %v1178_v37  ;;  %3184 = vmatprep.subr.bf16.mxu0 %v3183_v8  ;;  %v1595_v31 = vld [vmem:[#allocation9 + $0x768] sm:$0xff]  ;;  %v1593_v37 = vld [vmem:[#allocation9 + $0x758] sm:$0xff]  ;;  %v1590_v39 = vld [vmem:[#allocation9 + $0x740] sm:$0xff] }
 0x205   : > { %1117 = vrot.lane.b32.xlu1 %v1115_v42, %s3812_s7  ;;  %1095 = vrot.lane.b32.xlu0 %v1093_v33, %s3812_s7  ;;  %v1220_v57 = vpop.permute.xlu1 %1219  ;;  %v1181_v25 = vmax.f32 %v4105_v46, %v1179_v63  ;;  %v3187_v36 = vpack.c.bf16 %v1595_v31, %v1591_v30  ;;  %v1594_v42 = vld [vmem:[#allocation9 + $0x760] sm:$0xff]  ;;  %v3255_v47 = vpack.c.bf16 %v1597_v38, %v1593_v37  ;;  %v1592_v46 = vld [vmem:[#allocation9 + $0x750] sm:$0xff]  ;;  %v1607_v9 = vld [vmem:[#allocation9 + $0x7c8] sm:$0xff] }
 0x206   : > { %v1157_v60 = vsel %vm1003_vm2, %v1155_v51, %v1156_v53  ;;  %v1221_v4 = vrot.slane %v1220_v57, 1  ;;  %v1222_v5 = vrot.slane %v1220_v57, 2  ;;  %3250 = vmatpush1.bf16.msra.mxu1 %v3249_v43  ;;  %3186 = vmatpush1.bf16.msra.mxu0 %v3185_v17  ;;  %v3189_v51 = vpack.c.bf16 %v1594_v42, %v1590_v39  ;;  %v1603_v57 = vld [vmem:[#allocation9 + $0x7a8] sm:$0xff]  ;;  %v1604_v8 = vld [vmem:[#allocation9 + $0x7b0] sm:$0xff]  ;;  %v1606_v17 = vld [vmem:[#allocation9 + $0x7c0] sm:$0xff] }
 0x207   : > { %v1198_v6 = vpop.permute.xlu0 %1197  ;;  %v1159_v7 = vmax.f32 %v4109_v49, %v1157_v60  ;;  %3252 = vmatprep.subr.bf16.mxu1 %v3251_v14  ;;  %3188 = vmatprep.subr.bf16.mxu0 %v3187_v36  ;;  %v3191_v29 = vpack.c.bf16 %v1603_v57, %v1599_v56  ;;  %v1613_v14 = vld [vmem:[#allocation9 + $0x7f8] sm:$0xff]  ;;  %v1612_v30 = vld [vmem:[#allocation9 + $0x7f0] sm:$0xff]  ;;  %v1615_v31 = vld [vmem:[#allocation9 + $0x808] sm:$0xff] }
 0x208   : > { %v1199_v13 = vrot.slane %v1198_v6, 1  ;;  %v1200_v40 = vrot.slane %v1198_v6, 2  ;;  %v1223_v35 = vsel %vm1003_vm2, %v1221_v4, %v1222_v5  ;;  %v1602_v4 = vld [vmem:[#allocation9 + $0x7a0] sm:$0xff]  ;;  %v3259_v6 = vpack.c.bf16 %v1605_v2, %v1601_v59  ;;  %v1619_v37 = vld [vmem:[#allocation9 + $0x828] sm:$0xff]  ;;  %v1617_v38 = vld [vmem:[#allocation9 + $0x818] sm:$0xff] }
 0x209   : > { %1161 = vrot.lane.b32.xlu1 %v1159_v7, %s3812_s7  ;;  %1139 = vrot.lane.b32.xlu0 %v1137_v62, %s3812_s7  ;;  %v1264_v16 = vpop.permute.xlu1 %1263  ;;  %v1225_v54 = vmax.f32 %v4113_v52, %v1223_v35  ;;  %v1600_v7 = vld [vmem:[#allocation9 + $0x790] sm:$0xff]  ;;  %v3193_v12 = vpack.c.bf16 %v1602_v4, %v1598_v3  ;;  %v3199_v36 = vpack.c.bf16 %v1619_v37, %v1615_v31  ;;  %v1621_v39 = vld [vmem:[#allocation9 + $0x838] sm:$0xff]  ;;  %v1614_v42 = vld [vmem:[#allocation9 + $0x800] sm:$0xff] }
 0x20a   : > { %v1265_v20 = vrot.slane %v1264_v16, 1  ;;  %v1266_v49 = vrot.slane %v1264_v16, 2  ;;  %v1201_v21 = vsel %vm1003_vm2, %v1199_v13, %v1200_v40  ;;  %3254 = vmatpush1.bf16.msra.mxu1 %v3253_v18  ;;  %3190 = vmatpush1.bf16.msra.mxu0 %v3189_v51  ;;  %v1611_v13 = vld [vmem:[#allocation9 + $0x7e8] sm:$0xff]  ;;  %v1609_v40 = vld [vmem:[#allocation9 + $0x7d8] sm:$0xff]  ;;  %v1610_v18 = vld [vmem:[#allocation9 + $0x7e0] sm:$0xff] }
 0x20b   : > { %v1242_v32 = vpop.permute.xlu0 %1241  ;;  %v1203_v33 = vmax.f32 %v4117_v55, %v1201_v21  ;;  %v3257_v55 = vpack.c.bf16 %v1596_v48, %v1592_v46  ;;  %3256 = vmatprep.subr.bf16.mxu1 %v3255_v47  ;;  %3192 = vmatprep.subr.bf16.mxu0 %v3191_v29  ;;  %v3195_v19 = vpack.c.bf16 %v1611_v13, %v1607_v9  ;;  %v1620_v47 = vld [vmem:[#allocation9 + $0x830] sm:$0xff]  ;;  %v1629_v56 = vld [vmem:[#allocation9 + $0x878] sm:$0xff] }
 0x20c   : > { %v1243_v44 = vrot.slane %v1242_v32, 1  ;;  %v1244_v45 = vrot.slane %v1242_v32, 2  ;;  %v1267_v34 = vsel %vm1003_vm2, %v1265_v20, %v1266_v49  ;;  %v3263_v16 = vpack.c.bf16 %v1613_v14, %v1609_v40  ;;  %v1608_v20 = vld [vmem:[#allocation9 + $0x7d0] sm:$0xff]  ;;  %v1358_v59 = vld [vmem:[#allocation9 + $0x38] sm:$0xff] }
 0x20d   : > { %1205 = vrot.lane.b32.xlu1 %v1203_v33, %s3812_s7  ;;  %1183 = vrot.lane.b32.xlu0 %v1181_v25, %s3812_s7  ;;  %v1308_v50 = vpop.permute.xlu1 %1307  ;;  %v1269_v10 = vmax.f32 %v4121_v58, %v1267_v34  ;;  %v3197_v58 = vpack.c.bf16 %v1610_v18, %v1606_v17  ;;  %v3265_v35 = vpack.c.bf16 %v1612_v30, %v1608_v20  ;;  %v1625_v34 = vld [vmem:[#allocation9 + $0x858] sm:$0xff] }
 0x20e   : > { %v1245_v53 = vsel %vm1003_vm2, %v1243_v44, %v1244_v45  ;;  %v1309_v43 = vrot.slane %v1308_v50, 1  ;;  %v1310_v60 = vrot.slane %v1308_v50, 2  ;;  %3258 = vmatpush1.bf16.msra.mxu1 %v3257_v55  ;;  %3194 = vmatpush1.bf16.msra.mxu0 %v3193_v12  ;;  %v1618_v44 = vld [vmem:[#allocation9 + $0x820] sm:$0xff]  ;;  %v1616_v45 = vld [vmem:[#allocation9 + $0x810] sm:$0xff]  ;;  %v3271_v57 = vpack.c.bf16 %v1629_v56, %v1625_v34  ;;  %v1356_v56 = vld [vmem:[#allocation9 + $0x28] sm:$0xff] }
 0x20f   : > { %v1286_v62 = vpop.permute.xlu0 %1285  ;;  %v1247_v63 = vmax.f32 %v4125_v61, %v1245_v53  ;;  %v3261_v61 = vpack.c.bf16 %v1604_v8, %v1600_v7  ;;  %3260 = vmatprep.subr.bf16.mxu1 %v3259_v6  ;;  %3196 = vmatprep.subr.bf16.mxu0 %v3195_v19  ;;  %v3201_v51 = vpack.c.bf16 %v1618_v44, %v1614_v42  ;;  %v1623_v53 = vld [vmem:[#allocation9 + $0x848] sm:$0xff] }
 0x210   : > { %v1287_v5 = vrot.slane %v1286_v62, 1  ;;  %v1288_v52 = vrot.slane %v1286_v62, 2  ;;  %v1311_v25 = vsel %vm1003_vm2, %v1309_v43, %v1310_v60  ;;  %v3269_v55 = vpack.c.bf16 %v1620_v47, %v1616_v45 }
 0x211   : > { %1249 = vrot.lane.b32.xlu1 %v1247_v63, %s3812_s7  ;;  %1227 = vrot.lane.b32.xlu0 %v1225_v54, %s3812_s7  ;;  %v1313_v46 = vmax.f32 %v4129_v1, %v1311_v25  ;;  %v1627_v54 = vld [vmem:[#allocation9 + $0x868] sm:$0xff] }
 0x212   : > { %v1289_v15 = vsel %vm1003_vm2, %v1287_v5, %v1288_v52  ;;  %3262 = vmatpush1.bf16.msra.mxu1 %v3261_v61  ;;  %3198 = vmatpush1.bf16.msra.mxu0 %v3197_v58  ;;  %v3203_v1 = vpack.c.bf16 %v1627_v54, %v1623_v53  ;;  %v1628_v53 = vld [vmem:[#allocation9 + $0x870] sm:$0xff]  ;;  %v1352_v54 = vld [vmem:[#allocation9 + $0x8] sm:$0xff] }
 0x213   : > { %v1330_v49 = vpop.permute.xlu0 %1329  ;;  %v1291_v21 = vmax.f32 %v4133_v11, %v1289_v15  ;;  %3264 = vmatprep.subr.bf16.mxu1 %v3263_v16  ;;  %v3267_v11 = vpack.c.bf16 %v1621_v39, %v1617_v38  ;;  %3200 = vmatprep.subr.bf16.mxu0 %v3199_v36 }
 0x214   : > { %v1331_v32 = vrot.slane %v1330_v49, 1  ;;  %v1332_v33 = vrot.slane %v1330_v49, 2 }
 0x215   : > { %1271 = vrot.lane.b32.xlu0 %v1269_v10, %s3812_s7  ;;  %1293 = vrot.lane.b32.xlu1 %v1291_v21, %s3812_s7 }
 0x216   : > { %v1333_v48 = vsel %vm1003_vm2, %v1331_v32, %v1332_v33  ;;  %3266 = vmatpush1.bf16.msra.mxu1 %v3265_v35  ;;  %3202 = vmatpush1.bf16.msra.mxu0 %v3201_v51  ;;  %v1626_v51 = vld [vmem:[#allocation9 + $0x860] sm:$0xff] }
 0x217   : > { %v1335_v50 = vmax.f32 %v4137_v41, %v1333_v48  ;;  %3268 = vmatprep.subr.bf16.mxu1 %v3267_v11  ;;  %3204 = vmatprep.subr.bf16.mxu0 %v3203_v1 }
 0x219   : > { %1315 = vrot.lane.b32.xlu0 %v1313_v46, %s3812_s7  ;;  %1337 = vrot.lane.b32.xlu1 %v1335_v50, %s3812_s7  ;;  %v1622_v46 = vld [vmem:[#allocation9 + $0x840] sm:$0xff] }
 0x21a   : > { %3270 = vmatpush1.bf16.msra.mxu1 %v3269_v55  ;;  %v1624_v55 = vld [vmem:[#allocation9 + $0x850] sm:$0xff] }
 0x21b   : > { %3272 = vmatprep.subr.bf16.mxu1 %v3271_v57 }
 0x26f   : > { %v1026_v41 = vpop.permute.xlu1 %1025 }
 0x270   : > { %v1027_v43 = vrot.slane %v1026_v41, 7 }
 0x272   : > { %v1028_v60 = vsel %vm1003_vm2, %v1027_v43, %v1026_v41 }
 0x273   : > { %1035 = vst.msk [vmem:[#allocation3 + $0x1] ss:$8 sm:$0x3] %vm4188_vm6, %v1028_v60  ;;  %v1074_v62 = vpop.permute.xlu1 %1073  ;;  %v1052_v63 = vpop.permute.xlu0 %1051 }
 0x274   : > { %v1075_v29 = vrot.slane %v1074_v62, 7  ;;  %v1053_v2 = vrot.slane %v1052_v63, 7 }
 0x276   : > { %v1076_v3 = vsel %vm1003_vm2, %v1075_v29, %v1074_v62  ;;  %v1054_v4 = vsel %vm1003_vm2, %v1053_v2, %v1052_v63  ;;  %v1354_v62 = vld [vmem:[#allocation9 + $0x18] sm:$0xff]  ;;  %v3205_v63 = vpack.c.bf16 %v1626_v51, %v1622_v46  ;;  %v1489_v29 = vld [vmem:[#allocation3 + $0x10] sm:$0xfe] }
 0x277   : > { %1079 = vst.msk [vmem:[#allocation3 + $0x3] ss:$8 sm:$0x3] %vm4188_vm6, %v1076_v3  ;;  %1057 = vst.msk [vmem:[#allocation3 + $0x2] ss:$8 sm:$0x3] %vm4188_vm6, %v1054_v4  ;;  %v1118_v5 = vpop.permute.xlu1 %1117  ;;  %v1096_v52 = vpop.permute.xlu0 %1095 }
 0x278   : > { %v1119_v6 = vrot.slane %v1118_v5, 7  ;;  %v1097_v7 = vrot.slane %v1096_v52, 7  ;;  %v1492_v2 = vld [vmem:[#allocation3 + $0x28] sm:$0xff] }
 0x279   : > { %v1378_v46 = vld [vmem:[#allocation9 + $0xd8] sm:$0xff] }
 0x27a   : > { %v1120_v8 = vsel %vm1003_vm2, %v1119_v6, %v1118_v5  ;;  %v1098_v9 = vsel %vm1003_vm2, %v1097_v7, %v1096_v52  ;;  %v3273_v5 = vpack.c.bf16 %v1628_v53, %v1624_v55  ;;  %v3275_v52 = vpack.c.bf16 %v1356_v56, %v1352_v54  ;;  %v1375_v53 = vld [vmem:[#allocation9 + $0xc0] sm:$0xff] }
 0x27b   : > { %1123 = vst.msk [vmem:[#allocation3 + $0x5] ss:$8 sm:$0x3] %vm4188_vm6, %v1120_v8  ;;  %1101 = vst.msk [vmem:[#allocation3 + $0x4] ss:$8 sm:$0x3] %vm4188_vm6, %v1098_v9  ;;  %v1162_v10 = vpop.permute.xlu1 %1161  ;;  %v1140_v12 = vpop.permute.xlu0 %1139  ;;  %v3343_v6 = vpack.c.bf16 %v1358_v59, %v1354_v62 }
 0x27c   : > { %v1163_v61 = vrot.slane %v1162_v10, 7  ;;  %v1141_v13 = vrot.slane %v1140_v12, 7  ;;  %v1643_v7 = vrot.slane %v1489_v29, 1  ;;  %v1644_v8 = vrot.slane %v1492_v2, 1  ;;  %v1351_v9 = vld [vmem:[#allocation9] sm:$0xff]  ;;  %v1386_v62 = vld [vmem:[#allocation9 + $0x118] sm:$0xff] }
 0x27d   : > { %v1379_v54 = vld [vmem:[#allocation9 + $0xe0] sm:$0xff]  ;;  %v1390_v59 = vld [vmem:[#allocation9 + $0x138] sm:$0xff] }
 0x27e   : > { %v1164_v40 = vsel %vm1003_vm2, %v1163_v61, %v1162_v10  ;;  %v1142_v14 = vsel %vm1003_vm2, %v1141_v13, %v1140_v12  ;;  %v1355_v10 = vld [vmem:[#allocation9 + $0x20] sm:$0xff]  ;;  %v1353_v12 = vld [vmem:[#allocation9 + $0x10] sm:$0xff]  ;;  %v1360_v13 = vld [vmem:[#allocation9 + $0x48] sm:$0xff] }
 0x27f   : > { %1167 = vst.msk [vmem:[#allocation3 + $0x7] ss:$8 sm:$0x3] %vm4188_vm6, %v1164_v40  ;;  %1145 = vst.msk [vmem:[#allocation3 + $0x6] ss:$8 sm:$0x3] %vm4188_vm6, %v1142_v14  ;;  %v1206_v15 = vpop.permute.xlu1 %1205  ;;  %v1184_v19 = vpop.permute.xlu0 %1183 }
 0x280   : > { %v1207_v16 = vrot.slane %v1206_v15, 7  ;;  %v1185_v17 = vrot.slane %v1184_v19, 7  ;;  %v1357_v61 = vld [vmem:[#allocation9 + $0x30] sm:$0xff]  ;;  %v1364_v40 = vld [vmem:[#allocation9 + $0x68] sm:$0xff]  ;;  %v1362_v14 = vld [vmem:[#allocation9 + $0x58] sm:$0xff] }
 0x281   : > { %v1383_v2 = vld [vmem:[#allocation9 + $0x100] sm:$0xff] }
 0x282   : > { %v1208_v18 = vsel %vm1003_vm2, %v1207_v16, %v1206_v15  ;;  %v1186_v20 = vsel %vm1003_vm2, %v1185_v17, %v1184_v19  ;;  %v1366_v15 = vld [vmem:[#allocation9 + $0x78] sm:$0xff]  ;;  %v1645_v19 = vsel %vm1636_vm7, %v1643_v7, %v1644_v8  ;;  %v3277_v16 = vpack.c.bf16 %v1355_v10, %v1351_v9  ;;  %v1392_v7 = vld [vmem:[#allocation9 + $0x148] sm:$0xff] }
 0x283   : > { %1211 = vst.msk [vmem:[#allocation3 + $0x19] ss:$8 sm:$0x3] %vm4188_vm6, %v1208_v18  ;;  %1189 = vst.msk [vmem:[#allocation3 + $0x18] ss:$8 sm:$0x3] %vm4188_vm6, %v1186_v20  ;;  %v1250_v49 = vpop.permute.xlu1 %1249  ;;  %v1228_v21 = vpop.permute.xlu0 %1227  ;;  %v3345_v17 = vpack.c.bf16 %v1357_v61, %v1353_v12 }
 0x284   : > { %v1251_v25 = vrot.slane %v1250_v49, 7  ;;  %v1229_v58 = vrot.slane %v1228_v21, 7  ;;  %v1359_v18 = vld [vmem:[#allocation9 + $0x40] sm:$0xff]  ;;  %v1394_v9 = vld [vmem:[#allocation9 + $0x158] sm:$0xff] }
 0x285   : > { %v1363_v20 = vld [vmem:[#allocation9 + $0x60] sm:$0xff]  ;;  %v1398_v10 = vld [vmem:[#allocation9 + $0x178] sm:$0xff] }
 0x286   : > { %v1252_v30 = vsel %vm1003_vm2, %v1251_v25, %v1250_v49  ;;  %v1230_v31 = vsel %vm1003_vm2, %v1229_v58, %v1228_v21  ;;  %v1488_v48 = vld [vmem:[#allocation3 + $0x8] sm:$0xfe]  ;;  %v1487_v50 = vld [vmem:[#allocation3] sm:$0xfe]  ;;  %v3279_v25 = vpack.c.bf16 %v1364_v40, %v1360_v13  ;;  %v3347_v58 = vpack.c.bf16 %v1366_v15, %v1362_v14 }
 0x287   : > { %1255 = vst.msk [vmem:[#allocation3 + $0x1b] ss:$8 sm:$0x3] %vm4188_vm6, %v1252_v30  ;;  %1233 = vst.msk [vmem:[#allocation3 + $0x1a] ss:$8 sm:$0x3] %vm4188_vm6, %v1230_v31  ;;  %v1294_v37 = vpop.permute.xlu1 %1293  ;;  %v1272_v32 = vpop.permute.xlu0 %1271  ;;  %v3363_v15 = vpack.c.bf16 %v1398_v10, %v1394_v9 }
 0x288   : > { %v1295_v33 = vrot.slane %v1294_v37, 7  ;;  %v1273_v35 = vrot.slane %v1272_v32, 7  ;;  %v1640_v57 = vrot.slane %v1488_v48, 1  ;;  %v1637_v43 = vrot.slane %v1487_v50, 1  ;;  %v1361_v49 = vld [vmem:[#allocation9 + $0x50] sm:$0xff]  ;;  %v1368_v30 = vld [vmem:[#allocation9 + $0x88] sm:$0xff] }
 0x289   : > { %v1365_v21 = vld [vmem:[#allocation9 + $0x70] sm:$0xff]  ;;  %v1372_v31 = vld [vmem:[#allocation9 + $0xa8] sm:$0xff]  ;;  %v1382_v48 = vld [vmem:[#allocation9 + $0xf8] sm:$0xff] }
 0x28a   : > { %v1296_v36 = vsel %vm1003_vm2, %v1295_v33, %v1294_v37  ;;  %v1274_v38 = vsel %vm1003_vm2, %v1273_v35, %v1272_v32  ;;  %v1370_v37 = vld [vmem:[#allocation9 + $0x98] sm:$0xff]  ;;  %v3281_v33 = vpack.c.bf16 %v1363_v20, %v1359_v18  ;;  %v3349_v35 = vpack.c.bf16 %v1365_v21, %v1361_v49  ;;  %v1391_v13 = vld [vmem:[#allocation9 + $0x140] sm:$0xff]  ;;  %v1404_v18 = vld [vmem:[#allocation9 + $0x1a8] sm:$0xff] }
 0x28b   : > { %1299 = vst.msk [vmem:[#allocation3 + $0x1d] ss:$8 sm:$0x3] %vm4188_vm6, %v1296_v36  ;;  %1277 = vst.msk [vmem:[#allocation3 + $0x1c] ss:$8 sm:$0x3] %vm4188_vm6, %v1274_v38  ;;  %v1338_v39 = vpop.permute.xlu1 %1337  ;;  %v1316_v42 = vpop.permute.xlu0 %1315  ;;  %v3355_v56 = vpack.c.bf16 %v1382_v48, %v1378_v46 }
 0x28c   : > { %v1339_v11 = vrot.slane %v1338_v39, 7  ;;  %v1317_v44 = vrot.slane %v1316_v42, 7  ;;  %v1374_v32 = vld [vmem:[#allocation9 + $0xb8] sm:$0xff]  ;;  %v1367_v36 = vld [vmem:[#allocation9 + $0x80] sm:$0xff]  ;;  %v1409_v48 = vld [vmem:[#allocation9 + $0x1d0] sm:$0xff] }
 0x28d   : > { %v1371_v38 = vld [vmem:[#allocation9 + $0xa0] sm:$0xff]  ;;  %v1402_v20 = vld [vmem:[#allocation9 + $0x198] sm:$0xff]  ;;  %v1425_v9 = vld [vmem:[#allocation9 + $0x250] sm:$0xff] }
 0x28e   : > { %v1340_v45 = vsel %vm1003_vm2, %v1339_v11, %v1338_v39  ;;  %v1318_v47 = vsel %vm1003_vm2, %v1317_v44, %v1316_v42  ;;  %v1369_v39 = vld [vmem:[#allocation9 + $0x90] sm:$0xff]  ;;  %v1376_v11 = vld [vmem:[#allocation9 + $0xc8] sm:$0xff]  ;;  %v3283_v44 = vpack.c.bf16 %v1372_v31, %v1368_v30  ;;  %v1346_v50 = vld [vmem:[#allocation3 + $0x8] sm:$0xff]  ;;  %v3285_v51 = vpack.c.bf16 %v1371_v38, %v1367_v36 }
 0x28f   : > { %1343 = vst.msk [vmem:[#allocation3 + $0x1f] ss:$8 sm:$0x3] %vm4188_vm6, %v1340_v45  ;;  %1321 = vst.msk [vmem:[#allocation3 + $0x1e] ss:$8 sm:$0x3] %vm4188_vm6, %v1318_v47  ;;  %v3351_v45 = vpack.c.bf16 %v1374_v32, %v1370_v37 }
 0x290   : > { %v1373_v42 = vld [vmem:[#allocation9 + $0xb0] sm:$0xff]  ;;  %v1380_v47 = vld [vmem:[#allocation9 + $0xe8] sm:$0xff]  ;;  %v1395_v40 = vld [vmem:[#allocation9 + $0x160] sm:$0xff] }
 0x291   : > { %v3353_v55 = vpack.c.bf16 %v1373_v42, %v1369_v39  ;;  %v1406_v49 = vld [vmem:[#allocation9 + $0x1b8] sm:$0xff]  ;;  %v3297_v21 = vpack.c.bf16 %v1395_v40, %v1391_v13  ;;  %v1403_v30 = vld [vmem:[#allocation9 + $0x1a0] sm:$0xff]  ;;  %v1401_v32 = vld [vmem:[#allocation9 + $0x190] sm:$0xff] }
 0x292   : > { %v3367_v37 = vpack.c.bf16 %v1406_v49, %v1402_v20  ;;  %v1412_v36 = vld [vmem:[#allocation9 + $0x1e8] sm:$0xff]  ;;  %v1410_v38 = vld [vmem:[#allocation9 + $0x1d8] sm:$0xff]  ;;  %v1429_v10 = vld [vmem:[#allocation9 + $0x270] sm:$0xff] }
 0x293   : > { %v1414_v39 = vld [vmem:[#allocation9 + $0x1f8] sm:$0xff]  ;;  %v1433_v20 = vld [vmem:[#allocation9 + $0x290] sm:$0xff] }
 0x294   : > { %v3371_v46 = vpack.c.bf16 %v1414_v39, %v1410_v38  ;;  %v1434_v13 = vld [vmem:[#allocation9 + $0x298] sm:$0xff]  ;;  %v1437_v49 = vld [vmem:[#allocation9 + $0x2b0] sm:$0xff] }
 0x295   : > { %v1438_v40 = vld [vmem:[#allocation9 + $0x2b8] sm:$0xff]  ;;  %v1441_v38 = vld [vmem:[#allocation9 + $0x2d0] sm:$0xff] }
 0x296   : > { %v4237_v34 = vld [vmem:[#allocation3 + $0x20] sm:$0xff]  ;;  %v1490_v1 = vld [vmem:[#allocation3 + $0x18] sm:$0xff] }
 0x297   : > { %v1641_v41 = vrot.slane %v4237_v34, 1  ;;  %v1638_v60 = vrot.slane %v1490_v1, 1  ;;  %v3287_v1 = vpack.c.bf16 %v1380_v47, %v1376_v11  ;;  %v1445_v39 = vld [vmem:[#allocation9 + $0x2f0] sm:$0xff] }
 0x299   : > { %v1642_v3 = vsel %vm1636_vm7, %v1640_v57, %v1641_v41  ;;  %v1639_v4 = vsel %vm1636_vm7, %v1637_v43, %v1638_v60  ;;  %v1377_v57 = vld [vmem:[#allocation9 + $0xd0] sm:$0xff]  ;;  %v1384_v43 = vld [vmem:[#allocation9 + $0x108] sm:$0xff] }
 0x29a   : > { %1718 = vmatprep.mubr.f32.mxu0 %v1642_v3  ;;  %1872 = vmatprep.mubr.f32.mxu1 %v1642_v3  ;;  %v1387_v3 = vld [vmem:[#allocation9 + $0x120] sm:$0xff] }
 0x29b   : > { %1719 = vmatmul.mubr.f32.vlgmr.msra.gmra.mrb[8].mxu0 %v1639_v4  ;;  %1873 = vmatmul.mubr.f32.vlgmr.msra.gmra.mrb[8].mxu1 %v1639_v4  ;;  %v3293_v12 = vpack.c.bf16 %v1387_v3, %v1383_v2  ;;  %v1426_v2 = vld [vmem:[#allocation9 + $0x258] sm:$0xff] }
 0x29c   : > { %1724 = vmatprep.mubr.f32.mxu0 %v1641_v41  ;;  %3206 = vmatpush1.bf16.msra.mxu0 %v3205_v63  ;;  %v3289_v63 = vpack.c.bf16 %v1379_v54, %v1375_v53  ;;  %v1418_v53 = vld [vmem:[#allocation9 + $0x218] sm:$0xff] }
 0x29d   : > { %1878 = vmatprep.mubr.f32.mxu1 %v1641_v41  ;;  %3274 = vmatpush1.bf16.msra.mxu1 %v3273_v5  ;;  %v1381_v41 = vld [vmem:[#allocation9 + $0xf0] sm:$0xff]  ;;  %v3359_v5 = vpack.c.bf16 %v1390_v59, %v1386_v62  ;;  %v1422_v54 = vld [vmem:[#allocation9 + $0x238] sm:$0xff] }
 0x29e   : > { %3276 = vmatprep.subr.bf16.mxu0 %v3275_v52  ;;  %3344 = vmatprep.subr.bf16.mxu1 %v3343_v6  ;;  %v3357_v29 = vpack.c.bf16 %v1381_v41, %v1377_v57  ;;  %v1385_v52 = vld [vmem:[#allocation9 + $0x110] sm:$0xff]  ;;  %v1415_v57 = vld [vmem:[#allocation9 + $0x200] sm:$0xff]  ;;  %v1430_v3 = vld [vmem:[#allocation9 + $0x278] sm:$0xff] }
 0x29f   : > { %1725 = vmatmul.mubr.f32.gmra.mrb[10].mxu0 %v1638_v60  ;;  %1879 = vmatmul.mubr.f32.gmra.mrb[10].mxu1 %v1638_v60  ;;  %v1388_v60 = vld [vmem:[#allocation9 + $0x128] sm:$0xff]  ;;  %v1389_v6 = vld [vmem:[#allocation9 + $0x130] sm:$0xff]  ;;  %v1419_v41 = vld [vmem:[#allocation9 + $0x220] sm:$0xff] }
 0x2a0   : > { %1795 = vmatprep.mubr.f32.mxu0 %v3811_v0  ;;  %1949 = vmatprep.mubr.f32.mxu1 %v3811_v0  ;;  %v3291_v4 = vpack.c.bf16 %v1388_v60, %v1384_v43  ;;  %v3361_v61 = vpack.c.bf16 %v1389_v6, %v1385_v52  ;;  %v3375_v60 = vpack.c.bf16 %v1422_v54, %v1418_v53  ;;  %v1417_v62 = vld [vmem:[#allocation9 + $0x210] sm:$0xff]  ;;  %v1423_v52 = vld [vmem:[#allocation9 + $0x240] sm:$0xff] }
 0x2a1   : > { %v1421_v59 = vld [vmem:[#allocation9 + $0x230] sm:$0xff]  ;;  %v1427_v6 = vld [vmem:[#allocation9 + $0x260] sm:$0xff] }
 0x2a2   : > { %v1449_v53 = vld [vmem:[#allocation9 + $0x310] sm:$0xff] }
 0x2a3   : > { %3069 = vmatmul.mubr.msk.f32.vlgmr.msra.gmra.mrb[8].mxu0 %vm1003_vm2, %v1645_v19  ;;  %3071 = vmatmul.mubr.msk.f32.vlgmr.msra.gmra.mrb[8].mxu1 %vm1003_vm2, %v1645_v19  ;;  %v1393_v19 = vld [vmem:[#allocation9 + $0x150] sm:$0xff] }
 0x2a4   : > { %3278 = vmatpush1.bf16.msra.mxu0 %v3277_v16  ;;  %3346 = vmatpush1.bf16.msra.mxu1 %v3345_v17  ;;  %v1397_v16 = vld [vmem:[#allocation9 + $0x170] sm:$0xff]  ;;  %v1400_v17 = vld [vmem:[#allocation9 + $0x188] sm:$0xff] }
 0x2a5   : > { %1801 = vmatprep.mubr.f32.mxu0 %v3811_v0  ;;  %1955 = vmatprep.mubr.f32.mxu1 %v3811_v0  ;;  %v3299_v31 = vpack.c.bf16 %v1404_v18, %v1400_v17  ;;  %v3383_v18 = vpack.c.bf16 %v1438_v40, %v1434_v13  ;;  %v1453_v54 = vld [vmem:[#allocation9 + $0x330] sm:$0xff] }
 0x2a6   : > { %3280 = vmatprep.subr.bf16.mxu0 %v3279_v25  ;;  %3348 = vmatprep.subr.bf16.mxu1 %v3347_v58  ;;  %v3365_v25 = vpack.c.bf16 %v1397_v16, %v1393_v19  ;;  %v1399_v58 = vld [vmem:[#allocation9 + $0x180] sm:$0xff]  ;;  %v1465_v13 = vld [vmem:[#allocation9 + $0x390] sm:$0xff] }
 0x2a7   : > { %3070 = vmatmul.mubr.msk.f32.gmra.mrb[10].mxu0 %vm1003_vm2, %v1644_v8  ;;  %3072 = vmatmul.mubr.msk.f32.gmra.mrb[10].mxu1 %vm1003_vm2, %v1644_v8  ;;  %v1396_v8 = vld [vmem:[#allocation9 + $0x168] sm:$0xff]  ;;  %v3301_v42 = vpack.c.bf16 %v1403_v30, %v1399_v58  ;;  %v1431_v19 = vld [vmem:[#allocation9 + $0x280] sm:$0xff]  ;;  %v1442_v58 = vld [vmem:[#allocation9 + $0x2d8] sm:$0xff] }
 0x2a8   : > { %3282 = vmatpush1.bf16.msra.mxu0 %v3281_v33  ;;  %3350 = vmatpush1.bf16.msra.mxu1 %v3349_v35  ;;  %v3295_v14 = vpack.c.bf16 %v1396_v8, %v1392_v7  ;;  %v1405_v33 = vld [vmem:[#allocation9 + $0x1b0] sm:$0xff]  ;;  %v1408_v35 = vld [vmem:[#allocation9 + $0x1c8] sm:$0xff]  ;;  %v3379_v8 = vpack.c.bf16 %v1430_v3, %v1426_v2  ;;  %v1435_v16 = vld [vmem:[#allocation9 + $0x2a0] sm:$0xff] }
 0x2a9   : > { %2032 = vmatprep.mubr.f32.mxu0 %v1346_v50  ;;  %2186 = vmatprep.mubr.f32.mxu1 %v1346_v50  ;;  %v3369_v11 = vpack.c.bf16 %v1405_v33, %v1401_v32  ;;  %v3303_v47 = vpack.c.bf16 %v1412_v36, %v1408_v35  ;;  %v1413_v50 = vld [vmem:[#allocation9 + $0x1f0] sm:$0xff]  ;;  %v1446_v30 = vld [vmem:[#allocation9 + $0x2f8] sm:$0xff]  ;;  %v1439_v32 = vld [vmem:[#allocation9 + $0x2c0] sm:$0xff] }
 0x2aa   : > { %3284 = vmatprep.subr.bf16.mxu0 %v3283_v44  ;;  %3352 = vmatprep.subr.bf16.mxu1 %v3351_v45  ;;  %v1407_v44 = vld [vmem:[#allocation9 + $0x1c0] sm:$0xff]  ;;  %v3387_v36 = vpack.c.bf16 %v1446_v30, %v1442_v58  ;;  %v1457_v2 = vld [vmem:[#allocation9 + $0x350] sm:$0xff] }
 0x2ab   : > { %v1411_v45 = vld [vmem:[#allocation9 + $0x1e0] sm:$0xff]  ;;  %v1461_v3 = vld [vmem:[#allocation9 + $0x370] sm:$0xff] }
 0x2ac   : > { %3286 = vmatpush1.bf16.msra.mxu0 %v3285_v51  ;;  %3354 = vmatpush1.bf16.msra.mxu1 %v3353_v55  ;;  %v1416_v51 = vld [vmem:[#allocation9 + $0x208] sm:$0xff]  ;;  %v1443_v33 = vld [vmem:[#allocation9 + $0x2e0] sm:$0xff]  ;;  %v1469_v40 = vld [vmem:[#allocation9 + $0x3b0] sm:$0xff] }
 0x2ad   : > { %3288 = vmatprep.subr.bf16.mxu0 %v3287_v1  ;;  %3356 = vmatprep.subr.bf16.mxu1 %v3355_v56  ;;  %v1420_v55 = vld [vmem:[#allocation9 + $0x228] sm:$0xff]  ;;  %v3305_v1 = vpack.c.bf16 %v1411_v45, %v1407_v44  ;;  %v3373_v56 = vpack.c.bf16 %v1413_v50, %v1409_v48  ;;  %v1450_v44 = vld [vmem:[#allocation9 + $0x318] sm:$0xff]  ;;  %v1447_v48 = vld [vmem:[#allocation9 + $0x300] sm:$0xff] }
 0x2ae   : > { %v3307_v43 = vpack.c.bf16 %v1420_v55, %v1416_v51  ;;  %v1454_v45 = vld [vmem:[#allocation9 + $0x338] sm:$0xff]  ;;  %v1451_v50 = vld [vmem:[#allocation9 + $0x320] sm:$0xff]  ;;  %v1473_v58 = vld [vmem:[#allocation9 + $0x3d0] sm:$0xff] }
 0x2af   : > { %v3391_v55 = vpack.c.bf16 %v1454_v45, %v1450_v44  ;;  %v1477_v30 = vld [vmem:[#allocation9 + $0x3f0] sm:$0xff] }
 0x2b0   : > { %3290 = vmatpush1.bf16.msra.mxu0 %v3289_v63  ;;  %3358 = vmatpush1.bf16.msra.mxu1 %v3357_v29  ;;  %v1424_v63 = vld [vmem:[#allocation9 + $0x248] sm:$0xff]  ;;  %v1481_v44 = vld [vmem:[#allocation9 + $0x410] sm:$0xff] }
 0x2b1   : > { %3292 = vmatprep.subr.bf16.mxu0 %v3291_v4  ;;  %3360 = vmatprep.subr.bf16.mxu1 %v3359_v5  ;;  %v1428_v29 = vld [vmem:[#allocation9 + $0x268] sm:$0xff]  ;;  %v3309_v4 = vpack.c.bf16 %v1419_v41, %v1415_v57  ;;  %v3377_v5 = vpack.c.bf16 %v1421_v59, %v1417_v62  ;;  %v1458_v57 = vld [vmem:[#allocation9 + $0x358] sm:$0xff]  ;;  %v1455_v62 = vld [vmem:[#allocation9 + $0x340] sm:$0xff] }
 0x2b2   : > { %v3311_v7 = vpack.c.bf16 %v1428_v29, %v1424_v63  ;;  %v1462_v41 = vld [vmem:[#allocation9 + $0x378] sm:$0xff]  ;;  %v1459_v59 = vld [vmem:[#allocation9 + $0x360] sm:$0xff]  ;;  %v1485_v45 = vld [vmem:[#allocation9 + $0x430] sm:$0xff] }
 0x2b3   : > { %v3395_v29 = vpack.c.bf16 %v1462_v41, %v1458_v57  ;;  %v2286_v57 = vld [vmem:[#allocation9 + $0x880] sm:$0xff] }
 0x2b4   : > { %3294 = vmatpush1.bf16.msra.mxu0 %v3293_v12  ;;  %3362 = vmatpush1.bf16.msra.mxu1 %v3361_v61  ;;  %v1432_v12 = vld [vmem:[#allocation9 + $0x288] sm:$0xff]  ;;  %v2290_v41 = vld [vmem:[#allocation9 + $0x8a0] sm:$0xff] }
 0x2b5   : > { %3296 = vmatprep.subr.bf16.mxu0 %v3295_v14  ;;  %3364 = vmatprep.subr.bf16.mxu1 %v3363_v15  ;;  %v1436_v61 = vld [vmem:[#allocation9 + $0x2a8] sm:$0xff]  ;;  %v3313_v14 = vpack.c.bf16 %v1427_v6, %v1423_v52  ;;  %v3381_v15 = vpack.c.bf16 %v1429_v10, %v1425_v9  ;;  %v1466_v52 = vld [vmem:[#allocation9 + $0x398] sm:$0xff]  ;;  %v1463_v9 = vld [vmem:[#allocation9 + $0x380] sm:$0xff] }
 0x2b6   : > { %v3315_v17 = vpack.c.bf16 %v1436_v61, %v1432_v12  ;;  %v1470_v6 = vld [vmem:[#allocation9 + $0x3b8] sm:$0xff]  ;;  %v1467_v10 = vld [vmem:[#allocation9 + $0x3a0] sm:$0xff] }
 0x2b7   : > { %v3399_v61 = vpack.c.bf16 %v1470_v6, %v1466_v52  ;;  %v2294_v52 = vld [vmem:[#allocation9 + $0x8c0] sm:$0xff] }
 0x2b8   : > { %3298 = vmatpush1.bf16.msra.mxu0 %v3297_v21  ;;  %3366 = vmatpush1.bf16.msra.mxu1 %v3365_v25  ;;  %v1440_v21 = vld [vmem:[#allocation9 + $0x2c8] sm:$0xff]  ;;  %v2298_v6 = vld [vmem:[#allocation9 + $0x8e0] sm:$0xff] }
 0x2b9   : > { %3300 = vmatprep.subr.bf16.mxu0 %v3299_v31  ;;  %3368 = vmatprep.subr.bf16.mxu1 %v3367_v37  ;;  %v1444_v25 = vld [vmem:[#allocation9 + $0x2e8] sm:$0xff]  ;;  %v3317_v31 = vpack.c.bf16 %v1435_v16, %v1431_v19  ;;  %v3385_v37 = vpack.c.bf16 %v1437_v49, %v1433_v20  ;;  %v1474_v19 = vld [vmem:[#allocation9 + $0x3d8] sm:$0xff]  ;;  %v1471_v20 = vld [vmem:[#allocation9 + $0x3c0] sm:$0xff] }
 0x2ba   : > { %v3319_v35 = vpack.c.bf16 %v1444_v25, %v1440_v21  ;;  %v1478_v16 = vld [vmem:[#allocation9 + $0x3f8] sm:$0xff]  ;;  %v1475_v49 = vld [vmem:[#allocation9 + $0x3e0] sm:$0xff] }
 0x2bb   : > { %v3403_v25 = vpack.c.bf16 %v1478_v16, %v1474_v19  ;;  %v3417_v19 = vpack.c.bf16 %v2298_v6, %v2294_v52  ;;  %v2328_v6 = vld [vmem:[#allocation9 + $0x9d0] sm:$0xff] }
 0x2bc   : > { %3302 = vmatpush1.bf16.msra.mxu0 %v3301_v42  ;;  %3370 = vmatpush1.bf16.msra.mxu1 %v3369_v11  ;;  %v1448_v42 = vld [vmem:[#allocation9 + $0x308] sm:$0xff] }
 0x2bd   : > { %3304 = vmatprep.subr.bf16.mxu0 %v3303_v47  ;;  %3372 = vmatprep.subr.bf16.mxu1 %v3371_v46  ;;  %v1452_v11 = vld [vmem:[#allocation9 + $0x328] sm:$0xff]  ;;  %v3321_v47 = vpack.c.bf16 %v1443_v33, %v1439_v32  ;;  %v3389_v46 = vpack.c.bf16 %v1445_v39, %v1441_v38  ;;  %v1482_v32 = vld [vmem:[#allocation9 + $0x418] sm:$0xff] }
 0x2be   : > { %v3323_v51 = vpack.c.bf16 %v1452_v11, %v1448_v42  ;;  %v1486_v33 = vld [vmem:[#allocation9 + $0x438] sm:$0xff]  ;;  %v1479_v42 = vld [vmem:[#allocation9 + $0x400] sm:$0xff] }
 0x2bf   : > { %v3407_v39 = vpack.c.bf16 %v1486_v33, %v1482_v32  ;;  %v1483_v11 = vld [vmem:[#allocation9 + $0x420] sm:$0xff]  ;;  %v2313_v32 = vld [vmem:[#allocation9 + $0x958] sm:$0xff] }
 0x2c0   : > { %3306 = vmatpush1.bf16.msra.mxu0 %v3305_v1  ;;  %3374 = vmatpush1.bf16.msra.mxu1 %v3373_v56  ;;  %v1456_v1 = vld [vmem:[#allocation9 + $0x348] sm:$0xff]  ;;  %v2317_v33 = vld [vmem:[#allocation9 + $0x978] sm:$0xff] }
 0x2c1   : > { %3308 = vmatprep.subr.bf16.mxu0 %v3307_v43  ;;  %3376 = vmatprep.subr.bf16.mxu1 %v3375_v60  ;;  %v1460_v56 = vld [vmem:[#allocation9 + $0x368] sm:$0xff]  ;;  %v3325_v43 = vpack.c.bf16 %v1451_v50, %v1447_v48  ;;  %v3393_v60 = vpack.c.bf16 %v1453_v54, %v1449_v53  ;;  %v2289_v48 = vld [vmem:[#allocation9 + $0x898] sm:$0xff] }
 0x2c2   : > { %v3327_v63 = vpack.c.bf16 %v1460_v56, %v1456_v1  ;;  %v2293_v50 = vld [vmem:[#allocation9 + $0x8b8] sm:$0xff] }
 0x2c3   : > { %v1345_v53 = vld [vmem:[#allocation3] sm:$0xff]  ;;  %v3479_v1 = vpack.c.bf16 %v2293_v50, %v2289_v48  ;;  %v2323_v48 = vld [vmem:[#allocation9 + $0x9a8] sm:$0xff] }
 0x2c4   : > { %3310 = vmatpush1.bf16.msra.mxu0 %v3309_v4  ;;  %3378 = vmatpush1.bf16.msra.mxu1 %v3377_v5  ;;  %v1464_v4 = vld [vmem:[#allocation9 + $0x388] sm:$0xff]  ;;  %v1349_v56 = vld [vmem:[#allocation3 + $0x20] sm:$0x7f] }
 0x2c5   : > { %3312 = vmatprep.subr.bf16.mxu0 %v3311_v7  ;;  %3380 = vmatprep.subr.bf16.mxu1 %v3379_v8  ;;  %v1468_v5 = vld [vmem:[#allocation9 + $0x3a8] sm:$0xff]  ;;  %v3329_v7 = vpack.c.bf16 %v1459_v59, %v1455_v62  ;;  %v3397_v8 = vpack.c.bf16 %v1461_v3, %v1457_v2  ;;  %v2301_v2 = vld [vmem:[#allocation9 + $0x8f8] sm:$0xff] }
 0x2c6   : > { %v3331_v12 = vpack.c.bf16 %v1468_v5, %v1464_v4  ;;  %v1348_v62 = vld [vmem:[#allocation3 + $0x18] sm:$0x7f]  ;;  %v1347_v3 = vld [vmem:[#allocation3 + $0x10] sm:$0xff]  ;;  %v3413_v4 = vpack.c.bf16 %v2290_v41, %v2286_v57  ;;  %v2321_v50 = vld [vmem:[#allocation9 + $0x998] sm:$0xff] }
 0x2c7   : > { %v2295_v59 = vld [vmem:[#allocation9 + $0x8c8] sm:$0xff]  ;;  %v2320_v41 = vld [vmem:[#allocation9 + $0x990] sm:$0xff] }
 0x2c8   : > { %3314 = vmatpush1.bf16.msra.mxu0 %v3313_v14  ;;  %3382 = vmatpush1.bf16.msra.mxu1 %v3381_v15  ;;  %v1472_v14 = vld [vmem:[#allocation9 + $0x3c8] sm:$0xff] }
 0x2c9   : > { %3316 = vmatprep.subr.bf16.mxu0 %v3315_v17  ;;  %3384 = vmatprep.subr.bf16.mxu1 %v3383_v18  ;;  %v1476_v15 = vld [vmem:[#allocation9 + $0x3e8] sm:$0xff]  ;;  %v3333_v17 = vpack.c.bf16 %v1467_v10, %v1463_v9  ;;  %v3401_v18 = vpack.c.bf16 %v1469_v40, %v1465_v13  ;;  %v2277_v13 = vld [vmem:[#allocation3 + $0x8] sm:$0xfc] }
 0x2ca   : > { %v3335_v21 = vpack.c.bf16 %v1476_v15, %v1472_v14  ;;  %v2305_v40 = vld [vmem:[#allocation9 + $0x918] sm:$0xff] }
 0x2cb   : > { %v2309_v14 = vld [vmem:[#allocation9 + $0x938] sm:$0xff] }
 0x2cc   : > { %3318 = vmatpush1.bf16.msra.mxu0 %v3317_v31  ;;  %3386 = vmatpush1.bf16.msra.mxu1 %v3385_v37  ;;  %v1480_v31 = vld [vmem:[#allocation9 + $0x408] sm:$0xff]  ;;  %v1350_v15 = vld [vmem:[#allocation3 + $0x28] sm:$0x7f] }
 0x2cd   : > { %3320 = vmatprep.subr.bf16.mxu0 %v3319_v35  ;;  %3388 = vmatprep.subr.bf16.mxu1 %v3387_v36  ;;  %v1484_v37 = vld [vmem:[#allocation9 + $0x428] sm:$0xff]  ;;  %v3337_v35 = vpack.c.bf16 %v1475_v49, %v1471_v20  ;;  %v3405_v36 = vpack.c.bf16 %v1477_v30, %v1473_v58  ;;  %v2306_v20 = vld [vmem:[#allocation9 + $0x920] sm:$0xff]  ;;  %v2304_v49 = vld [vmem:[#allocation9 + $0x910] sm:$0xff]  ;;  %v2435_v58 = vrot.slane %v2277_v13, 2 }
 0x2ce   : > { %v3339_v38 = vpack.c.bf16 %v1484_v37, %v1480_v31  ;;  %v3487_v31 = vpack.c.bf16 %v2309_v14, %v2305_v40  ;;  %v2315_v37 = vld [vmem:[#allocation9 + $0x968] sm:$0xff]  ;;  %v2334_v40 = vld [vmem:[#allocation9 + $0xa00] sm:$0xff] }
 0x2cf   : > { %v2338_v14 = vld [vmem:[#allocation9 + $0xa20] sm:$0xff] }
 0x2d0   : > { %3322 = vmatpush1.bf16.msra.mxu0 %v3321_v47  ;;  %3390 = vmatpush1.bf16.msra.mxu1 %v3389_v46  ;;  %v2287_v47 = vld [vmem:[#allocation9 + $0x888] sm:$0xff] }
 0x2d1   : > { %3324 = vmatprep.subr.bf16.mxu0 %v3323_v51  ;;  %3392 = vmatprep.subr.bf16.mxu1 %v3391_v55  ;;  %v2291_v46 = vld [vmem:[#allocation9 + $0x8a8] sm:$0xff]  ;;  %v3341_v51 = vpack.c.bf16 %v1483_v11, %v1479_v42  ;;  %v3409_v55 = vpack.c.bf16 %v1485_v45, %v1481_v44  ;;  %v2314_v42 = vld [vmem:[#allocation9 + $0x960] sm:$0xff]  ;;  %v3491_v44 = vpack.c.bf16 %v2317_v33, %v2313_v32  ;;  %v2312_v45 = vld [vmem:[#allocation9 + $0x950] sm:$0xff] }
 0x2d2   : > { %v3411_v54 = vpack.c.bf16 %v2291_v46, %v2287_v47  ;;  %v2316_v47 = vld [vmem:[#allocation9 + $0x970] sm:$0xff]  ;;  %v2319_v46 = vld [vmem:[#allocation9 + $0x988] sm:$0xff] }
 0x2d4   : > { %3326 = vmatpush1.bf16.msra.mxu0 %v3325_v43  ;;  %3394 = vmatpush1.bf16.msra.mxu1 %v3393_v60  ;;  %v2288_v43 = vld [vmem:[#allocation9 + $0x890] sm:$0xff] }
 0x2d5   : > { %3328 = vmatprep.subr.bf16.mxu0 %v3327_v63  ;;  %3396 = vmatprep.subr.bf16.mxu1 %v3395_v29  ;;  %v2292_v60 = vld [vmem:[#allocation9 + $0x8b0] sm:$0xff]  ;;  %v2299_v63 = vld [vmem:[#allocation9 + $0x8e8] sm:$0xff]  ;;  %v2297_v29 = vld [vmem:[#allocation9 + $0x8d8] sm:$0xff] }
 0x2d6   : > { %v3481_v5 = vpack.c.bf16 %v2292_v60, %v2288_v43  ;;  %v3415_v9 = vpack.c.bf16 %v2299_v63, %v2295_v59  ;;  %v3483_v10 = vpack.c.bf16 %v2301_v2, %v2297_v29  ;;  %v2324_v43 = vld [vmem:[#allocation9 + $0x9b0] sm:$0xff]  ;;  %v2327_v60 = vld [vmem:[#allocation9 + $0x9c8] sm:$0xff]  ;;  %v2329_v59 = vld [vmem:[#allocation9 + $0x9d8] sm:$0xff] }
 0x2d7   : > { %v2333_v63 = vld [vmem:[#allocation9 + $0x9f8] sm:$0xff]  ;;  %v3497_v2 = vpack.c.bf16 %v2324_v43, %v2320_v41  ;;  %v2358_v43 = vld [vmem:[#allocation9 + $0xac0] sm:$0xff] }
 0x2d8   : > { %3330 = vmatpush1.bf16.msra.mxu0 %v3329_v7  ;;  %3398 = vmatpush1.bf16.msra.mxu1 %v3397_v8  ;;  %v2296_v7 = vld [vmem:[#allocation9 + $0x8d0] sm:$0xff]  ;;  %v3499_v52 = vpack.c.bf16 %v2333_v63, %v2329_v59 }
 0x2d9   : > { %3332 = vmatprep.subr.bf16.mxu0 %v3331_v12  ;;  %3400 = vmatprep.subr.bf16.mxu1 %v3399_v61  ;;  %v2300_v8 = vld [vmem:[#allocation9 + $0x8f0] sm:$0xff]  ;;  %v2303_v12 = vld [vmem:[#allocation9 + $0x908] sm:$0xff] }
 0x2da   : > { %v2307_v61 = vld [vmem:[#allocation9 + $0x928] sm:$0xff]  ;;  %v3485_v16 = vpack.c.bf16 %v2300_v8, %v2296_v7  ;;  %v2332_v7 = vld [vmem:[#allocation9 + $0x9f0] sm:$0xff] }
 0x2db   : > { %v3419_v30 = vpack.c.bf16 %v2307_v61, %v2303_v12  ;;  %v2335_v8 = vld [vmem:[#allocation9 + $0xa08] sm:$0xff]  ;;  %v2341_v12 = vld [vmem:[#allocation9 + $0xa38] sm:$0xff]  ;;  %v3501_v13 = vpack.c.bf16 %v2332_v7, %v2328_v6  ;;  %v2360_v63 = vld [vmem:[#allocation9 + $0xad0] sm:$0xff] }
 0x2dc   : > { %3334 = vmatpush1.bf16.msra.mxu0 %v3333_v17  ;;  %3402 = vmatpush1.bf16.msra.mxu1 %v3401_v18  ;;  %v2436_v17 = vrot.slane %v4237_v34, 2  ;;  %v2302_v18 = vld [vmem:[#allocation9 + $0x900] sm:$0xff] }
 0x2dd   : > { %3336 = vmatprep.subr.bf16.mxu0 %v3335_v21  ;;  %3404 = vmatprep.subr.bf16.mxu1 %v3403_v25  ;;  %v2308_v21 = vld [vmem:[#allocation9 + $0x930] sm:$0xff]  ;;  %v2311_v25 = vld [vmem:[#allocation9 + $0x948] sm:$0xff]  ;;  %v2366_v7 = vld [vmem:[#allocation9 + $0xb00] sm:$0xff] }
 0x2de   : > { %v3423_v11 = vpack.c.bf16 %v2315_v37, %v2311_v25  ;;  %v2349_v25 = vld [vmem:[#allocation9 + $0xa78] sm:$0xff]  ;;  %v2346_v37 = vld [vmem:[#allocation9 + $0xa60] sm:$0xff] }
 0x2e0   : > { %3338 = vmatpush1.bf16.msra.mxu0 %v3337_v35  ;;  %3406 = vmatpush1.bf16.msra.mxu1 %v3405_v36  ;;  %v2437_v35 = vsel %vm2431_vm9, %v2435_v58, %v2436_v17  ;;  %v3421_v36 = vpack.c.bf16 %v2306_v20, %v2302_v18  ;;  %v2340_v18 = vld [vmem:[#allocation9 + $0xa30] sm:$0xff]  ;;  %v2343_v20 = vld [vmem:[#allocation9 + $0xa48] sm:$0xff]  ;;  %v3437_v58 = vpack.c.bf16 %v2338_v14, %v2334_v40  ;;  %v2377_v14 = vld [vmem:[#allocation9 + $0xb58] sm:$0xff] }
 0x2e1   : > { %3340 = vmatprep.subr.bf16.mxu0 %v3339_v38  ;;  %3408 = vmatprep.subr.bf16.mxu1 %v3407_v39  ;;  %v3489_v38 = vpack.c.bf16 %v2308_v21, %v2304_v49  ;;  %v2310_v39 = vld [vmem:[#allocation9 + $0x940] sm:$0xff]  ;;  %v2347_v49 = vld [vmem:[#allocation9 + $0xa68] sm:$0xff]  ;;  %v2345_v21 = vld [vmem:[#allocation9 + $0xa58] sm:$0xff] }
 0x2e2   : > { %v3439_v32 = vpack.c.bf16 %v2347_v49, %v2343_v20  ;;  %v3507_v33 = vpack.c.bf16 %v2349_v25, %v2345_v21  ;;  %v2379_v40 = vld [vmem:[#allocation9 + $0xb68] sm:$0xff]  ;;  %v2378_v20 = vld [vmem:[#allocation9 + $0xb60] sm:$0xff]  ;;  %v2376_v25 = vld [vmem:[#allocation9 + $0xb50] sm:$0xff] }
 0x2e3   : > { %2033 = vmatmul.mubr.f32.vlgmr.msra.gmra.mrb[8].mxu0 %v1345_v53  ;;  %2187 = vmatmul.mubr.f32.vlgmr.msra.gmra.mrb[8].mxu1 %v1345_v53  ;;  %v3493_v53 = vpack.c.bf16 %v2316_v47, %v2312_v45  ;;  %v2350_v47 = vld [vmem:[#allocation9 + $0xa80] sm:$0xff] }
 0x2e4   : > { %2038 = vmatprep.mubr.f32.mxu0 %v1349_v56  ;;  %3342 = vmatpush1.bf16.msra.mxu0 %v3341_v51  ;;  %v2325_v51 = vld [vmem:[#allocation9 + $0x9b8] sm:$0xff] }
 0x2e5   : > { %2192 = vmatprep.mubr.f32.mxu1 %v1349_v56  ;;  %3410 = vmatpush1.bf16.msra.mxu1 %v3409_v55  ;;  %v3425_v55 = vpack.c.bf16 %v2314_v42, %v2310_v39  ;;  %v3427_v56 = vpack.c.bf16 %v2323_v48, %v2319_v46  ;;  %v3495_v57 = vpack.c.bf16 %v2325_v51, %v2321_v50  ;;  %v2355_v39 = vld [vmem:[#allocation9 + $0xaa8] sm:$0xff]  ;;  %v2353_v42 = vld [vmem:[#allocation9 + $0xa98] sm:$0xff]  ;;  %v2354_v46 = vld [vmem:[#allocation9 + $0xaa0] sm:$0xff] }
 0x2e6   : > { %3412 = vmatprep.subr.bf16.mxu0 %v3411_v54  ;;  %3480 = vmatprep.subr.bf16.mxu1 %v3479_v1  ;;  %v2318_v54 = vld [vmem:[#allocation9 + $0x980] sm:$0xff]  ;;  %v2352_v51 = vld [vmem:[#allocation9 + $0xa90] sm:$0xff] }
 0x2e7   : > { %2039 = vmatmul.mubr.f32.gmra.mrb[10].mxu0 %v1348_v62  ;;  %2193 = vmatmul.mubr.f32.gmra.mrb[10].mxu1 %v1348_v62  ;;  %v2322_v1 = vld [vmem:[#allocation9 + $0x9a0] sm:$0xff]  ;;  %v2331_v62 = vld [vmem:[#allocation9 + $0x9e8] sm:$0xff] }
 0x2e8   : > { %2109 = vmatprep.mubr.f32.mxu0 %v3811_v0  ;;  %2263 = vmatprep.mubr.f32.mxu1 %v3811_v0  ;;  %v3429_v29 = vpack.c.bf16 %v2322_v1, %v2318_v54  ;;  %v2363_v54 = vld [vmem:[#allocation9 + $0xae8] sm:$0xff]  ;;  %v2361_v1 = vld [vmem:[#allocation9 + $0xad8] sm:$0xff] }
 0x2eb   : > { %3073 = vmatmul.mubr.msk.f32.vlgmr.msra.gmra.mrb[8].mxu0 %vm1003_vm2, %v1347_v3  ;;  %3075 = vmatmul.mubr.msk.f32.vlgmr.msra.gmra.mrb[8].mxu1 %vm1003_vm2, %v1347_v3  ;;  %v2326_v3 = vld [vmem:[#allocation9 + $0x9c0] sm:$0xff] }
 0x2ec   : > { %3414 = vmatpush1.bf16.msra.mxu0 %v3413_v4  ;;  %3482 = vmatpush1.bf16.msra.mxu1 %v3481_v5  ;;  %v2330_v4 = vld [vmem:[#allocation9 + $0x9e0] sm:$0xff]  ;;  %v3431_v5 = vpack.c.bf16 %v2331_v62, %v2327_v60 }
 0x2ed   : > { %2115 = vmatprep.mubr.f32.mxu0 %v3811_v0  ;;  %2269 = vmatprep.mubr.f32.mxu1 %v3811_v0  ;;  %v3433_v61 = vpack.c.bf16 %v2330_v4, %v2326_v3  ;;  %v2362_v60 = vld [vmem:[#allocation9 + $0xae0] sm:$0xff]  ;;  %v2371_v3 = vld [vmem:[#allocation9 + $0xb28] sm:$0xff]  ;;  %v2369_v4 = vld [vmem:[#allocation9 + $0xb18] sm:$0xff] }
 0x2ee   : > { %3416 = vmatprep.subr.bf16.mxu0 %v3415_v9  ;;  %3484 = vmatprep.subr.bf16.mxu1 %v3483_v10  ;;  %v2339_v9 = vld [vmem:[#allocation9 + $0xa28] sm:$0xff]  ;;  %v2337_v10 = vld [vmem:[#allocation9 + $0xa18] sm:$0xff] }
 0x2ef   : > { %3074 = vmatmul.mubr.msk.f32.gmra.mrb[10].mxu0 %vm1003_vm2, %v1350_v15  ;;  %3076 = vmatmul.mubr.msk.f32.gmra.mrb[10].mxu1 %vm1003_vm2, %v1350_v15  ;;  %v3435_v15 = vpack.c.bf16 %v2339_v9, %v2335_v8  ;;  %v2370_v8 = vld [vmem:[#allocation9 + $0xb20] sm:$0xff] }
 0x2f0   : > { %3418 = vmatpush1.bf16.msra.mxu0 %v3417_v19  ;;  %3486 = vmatpush1.bf16.msra.mxu1 %v3485_v16  ;;  %v3503_v19 = vpack.c.bf16 %v2341_v12, %v2337_v10  ;;  %v2336_v16 = vld [vmem:[#allocation9 + $0xa10] sm:$0xff] }
 0x2f1   : > { %2519 = vmatprep.mubr.f32.mxu0 %v2437_v35  ;;  %2673 = vmatprep.mubr.f32.mxu1 %v2437_v35  ;;  %v2344_v35 = vld [vmem:[#allocation9 + $0xa50] sm:$0xff] }
 0x2f2   : > { %3420 = vmatprep.subr.bf16.mxu0 %v3419_v30  ;;  %3488 = vmatprep.subr.bf16.mxu1 %v3487_v31  ;;  %v3505_v30 = vpack.c.bf16 %v2340_v18, %v2336_v16  ;;  %v2342_v31 = vld [vmem:[#allocation9 + $0xa40] sm:$0xff]  ;;  %v2368_v12 = vld [vmem:[#allocation9 + $0xb10] sm:$0xff] }
 0x2f3   : > { %v2374_v18 = vld [vmem:[#allocation9 + $0xb40] sm:$0xff] }
 0x2f4   : > { %3422 = vmatpush1.bf16.msra.mxu0 %v3421_v36  ;;  %3490 = vmatpush1.bf16.msra.mxu1 %v3489_v38  ;;  %v2348_v36 = vld [vmem:[#allocation9 + $0xa70] sm:$0xff]  ;;  %v2351_v38 = vld [vmem:[#allocation9 + $0xa88] sm:$0xff] }
 0x2f5   : > { %3424 = vmatprep.subr.bf16.mxu0 %v3423_v11  ;;  %3492 = vmatprep.subr.bf16.mxu1 %v3491_v44  ;;  %v2357_v11 = vld [vmem:[#allocation9 + $0xab8] sm:$0xff]  ;;  %v3441_v44 = vpack.c.bf16 %v2346_v37, %v2342_v31  ;;  %v3509_v45 = vpack.c.bf16 %v2348_v36, %v2344_v35  ;;  %v3443_v48 = vpack.c.bf16 %v2355_v39, %v2351_v38  ;;  %v2387_v31 = vld [vmem:[#allocation9 + $0xba8] sm:$0xff]  ;;  %v2382_v36 = vld [vmem:[#allocation9 + $0xb80] sm:$0xff] }
 0x2f6   : > { %v3511_v50 = vpack.c.bf16 %v2357_v11, %v2353_v42  ;;  %v2385_v37 = vld [vmem:[#allocation9 + $0xb98] sm:$0xff]  ;;  %v2386_v38 = vld [vmem:[#allocation9 + $0xba0] sm:$0xff]  ;;  %v2384_v11 = vld [vmem:[#allocation9 + $0xb90] sm:$0xff] }
 0x2f8   : > { %3426 = vmatpush1.bf16.msra.mxu0 %v3425_v55  ;;  %3494 = vmatpush1.bf16.msra.mxu1 %v3493_v53  ;;  %v2356_v55 = vld [vmem:[#allocation9 + $0xab0] sm:$0xff]  ;;  %v2359_v53 = vld [vmem:[#allocation9 + $0xac8] sm:$0xff] }
 0x2f9   : > { %3428 = vmatprep.subr.bf16.mxu0 %v3427_v56  ;;  %3496 = vmatprep.subr.bf16.mxu1 %v3495_v57  ;;  %v2365_v56 = vld [vmem:[#allocation9 + $0xaf8] sm:$0xff]  ;;  %v3445_v57 = vpack.c.bf16 %v2354_v46, %v2350_v47  ;;  %v3513_v41 = vpack.c.bf16 %v2356_v55, %v2352_v51  ;;  %v3447_v62 = vpack.c.bf16 %v2363_v54, %v2359_v53  ;;  %v2395_v47 = vld [vmem:[#allocation9 + $0xbe8] sm:$0xff]  ;;  %v2390_v55 = vld [vmem:[#allocation9 + $0xbc0] sm:$0xff] }
 0x2fa   : > { %v3515_v59 = vpack.c.bf16 %v2365_v56, %v2361_v1  ;;  %v2393_v46 = vld [vmem:[#allocation9 + $0xbd8] sm:$0xff]  ;;  %v2394_v53 = vld [vmem:[#allocation9 + $0xbe0] sm:$0xff]  ;;  %v2392_v56 = vld [vmem:[#allocation9 + $0xbd0] sm:$0xff] }
 0x2fc   : > { %3430 = vmatpush1.bf16.msra.mxu0 %v3429_v29  ;;  %3498 = vmatpush1.bf16.msra.mxu1 %v3497_v2  ;;  %v2364_v29 = vld [vmem:[#allocation9 + $0xaf0] sm:$0xff]  ;;  %v2367_v2 = vld [vmem:[#allocation9 + $0xb08] sm:$0xff] }
 0x2fd   : > { %3432 = vmatprep.subr.bf16.mxu0 %v3431_v5  ;;  %3500 = vmatprep.subr.bf16.mxu1 %v3499_v52  ;;  %v2373_v5 = vld [vmem:[#allocation9 + $0xb38] sm:$0xff]  ;;  %v3449_v52 = vpack.c.bf16 %v2362_v60, %v2358_v43  ;;  %v3517_v6 = vpack.c.bf16 %v2364_v29, %v2360_v63  ;;  %v3451_v9 = vpack.c.bf16 %v2371_v3, %v2367_v2  ;;  %v2403_v43 = vld [vmem:[#allocation9 + $0xc28] sm:$0xff]  ;;  %v2398_v29 = vld [vmem:[#allocation9 + $0xc00] sm:$0xff] }
 0x2fe   : > { %v3519_v10 = vpack.c.bf16 %v2373_v5, %v2369_v4  ;;  %v2401_v60 = vld [vmem:[#allocation9 + $0xc18] sm:$0xff]  ;;  %v2402_v2 = vld [vmem:[#allocation9 + $0xc20] sm:$0xff]  ;;  %v2400_v5 = vld [vmem:[#allocation9 + $0xc10] sm:$0xff] }
 0x300   : > { %3434 = vmatpush1.bf16.msra.mxu0 %v3433_v61  ;;  %3502 = vmatpush1.bf16.msra.mxu1 %v3501_v13  ;;  %v2372_v61 = vld [vmem:[#allocation9 + $0xb30] sm:$0xff]  ;;  %v2375_v13 = vld [vmem:[#allocation9 + $0xb48] sm:$0xff] }
 0x301   : > { %3436 = vmatprep.subr.bf16.mxu0 %v3435_v15  ;;  %3504 = vmatprep.subr.bf16.mxu1 %v3503_v19  ;;  %v2381_v15 = vld [vmem:[#allocation9 + $0xb78] sm:$0xff]  ;;  %v3453_v19 = vpack.c.bf16 %v2370_v8, %v2366_v7  ;;  %v3521_v16 = vpack.c.bf16 %v2372_v61, %v2368_v12  ;;  %v3455_v49 = vpack.c.bf16 %v2379_v40, %v2375_v13  ;;  %v2411_v7 = vld [vmem:[#allocation9 + $0xc68] sm:$0xff]  ;;  %v2406_v61 = vld [vmem:[#allocation9 + $0xc40] sm:$0xff] }
 0x302   : > { %v3523_v21 = vpack.c.bf16 %v2381_v15, %v2377_v14  ;;  %v2409_v8 = vld [vmem:[#allocation9 + $0xc58] sm:$0xff]  ;;  %v2410_v13 = vld [vmem:[#allocation9 + $0xc60] sm:$0xff]  ;;  %v2408_v15 = vld [vmem:[#allocation9 + $0xc50] sm:$0xff] }
 0x304   : > { %3438 = vmatpush1.bf16.msra.mxu0 %v3437_v58  ;;  %3506 = vmatpush1.bf16.msra.mxu1 %v3505_v30  ;;  %v2380_v58 = vld [vmem:[#allocation9 + $0xb70] sm:$0xff]  ;;  %v2383_v30 = vld [vmem:[#allocation9 + $0xb88] sm:$0xff] }
 0x305   : > { %3440 = vmatprep.subr.bf16.mxu0 %v3439_v32  ;;  %3508 = vmatprep.subr.bf16.mxu1 %v3507_v33  ;;  %v2389_v32 = vld [vmem:[#allocation9 + $0xbb8] sm:$0xff]  ;;  %v3457_v33 = vpack.c.bf16 %v2378_v20, %v2374_v18  ;;  %v3525_v35 = vpack.c.bf16 %v2380_v58, %v2376_v25  ;;  %v3459_v39 = vpack.c.bf16 %v2387_v31, %v2383_v30  ;;  %v2419_v18 = vld [vmem:[#allocation9 + $0xca8] sm:$0xff] }
 0x306   : > { %v3527_v42 = vpack.c.bf16 %v2389_v32, %v2385_v37  ;;  %v2417_v20 = vld [vmem:[#allocation9 + $0xc98] sm:$0xff]  ;;  %v3473_v25 = vpack.c.bf16 %v2410_v13, %v2406_v61  ;;  %v2283_v30 = vld [vmem:[#allocation3 + $0x38] sm:$0x1] }
 0x307   : > { %v2276_v31 = vld [vmem:[#allocation3] sm:$0xfc] }
 0x308   : > { %3442 = vmatpush1.bf16.msra.mxu0 %v3441_v44  ;;  %3510 = vmatpush1.bf16.msra.mxu1 %v3509_v45  ;;  %v2388_v44 = vld [vmem:[#allocation9 + $0xbb0] sm:$0xff]  ;;  %v2391_v45 = vld [vmem:[#allocation9 + $0xbc8] sm:$0xff] }
 0x309   : > { %3444 = vmatprep.subr.bf16.mxu0 %v3443_v48  ;;  %3512 = vmatprep.subr.bf16.mxu1 %v3511_v50  ;;  %v2397_v48 = vld [vmem:[#allocation9 + $0xbf8] sm:$0xff]  ;;  %v3461_v50 = vpack.c.bf16 %v2386_v38, %v2382_v36  ;;  %v3529_v51 = vpack.c.bf16 %v2388_v44, %v2384_v11  ;;  %v3463_v54 = vpack.c.bf16 %v2395_v47, %v2391_v45  ;;  %v2416_v38 = vld [vmem:[#allocation9 + $0xc90] sm:$0xff]  ;;  %v2282_v11 = vld [vmem:[#allocation3 + $0x30] sm:$0x1]  ;;  %v2432_v44 = vrot.slane %v2276_v31, 2 }
 0x30a   : > { %v3531_v1 = vpack.c.bf16 %v2397_v48, %v2393_v46  ;;  %v2278_v46 = vld [vmem:[#allocation3 + $0x10] sm:$0xfc]  ;;  %v2281_v48 = vld [vmem:[#allocation3 + $0x28] sm:$0xff] }
 0x30c   : > { %3446 = vmatpush1.bf16.msra.mxu0 %v3445_v57  ;;  %3514 = vmatpush1.bf16.msra.mxu1 %v3513_v41  ;;  %v2396_v57 = vld [vmem:[#allocation9 + $0xbf0] sm:$0xff]  ;;  %v2399_v41 = vld [vmem:[#allocation9 + $0xc08] sm:$0xff] }
 0x30d   : > { %3448 = vmatprep.subr.bf16.mxu0 %v3447_v62  ;;  %3516 = vmatprep.subr.bf16.mxu1 %v3515_v59  ;;  %v2405_v62 = vld [vmem:[#allocation9 + $0xc38] sm:$0xff]  ;;  %v3465_v59 = vpack.c.bf16 %v2394_v53, %v2390_v55  ;;  %v3533_v63 = vpack.c.bf16 %v2396_v57, %v2392_v56  ;;  %v3467_v3 = vpack.c.bf16 %v2403_v43, %v2399_v41  ;;  %v2438_v53 = vrot.slane %v2278_v46, 2  ;;  %v2771_v41 = vld [vmem:[#allocation10] sm:$0xf] }
 0x30e   : > { %v3535_v4 = vpack.c.bf16 %v2405_v62, %v2401_v60  ;;  %v2776_v43 = vrot.slane %v2771_v41, %v933_v24  ;;  %v2784_v60 = vrot.slane %v2771_v41, %v941_v26  ;;  %v2780_v62 = vrot.slane %v2771_v41, %v937_v27 }
 0x310   : > { %3450 = vmatpush1.bf16.msra.mxu0 %v3449_v52  ;;  %3518 = vmatpush1.bf16.msra.mxu1 %v3517_v6  ;;  %v2404_v52 = vld [vmem:[#allocation9 + $0xc30] sm:$0xff]  ;;  %v2407_v6 = vld [vmem:[#allocation9 + $0xc48] sm:$0xff] }
 0x311   : > { %3452 = vmatprep.subr.bf16.mxu0 %v3451_v9  ;;  %3520 = vmatprep.subr.bf16.mxu1 %v3519_v10  ;;  %v2413_v9 = vld [vmem:[#allocation9 + $0xc78] sm:$0xff]  ;;  %v3469_v10 = vpack.c.bf16 %v2402_v2, %v2398_v29  ;;  %v3537_v12 = vpack.c.bf16 %v2404_v52, %v2400_v5  ;;  %v3471_v40 = vpack.c.bf16 %v2411_v7, %v2407_v6 }
 0x312   : > { %v3539_v14 = vpack.c.bf16 %v2413_v9, %v2409_v8 }
 0x314   : > { %3454 = vmatpush1.bf16.msra.mxu0 %v3453_v19  ;;  %3522 = vmatpush1.bf16.msra.mxu1 %v3521_v16  ;;  %v2412_v19 = vld [vmem:[#allocation9 + $0xc70] sm:$0xff]  ;;  %v2415_v16 = vld [vmem:[#allocation9 + $0xc88] sm:$0xff] }
 0x315   : > { %3456 = vmatprep.subr.bf16.mxu0 %v3455_v49  ;;  %3524 = vmatprep.subr.bf16.mxu1 %v3523_v21  ;;  %v2421_v49 = vld [vmem:[#allocation9 + $0xcb8] sm:$0xff]  ;;  %v2279_v21 = vld [vmem:[#allocation3 + $0x18] sm:$0xff]  ;;  %v3541_v58 = vpack.c.bf16 %v2412_v19, %v2408_v15  ;;  %v3475_v37 = vpack.c.bf16 %v2419_v18, %v2415_v16 }
 0x316   : > { %v3543_v32 = vpack.c.bf16 %v2421_v49, %v2417_v20  ;;  %v2433_v36 = vrot.slane %v2279_v21, 2 }
 0x318   : > { %3458 = vmatpush1.bf16.msra.mxu0 %v3457_v33  ;;  %3526 = vmatpush1.bf16.msra.mxu1 %v3525_v35  ;;  %v2414_v33 = vld [vmem:[#allocation9 + $0xc80] sm:$0xff] }
 0x319   : > { %3460 = vmatprep.subr.bf16.mxu0 %v3459_v39  ;;  %3528 = vmatprep.subr.bf16.mxu1 %v3527_v42  ;;  %v2418_v35 = vld [vmem:[#allocation9 + $0xca0] sm:$0xff]  ;;  %v2420_v39 = vld [vmem:[#allocation9 + $0xcb0] sm:$0xff]  ;;  %v2443_v42 = vrot.slane %v2283_v30, 2 }
 0x31a   : > { %v3477_v45 = vpack.c.bf16 %v2418_v35, %v2414_v33  ;;  %v3545_v47 = vpack.c.bf16 %v2420_v39, %v2416_v38 }
 0x31b   : > { %v2444_v55 = vsel %vm2431_vm9, %v2436_v17, %v2443_v42 }
 0x31c   : > { %3462 = vmatpush1.bf16.msra.mxu0 %v3461_v50  ;;  %3530 = vmatpush1.bf16.msra.mxu1 %v3529_v51  ;;  %v2434_v50 = vsel %vm2431_vm9, %v2432_v44, %v2433_v36  ;;  %v2441_v51 = vrot.slane %v2282_v11, 2 }
 0x31d   : > { %3464 = vmatprep.subr.bf16.mxu0 %v3463_v54  ;;  %3532 = vmatprep.subr.bf16.mxu1 %v3531_v1  ;;  %v2439_v54 = vrot.slane %v2281_v48, 2  ;;  %v2284_v1 = vld [vmem:[#allocation3 + $0x40] sm:$0x1] }
 0x31e   : > { %v2442_v56 = vsel %vm2431_vm9, %v2433_v36, %v2441_v51  ;;  %v2445_v34 = vrot.slane %v2284_v1, 2 }
 0x31f   : > { %v2440_v57 = vsel %vm2431_vm9, %v2438_v53, %v2439_v54 }
 0x320   : > { %3466 = vmatpush1.bf16.msra.mxu0 %v3465_v59  ;;  %3534 = vmatpush1.bf16.msra.mxu1 %v3533_v63  ;;  %v2446_v17 = vsel %vm2431_vm9, %v2439_v54, %v2445_v34  ;;  %v2788_v59 = vrot.slane %v2771_v41, %v945_v28 }
 0x321   : > { %3468 = vmatprep.subr.bf16.mxu0 %v3467_v3  ;;  %3536 = vmatprep.subr.bf16.mxu1 %v3535_v4 }
 0x324   : > { %3470 = vmatpush1.bf16.msra.mxu0 %v3469_v10  ;;  %3538 = vmatpush1.bf16.msra.mxu1 %v3537_v12 }
 0x325   : > { %3472 = vmatprep.subr.bf16.mxu0 %v3471_v40  ;;  %3540 = vmatprep.subr.bf16.mxu1 %v3539_v14 }
 0x328   : > { %3474 = vmatpush1.bf16.msra.mxu0 %v3473_v25  ;;  %3542 = vmatpush1.bf16.msra.mxu1 %v3541_v58 }
 0x329   : > { %3476 = vmatprep.subr.bf16.mxu0 %v3475_v37  ;;  %3544 = vmatprep.subr.bf16.mxu1 %v3543_v32 }
 0x32b   : > { %2520 = vmatmul.mubr.f32.vlgmr.msra.gmra.mrb[8].mxu0 %v2434_v50  ;;  %2674 = vmatmul.mubr.f32.vlgmr.msra.gmra.mrb[8].mxu1 %v2434_v50 }
 0x32c   : > { %2525 = vmatprep.mubr.f32.mxu0 %v2444_v55  ;;  %3478 = vmatpush1.bf16.msra.mxu0 %v3477_v45 }
 0x32d   : > { %2679 = vmatprep.mubr.f32.mxu1 %v2444_v55  ;;  %3546 = vmatpush1.bf16.msra.mxu1 %v3545_v47 }
 0x32f   : > { %2526 = vmatmul.mubr.f32.gmra.mrb[10].mxu0 %v2442_v56  ;;  %2680 = vmatmul.mubr.f32.gmra.mrb[10].mxu1 %v2442_v56 }
 0x330   : > { %2596 = vmatprep.mubr.f32.mxu0 %v3811_v0  ;;  %2750 = vmatprep.mubr.f32.mxu1 %v3811_v0 }
 0x333   : > { %3077 = vmatmul.mubr.msk.f32.vlgmr.msra.gmra.mrb[8].mxu0 %vm1003_vm2, %v2440_v57  ;;  %3079 = vmatmul.mubr.msk.f32.vlgmr.msra.gmra.mrb[8].mxu1 %vm1003_vm2, %v2440_v57 }
 0x334   : > { %2602 = vmatprep.mubr.f32.mxu0 %v3811_v0  ;;  %2756 = vmatprep.mubr.f32.mxu1 %v3811_v0 }
 0x337   : > { %3078 = vmatmul.mubr.msk.f32.gmra.mrb[10].mxu0 %vm1003_vm2, %v2446_v17  ;;  %3080 = vmatmul.mubr.msk.f32.gmra.mrb[10].mxu1 %vm1003_vm2, %v2446_v17 }
 0x406   : > { %v2598_v0 = vpop.f32.mrb[8].mxu0  ;;  %v2752_v63 = vpop.f32.mrb[8].mxu1 }
 0x407   : > { %v2793_v29 = vadd.f32 %v2776_v43, %v2598_v0  ;;  %v2795_v2 = vadd.f32 %v2784_v60, %v2752_v63  ;;  %v2600_v3 = vpop.f32.mrb[9].mxu0  ;;  %v2754_v4 = vpop.f32.mrb[9].mxu1 }
 0x408   : > { %v2794_v5 = vadd.f32 %v2780_v62, %v2600_v3  ;;  %v2796_v52 = vadd.f32 %v2788_v59, %v2754_v4 }
 0x409   : > { %v2801_v6 = vmax.f32 %v2793_v29, 0.0  ;;  %v2803_v7 = vmax.f32 %v2795_v2, 0.0 }
 0x40a   : > { %v2802_v24 = vmax.f32 %v2794_v5, 0.0  ;;  %v2804_v8 = vmax.f32 %v2796_v52, 0.0  ;;  %v2604_v26 = vpop.f32.mrb[10].mxu0  ;;  %v2758_v9 = vpop.f32.mrb[10].mxu1 }
 0x40b   : > { %2809 = vst [vmem:[#allocation4] sm:$0xff] %v2801_v6  ;;  %2811 = vst [vmem:[#allocation4 + $0x10] sm:$0xff] %v2803_v7  ;;  %v2797_v27 = vadd.f32 %v2776_v43, %v2604_v26  ;;  %v2799_v23 = vadd.f32 %v2784_v60, %v2758_v9  ;;  %v2606_v28 = vpop.f32.mrb[11].mxu0  ;;  %v2760_v10 = vpop.f32.mrb[11].mxu1 }
 0x40c   : > { %2810 = vst [vmem:[#allocation4 + $0x8] sm:$0xff] %v2802_v24  ;;  %2813 = vst.msk [vmem:[#allocation4 + $0x18] sm:$0xff] %vm2812_vm10, %v2804_v8  ;;  %v2798_v12 = vadd.f32 %v2780_v62, %v2606_v28  ;;  %v2800_v61 = vadd.f32 %v2788_v59, %v2760_v10 }
 0x40d   : > { %v2805_v13 = vmax.f32 %v2797_v27, 0.0  ;;  %v2807_v40 = vmax.f32 %v2799_v23, 0.0 }
 0x40e   : > { %v2806_v14 = vmax.f32 %v2798_v12, 0.0  ;;  %v2808_v15 = vmax.f32 %v2800_v61, 0.0 }
 0x40f   : > { %2814 = vst [vmem:[#allocation4 + $0x20] sm:$0x7f] %v2805_v13  ;;  %2816 = vst [vmem:[#allocation4 + $0x30] sm:$0x7f] %v2807_v40 }
 0x410   : > { %2815 = vst [vmem:[#allocation4 + $0x28] sm:$0x7f] %v2806_v14  ;;  %2818 = vst.msk [vmem:[#allocation4 + $0x38] sm:$0x7f] %vm2817_vm11, %v2808_v15 }
 0x413   : > { %v2837_v19 = vld [vmem:[#allocation4 + $0x2] ss:$8 sm:$0xf]  ;;  %v2839_v16 = vld [vmem:[#allocation4 + $0x3] ss:$8 sm:$0xf] }
 0x414   : > { %v2840_v18 = vmax.f32 %v2837_v19, %v2839_v16  ;;  %v2819_v20 = vld [vmem:[#allocation4] ss:$8 sm:$0xf]  ;;  %v2821_v49 = vld [vmem:[#allocation4 + $0x1] ss:$8 sm:$0xf] }
 0x415   : > { %v2822_v21 = vmax.f32 %v2819_v20, %v2821_v49  ;;  %v2869_v25 = vld [vmem:[#allocation4 + $0x6] ss:$8 sm:$0xf]  ;;  %v2871_v58 = vld [vmem:[#allocation4 + $0x7] ss:$8 sm:$0xf] }
 0x416   : > { %2842 = vrot.lane.b32.xlu1 %v2840_v18, %s3813_s13  ;;  %v2853_v30 = vld [vmem:[#allocation4 + $0x4] ss:$8 sm:$0xf]  ;;  %v2855_v31 = vld [vmem:[#allocation4 + $0x5] ss:$8 sm:$0xf]  ;;  %v2872_v37 = vmax.f32 %v2869_v25, %v2871_v58 }
 0x417   : > { %2824 = vrot.lane.b32.xlu0 %v2822_v21, %s3813_s13  ;;  %v2856_v32 = vmax.f32 %v2853_v30, %v2855_v31  ;;  %v2901_v33 = vld [vmem:[#allocation4 + $0x22] ss:$8 sm:$0xf]  ;;  %v2903_v35 = vld [vmem:[#allocation4 + $0x23] ss:$8 sm:$0xf] }
 0x418   : > { %v2885_v36 = vld [vmem:[#allocation4 + $0x20] ss:$8 sm:$0xf]  ;;  %v2887_v38 = vld [vmem:[#allocation4 + $0x21] ss:$8 sm:$0xf]  ;;  %v2904_v39 = vmax.f32 %v2901_v33, %v2903_v35 }
 0x419   : > { %v2888_v42 = vmax.f32 %v2885_v36, %v2887_v38  ;;  %v2917_v11 = vld [vmem:[#allocation4 + $0x24] ss:$8 sm:$0xf]  ;;  %v2919_v44 = vld [vmem:[#allocation4 + $0x25] ss:$8 sm:$0xf] }
 0x41a   : > { %2874 = vrot.lane.b32.xlu1 %v2872_v37, %s3813_s13  ;;  %v2920_v45 = vmax.f32 %v2917_v11, %v2919_v44 }
 0x41b   : > { %2858 = vrot.lane.b32.xlu0 %v2856_v32, %s3813_s13 }
 0x41e   : > { %2906 = vrot.lane.b32.xlu1 %v2904_v39, %s3813_s13 }
 0x41f   : > { %2890 = vrot.lane.b32.xlu0 %v2888_v42, %s3813_s13 }
 0x423   : > { %2922 = vrot.lane.b32.xlu0 %v2920_v45, %s3813_s13 }
 0x488   : > { %v2843_v47 = vpop.permute.xlu1 %2842 }
 0x489   : > { %v2844_v46 = vrot.slane %v2843_v47, 1  ;;  %v2845_v48 = vrot.slane %v2843_v47, 2  ;;  %v2825_v50 = vpop.permute.xlu0 %2824 }
 0x48a   : > { %v2826_v51 = vrot.slane %v2825_v50, 1  ;;  %v2827_v55 = vrot.slane %v2825_v50, 2 }
 0x48b   : > { %v2846_v54 = vsel %vm321_vm0, %v2844_v46, %v2845_v48 }
 0x48c   : > { %v2848_v1 = vmax.f32 %v2840_v18, %v2846_v54  ;;  %v2828_v56 = vsel %vm321_vm0, %v2826_v51, %v2827_v55  ;;  %v2875_v57 = vpop.permute.xlu1 %2874 }
 0x48d   : > { %v2830_v34 = vmax.f32 %v2822_v21, %v2828_v56  ;;  %v2876_v17 = vrot.slane %v2875_v57, 1  ;;  %v2877_v41 = vrot.slane %v2875_v57, 2  ;;  %v2859_v43 = vpop.permute.xlu0 %2858 }
 0x48e   : > { %3081 = vst.msk [vmem:[%s4291_s17 + $0x1] ss:$8 sm:$0x3] %vm4294_vm12, %v2848_v1  ;;  %v2860_v60 = vrot.slane %v2859_v43, 1  ;;  %v2861_v22 = vrot.slane %v2859_v43, 2 }
 0x48f   : > { %2834 = vst.msk [vmem:[%s4291_s17] ss:$8 sm:$0x3] %vm4294_vm12, %v2830_v34  ;;  %v2878_v62 = vsel %vm321_vm0, %v2876_v17, %v2877_v41 }
 0x490   : > { %v2880_v59 = vmax.f32 %v2872_v37, %v2878_v62  ;;  %v2862_v0 = vsel %vm321_vm0, %v2860_v60, %v2861_v22  ;;  %v2907_v63 = vpop.permute.xlu1 %2906 }
 0x491   : > { %v2864_v29 = vmax.f32 %v2856_v32, %v2862_v0  ;;  %v2908_v2 = vrot.slane %v2907_v63, 1  ;;  %v2909_v3 = vrot.slane %v2907_v63, 2  ;;  %v2891_v4 = vpop.permute.xlu0 %2890 }
 0x492   : > { %3083 = vst.msk [vmem:[%s4291_s17 + $0x3] ss:$8 sm:$0x3] %vm4294_vm12, %v2880_v59  ;;  %v2892_v5 = vrot.slane %v2891_v4, 1  ;;  %v2893_v52 = vrot.slane %v2891_v4, 2 }
 0x493   : > { %3082 = vst.msk [vmem:[%s4291_s17 + $0x2] ss:$8 sm:$0x3] %vm4294_vm12, %v2864_v29  ;;  %v2910_v6 = vsel %vm321_vm0, %v2908_v2, %v2909_v3 }
 0x494   : > { %v2912_v7 = vmax.f32 %v2904_v39, %v2910_v6  ;;  %v2894_v24 = vsel %vm321_vm0, %v2892_v5, %v2893_v52 }
 0x495   : > { %v2896_v8 = vmax.f32 %v2888_v42, %v2894_v24  ;;  %v2923_v26 = vpop.permute.xlu0 %2922 }
 0x496   : > { %3085 = vst.msk [vmem:[%s4291_s17 + $0x5] ss:$8 sm:$0x3] %vm4294_vm12, %v2912_v7  ;;  %v2924_v9 = vrot.slane %v2923_v26, 1  ;;  %v2925_v27 = vrot.slane %v2923_v26, 2 }
 0x497   : > { %3084 = vst.msk [vmem:[%s4291_s17 + $0x4] ss:$8 sm:$0x3] %vm4294_vm12, %v2896_v8 }
 0x498   : > { %v2926_v23 = vsel %vm321_vm0, %v2924_v9, %v2925_v27 }
 0x499   : > { %v2928_v28 = vmax.f32 %v2920_v45, %v2926_v23 }
 0x49b   : > { %3086 = vst.msk [vmem:[%s4291_s17 + $0x6] ss:$8 sm:$0x3] %vm4294_vm12, %v2928_v28 }
 0x49c PF: > { %s18_s18 = sadd.s32 1, %s3803_s18  }
 0x49d   : > { %p15_p6 = scmp.ge.s32.totalorder %s18_s18, 4  }
 0x49f   :  { %17 = sbr.rel (!%p15_p6) target bundleno = 3 (0x3), region = 154 }
 0x4a6   :  { %2953 = vsyncpa [#allocation6], 1 }
 0x4a7   :  { %2955 = vsyncpa [#allocation6 + $0x1], 1 }
 0x4a8   :  { %2956 = vsyncpa [#allocation8], 1 }
 0x4a9   :  { %2957 = vsyncpa [#allocation11], 1 }

</bundles_post_ra>
